<compile_context>
chip_gen: v7x
topology: tpu7x:2x2x1
jax: 0.10.0
libtpu: 0.0.40
codegen_flags: <defaults>
</compile_context>

<pallas_src>
import functools

import jax
import jax.numpy as jnp
from jax.experimental import pallas as pl
from jax.experimental.pallas import tpu as pltpu


# ----------------------------- Pallas kernels ---------------------------------

def _mm_bias_act_kernel(x_ref, w_ref, b_ref, o_ref, acc_ref, *, slope):
    """Tiled o = leaky_relu(x @ w + b); slope=None -> no activation.

    Grid (M/tm, N/tn, K/tk); K is the innermost reduction axis; acc_ref is the
    f32 VMEM accumulator that lives across the K loop.
    """
    @pl.when(pl.program_id(2) == 0)
    def _():
        acc_ref[...] = jnp.zeros_like(acc_ref)

    acc_ref[...] += jnp.dot(x_ref[...], w_ref[...],
                            preferred_element_type=jnp.float32)

    @pl.when(pl.program_id(2) == pl.num_programs(2) - 1)
    def _():
        acc = acc_ref[...] + b_ref[...]          # (tm, tn) + (1, tn)
        if slope is not None:
            acc = jnp.where(acc >= 0.0, acc, slope * acc)
        o_ref[...] = acc.astype(o_ref.dtype)


def _pick_tile(dim, pref):
    """Largest tile <= pref dividing dim (dims exceeding pref are powers of two here)."""
    if dim <= pref:
        return dim
    t = pref
    while t > 1 and dim % t != 0:
        t //= 2
    return t if dim % t == 0 else dim


def matmul_bias_act(x, w, b, slope, tm=256, tn=256, tk=512):
    """x: (M, K) bf16, w: (K, N) bf16, b: (1, N) f32 -> (M, N) f32."""
    M, K = x.shape
    _, N = w.shape
    tm = _pick_tile(M, tm)
    tn = _pick_tile(N, tn)
    tk = _pick_tile(K, tk)
    grid = (M // tm, N // tn, K // tk)
    return pl.pallas_call(
        functools.partial(_mm_bias_act_kernel, slope=slope),
        out_shape=jax.ShapeDtypeStruct((M, N), jnp.float32),
        grid_spec=pltpu.PrefetchScalarGridSpec(
            num_scalar_prefetch=0,
            grid=grid,
            in_specs=[
                pl.BlockSpec((tm, tk), lambda i, j, k: (i, k)),
                pl.BlockSpec((tk, tn), lambda i, j, k: (k, j)),
                pl.BlockSpec((1, tn), lambda i, j, k: (0, j)),
            ],
            out_specs=pl.BlockSpec((tm, tn), lambda i, j, k: (i, j)),
            scratch_shapes=[pltpu.VMEM((tm, tn), jnp.float32)],
        ),
        compiler_params=pltpu.CompilerParams(
            dimension_semantics=("parallel", "parallel", "arbitrary")),
    )(x, w, b)


def _self_attn_kernel(x_ref, wqk_ref, bqk_ref, wv_ref, bv_ref, gamma_ref, o_ref, *, cq):
    """One batch element of SAGAN self-attention, token-major (N, C) layout.

    x: (1, N, C) f32; wqk: (C, 2*Cq) bf16; bqk: (1, 2*Cq) f32;
    wv: (C, C) bf16; bv: (1, C) f32; gamma: (1, 1) f32.
    """
    xb = x_ref[0]                                   # (N, C) f32
    xb_bf = xb.astype(jnp.bfloat16)

    # Fused q/k 1x1 projections -> (N, 2*Cq); v -> (N, C).
    qk = jnp.dot(xb_bf, wqk_ref[...],
                 preferred_element_type=jnp.float32) + bqk_ref[...]
    q = qk[:, :cq].astype(jnp.bfloat16)             # (N, Cq)
    k = qk[:, cq:].astype(jnp.bfloat16)             # (N, Cq)
    v = (jnp.dot(xb_bf, wv_ref[...],
                 preferred_element_type=jnp.float32) + bv_ref[...]).astype(jnp.bfloat16)

    # energy[i, j] = sum_c q[i, c] * k[j, c]   (== torch.bmm(proj_query, proj_key))
    energy = jax.lax.dot_general(q, k, (((1,), (1,)), ((), ())),
                                 preferred_element_type=jnp.float32)   # (N, N)
    m = jnp.max(energy, axis=-1, keepdims=True)
    e = jnp.exp(energy - m)                                            # stable softmax
    attn = e * pl.reciprocal(jnp.sum(e, axis=-1, keepdims=True), approx=True)

    # out[i, c] = sum_j attn[i, j] * v[j, c]   (== torch.bmm(proj_value, attention^T))
    out = jnp.dot(attn.astype(jnp.bfloat16), v,
                  preferred_element_type=jnp.float32)                  # (N, C)

    o_ref[0] = (gamma_ref[...] * out + xb).astype(o_ref.dtype)


def self_attn(x_tok, wqk_t, bqk, wv_t, bv, gamma):
    """x_tok: (B, N, C) f32 -> gamma * attention(x) + x, shape (B, N, C)."""
    B, N, C = x_tok.shape
    cq2 = wqk_t.shape[1]
    return pl.pallas_call(
        functools.partial(_self_attn_kernel, cq=cq2 // 2),
        out_shape=jax.ShapeDtypeStruct((B, N, C), jnp.float32),
        grid=(B,),
        in_specs=[
            pl.BlockSpec((1, N, C), lambda b: (b, 0, 0)),
            pl.BlockSpec((C, cq2), lambda b: (0, 0)),
            pl.BlockSpec((1, cq2), lambda b: (0, 0)),
            pl.BlockSpec((C, C), lambda b: (0, 0)),
            pl.BlockSpec((1, C), lambda b: (0, 0)),
            pl.BlockSpec((1, 1), lambda b: (0, 0)),
        ],
        out_specs=pl.BlockSpec((1, N, C), lambda b: (b, 0, 0)),
        compiler_params=pltpu.CompilerParams(dimension_semantics=("parallel",)),
    )(x_tok, wqk_t, bqk, wv_t, bv, gamma)


# ----------------------------- JAX glue ---------------------------------------

def _im2col_nhwc(x, kh, kw, stride, pad):
    """x: (B, H, W, C) -> patches (B*Ho*Wo, kh*kw*C), row order (b, ho, wo)."""
    B, H, W, C = x.shape
    if pad > 0:
        x = jnp.pad(x, ((0, 0), (pad, pad), (pad, pad), (0, 0)))
    Ho = (H + 2 * pad - kh) // stride + 1
    Wo = (W + 2 * pad - kw) // stride + 1
    cols = []
    for i in range(kh):
        for j in range(kw):
            cols.append(x[:, i:i + stride * Ho:stride, j:j + stride * Wo:stride, :])
    p = jnp.stack(cols, axis=3)                       # (B, Ho, Wo, kh*kw, C)
    p = p.reshape(B * Ho * Wo, kh * kw * C)
    return p, Ho, Wo


def conv2d(x, w, b, stride, pad, slope):
    """NHWC conv via im2col + tiled Pallas matmul.

    x: (B, H, W, Cin) f32, w: (Cout, Cin, kh, kw) f32, b: (Cout,) or None.
    Returns (B, Ho, Wo, Cout) f32.
    """
    B = x.shape[0]
    Cout, Cin, kh, kw = w.shape
    patches, Ho, Wo = _im2col_nhwc(x, kh, kw, stride, pad)
    # Patch column order is (kh, kw, Cin) -> weight must match.
    w_mat = jnp.transpose(w, (2, 3, 1, 0)).reshape(kh * kw * Cin, Cout)
    if b is None:
        b = jnp.zeros((Cout,), jnp.float32)
    y = matmul_bias_act(patches.astype(jnp.bfloat16),
                        w_mat.astype(jnp.bfloat16),
                        b.reshape(1, Cout).astype(jnp.float32),
                        slope)
    return y.reshape(B, Ho, Wo, Cout)


def _l2normalize(v, eps=1e-12):
    return v / (jnp.sqrt(jnp.sum(v * v)) + eps)


def spectral_norm(w, u):
    """One power iteration on w.view(Cout, -1), returns w / sigma (SAGAN SpectralNorm)."""
    w_mat = w.reshape(w.shape[0], -1)
    v = _l2normalize(w_mat.T @ u)
    u_new = _l2normalize(w_mat @ v)
    sigma = jnp.dot(u_new, w_mat @ v)
    return w / sigma


# ----------------------------- Discriminator ----------------------------------

def init_params(key, conv_dim=64, c_dim=5):
    ks = jax.random.split(key, 24)

    def w_init(k, shape, scale=0.05):
        return (scale * jax.random.normal(k, shape, jnp.float32)).astype(jnp.float32)

    d = conv_dim
    p = {}
    # l1: Conv(3->64, k4 s2 p1) + Conv(64->128, k4 s2 p1), both spectral-normed
    p["w1"], p["b1"] = w_init(ks[0], (d, 3, 4, 4)), w_init(ks[1], (d,), 0.01)
    p["u1"] = jax.random.normal(ks[2], (d,), jnp.float32)
    p["w2"], p["b2"] = w_init(ks[3], (2 * d, d, 4, 4)), w_init(ks[4], (2 * d,), 0.01)
    p["u2"] = jax.random.normal(ks[5], (2 * d,), jnp.float32)
    # attn1: Self_Attn(128)
    C = 2 * d
    p["wq"], p["bq"] = w_init(ks[6], (C // 8, C)), w_init(ks[7], (C // 8,), 0.01)
    p["wk"], p["bk"] = w_init(ks[8], (C // 8, C)), w_init(ks[9], (C // 8,), 0.01)
    p["wv"], p["bv"] = w_init(ks[10], (C, C)), w_init(ks[11], (C,), 0.01)
    p["gamma"] = jnp.zeros((1, 1), jnp.float32)          # nn.Parameter(torch.zeros(1))
    # l2: Conv(128->256, k4 s2 p1), l3: Conv(256->512, k4 s2 p1)
    p["w3"], p["b3"] = w_init(ks[12], (4 * d, 2 * d, 4, 4)), w_init(ks[13], (4 * d,), 0.01)
    p["u3"] = jax.random.normal(ks[14], (4 * d,), jnp.float32)
    p["w4"], p["b4"] = w_init(ks[15], (8 * d, 4 * d, 4, 4)), w_init(ks[16], (8 * d,), 0.01)
    p["u4"] = jax.random.normal(ks[17], (8 * d,), jnp.float32)
    # heads: Conv(512->1, k4, no bias), Conv(512->c_dim, k4, no bias)
    p["w_src"] = w_init(ks[18], (1, 8 * d, 4, 4))
    p["w_cls"] = w_init(ks[19], (c_dim, 8 * d, 4, 4))
    return p


def _forward_arrays(x_nchw, p):
    # Single layout change at the boundary; NHWC from here on.
    h = jnp.transpose(x_nchw, (0, 2, 3, 1))                              # (B, H, W, 3)
    # l1
    h = conv2d(h, spectral_norm(p["w1"], p["u1"]), p["b1"], 2, 1, 0.1)   # (B, 32, 32, 64)
    h = conv2d(h, spectral_norm(p["w2"], p["u2"]), p["b2"], 2, 1, 0.1)   # (B, 16, 16, 128)
    # attn1 (token-major (N, C); fused q/k weights)
    B, H, W, C = h.shape
    wqk_t = jnp.concatenate([p["wq"].T, p["wk"].T], axis=1).astype(jnp.bfloat16)  # (C, 2Cq)
    bqk = jnp.concatenate([p["bq"], p["bk"]]).reshape(1, -1).astype(jnp.float32)
    wv_t = p["wv"].T.astype(jnp.bfloat16)                                # (C, C)
    bv = p["bv"].reshape(1, -1).astype(jnp.float32)
    h = self_attn(h.reshape(B, H * W, C), wqk_t, bqk, wv_t, bv, p["gamma"])
    h = h.reshape(B, H, W, C)
    # l2, l3
    h = conv2d(h, spectral_norm(p["w3"], p["u3"]), p["b3"], 2, 1, 0.1)   # (B, 8, 8, 256)
    h = conv2d(h, spectral_norm(p["w4"], p["u4"]), p["b4"], 2, 1, 0.1)   # (B, 4, 4, 512)
    # Fused heads: one matmul over the shared patch matrix (no bias, no activation).
    w_heads = jnp.concatenate([p["w_src"], p["w_cls"]], axis=0)          # (1+c_dim, 512, 4, 4)
    y = conv2d(h, w_heads, None, 1, 0, None)                             # (B, 1, 1, 1+c_dim)
    out_src = y[:, :, :, 0:1]                                            # (B, 1, 1, 1)
    out_cls = y[:, 0, 0, 1:]                                             # (B, c_dim)
    return out_src, out_cls


_forward_jit = jax.jit(_forward_arrays)


def discriminator_forward(x, p):
    # Strings are not JAX types -> attach them outside jit (matches the module's return).
    out_src, out_cls = _forward_jit(x, p)
    return out_src, out_cls, "p1", "p2"


# ----------------------------- main --------------------------------------------

if __name__ == "__main__":
    key = jax.random.PRNGKey(0)
    pkey, xkey = jax.random.split(key)
    params = init_params(pkey)

    # image_size must be 64 so the 4x4 heads see a 4x4 feature map (as in the module).
    x = jax.random.normal(xkey, (2, 3, 64, 64), jnp.float32)

    out_src, out_cls, p1, p2 = discriminator_forward(x, params)
    jax.block_until_ready((out_src, out_cls))

    assert out_src.shape == (2, 1, 1, 1), out_src.shape
    assert out_cls.shape == (2, 5), out_cls.shape
    assert (p1, p2) == ("p1", "p2")
    assert bool(jnp.all(jnp.isfinite(out_src))) and bool(jnp.all(jnp.isfinite(out_cls)))
    print("KERNEL_OK")
</pallas_src>

<mosaic_0001>
module attributes {stable_mosaic.version = 11 : i64} {
  func.func @_mm_bias_act_kernel(%arg0: i32, %arg1: i32, %arg2: i32, %arg3: memref<256x48xbf16, #tpu.memory_space<vmem>>, %arg4: memref<48x64xbf16, #tpu.memory_space<vmem>>, %arg5: memref<1x64xf32, #tpu.memory_space<vmem>>, %arg6: memref<256x64xf32, #tpu.memory_space<vmem>>, %arg7: memref<256x64xf32, #tpu.memory_space<vmem>>) attributes {dimension_semantics = [#tpu.dimension_semantics<parallel>, #tpu.dimension_semantics<parallel>, #tpu.dimension_semantics<arbitrary>], iteration_bounds = array<i64: 8, 1, 1>, scalar_prefetch = 0 : i64, scratch_operands = 1 : i64, tpu.core_type = #tpu.core_type<tc>, window_params = [{transform_indices = @transform_0, window_bounds = array<i64: 256, 48>}, {transform_indices = @transform_1, window_bounds = array<i64: 48, 64>}, {transform_indices = @transform_2, window_bounds = array<i64: 1, 64>}, {transform_indices = @transform_3, window_bounds = array<i64: 256, 64>}]} {
    %c0_i32 = arith.constant 0 : i32
    %0 = arith.cmpi eq, %arg2, %c0_i32 : i32
    %1 = arith.extui %0 : i1 to i32
    %c0_i32_0 = arith.constant 0 : i32
    %2 = arith.cmpi ne, %1, %c0_i32_0 : i32
    scf.if %2 {
      %cst_10 = arith.constant 0.000000e+00 : f32
      %12 = vector.broadcast %cst_10 : f32 to vector<256x64xf32>
      %c0_11 = arith.constant 0 : index
      %c0_12 = arith.constant 0 : index
      %13 = vector.load %arg7[%c0_11, %c0_12] : memref<256x64xf32, #tpu.memory_space<vmem>>, vector<256x64xf32>
      tpu.vector_store %arg7[%c0_11, %c0_12], %12 {strides = array<i32>} : memref<256x64xf32, #tpu.memory_space<vmem>>, vector<256x64xf32>,
    } else {
    }
    %c0 = arith.constant 0 : index
    %c0_1 = arith.constant 0 : index
    %3 = vector.load %arg7[%c0, %c0_1] : memref<256x64xf32, #tpu.memory_space<vmem>>, vector<256x64xf32>
    %c0_2 = arith.constant 0 : index
    %c0_3 = arith.constant 0 : index
    %4 = vector.load %arg3[%c0_2, %c0_3] : memref<256x48xbf16, #tpu.memory_space<vmem>>, vector<256x48xbf16>
    %c0_4 = arith.constant 0 : index
    %c0_5 = arith.constant 0 : index
    %5 = vector.load %arg4[%c0_4, %c0_5] : memref<48x64xbf16, #tpu.memory_space<vmem>>, vector<48x64xbf16>
    %cst = arith.constant dense<0.000000e+00> : vector<256x64xf32>
    %6 = tpu.matmul %4, %5, %cst {dimension_numbers = #tpu.dot_dimension_numbers<[1], [0], [0], [1], [0, 0, 1, 1], [], []>} : vector<256x48xbf16>, vector<48x64xbf16>, vector<256x64xf32> -> vector<256x64xf32>
    %7 = arith.addf %3, %6 : vector<256x64xf32>
    %c0_6 = arith.constant 0 : index
    %c0_7 = arith.constant 0 : index
    %8 = vector.load %arg7[%c0_6, %c0_7] : memref<256x64xf32, #tpu.memory_space<vmem>>, vector<256x64xf32>
    tpu.vector_store %arg7[%c0_6, %c0_7], %7 {strides = array<i32>} : memref<256x64xf32, #tpu.memory_space<vmem>>, vector<256x64xf32>,
    %c0_i32_8 = arith.constant 0 : i32
    %9 = arith.cmpi eq, %arg2, %c0_i32_8 : i32
    %10 = arith.extui %9 : i1 to i32
    %c0_i32_9 = arith.constant 0 : i32
    %11 = arith.cmpi ne, %10, %c0_i32_9 : i32
    scf.if %11 {
      %c0_10 = arith.constant 0 : index
      %c0_11 = arith.constant 0 : index
      %12 = vector.load %arg7[%c0_10, %c0_11] : memref<256x64xf32, #tpu.memory_space<vmem>>, vector<256x64xf32>
      %c0_12 = arith.constant 0 : index
      %c0_13 = arith.constant 0 : index
      %13 = vector.load %arg5[%c0_12, %c0_13] : memref<1x64xf32, #tpu.memory_space<vmem>>, vector<1x64xf32>
      %14 = vector.broadcast %13 : vector<1x64xf32> to vector<256x64xf32>
      %15 = arith.addf %12, %14 : vector<256x64xf32>
      %cst_14 = arith.constant 0.000000e+00 : f32
      %16 = vector.broadcast %cst_14 : f32 to vector<256x64xf32>
      %17 = arith.cmpf oge, %15, %16 : vector<256x64xf32>
      %cst_15 = arith.constant 1.000000e-01 : f32
      %18 = vector.broadcast %cst_15 : f32 to vector<256x64xf32>
      %19 = arith.mulf %18, %15 : vector<256x64xf32>
      %20 = arith.select %17, %15, %19 : vector<256x64xi1>, vector<256x64xf32>
      %c0_16 = arith.constant 0 : index
      %c0_17 = arith.constant 0 : index
      %21 = vector.load %arg6[%c0_16, %c0_17] : memref<256x64xf32, #tpu.memory_space<vmem>>, vector<256x64xf32>
      tpu.vector_store %arg6[%c0_16, %c0_17], %20 {strides = array<i32>} : memref<256x64xf32, #tpu.memory_space<vmem>>, vector<256x64xf32>,
    } else {
    }
    return
  }
  func.func @transform_0(%arg0: i32, %arg1: i32, %arg2: i32) -> (i32, i32) {
    %c0_i32 = arith.constant 0 : i32
    return %arg0, %arg2 : i32, i32
  }
  func.func @transform_1(%arg0: i32, %arg1: i32, %arg2: i32) -> (i32, i32) {
    %c0_i32 = arith.constant 0 : i32
    return %arg2, %arg1 : i32, i32
  }
  func.func @transform_2(%arg0: i32, %arg1: i32, %arg2: i32) -> (i32, i32) {
    %c0_i32 = arith.constant 0 : i32
    %c0_i32_0 = arith.constant 0 : i32
    return %c0_i32, %arg1 : i32, i32
  }
  func.func @transform_3(%arg0: i32, %arg1: i32, %arg2: i32) -> (i32, i32) {
    %c0_i32 = arith.constant 0 : i32
    return %arg0, %arg1 : i32, i32
  }
}

module attributes {stable_mosaic.version = 11 : i64} {
  func.func @_mm_bias_act_kernel(%arg0: i32, %arg1: i32, %arg2: i32, %arg3: memref<256x512xbf16, #tpu.memory_space<vmem>>, %arg4: memref<512x128xbf16, #tpu.memory_space<vmem>>, %arg5: memref<1x128xf32, #tpu.memory_space<vmem>>, %arg6: memref<256x128xf32, #tpu.memory_space<vmem>>, %arg7: memref<256x128xf32, #tpu.memory_space<vmem>>) attributes {dimension_semantics = [#tpu.dimension_semantics<parallel>, #tpu.dimension_semantics<parallel>, #tpu.dimension_semantics<arbitrary>], iteration_bounds = array<i64: 2, 1, 2>, scalar_prefetch = 0 : i64, scratch_operands = 1 : i64, tpu.core_type = #tpu.core_type<tc>, window_params = [{transform_indices = @transform_0, window_bounds = array<i64: 256, 512>}, {transform_indices = @transform_1, window_bounds = array<i64: 512, 128>}, {transform_indices = @transform_2, window_bounds = array<i64: 1, 128>}, {transform_indices = @transform_3, window_bounds = array<i64: 256, 128>}]} {
    %c0_i32 = arith.constant 0 : i32
    %0 = arith.cmpi eq, %arg2, %c0_i32 : i32
    %1 = arith.extui %0 : i1 to i32
    %c0_i32_0 = arith.constant 0 : i32
    %2 = arith.cmpi ne, %1, %c0_i32_0 : i32
    scf.if %2 {
      %cst_9 = arith.constant 0.000000e+00 : f32
      %12 = vector.broadcast %cst_9 : f32 to vector<256x128xf32>
      %c0_10 = arith.constant 0 : index
      %c0_11 = arith.constant 0 : index
      %13 = vector.load %arg7[%c0_10, %c0_11] : memref<256x128xf32, #tpu.memory_space<vmem>>, vector<256x128xf32>
      tpu.vector_store %arg7[%c0_10, %c0_11], %12 {strides = array<i32>} : memref<256x128xf32, #tpu.memory_space<vmem>>, vector<256x128xf32>,
    } else {
    }
    %c0 = arith.constant 0 : index
    %c0_1 = arith.constant 0 : index
    %3 = vector.load %arg7[%c0, %c0_1] : memref<256x128xf32, #tpu.memory_space<vmem>>, vector<256x128xf32>
    %c0_2 = arith.constant 0 : index
    %c0_3 = arith.constant 0 : index
    %4 = vector.load %arg3[%c0_2, %c0_3] : memref<256x512xbf16, #tpu.memory_space<vmem>>, vector<256x512xbf16>
    %c0_4 = arith.constant 0 : index
    %c0_5 = arith.constant 0 : index
    %5 = vector.load %arg4[%c0_4, %c0_5] : memref<512x128xbf16, #tpu.memory_space<vmem>>, vector<512x128xbf16>
    %cst = arith.constant dense<0.000000e+00> : vector<256x128xf32>
    %6 = tpu.matmul %4, %5, %cst {dimension_numbers = #tpu.dot_dimension_numbers<[1], [0], [0], [1], [0, 0, 1, 1], [], []>} : vector<256x512xbf16>, vector<512x128xbf16>, vector<256x128xf32> -> vector<256x128xf32>
    %7 = arith.addf %3, %6 : vector<256x128xf32>
    %c0_6 = arith.constant 0 : index
    %c0_7 = arith.constant 0 : index
    %8 = vector.load %arg7[%c0_6, %c0_7] : memref<256x128xf32, #tpu.memory_space<vmem>>, vector<256x128xf32>
    tpu.vector_store %arg7[%c0_6, %c0_7], %7 {strides = array<i32>} : memref<256x128xf32, #tpu.memory_space<vmem>>, vector<256x128xf32>,
    %c1_i32 = arith.constant 1 : i32
    %9 = arith.cmpi eq, %arg2, %c1_i32 : i32
    %10 = arith.extui %9 : i1 to i32
    %c0_i32_8 = arith.constant 0 : i32
    %11 = arith.cmpi ne, %10, %c0_i32_8 : i32
    scf.if %11 {
      %c0_9 = arith.constant 0 : index
      %c0_10 = arith.constant 0 : index
      %12 = vector.load %arg7[%c0_9, %c0_10] : memref<256x128xf32, #tpu.memory_space<vmem>>, vector<256x128xf32>
      %c0_11 = arith.constant 0 : index
      %c0_12 = arith.constant 0 : index
      %13 = vector.load %arg5[%c0_11, %c0_12] : memref<1x128xf32, #tpu.memory_space<vmem>>, vector<1x128xf32>
      %14 = vector.broadcast %13 : vector<1x128xf32> to vector<256x128xf32>
      %15 = arith.addf %12, %14 : vector<256x128xf32>
      %cst_13 = arith.constant 0.000000e+00 : f32
      %16 = vector.broadcast %cst_13 : f32 to vector<256x128xf32>
      %17 = arith.cmpf oge, %15, %16 : vector<256x128xf32>
      %cst_14 = arith.constant 1.000000e-01 : f32
      %18 = vector.broadcast %cst_14 : f32 to vector<256x128xf32>
      %19 = arith.mulf %18, %15 : vector<256x128xf32>
      %20 = arith.select %17, %15, %19 : vector<256x128xi1>, vector<256x128xf32>
      %c0_15 = arith.constant 0 : index
      %c0_16 = arith.constant 0 : index
      %21 = vector.load %arg6[%c0_15, %c0_16] : memref<256x128xf32, #tpu.memory_space<vmem>>, vector<256x128xf32>
      tpu.vector_store %arg6[%c0_15, %c0_16], %20 {strides = array<i32>} : memref<256x128xf32, #tpu.memory_space<vmem>>, vector<256x128xf32>,
    } else {
    }
    return
  }
  func.func @transform_0(%arg0: i32, %arg1: i32, %arg2: i32) -> (i32, i32) {
    %c0_i32 = arith.constant 0 : i32
    return %arg0, %arg2 : i32, i32
  }
  func.func @transform_1(%arg0: i32, %arg1: i32, %arg2: i32) -> (i32, i32) {
    %c0_i32 = arith.constant 0 : i32
    return %arg2, %arg1 : i32, i32
  }
  func.func @transform_2(%arg0: i32, %arg1: i32, %arg2: i32) -> (i32, i32) {
    %c0_i32 = arith.constant 0 : i32
    %c0_i32_0 = arith.constant 0 : i32
    return %c0_i32, %arg1 : i32, i32
  }
  func.func @transform_3(%arg0: i32, %arg1: i32, %arg2: i32) -> (i32, i32) {
    %c0_i32 = arith.constant 0 : i32
    return %arg0, %arg1 : i32, i32
  }
}

module attributes {stable_mosaic.version = 11 : i64} {
  func.func @_self_attn_kernel(%arg0: i32, %arg1: memref<1x256x128xf32, #tpu.memory_space<vmem>>, %arg2: memref<128x32xbf16, #tpu.memory_space<vmem>>, %arg3: memref<1x32xf32, #tpu.memory_space<vmem>>, %arg4: memref<128x128xbf16, #tpu.memory_space<vmem>>, %arg5: memref<1x128xf32, #tpu.memory_space<vmem>>, %arg6: memref<1x1xf32, #tpu.memory_space<vmem>>, %arg7: memref<1x256x128xf32, #tpu.memory_space<vmem>>) attributes {dimension_semantics = [#tpu.dimension_semantics<parallel>], iteration_bounds = array<i64: 2>, scalar_prefetch = 0 : i64, scratch_operands = 0 : i64, tpu.core_type = #tpu.core_type<tc>, window_params = [{transform_indices = @transform_0, window_bounds = array<i64: 1, 256, 128>}, {pipeline_mode = #tpu.pipeline_mode<synchronous>, transform_indices = @transform_1, window_bounds = array<i64: 128, 32>}, {pipeline_mode = #tpu.pipeline_mode<synchronous>, transform_indices = @transform_2, window_bounds = array<i64: 1, 32>}, {pipeline_mode = #tpu.pipeline_mode<synchronous>, transform_indices = @transform_3, window_bounds = array<i64: 128, 128>}, {pipeline_mode = #tpu.pipeline_mode<synchronous>, transform_indices = @transform_4, window_bounds = array<i64: 1, 128>}, {pipeline_mode = #tpu.pipeline_mode<synchronous>, transform_indices = @transform_5, window_bounds = array<i64: 1, 1>}, {transform_indices = @transform_6, window_bounds = array<i64: 1, 256, 128>}]} {
    %c0 = arith.constant 0 : index
    %c0_0 = arith.constant 0 : index
    %c0_1 = arith.constant 0 : index
    %0 = vector.load %arg1[%c0, %c0_0, %c0_1] : memref<1x256x128xf32, #tpu.memory_space<vmem>>, vector<1x256x128xf32>
    %1 = vector.shape_cast %0 : vector<1x256x128xf32> to vector<256x128xf32>
    %2 = arith.truncf %1 : vector<256x128xf32> to vector<256x128xbf16>
    %c0_2 = arith.constant 0 : index
    %c0_3 = arith.constant 0 : index
    %3 = vector.load %arg2[%c0_2, %c0_3] : memref<128x32xbf16, #tpu.memory_space<vmem>>, vector<128x32xbf16>
    %cst = arith.constant dense<0.000000e+00> : vector<256x32xf32>
    %4 = tpu.matmul %2, %3, %cst {dimension_numbers = #tpu.dot_dimension_numbers<[1], [0], [0], [1], [0, 0, 1, 1], [], []>} : vector<256x128xbf16>, vector<128x32xbf16>, vector<256x32xf32> -> vector<256x32xf32>
    %c0_4 = arith.constant 0 : index
    %c0_5 = arith.constant 0 : index
    %5 = vector.load %arg3[%c0_4, %c0_5] : memref<1x32xf32, #tpu.memory_space<vmem>>, vector<1x32xf32>
    %6 = vector.broadcast %5 : vector<1x32xf32> to vector<256x32xf32>
    %7 = arith.addf %4, %6 : vector<256x32xf32>
    %8 = vector.extract_strided_slice %7 {offsets = [0, 0], sizes = [256, 16], strides = [1, 1]} : vector<256x32xf32> to vector<256x16xf32>
    %9 = arith.truncf %8 : vector<256x16xf32> to vector<256x16xbf16>
    %10 = vector.extract_strided_slice %7 {offsets = [0, 16], sizes = [256, 16], strides = [1, 1]} : vector<256x32xf32> to vector<256x16xf32>
    %11 = arith.truncf %10 : vector<256x16xf32> to vector<256x16xbf16>
    %c0_6 = arith.constant 0 : index
    %c0_7 = arith.constant 0 : index
    %12 = vector.load %arg4[%c0_6, %c0_7] : memref<128x128xbf16, #tpu.memory_space<vmem>>, vector<128x128xbf16>
    %cst_8 = arith.constant dense<0.000000e+00> : vector<256x128xf32>
    %13 = tpu.matmul %2, %12, %cst_8 {dimension_numbers = #tpu.dot_dimension_numbers<[1], [0], [0], [1], [0, 0, 1, 1], [], []>} : vector<256x128xbf16>, vector<128x128xbf16>, vector<256x128xf32> -> vector<256x128xf32>
    %c0_9 = arith.constant 0 : index
    %c0_10 = arith.constant 0 : index
    %14 = vector.load %arg5[%c0_9, %c0_10] : memref<1x128xf32, #tpu.memory_space<vmem>>, vector<1x128xf32>
    %15 = vector.broadcast %14 : vector<1x128xf32> to vector<256x128xf32>
    %16 = arith.addf %13, %15 : vector<256x128xf32>
    %17 = arith.truncf %16 : vector<256x128xf32> to vector<256x128xbf16>
    %cst_11 = arith.constant dense<0.000000e+00> : vector<256x256xf32>
    %18 = tpu.matmul %9, %11, %cst_11 {dimension_numbers = #tpu.dot_dimension_numbers<[1], [1], [0], [0], [0, 0, 1, 0], [], []>} : vector<256x16xbf16>, vector<256x16xbf16>, vector<256x256xf32> -> vector<256x256xf32>
    %cst_12 = arith.constant dense<0xFF800000> : vector<256xf32>
    %19 = vector.multi_reduction <maximumf>, %18, %cst_12 [1] : vector<256x256xf32> to vector<256xf32>
    %20 = vector.shape_cast %19 : vector<256xf32> to vector<256x1xf32>
    %21 = vector.broadcast %20 : vector<256x1xf32> to vector<256x256xf32>
    %22 = arith.subf %18, %21 : vector<256x256xf32>
    %23 = math.exp %22 : vector<256x256xf32>
    %cst_13 = arith.constant dense<0.000000e+00> : vector<256xf32>
    %24 = vector.multi_reduction <add>, %23, %cst_13 [1] : vector<256x256xf32> to vector<256xf32>
    %25 = vector.shape_cast %24 : vector<256xf32> to vector<256x1xf32>
    %26 = tpu.reciprocal %25 {approx = true} : vector<256x1xf32> -> vector<256x1xf32>
    %27 = vector.broadcast %26 : vector<256x1xf32> to vector<256x256xf32>
    %28 = arith.mulf %23, %27 : vector<256x256xf32>
    %29 = arith.truncf %28 : vector<256x256xf32> to vector<256x256xbf16>
    %cst_14 = arith.constant dense<0.000000e+00> : vector<256x128xf32>
    %30 = tpu.matmul %29, %17, %cst_14 {dimension_numbers = #tpu.dot_dimension_numbers<[1], [0], [0], [1], [0, 0, 1, 1], [], []>} : vector<256x256xbf16>, vector<256x128xbf16>, vector<256x128xf32> -> vector<256x128xf32>
    %c0_15 = arith.constant 0 : index
    %c0_16 = arith.constant 0 : index
    %31 = vector.load %arg6[%c0_15, %c0_16] : memref<1x1xf32, #tpu.memory_space<vmem>>, vector<1x1xf32>
    %32 = vector.broadcast %31 : vector<1x1xf32> to vector<256x128xf32>
    %33 = arith.mulf %32, %30 : vector<256x128xf32>
    %34 = arith.addf %33, %1 : vector<256x128xf32>
    %c0_17 = arith.constant 0 : index
    %c0_18 = arith.constant 0 : index
    %c0_19 = arith.constant 0 : index
    %35 = vector.load %arg7[%c0_17, %c0_18, %c0_19] : memref<1x256x128xf32, #tpu.memory_space<vmem>>, vector<1x256x128xf32>
    %36 = vector.shape_cast %35 : vector<1x256x128xf32> to vector<256x128xf32>
    %37 = vector.shape_cast %34 : vector<256x128xf32> to vector<1x256x128xf32>
    tpu.vector_store %arg7[%c0_17, %c0_18, %c0_19], %37 {strides = array<i32>} : memref<1x256x128xf32, #tpu.memory_space<vmem>>, vector<1x256x128xf32>,
    return
  }
  func.func @transform_0(%arg0: i32) -> (i32, i32, i32) {
    %c0_i32 = arith.constant 0 : i32
    %c0_i32_0 = arith.constant 0 : i32
    %c0_i32_1 = arith.constant 0 : i32
    return %arg0, %c0_i32, %c0_i32_0 : i32, i32, i32
  }
  func.func @transform_1(%arg0: i32) -> (i32, i32) {
    %c0_i32 = arith.constant 0 : i32
    %c0_i32_0 = arith.constant 0 : i32
    %c0_i32_1 = arith.constant 0 : i32
    return %c0_i32, %c0_i32_0 : i32, i32
  }
  func.func @transform_2(%arg0: i32) -> (i32, i32) {
    %c0_i32 = arith.constant 0 : i32
    %c0_i32_0 = arith.constant 0 : i32
    %c0_i32_1 = arith.constant 0 : i32
    return %c0_i32, %c0_i32_0 : i32, i32
  }
  func.func @transform_3(%arg0: i32) -> (i32, i32) {
    %c0_i32 = arith.constant 0 : i32
    %c0_i32_0 = arith.constant 0 : i32
    %c0_i32_1 = arith.constant 0 : i32
    return %c0_i32, %c0_i32_0 : i32, i32
  }
  func.func @transform_4(%arg0: i32) -> (i32, i32) {
    %c0_i32 = arith.constant 0 : i32
    %c0_i32_0 = arith.constant 0 : i32
    %c0_i32_1 = arith.constant 0 : i32
    return %c0_i32, %c0_i32_0 : i32, i32
  }
  func.func @transform_5(%arg0: i32) -> (i32, i32) {
    %c0_i32 = arith.constant 0 : i32
    %c0_i32_0 = arith.constant 0 : i32
    %c0_i32_1 = arith.constant 0 : i32
    return %c0_i32, %c0_i32_0 : i32, i32
  }
  func.func @transform_6(%arg0: i32) -> (i32, i32, i32) {
    %c0_i32 = arith.constant 0 : i32
    %c0_i32_0 = arith.constant 0 : i32
    %c0_i32_1 = arith.constant 0 : i32
    return %arg0, %c0_i32, %c0_i32_0 : i32, i32, i32
  }
}

module attributes {stable_mosaic.version = 11 : i64} {
  func.func @_mm_bias_act_kernel(%arg0: i32, %arg1: i32, %arg2: i32, %arg3: memref<128x512xbf16, #tpu.memory_space<vmem>>, %arg4: memref<512x256xbf16, #tpu.memory_space<vmem>>, %arg5: memref<1x256xf32, #tpu.memory_space<vmem>>, %arg6: memref<128x256xf32, #tpu.memory_space<vmem>>, %arg7: memref<128x256xf32, #tpu.memory_space<vmem>>) attributes {dimension_semantics = [#tpu.dimension_semantics<parallel>, #tpu.dimension_semantics<parallel>, #tpu.dimension_semantics<arbitrary>], iteration_bounds = array<i64: 1, 1, 4>, scalar_prefetch = 0 : i64, scratch_operands = 1 : i64, tpu.core_type = #tpu.core_type<tc>, window_params = [{transform_indices = @transform_0, window_bounds = array<i64: 128, 512>}, {transform_indices = @transform_1, window_bounds = array<i64: 512, 256>}, {transform_indices = @transform_2, window_bounds = array<i64: 1, 256>}, {transform_indices = @transform_3, window_bounds = array<i64: 128, 256>}]} {
    %c0_i32 = arith.constant 0 : i32
    %0 = arith.cmpi eq, %arg2, %c0_i32 : i32
    %1 = arith.extui %0 : i1 to i32
    %c0_i32_0 = arith.constant 0 : i32
    %2 = arith.cmpi ne, %1, %c0_i32_0 : i32
    scf.if %2 {
      %cst_9 = arith.constant 0.000000e+00 : f32
      %12 = vector.broadcast %cst_9 : f32 to vector<128x256xf32>
      %c0_10 = arith.constant 0 : index
      %c0_11 = arith.constant 0 : index
      %13 = vector.load %arg7[%c0_10, %c0_11] : memref<128x256xf32, #tpu.memory_space<vmem>>, vector<128x256xf32>
      tpu.vector_store %arg7[%c0_10, %c0_11], %12 {strides = array<i32>} : memref<128x256xf32, #tpu.memory_space<vmem>>, vector<128x256xf32>,
    } else {
    }
    %c0 = arith.constant 0 : index
    %c0_1 = arith.constant 0 : index
    %3 = vector.load %arg7[%c0, %c0_1] : memref<128x256xf32, #tpu.memory_space<vmem>>, vector<128x256xf32>
    %c0_2 = arith.constant 0 : index
    %c0_3 = arith.constant 0 : index
    %4 = vector.load %arg3[%c0_2, %c0_3] : memref<128x512xbf16, #tpu.memory_space<vmem>>, vector<128x512xbf16>
    %c0_4 = arith.constant 0 : index
    %c0_5 = arith.constant 0 : index
    %5 = vector.load %arg4[%c0_4, %c0_5] : memref<512x256xbf16, #tpu.memory_space<vmem>>, vector<512x256xbf16>
    %cst = arith.constant dense<0.000000e+00> : vector<128x256xf32>
    %6 = tpu.matmul %4, %5, %cst {dimension_numbers = #tpu.dot_dimension_numbers<[1], [0], [0], [1], [0, 0, 1, 1], [], []>} : vector<128x512xbf16>, vector<512x256xbf16>, vector<128x256xf32> -> vector<128x256xf32>
    %7 = arith.addf %3, %6 : vector<128x256xf32>
    %c0_6 = arith.constant 0 : index
    %c0_7 = arith.constant 0 : index
    %8 = vector.load %arg7[%c0_6, %c0_7] : memref<128x256xf32, #tpu.memory_space<vmem>>, vector<128x256xf32>
    tpu.vector_store %arg7[%c0_6, %c0_7], %7 {strides = array<i32>} : memref<128x256xf32, #tpu.memory_space<vmem>>, vector<128x256xf32>,
    %c3_i32 = arith.constant 3 : i32
    %9 = arith.cmpi eq, %arg2, %c3_i32 : i32
    %10 = arith.extui %9 : i1 to i32
    %c0_i32_8 = arith.constant 0 : i32
    %11 = arith.cmpi ne, %10, %c0_i32_8 : i32
    scf.if %11 {
      %c0_9 = arith.constant 0 : index
      %c0_10 = arith.constant 0 : index
      %12 = vector.load %arg7[%c0_9, %c0_10] : memref<128x256xf32, #tpu.memory_space<vmem>>, vector<128x256xf32>
      %c0_11 = arith.constant 0 : index
      %c0_12 = arith.constant 0 : index
      %13 = vector.load %arg5[%c0_11, %c0_12] : memref<1x256xf32, #tpu.memory_space<vmem>>, vector<1x256xf32>
      %14 = vector.broadcast %13 : vector<1x256xf32> to vector<128x256xf32>
      %15 = arith.addf %12, %14 : vector<128x256xf32>
      %cst_13 = arith.constant 0.000000e+00 : f32
      %16 = vector.broadcast %cst_13 : f32 to vector<128x256xf32>
      %17 = arith.cmpf oge, %15, %16 : vector<128x256xf32>
      %cst_14 = arith.constant 1.000000e-01 : f32
      %18 = vector.broadcast %cst_14 : f32 to vector<128x256xf32>
      %19 = arith.mulf %18, %15 : vector<128x256xf32>
      %20 = arith.select %17, %15, %19 : vector<128x256xi1>, vector<128x256xf32>
      %c0_15 = arith.constant 0 : index
      %c0_16 = arith.constant 0 : index
      %21 = vector.load %arg6[%c0_15, %c0_16] : memref<128x256xf32, #tpu.memory_space<vmem>>, vector<128x256xf32>
      tpu.vector_store %arg6[%c0_15, %c0_16], %20 {strides = array<i32>} : memref<128x256xf32, #tpu.memory_space<vmem>>, vector<128x256xf32>,
    } else {
    }
    return
  }
  func.func @transform_0(%arg0: i32, %arg1: i32, %arg2: i32) -> (i32, i32) {
    %c0_i32 = arith.constant 0 : i32
    return %arg0, %arg2 : i32, i32
  }
  func.func @transform_1(%arg0: i32, %arg1: i32, %arg2: i32) -> (i32, i32) {
    %c0_i32 = arith.constant 0 : i32
    return %arg2, %arg1 : i32, i32
  }
  func.func @transform_2(%arg0: i32, %arg1: i32, %arg2: i32) -> (i32, i32) {
    %c0_i32 = arith.constant 0 : i32
    %c0_i32_0 = arith.constant 0 : i32
    return %c0_i32, %arg1 : i32, i32
  }
  func.func @transform_3(%arg0: i32, %arg1: i32, %arg2: i32) -> (i32, i32) {
    %c0_i32 = arith.constant 0 : i32
    return %arg0, %arg1 : i32, i32
  }
}

module attributes {stable_mosaic.version = 11 : i64} {
  func.func @_mm_bias_act_kernel(%arg0: i32, %arg1: i32, %arg2: i32, %arg3: memref<32x512xbf16, #tpu.memory_space<vmem>>, %arg4: memref<512x256xbf16, #tpu.memory_space<vmem>>, %arg5: memref<1x256xf32, #tpu.memory_space<vmem>>, %arg6: memref<32x256xf32, #tpu.memory_space<vmem>>, %arg7: memref<32x256xf32, #tpu.memory_space<vmem>>) attributes {dimension_semantics = [#tpu.dimension_semantics<parallel>, #tpu.dimension_semantics<parallel>, #tpu.dimension_semantics<arbitrary>], iteration_bounds = array<i64: 1, 2, 8>, scalar_prefetch = 0 : i64, scratch_operands = 1 : i64, tpu.core_type = #tpu.core_type<tc>, window_params = [{transform_indices = @transform_0, window_bounds = array<i64: 32, 512>}, {transform_indices = @transform_1, window_bounds = array<i64: 512, 256>}, {transform_indices = @transform_2, window_bounds = array<i64: 1, 256>}, {transform_indices = @transform_3, window_bounds = array<i64: 32, 256>}]} {
    %c0_i32 = arith.constant 0 : i32
    %0 = arith.cmpi eq, %arg2, %c0_i32 : i32
    %1 = arith.extui %0 : i1 to i32
    %c0_i32_0 = arith.constant 0 : i32
    %2 = arith.cmpi ne, %1, %c0_i32_0 : i32
    scf.if %2 {
      %cst_9 = arith.constant 0.000000e+00 : f32
      %12 = vector.broadcast %cst_9 : f32 to vector<32x256xf32>
      %c0_10 = arith.constant 0 : index
      %c0_11 = arith.constant 0 : index
      %13 = vector.load %arg7[%c0_10, %c0_11] : memref<32x256xf32, #tpu.memory_space<vmem>>, vector<32x256xf32>
      tpu.vector_store %arg7[%c0_10, %c0_11], %12 {strides = array<i32>} : memref<32x256xf32, #tpu.memory_space<vmem>>, vector<32x256xf32>,
    } else {
    }
    %c0 = arith.constant 0 : index
    %c0_1 = arith.constant 0 : index
    %3 = vector.load %arg7[%c0, %c0_1] : memref<32x256xf32, #tpu.memory_space<vmem>>, vector<32x256xf32>
    %c0_2 = arith.constant 0 : index
    %c0_3 = arith.constant 0 : index
    %4 = vector.load %arg3[%c0_2, %c0_3] : memref<32x512xbf16, #tpu.memory_space<vmem>>, vector<32x512xbf16>
    %c0_4 = arith.constant 0 : index
    %c0_5 = arith.constant 0 : index
    %5 = vector.load %arg4[%c0_4, %c0_5] : memref<512x256xbf16, #tpu.memory_space<vmem>>, vector<512x256xbf16>
    %cst = arith.constant dense<0.000000e+00> : vector<32x256xf32>
    %6 = tpu.matmul %4, %5, %cst {dimension_numbers = #tpu.dot_dimension_numbers<[1], [0], [0], [1], [0, 0, 1, 1], [], []>} : vector<32x512xbf16>, vector<512x256xbf16>, vector<32x256xf32> -> vector<32x256xf32>
    %7 = arith.addf %3, %6 : vector<32x256xf32>
    %c0_6 = arith.constant 0 : index
    %c0_7 = arith.constant 0 : index
    %8 = vector.load %arg7[%c0_6, %c0_7] : memref<32x256xf32, #tpu.memory_space<vmem>>, vector<32x256xf32>
    tpu.vector_store %arg7[%c0_6, %c0_7], %7 {strides = array<i32>} : memref<32x256xf32, #tpu.memory_space<vmem>>, vector<32x256xf32>,
    %c7_i32 = arith.constant 7 : i32
    %9 = arith.cmpi eq, %arg2, %c7_i32 : i32
    %10 = arith.extui %9 : i1 to i32
    %c0_i32_8 = arith.constant 0 : i32
    %11 = arith.cmpi ne, %10, %c0_i32_8 : i32
    scf.if %11 {
      %c0_9 = arith.constant 0 : index
      %c0_10 = arith.constant 0 : index
      %12 = vector.load %arg7[%c0_9, %c0_10] : memref<32x256xf32, #tpu.memory_space<vmem>>, vector<32x256xf32>
      %c0_11 = arith.constant 0 : index
      %c0_12 = arith.constant 0 : index
      %13 = vector.load %arg5[%c0_11, %c0_12] : memref<1x256xf32, #tpu.memory_space<vmem>>, vector<1x256xf32>
      %14 = vector.broadcast %13 : vector<1x256xf32> to vector<32x256xf32>
      %15 = arith.addf %12, %14 : vector<32x256xf32>
      %cst_13 = arith.constant 0.000000e+00 : f32
      %16 = vector.broadcast %cst_13 : f32 to vector<32x256xf32>
      %17 = arith.cmpf oge, %15, %16 : vector<32x256xf32>
      %cst_14 = arith.constant 1.000000e-01 : f32
      %18 = vector.broadcast %cst_14 : f32 to vector<32x256xf32>
      %19 = arith.mulf %18, %15 : vector<32x256xf32>
      %20 = arith.select %17, %15, %19 : vector<32x256xi1>, vector<32x256xf32>
      %c0_15 = arith.constant 0 : index
      %c0_16 = arith.constant 0 : index
      %21 = vector.load %arg6[%c0_15, %c0_16] : memref<32x256xf32, #tpu.memory_space<vmem>>, vector<32x256xf32>
      tpu.vector_store %arg6[%c0_15, %c0_16], %20 {strides = array<i32>} : memref<32x256xf32, #tpu.memory_space<vmem>>, vector<32x256xf32>,
    } else {
    }
    return
  }
  func.func @transform_0(%arg0: i32, %arg1: i32, %arg2: i32) -> (i32, i32) {
    %c0_i32 = arith.constant 0 : i32
    return %arg0, %arg2 : i32, i32
  }
  func.func @transform_1(%arg0: i32, %arg1: i32, %arg2: i32) -> (i32, i32) {
    %c0_i32 = arith.constant 0 : i32
    return %arg2, %arg1 : i32, i32
  }
  func.func @transform_2(%arg0: i32, %arg1: i32, %arg2: i32) -> (i32, i32) {
    %c0_i32 = arith.constant 0 : i32
    %c0_i32_0 = arith.constant 0 : i32
    return %c0_i32, %arg1 : i32, i32
  }
  func.func @transform_3(%arg0: i32, %arg1: i32, %arg2: i32) -> (i32, i32) {
    %c0_i32 = arith.constant 0 : i32
    return %arg0, %arg1 : i32, i32
  }
}

module attributes {stable_mosaic.version = 11 : i64} {
  func.func @_mm_bias_act_kernel(%arg0: i32, %arg1: i32, %arg2: i32, %arg3: memref<2x512xbf16, #tpu.memory_space<vmem>>, %arg4: memref<512x6xbf16, #tpu.memory_space<vmem>>, %arg5: memref<1x6xf32, #tpu.memory_space<vmem>>, %arg6: memref<2x6xf32, #tpu.memory_space<vmem>>, %arg7: memref<2x6xf32, #tpu.memory_space<vmem>>) attributes {dimension_semantics = [#tpu.dimension_semantics<parallel>, #tpu.dimension_semantics<parallel>, #tpu.dimension_semantics<arbitrary>], iteration_bounds = array<i64: 1, 1, 16>, scalar_prefetch = 0 : i64, scratch_operands = 1 : i64, tpu.core_type = #tpu.core_type<tc>, window_params = [{transform_indices = @transform_0, window_bounds = array<i64: 2, 512>}, {transform_indices = @transform_1, window_bounds = array<i64: 512, 6>}, {transform_indices = @transform_2, window_bounds = array<i64: 1, 6>}, {transform_indices = @transform_3, window_bounds = array<i64: 2, 6>}]} {
    %c0_i32 = arith.constant 0 : i32
    %0 = arith.cmpi eq, %arg2, %c0_i32 : i32
    %1 = arith.extui %0 : i1 to i32
    %c0_i32_0 = arith.constant 0 : i32
    %2 = arith.cmpi ne, %1, %c0_i32_0 : i32
    scf.if %2 {
      %cst_9 = arith.constant 0.000000e+00 : f32
      %12 = vector.broadcast %cst_9 : f32 to vector<2x6xf32>
      %c0_10 = arith.constant 0 : index
      %c0_11 = arith.constant 0 : index
      %13 = vector.load %arg7[%c0_10, %c0_11] : memref<2x6xf32, #tpu.memory_space<vmem>>, vector<2x6xf32>
      tpu.vector_store %arg7[%c0_10, %c0_11], %12 {strides = array<i32>} : memref<2x6xf32, #tpu.memory_space<vmem>>, vector<2x6xf32>,
    } else {
    }
    %c0 = arith.constant 0 : index
    %c0_1 = arith.constant 0 : index
    %3 = vector.load %arg7[%c0, %c0_1] : memref<2x6xf32, #tpu.memory_space<vmem>>, vector<2x6xf32>
    %c0_2 = arith.constant 0 : index
    %c0_3 = arith.constant 0 : index
    %4 = vector.load %arg3[%c0_2, %c0_3] : memref<2x512xbf16, #tpu.memory_space<vmem>>, vector<2x512xbf16>
    %c0_4 = arith.constant 0 : index
    %c0_5 = arith.constant 0 : index
    %5 = vector.load %arg4[%c0_4, %c0_5] : memref<512x6xbf16, #tpu.memory_space<vmem>>, vector<512x6xbf16>
    %cst = arith.constant dense<0.000000e+00> : vector<2x6xf32>
    %6 = tpu.matmul %4, %5, %cst {dimension_numbers = #tpu.dot_dimension_numbers<[1], [0], [0], [1], [0, 0, 1, 1], [], []>} : vector<2x512xbf16>, vector<512x6xbf16>, vector<2x6xf32> -> vector<2x6xf32>
    %7 = arith.addf %3, %6 : vector<2x6xf32>
    %c0_6 = arith.constant 0 : index
    %c0_7 = arith.constant 0 : index
    %8 = vector.load %arg7[%c0_6, %c0_7] : memref<2x6xf32, #tpu.memory_space<vmem>>, vector<2x6xf32>
    tpu.vector_store %arg7[%c0_6, %c0_7], %7 {strides = array<i32>} : memref<2x6xf32, #tpu.memory_space<vmem>>, vector<2x6xf32>,
    %c15_i32 = arith.constant 15 : i32
    %9 = arith.cmpi eq, %arg2, %c15_i32 : i32
    %10 = arith.extui %9 : i1 to i32
    %c0_i32_8 = arith.constant 0 : i32
    %11 = arith.cmpi ne, %10, %c0_i32_8 : i32
    scf.if %11 {
      %c0_9 = arith.constant 0 : index
      %c0_10 = arith.constant 0 : index
      %12 = vector.load %arg7[%c0_9, %c0_10] : memref<2x6xf32, #tpu.memory_space<vmem>>, vector<2x6xf32>
      %c0_11 = arith.constant 0 : index
      %c0_12 = arith.constant 0 : index
      %13 = vector.load %arg5[%c0_11, %c0_12] : memref<1x6xf32, #tpu.memory_space<vmem>>, vector<1x6xf32>
      %14 = vector.broadcast %13 : vector<1x6xf32> to vector<2x6xf32>
      %15 = arith.addf %12, %14 : vector<2x6xf32>
      %c0_13 = arith.constant 0 : index
      %c0_14 = arith.constant 0 : index
      %16 = vector.load %arg6[%c0_13, %c0_14] : memref<2x6xf32, #tpu.memory_space<vmem>>, vector<2x6xf32>
      tpu.vector_store %arg6[%c0_13, %c0_14], %15 {strides = array<i32>} : memref<2x6xf32, #tpu.memory_space<vmem>>, vector<2x6xf32>,
    } else {
    }
    return
  }
  func.func @transform_0(%arg0: i32, %arg1: i32, %arg2: i32) -> (i32, i32) {
    %c0_i32 = arith.constant 0 : i32
    return %arg0, %arg2 : i32, i32
  }
  func.func @transform_1(%arg0: i32, %arg1: i32, %arg2: i32) -> (i32, i32) {
    %c0_i32 = arith.constant 0 : i32
    return %arg2, %arg1 : i32, i32
  }
  func.func @transform_2(%arg0: i32, %arg1: i32, %arg2: i32) -> (i32, i32) {
    %c0_i32 = arith.constant 0 : i32
    %c0_i32_0 = arith.constant 0 : i32
    return %c0_i32, %arg1 : i32, i32
  }
  func.func @transform_3(%arg0: i32, %arg1: i32, %arg2: i32) -> (i32, i32) {
    %c0_i32 = arith.constant 0 : i32
    return %arg0, %arg1 : i32, i32
  }
}

</mosaic_0001>

<bundles_post_ra>
// kernel: _forward_arrays.6
= control target key start
LH: loop header
LB: loop body
LE: loop exit
PB: predicated region body
PF: predicated region fallthrough
CT: control target
= control target key end

     0   :  { %s1254_s12 = smov 0   ;;  %s1256_s13 = smov 0   ;;  %s1506_s0 = inlined_call_operand.vmem [shape: bf16[2048,48], index: 0, kind: input, shape index: {}]   ;;  %s1507_s1 = inlined_call_operand.vmem [shape: bf16[48,64], index: 1, kind: input, shape index: {}]   ;;  %s1508_s2 = inlined_call_operand.vmem [shape: f32[1,64], index: 2, kind: input, shape index: {}]   ;;  %s1509_s3 = inlined_call_operand.vmem [shape: f32[2048,64], index: 3, kind: output, shape index: {}]  }
   0x1   :  { %s1258_s14 = smov 0  }
   0x2 LB: > { %s32_s15 = sadd.s32 1, %s1227_s13  ;;  %p1059_p0 = scmp.ge.s32.totalorder %s1231_s14, 1  ;;  %s1231_s14 = sphi %s1258_s14, %s13_s14   ;;  %s1227_s13 = sphi %s1256_s13, %s1511_s13   ;;  %s1223_s12 = sphi %s1254_s12, %s1510_s12  }
   0x3   : > { %p34_p1 = scmp.ge.s32.totalorder %s32_s15, 8  ;;  %p188_p2 = scmp.lt.s32.totalorder %s1231_s14, 9 }
   0x5   : > { %s1513_s15 = smov (%p34_p1, %s32_s15), 0  ;;  %p189_p3 = pnand %p1059_p0, %p188_p2 }
   0x6   : > { %v1190_v0 = vld [vmem:[%s1507_s1] sm:$0xff] (!%p189_p3)   ;;  %s1060_s18 = sshll.u32 (!%p189_p3), %s1223_s12, 5  ;;  %v1191_v1 = vld [vmem:[%s1507_s1 + $0x8] sm:$0xff] (!%p189_p3)   ;;  %vm264_vm0 = vcmask (!%p189_p3), 523264   ;;  %v1192_v2 = vld [vmem:[%s1507_s1 + $0x10] sm:$0xff] (!%p189_p3)   ;;  %v1233_v3 = vmov (!%p189_p3), 0.0  }
   0x7   : > { %192 = sbr.rel (%p189_p3) target bundleno = 286 (0x11e), region = 32  ;;  %p230_p4 = scmp.lt.s32.totalorder (!%p189_p3), %s1060_s18, 255  ;;  %1121 = vmatprep.subr.bf16.mxu0 (!%p189_p3), %v1190_v0  ;;  %1159 = vmatprep.subr.bf16.mxu1 (!%p189_p3), %v1190_v0  ;;  %267 = vst.msk [vmem:[#allocation2 + $0x10] sm:$0xff] (!%p189_p3), %vm264_vm0, %v1233_v3  ;;  %265 = vst.msk [vmem:[#allocation2] sm:$0xff] (!%p189_p3), %vm264_vm0, %v1233_v3  ;;  %vm465_vm1 = vcmask (!%p189_p3), 392192  }
   0x8   : > { %1122 = vmatpush3.bf16.msra.mxu0 (!%p189_p3), %v1190_v0  ;;  %1162 = vmatpush3.bf16.msra.mxu1 (!%p189_p3), %v1190_v0  ;;  %266 = vst.msk [vmem:[#allocation2 + $0x8] sm:$0xff] (!%p189_p3), %vm264_vm0, %v1233_v3  ;;  %268 = vst.msk [vmem:[#allocation2 + $0x18] sm:$0xff] (!%p189_p3), %vm264_vm0, %v1233_v3  ;;  %v1364_v48 = vld [vmem:[%s1508_s2] ss:$0 sm:$0xff] (!%p189_p3) }
   0x9   : > { %1123 = vmatprep.subr.bf16.mxu0 (!%p189_p3), %v1191_v1  ;;  %1160 = vmatprep.subr.bf16.mxu1 (!%p189_p3), %v1191_v1  ;;  %269 = vst.msk [vmem:[#allocation2 + $0x20] sm:$0xff] (!%p189_p3), %vm264_vm0, %v1233_v3  ;;  %270 = vst.msk [vmem:[#allocation2 + $0x28] sm:$0xff] (!%p189_p3), %vm264_vm0, %v1233_v3 }
   0xa   : > { %271 = vst.msk [vmem:[#allocation2 + $0x30] sm:$0xff] (!%p189_p3), %vm264_vm0, %v1233_v3  ;;  %272 = vst.msk [vmem:[#allocation2 + $0x38] sm:$0xff] (!%p189_p3), %vm264_vm0, %v1233_v3 }
   0xb   : > { %273 = vst.msk [vmem:[#allocation2 + $0x40] sm:$0xff] (!%p189_p3), %vm264_vm0, %v1233_v3  ;;  %274 = vst.msk [vmem:[#allocation2 + $0x48] sm:$0xff] (!%p189_p3), %vm264_vm0, %v1233_v3 }
   0xc   : > { %275 = vst.msk [vmem:[#allocation2 + $0x50] sm:$0xff] (!%p189_p3), %vm264_vm0, %v1233_v3  ;;  %276 = vst.msk [vmem:[#allocation2 + $0x58] sm:$0xff] (!%p189_p3), %vm264_vm0, %v1233_v3  ;;  %1124 = vmatpush3.bf16.msra.mxu0 (!%p189_p3), %v1191_v1  ;;  %1163 = vmatpush3.bf16.msra.mxu1 (!%p189_p3), %v1191_v1 }
   0xd   : > { %277 = vst.msk [vmem:[#allocation2 + $0x60] sm:$0xff] (!%p189_p3), %vm264_vm0, %v1233_v3  ;;  %278 = vst.msk [vmem:[#allocation2 + $0x68] sm:$0xff] (!%p189_p3), %vm264_vm0, %v1233_v3  ;;  %1125 = vmatprep.subr.bf16.mxu0 (!%p189_p3), %v1192_v2  ;;  %1161 = vmatprep.subr.bf16.mxu1 (!%p189_p3), %v1192_v2 }
   0xe   : > { %s1515_s18 = smov (!%p230_p4, %s1060_s18), 255  ;;  %279 = vst.msk [vmem:[#allocation2 + $0x70] sm:$0xff] %vm264_vm0, %v1233_v3  ;;  %280 = vst.msk [vmem:[#allocation2 + $0x78] sm:$0xff] %vm264_vm0, %v1233_v3  ;;  %v299_v20 = vld [vmem:[#allocation2 + $0x10] sm:$0xff]  ;;  %v297_v22 = vld [vmem:[#allocation2] sm:$0xff] }
   0xf   : > { %281 = vst.msk [vmem:[#allocation2 + $0x80] sm:$0xff] %vm264_vm0, %v1233_v3  ;;  %282 = vst.msk [vmem:[#allocation2 + $0x88] sm:$0xff] %vm264_vm0, %v1233_v3  ;;  %s1061_s23 = sshll.u32 %s1515_s18, 2  ;;  %v300_v26 = vld [vmem:[#allocation2 + $0x18] sm:$0xff]  ;;  %v298_v32 = vld [vmem:[#allocation2 + $0x8] sm:$0xff]  ;;  %s1063_s29 = sshll.u32 %s1515_s18, 3 }
  0x10   : > { %283 = vst.msk [vmem:[#allocation2 + $0x90] sm:$0xff] %vm264_vm0, %v1233_v3  ;;  %284 = vst.msk [vmem:[#allocation2 + $0x98] sm:$0xff] %vm264_vm0, %v1233_v3  ;;  %s1319_s26 = scalar_lea.vmem %s1506_s0, %s1061_s23  ;;  %1126 = vmatpush3.bf16.msra.mxu0 %v1192_v2  ;;  %1164 = vmatpush3.bf16.msra.mxu1 %v1192_v2  ;;  %v301_v46 = vld [vmem:[#allocation2 + $0x20] sm:$0xff]  ;;  %v302_v57 = vld [vmem:[#allocation2 + $0x28] sm:$0xff]  ;;  %s1378_s5 = scalar_lea.vmem %s1509_s3, %s1063_s29 }
  0x11   : > { %285 = vst.msk [vmem:[#allocation2 + $0xa0] sm:$0xff] %vm264_vm0, %v1233_v3  ;;  %286 = vst.msk [vmem:[#allocation2 + $0xa8] sm:$0xff] %vm264_vm0, %v1233_v3  ;;  %v1193_v4 = vld [vmem:[%s1319_s26] sm:$0xff]   ;;  %v1195_v6 = vld [vmem:[%s1319_s26 + $0x8] sm:$0xff]  }
  0x12   : > { %287 = vst.msk [vmem:[#allocation2 + $0xb0] sm:$0xff] %vm264_vm0, %v1233_v3  ;;  %288 = vst.msk [vmem:[#allocation2 + $0xb8] sm:$0xff] %vm264_vm0, %v1233_v3  ;;  %v1194_v5 = vld [vmem:[%s1319_s26 + $0x40] sm:$0xff]   ;;  %1127 = vmatprep.mubr.msk.bf16.mxu0 %vm465_vm1, %v1193_v4  ;;  %v1196_v7 = vld [vmem:[%s1319_s26 + $0x48] sm:$0xff]  }
  0x13   : > { %289 = vst.msk [vmem:[#allocation2 + $0xc0] sm:$0xff] %vm264_vm0, %v1233_v3  ;;  %290 = vst.msk [vmem:[#allocation2 + $0xc8] sm:$0xff] %vm264_vm0, %v1233_v3  ;;  %1143 = vmatprep.mubr.msk.bf16.mxu1 %vm465_vm1, %v1194_v5  ;;  %v1197_v8 = vld [vmem:[%s1319_s26 + $0x10] sm:$0xff]   ;;  %1128 = vmatmul.mubr.msk.bf16.vlgmr.msra.gmra.mrb[0].mxu0 %vm465_vm1, %v1195_v6  ;;  %v1199_v10 = vld [vmem:[%s1319_s26 + $0x18] sm:$0xff]  }
  0x14   : > { %291 = vst.msk [vmem:[#allocation2 + $0xd0] sm:$0xff] %vm264_vm0, %v1233_v3  ;;  %292 = vst.msk [vmem:[#allocation2 + $0xd8] sm:$0xff] %vm264_vm0, %v1233_v3  ;;  %v1198_v9 = vld [vmem:[%s1319_s26 + $0x50] sm:$0xff]   ;;  %1144 = vmatmul.mubr.msk.bf16.vlgmr.msra.gmra.mrb[0].mxu1 %vm465_vm1, %v1196_v7  ;;  %1131 = vmatprep.mubr.msk.bf16.mxu0 %vm465_vm1, %v1197_v8  ;;  %v1200_v11 = vld [vmem:[%s1319_s26 + $0x58] sm:$0xff]  }
  0x15   : > { %293 = vst.msk [vmem:[#allocation2 + $0xe0] sm:$0xff] %vm264_vm0, %v1233_v3  ;;  %294 = vst.msk [vmem:[#allocation2 + $0xe8] sm:$0xff] %vm264_vm0, %v1233_v3  ;;  %1147 = vmatprep.mubr.msk.bf16.mxu1 %vm465_vm1, %v1198_v9  ;;  %v1201_v12 = vld [vmem:[%s1319_s26 + $0x20] sm:$0xff]   ;;  %v1203_v14 = vld [vmem:[%s1319_s26 + $0x28] sm:$0xff]  }
  0x16   : > { %295 = vst.msk [vmem:[#allocation2 + $0xf0] sm:$0xff] %vm264_vm0, %v1233_v3  ;;  %296 = vst.msk [vmem:[#allocation2 + $0xf8] sm:$0xff] %vm264_vm0, %v1233_v3  ;;  %v1202_v13 = vld [vmem:[%s1319_s26 + $0x60] sm:$0xff]   ;;  %v1204_v15 = vld [vmem:[%s1319_s26 + $0x68] sm:$0xff]  }
  0x17   : > { %v1205_v16 = vld [vmem:[%s1319_s26 + $0x30] sm:$0xff]   ;;  %v1207_v18 = vld [vmem:[%s1319_s26 + $0x38] sm:$0xff]   ;;  %v313_v23 = vld [vmem:[#allocation2 + $0x80] sm:$0xff] }
  0x18   : > { %v1206_v17 = vld [vmem:[%s1319_s26 + $0x70] sm:$0xff]   ;;  %v1208_v19 = vld [vmem:[%s1319_s26 + $0x78] sm:$0xff]   ;;  %v314_v33 = vld [vmem:[#allocation2 + $0x88] sm:$0xff] }
  0x19   : > { %v315_v21 = vld [vmem:[#allocation2 + $0x90] sm:$0xff]  ;;  %v316_v27 = vld [vmem:[#allocation2 + $0x98] sm:$0xff]  ;;  %v317_v47 = vld [vmem:[#allocation2 + $0xa0] sm:$0xff] }
  0x1a   : > { %v303_v44 = vld [vmem:[#allocation2 + $0x30] sm:$0xff]  ;;  %v304_v51 = vld [vmem:[#allocation2 + $0x38] sm:$0xff]  ;;  %v318_v58 = vld [vmem:[#allocation2 + $0xa8] sm:$0xff] }
  0x1b   : > { %1132 = vmatmul.mubr.msk.bf16.gmra.mrb[4].mxu0 %vm465_vm1, %v1199_v10  ;;  %v319_v45 = vld [vmem:[#allocation2 + $0xb0] sm:$0xff]  ;;  %v320_v52 = vld [vmem:[#allocation2 + $0xb8] sm:$0xff] }
  0x1c   : > { %1148 = vmatmul.mubr.msk.bf16.gmra.mrb[4].mxu1 %vm465_vm1, %v1200_v11  ;;  %1135 = vmatprep.mubr.msk.bf16.mxu0 %vm465_vm1, %v1201_v12 }
  0x1d   : > { %1151 = vmatprep.mubr.msk.bf16.mxu1 %vm465_vm1, %v1202_v13 }
  0x23   : > { %1136 = vmatmul.mubr.msk.bf16.gmra.mrb[8].mxu0 %vm465_vm1, %v1203_v14 }
  0x24   : > { %1152 = vmatmul.mubr.msk.bf16.gmra.mrb[8].mxu1 %vm465_vm1, %v1204_v15  ;;  %1139 = vmatprep.mubr.msk.bf16.mxu0 %vm465_vm1, %v1205_v16 }
  0x25   : > { %1155 = vmatprep.mubr.msk.bf16.mxu1 %vm465_vm1, %v1206_v17 }
  0x2b   : > { %1140 = vmatmul.mubr.msk.bf16.gmra.mrb[12].mxu0 %vm465_vm1, %v1207_v18 }
  0x2c   : > { %1156 = vmatmul.mubr.msk.bf16.gmra.mrb[12].mxu1 %vm465_vm1, %v1208_v19 }
  0xe6   : > { %v1129_v24 = vpop.f32.mrb[0].mxu0 }
  0xe7   : > { %v1145_v25 = vpop.f32.mrb[0].mxu1  ;;  %v677_v28 = vadd.f32 %v1129_v24, %v299_v20  ;;  %v548_v30 = vpop.f32.mrb[1].mxu0 }
  0xe8   : > { %v693_v29 = vadd.f32 %v1145_v25, %v315_v21  ;;  %v612_v31 = vpop.f32.mrb[1].mxu1  ;;  %v675_v34 = vadd.f32 %v548_v30, %v297_v22  ;;  %v1130_v36 = vpop.f32.mrb[2].mxu0 }
  0xe9   : > { %v691_v35 = vadd.f32 %v612_v31, %v313_v23  ;;  %v1146_v37 = vpop.f32.mrb[2].mxu1  ;;  %710 = vst.msk [vmem:[#allocation2 + $0x10] sm:$0xff] %vm264_vm0, %v677_v28  ;;  %v678_v38 = vadd.f32 %v1130_v36, %v300_v26  ;;  %v551_v40 = vpop.f32.mrb[3].mxu0  ;;  %v323_v31 = vld [vmem:[#allocation2 + $0xd0] sm:$0xff] }
  0xea   : > { %726 = vst.msk [vmem:[#allocation2 + $0x90] sm:$0xff] %vm264_vm0, %v693_v29  ;;  %v694_v39 = vadd.f32 %v1146_v37, %v316_v27  ;;  %v615_v41 = vpop.f32.mrb[3].mxu1  ;;  %708 = vst.msk [vmem:[#allocation2] sm:$0xff] %vm264_vm0, %v675_v34  ;;  %v676_v42 = vadd.f32 %v551_v40, %v298_v32  ;;  %v307_v29 = vld [vmem:[#allocation2 + $0x50] sm:$0xff] }
  0xeb   : > { %724 = vst.msk [vmem:[#allocation2 + $0x80] sm:$0xff] %vm264_vm0, %v691_v35  ;;  %v692_v43 = vadd.f32 %v615_v41, %v314_v33  ;;  %711 = vst.msk [vmem:[#allocation2 + $0x18] sm:$0xff] %vm264_vm0, %v678_v38 }
  0xec   : > { %727 = vst.msk [vmem:[#allocation2 + $0x98] sm:$0xff] %vm264_vm0, %v694_v39  ;;  %709 = vst.msk [vmem:[#allocation2 + $0x8] sm:$0xff] %vm264_vm0, %v676_v42 }
  0xed   : > { %725 = vst.msk [vmem:[#allocation2 + $0x88] sm:$0xff] %vm264_vm0, %v692_v43 }
  0xee   : > { %v1133_v49 = vpop.f32.mrb[4].mxu0 }
  0xef   : > { %v1149_v50 = vpop.f32.mrb[4].mxu1  ;;  %v681_v53 = vadd.f32 %v1133_v49, %v303_v44  ;;  %v564_v55 = vpop.f32.mrb[5].mxu0 }
  0xf0   : > { %v697_v54 = vadd.f32 %v1149_v50, %v319_v45  ;;  %v628_v56 = vpop.f32.mrb[5].mxu1  ;;  %v745_v59 = vld [vmem:[#allocation2 + $0x10] sm:$0xff]  ;;  %v679_v61 = vadd.f32 %v564_v55, %v301_v46  ;;  %v1134_v63 = vpop.f32.mrb[6].mxu0 }
  0xf1   : > { %v761_v60 = vld [vmem:[#allocation2 + $0x90] sm:$0xff]  ;;  %v695_v62 = vadd.f32 %v628_v56, %v317_v47  ;;  %v1150_v0 = vpop.f32.mrb[6].mxu1  ;;  %v784_v1 = vadd.f32 %v1364_v48, %v745_v59  ;;  %v743_v3 = vld [vmem:[#allocation2] sm:$0xff]  ;;  %714 = vst.msk [vmem:[#allocation2 + $0x30] sm:$0xff] %vm264_vm0, %v681_v53  ;;  %v682_v5 = vadd.f32 %v1134_v63, %v304_v51  ;;  %v567_v7 = vpop.f32.mrb[7].mxu0 }
  0xf2   : > { %v800_v2 = vadd.f32 %v1364_v48, %v761_v60  ;;  %v759_v4 = vld [vmem:[#allocation2 + $0x80] sm:$0xff]  ;;  %730 = vst.msk [vmem:[#allocation2 + $0xb0] sm:$0xff] %vm264_vm0, %v697_v54  ;;  %v698_v6 = vadd.f32 %v1150_v0, %v320_v52  ;;  %v631_v8 = vpop.f32.mrb[7].mxu1  ;;  %v782_v9 = vadd.f32 %v1364_v48, %v743_v3  ;;  %v746_v11 = vld [vmem:[#allocation2 + $0x18] sm:$0xff]  ;;  %712 = vst.msk [vmem:[#allocation2 + $0x20] sm:$0xff] %vm264_vm0, %v679_v61 }
  0xf3   : > { %v798_v10 = vadd.f32 %v1364_v48, %v759_v4  ;;  %v762_v12 = vld [vmem:[#allocation2 + $0x98] sm:$0xff]  ;;  %728 = vst.msk [vmem:[#allocation2 + $0xa0] sm:$0xff] %vm264_vm0, %v695_v62  ;;  %v680_v13 = vadd.f32 %v567_v7, %v302_v57  ;;  %v696_v14 = vadd.f32 %v631_v8, %v318_v58  ;;  %vm816_vm2 = vcmp.ge.f32.partialorder %v784_v1, 0.0  ;;  %715 = vst.msk [vmem:[#allocation2 + $0x38] sm:$0xff] %vm264_vm0, %v682_v5  ;;  %v744_v23 = vld [vmem:[#allocation2 + $0x8] sm:$0xff] }
  0xf4   : > { %v848_v15 = vmul.f32 0.1, %v784_v1  ;;  %vm832_vm3 = vcmp.ge.f32.partialorder %v800_v2, 0.0  ;;  %v864_v16 = vmul.f32 0.1, %v800_v2  ;;  %731 = vst.msk [vmem:[#allocation2 + $0xb8] sm:$0xff] %vm264_vm0, %v698_v6  ;;  %v785_v21 = vadd.f32 %v1364_v48, %v746_v11 }
  0xf5   : > { %vm814_vm4 = vcmp.ge.f32.partialorder %v782_v9, 0.0  ;;  %v846_v17 = vmul.f32 0.1, %v782_v9  ;;  %vm830_vm5 = vcmp.ge.f32.partialorder %v798_v10, 0.0  ;;  %v862_v18 = vmul.f32 0.1, %v798_v10 }
  0xf6   : > { %713 = vst.msk [vmem:[#allocation2 + $0x28] sm:$0xff] %vm264_vm0, %v680_v13  ;;  %729 = vst.msk [vmem:[#allocation2 + $0xa8] sm:$0xff] %vm264_vm0, %v696_v14  ;;  %v880_v19 = vsel %vm816_vm2, %v784_v1, %v848_v15  ;;  %v896_v20 = vsel %vm832_vm3, %v800_v2, %v864_v16  ;;  %v801_v22 = vadd.f32 %v1364_v48, %v762_v12  ;;  %v760_v24 = vld [vmem:[#allocation2 + $0x88] sm:$0xff]  ;;  %v1137_v30 = vpop.f32.mrb[8].mxu0  ;;  %vm817_vm6 = vcmp.ge.f32.partialorder %v785_v21, 0.0  ;;  %v305_v62 = vld [vmem:[#allocation2 + $0x40] sm:$0xff] }
  0xf7   : > { %912 = vst.msk [vmem:[%s1378_s5 + $0x10] sm:$0xff] %vm264_vm0, %v880_v19  ;;  %928 = vst.msk [vmem:[%s1378_s5 + $0x90] sm:$0xff] %vm264_vm0, %v896_v20  ;;  %v878_v25 = vsel %vm814_vm4, %v782_v9, %v846_v17  ;;  %v894_v26 = vsel %vm830_vm5, %v798_v10, %v862_v18  ;;  %v783_v27 = vadd.f32 %v1364_v48, %v744_v23  ;;  %v1153_v32 = vpop.f32.mrb[8].mxu1  ;;  %v849_v33 = vmul.f32 0.1, %v785_v21  ;;  %v580_v44 = vpop.f32.mrb[9].mxu0 }
  0xf8   : > { %v799_v28 = vadd.f32 %v1364_v48, %v760_v24  ;;  %910 = vst.msk [vmem:[%s1378_s5] sm:$0xff] %vm264_vm0, %v878_v25  ;;  %926 = vst.msk [vmem:[%s1378_s5 + $0x80] sm:$0xff] %vm264_vm0, %v894_v26  ;;  %vm833_vm7 = vcmp.ge.f32.partialorder %v801_v22, 0.0  ;;  %v865_v34 = vmul.f32 0.1, %v801_v22  ;;  %v749_v39 = vld [vmem:[#allocation2 + $0x30] sm:$0xff]  ;;  %v685_v42 = vadd.f32 %v1137_v30, %v307_v29 }
  0xf9   : > { %vm815_vm8 = vcmp.ge.f32.partialorder %v783_v27, 0.0  ;;  %v847_v35 = vmul.f32 0.1, %v783_v27  ;;  %v881_v37 = vsel %vm817_vm6, %v785_v21, %v849_v33  ;;  %v765_v40 = vld [vmem:[#allocation2 + $0xb0] sm:$0xff]  ;;  %v747_v41 = vld [vmem:[#allocation2 + $0x20] sm:$0xff]  ;;  %v701_v43 = vadd.f32 %v1153_v32, %v323_v31  ;;  %v1396_v45 = vpop.f32.mrb[9].mxu1 }
  0xfa   : > { %vm831_vm9 = vcmp.ge.f32.partialorder %v799_v28, 0.0  ;;  %v863_v36 = vmul.f32 0.1, %v799_v28  ;;  %v897_v38 = vsel %vm833_vm7, %v801_v22, %v865_v34  ;;  %913 = vst.msk [vmem:[%s1378_s5 + $0x18] sm:$0xff] %vm264_vm0, %v881_v37  ;;  %v788_v49 = vadd.f32 %v1364_v48, %v749_v39  ;;  %v763_v51 = vld [vmem:[#allocation2 + $0xa0] sm:$0xff]  ;;  %v750_v52 = vld [vmem:[#allocation2 + $0x38] sm:$0xff] }
  0xfb   : > { %929 = vst.msk [vmem:[%s1378_s5 + $0x98] sm:$0xff] %vm264_vm0, %v897_v38  ;;  %v879_v46 = vsel %vm815_vm8, %v783_v27, %v847_v35  ;;  %v804_v50 = vadd.f32 %v1364_v48, %v765_v40  ;;  %v766_v53 = vld [vmem:[#allocation2 + $0xb8] sm:$0xff]  ;;  %v1138_v54 = vpop.f32.mrb[10].mxu0  ;;  %v1154_v55 = vpop.f32.mrb[10].mxu1  ;;  %v786_v56 = vadd.f32 %v1364_v48, %v747_v41  ;;  %v802_v57 = vadd.f32 %v1364_v48, %v763_v51  ;;  %v321_v3 = vld [vmem:[#allocation2 + $0xc0] sm:$0xff]  ;;  %v306_v11 = vld [vmem:[#allocation2 + $0x48] sm:$0xff] }
  0xfc   : > { %v895_v47 = vsel %vm831_vm9, %v799_v28, %v863_v36  ;;  %911 = vst.msk [vmem:[%s1378_s5 + $0x8] sm:$0xff] %vm264_vm0, %v879_v46  ;;  %v789_v58 = vadd.f32 %v1364_v48, %v750_v52  ;;  %v805_v59 = vadd.f32 %v1364_v48, %v766_v53  ;;  %718 = vst.msk [vmem:[#allocation2 + $0x50] sm:$0xff] %vm264_vm0, %v685_v42  ;;  %v583_v63 = vpop.f32.mrb[11].mxu0  ;;  %v647_v0 = vpop.f32.mrb[11].mxu1  ;;  %vm820_vm10 = vcmp.ge.f32.partialorder %v788_v49, 0.0  ;;  %v308_v4 = vld [vmem:[#allocation2 + $0x58] sm:$0xff] }
  0xfd   : > { %927 = vst.msk [vmem:[%s1378_s5 + $0x88] sm:$0xff] %vm264_vm0, %v895_v47  ;;  %v748_v60 = vld [vmem:[#allocation2 + $0x28] sm:$0xff]  ;;  %734 = vst.msk [vmem:[#allocation2 + $0xd0] sm:$0xff] %vm264_vm0, %v701_v43  ;;  %v852_v1 = vmul.f32 0.1, %v788_v49  ;;  %vm836_vm11 = vcmp.ge.f32.partialorder %v804_v50, 0.0  ;;  %v683_v23 = vadd.f32 %v580_v44, %v305_v62  ;;  %v699_v30 = vadd.f32 %v1396_v45, %v321_v3 }
  0xfe   : > { %v764_v61 = vld [vmem:[#allocation2 + $0xa8] sm:$0xff]  ;;  %v868_v2 = vmul.f32 0.1, %v804_v50  ;;  %v324_v5 = vld [vmem:[#allocation2 + $0xd8] sm:$0xff]  ;;  %vm818_vm12 = vcmp.ge.f32.partialorder %v786_v56, 0.0  ;;  %vm834_vm13 = vcmp.ge.f32.partialorder %v802_v57, 0.0  ;;  %v787_v21 = vadd.f32 %v1364_v48, %v748_v60 }
  0xff   : > { %v850_v6 = vmul.f32 0.1, %v786_v56  ;;  %v866_v7 = vmul.f32 0.1, %v802_v57  ;;  %v884_v8 = vsel %vm820_vm10, %v788_v49, %v852_v1  ;;  %vm821_vm14 = vcmp.ge.f32.partialorder %v789_v58, 0.0  ;;  %v1141_v12 = vpop.f32.mrb[12].mxu0 }
 0x100   : > { %v900_v9 = vsel %vm836_vm11, %v804_v50, %v868_v2  ;;  %v853_v10 = vmul.f32 0.1, %v789_v58  ;;  %v1157_v13 = vpop.f32.mrb[12].mxu1  ;;  %916 = vst.msk [vmem:[%s1378_s5 + $0x30] sm:$0xff] %vm264_vm0, %v884_v8  ;;  %vm837_vm15 = vcmp.ge.f32.partialorder %v805_v59, 0.0  ;;  %v322_v17 = vld [vmem:[#allocation2 + $0xc8] sm:$0xff]  ;;  %v803_v22 = vadd.f32 %v1364_v48, %v764_v61 }
 0x101   : > { %932 = vst.msk [vmem:[%s1378_s5 + $0xb0] sm:$0xff] %vm264_vm0, %v900_v9  ;;  %v882_v14 = vsel %vm818_vm12, %v786_v56, %v850_v6  ;;  %v898_v15 = vsel %vm834_vm13, %v802_v57, %v866_v7  ;;  %v869_v16 = vmul.f32 0.1, %v805_v59  ;;  %v596_v18 = vpop.f32.mrb[13].mxu0  ;;  %v660_v19 = vpop.f32.mrb[13].mxu1  ;;  %v311_v24 = vld [vmem:[#allocation2 + $0x70] sm:$0xff]  ;;  %v686_v31 = vadd.f32 %v1138_v54, %v308_v4 }
 0x102   : > { %914 = vst.msk [vmem:[%s1378_s5 + $0x20] sm:$0xff] %vm264_vm0, %v882_v14  ;;  %930 = vst.msk [vmem:[%s1378_s5 + $0xa0] sm:$0xff] %vm264_vm0, %v898_v15  ;;  %v885_v20 = vsel %vm821_vm14, %v789_v58, %v853_v10  ;;  %v327_v25 = vld [vmem:[#allocation2 + $0xf0] sm:$0xff]  ;;  %v309_v26 = vld [vmem:[#allocation2 + $0x60] sm:$0xff]  ;;  %v1142_v27 = vpop.f32.mrb[14].mxu0  ;;  %v1158_v28 = vpop.f32.mrb[14].mxu1  ;;  %v702_v32 = vadd.f32 %v1154_v55, %v324_v5  ;;  %v684_v42 = vadd.f32 %v583_v63, %v306_v11 }
 0x103   : > { %917 = vst.msk [vmem:[%s1378_s5 + $0x38] sm:$0xff] %vm264_vm0, %v885_v20  ;;  %v901_v29 = vsel %vm837_vm15, %v805_v59, %v869_v16  ;;  %v325_v33 = vld [vmem:[#allocation2 + $0xe0] sm:$0xff]  ;;  %v312_v34 = vld [vmem:[#allocation2 + $0x78] sm:$0xff]  ;;  %v599_v36 = vpop.f32.mrb[15].mxu0  ;;  %v663_v37 = vpop.f32.mrb[15].mxu1  ;;  %vm819_vm1 = vcmp.ge.f32.partialorder %v787_v21, 0.0  ;;  %v700_v43 = vadd.f32 %v647_v0, %v322_v17  ;;  %v689_v44 = vadd.f32 %v1141_v12, %v311_v24 }
 0x104   : > { %v328_v35 = vld [vmem:[#allocation2 + $0xf8] sm:$0xff]  ;;  %933 = vst.msk [vmem:[%s1378_s5 + $0xb8] sm:$0xff] %vm264_vm0, %v901_v29  ;;  %v851_v38 = vmul.f32 0.1, %v787_v21  ;;  %vm835_vm2 = vcmp.ge.f32.partialorder %v803_v22, 0.0  ;;  %716 = vst.msk [vmem:[#allocation2 + $0x40] sm:$0xff] %vm264_vm0, %v683_v23  ;;  %v705_v45 = vadd.f32 %v1157_v13, %v327_v25  ;;  %v687_v53 = vadd.f32 %v596_v18, %v309_v26 }
 0x105   : > { %v867_v39 = vmul.f32 0.1, %v803_v22  ;;  %v753_v40 = vld [vmem:[#allocation2 + $0x50] sm:$0xff]  ;;  %732 = vst.msk [vmem:[#allocation2 + $0xc0] sm:$0xff] %vm264_vm0, %v699_v30  ;;  %719 = vst.msk [vmem:[#allocation2 + $0x58] sm:$0xff] %vm264_vm0, %v686_v31  ;;  %v310_v51 = vld [vmem:[#allocation2 + $0x68] sm:$0xff]  ;;  %v703_v54 = vadd.f32 %v660_v19, %v325_v33  ;;  %v690_v55 = vadd.f32 %v1142_v27, %v312_v34  ;;  %v706_v56 = vadd.f32 %v1158_v28, %v328_v35 }
 0x106   : > { %v769_v41 = vld [vmem:[#allocation2 + $0xd0] sm:$0xff]  ;;  %735 = vst.msk [vmem:[#allocation2 + $0xd8] sm:$0xff] %vm264_vm0, %v702_v32  ;;  %v883_v46 = vsel %vm819_vm1, %v787_v21, %v851_v38  ;;  %v792_v49 = vadd.f32 %v1364_v48, %v753_v40  ;;  %v326_v52 = vld [vmem:[#allocation2 + $0xe8] sm:$0xff]  ;;  %717 = vst.msk [vmem:[#allocation2 + $0x48] sm:$0xff] %vm264_vm0, %v684_v42  ;;  %v688_v59 = vadd.f32 %v599_v36, %v310_v51 }
 0x107   : > { %v899_v47 = vsel %vm835_vm2, %v803_v22, %v867_v39  ;;  %v808_v50 = vadd.f32 %v1364_v48, %v769_v41  ;;  %915 = vst.msk [vmem:[%s1378_s5 + $0x28] sm:$0xff] %vm264_vm0, %v883_v46  ;;  %733 = vst.msk [vmem:[#allocation2 + $0xc8] sm:$0xff] %vm264_vm0, %v700_v43  ;;  %v704_v60 = vadd.f32 %v663_v37, %v326_v52 }
 0x108   : > { %931 = vst.msk [vmem:[%s1378_s5 + $0xa8] sm:$0xff] %vm264_vm0, %v899_v47  ;;  %722 = vst.msk [vmem:[#allocation2 + $0x70] sm:$0xff] %vm264_vm0, %v689_v44  ;;  %vm824_vm3 = vcmp.ge.f32.partialorder %v792_v49, 0.0  ;;  %v856_v57 = vmul.f32 0.1, %v792_v49 }
 0x109   : > { %738 = vst.msk [vmem:[#allocation2 + $0xf0] sm:$0xff] %vm264_vm0, %v705_v45  ;;  %vm840_vm4 = vcmp.ge.f32.partialorder %v808_v50, 0.0  ;;  %v872_v58 = vmul.f32 0.1, %v808_v50  ;;  %720 = vst.msk [vmem:[#allocation2 + $0x60] sm:$0xff] %vm264_vm0, %v687_v53 }
 0x10a   : > { %736 = vst.msk [vmem:[#allocation2 + $0xe0] sm:$0xff] %vm264_vm0, %v703_v54  ;;  %723 = vst.msk [vmem:[#allocation2 + $0x78] sm:$0xff] %vm264_vm0, %v690_v55  ;;  %v888_v61 = vsel %vm824_vm3, %v792_v49, %v856_v57 }
 0x10b   : > { %739 = vst.msk [vmem:[#allocation2 + $0xf8] sm:$0xff] %vm264_vm0, %v706_v56  ;;  %v904_v62 = vsel %vm840_vm4, %v808_v50, %v872_v58  ;;  %920 = vst.msk [vmem:[%s1378_s5 + $0x50] sm:$0xff] %vm264_vm0, %v888_v61  ;;  %v751_v63 = vld [vmem:[#allocation2 + $0x40] sm:$0xff] }
 0x10c   : > { %936 = vst.msk [vmem:[%s1378_s5 + $0xd0] sm:$0xff] %vm264_vm0, %v904_v62  ;;  %721 = vst.msk [vmem:[#allocation2 + $0x68] sm:$0xff] %vm264_vm0, %v688_v59  ;;  %v790_v0 = vadd.f32 %v1364_v48, %v751_v63  ;;  %v767_v1 = vld [vmem:[#allocation2 + $0xc0] sm:$0xff]  ;;  %v754_v2 = vld [vmem:[#allocation2 + $0x58] sm:$0xff] }
 0x10d   : > { %737 = vst.msk [vmem:[#allocation2 + $0xe8] sm:$0xff] %vm264_vm0, %v704_v60  ;;  %v770_v3 = vld [vmem:[#allocation2 + $0xd8] sm:$0xff]  ;;  %v806_v4 = vadd.f32 %v1364_v48, %v767_v1  ;;  %v793_v5 = vadd.f32 %v1364_v48, %v754_v2  ;;  %v752_v8 = vld [vmem:[#allocation2 + $0x48] sm:$0xff] }
 0x10e   : > { %v809_v6 = vadd.f32 %v1364_v48, %v770_v3  ;;  %vm822_vm5 = vcmp.ge.f32.partialorder %v790_v0, 0.0  ;;  %v854_v7 = vmul.f32 0.1, %v790_v0  ;;  %v768_v9 = vld [vmem:[#allocation2 + $0xc8] sm:$0xff]  ;;  %v791_v15 = vadd.f32 %v1364_v48, %v752_v8 }
 0x10f   : > { %v757_v10 = vld [vmem:[#allocation2 + $0x70] sm:$0xff]  ;;  %vm838_vm6 = vcmp.ge.f32.partialorder %v806_v4, 0.0  ;;  %v870_v11 = vmul.f32 0.1, %v806_v4  ;;  %vm825_vm7 = vcmp.ge.f32.partialorder %v793_v5, 0.0  ;;  %v807_v19 = vadd.f32 %v1364_v48, %v768_v9 }
 0x110   : > { %v857_v12 = vmul.f32 0.1, %v793_v5  ;;  %v886_v13 = vsel %vm822_vm5, %v790_v0, %v854_v7  ;;  %vm841_vm8 = vcmp.ge.f32.partialorder %v809_v6, 0.0  ;;  %v873_v14 = vmul.f32 0.1, %v809_v6  ;;  %v773_v16 = vld [vmem:[#allocation2 + $0xf0] sm:$0xff] }
 0x111   : > { %918 = vst.msk [vmem:[%s1378_s5 + $0x40] sm:$0xff] %vm264_vm0, %v886_v13  ;;  %v902_v17 = vsel %vm838_vm6, %v806_v4, %v870_v11  ;;  %v796_v20 = vadd.f32 %v1364_v48, %v757_v10  ;;  %v755_v21 = vld [vmem:[#allocation2 + $0x60] sm:$0xff]  ;;  %vm823_vm9 = vcmp.ge.f32.partialorder %v791_v15, 0.0  ;;  %v855_v23 = vmul.f32 0.1, %v791_v15  ;;  %v758_v26 = vld [vmem:[#allocation2 + $0x78] sm:$0xff] }
 0x112   : > { %v889_v18 = vsel %vm825_vm7, %v793_v5, %v857_v12  ;;  %934 = vst.msk [vmem:[%s1378_s5 + $0xc0] sm:$0xff] %vm264_vm0, %v902_v17  ;;  %v905_v22 = vsel %vm841_vm8, %v809_v6, %v873_v14  ;;  %v812_v24 = vadd.f32 %v1364_v48, %v773_v16  ;;  %v771_v25 = vld [vmem:[#allocation2 + $0xe0] sm:$0xff]  ;;  %v774_v27 = vld [vmem:[#allocation2 + $0xf8] sm:$0xff]  ;;  %vm839_vm10 = vcmp.ge.f32.partialorder %v807_v19, 0.0 }
 0x113   : > { %921 = vst.msk [vmem:[%s1378_s5 + $0x58] sm:$0xff] %vm264_vm0, %v889_v18  ;;  %937 = vst.msk [vmem:[%s1378_s5 + $0xd8] sm:$0xff] %vm264_vm0, %v905_v22  ;;  %v871_v28 = vmul.f32 0.1, %v807_v19  ;;  %vm828_vm11 = vcmp.ge.f32.partialorder %v796_v20, 0.0  ;;  %v887_v30 = vsel %vm823_vm9, %v791_v15, %v855_v23  ;;  %v794_v32 = vadd.f32 %v1364_v48, %v755_v21  ;;  %v756_v37 = vld [vmem:[#allocation2 + $0x68] sm:$0xff] }
 0x114   : > { %v860_v29 = vmul.f32 0.1, %v796_v20  ;;  %vm844_vm12 = vcmp.ge.f32.partialorder %v812_v24, 0.0  ;;  %v876_v31 = vmul.f32 0.1, %v812_v24  ;;  %919 = vst.msk [vmem:[%s1378_s5 + $0x48] sm:$0xff] %vm264_vm0, %v887_v30  ;;  %v810_v35 = vadd.f32 %v1364_v48, %v771_v25 }
 0x115   : > { %v903_v33 = vsel %vm839_vm10, %v807_v19, %v871_v28  ;;  %v797_v36 = vadd.f32 %v1364_v48, %v758_v26  ;;  %vm826_vm13 = vcmp.ge.f32.partialorder %v794_v32, 0.0  ;;  %v858_v39 = vmul.f32 0.1, %v794_v32  ;;  %v772_v41 = vld [vmem:[#allocation2 + $0xe8] sm:$0xff] }
 0x116   : > { %v892_v34 = vsel %vm828_vm11, %v796_v20, %v860_v29  ;;  %935 = vst.msk [vmem:[%s1378_s5 + $0xc8] sm:$0xff] %vm264_vm0, %v903_v33  ;;  %v908_v38 = vsel %vm844_vm12, %v812_v24, %v876_v31  ;;  %v813_v40 = vadd.f32 %v1364_v48, %v774_v27  ;;  %vm842_vm14 = vcmp.ge.f32.partialorder %v810_v35, 0.0 }
 0x117   : > { %924 = vst.msk [vmem:[%s1378_s5 + $0x70] sm:$0xff] %vm264_vm0, %v892_v34  ;;  %940 = vst.msk [vmem:[%s1378_s5 + $0xf0] sm:$0xff] %vm264_vm0, %v908_v38  ;;  %v874_v42 = vmul.f32 0.1, %v810_v35  ;;  %vm829_vm15 = vcmp.ge.f32.partialorder %v797_v36, 0.0  ;;  %v890_v44 = vsel %vm826_vm13, %v794_v32, %v858_v39  ;;  %v795_v46 = vadd.f32 %v1364_v48, %v756_v37 }
 0x118   : > { %v861_v43 = vmul.f32 0.1, %v797_v36  ;;  %vm845_vm1 = vcmp.ge.f32.partialorder %v813_v40, 0.0  ;;  %v877_v45 = vmul.f32 0.1, %v813_v40  ;;  %922 = vst.msk [vmem:[%s1378_s5 + $0x60] sm:$0xff] %vm264_vm0, %v890_v44  ;;  %v811_v50 = vadd.f32 %v1364_v48, %v772_v41 }
 0x119   : > { %v906_v47 = vsel %vm842_vm14, %v810_v35, %v874_v42  ;;  %vm827_vm2 = vcmp.ge.f32.partialorder %v795_v46, 0.0  ;;  %v859_v52 = vmul.f32 0.1, %v795_v46 }
 0x11a   : > { %v893_v49 = vsel %vm829_vm15, %v797_v36, %v861_v43  ;;  %938 = vst.msk [vmem:[%s1378_s5 + $0xe0] sm:$0xff] %vm264_vm0, %v906_v47  ;;  %v909_v51 = vsel %vm845_vm1, %v813_v40, %v877_v45  ;;  %vm843_vm3 = vcmp.ge.f32.partialorder %v811_v50, 0.0  ;;  %v875_v53 = vmul.f32 0.1, %v811_v50 }
 0x11b   : > { %925 = vst.msk [vmem:[%s1378_s5 + $0x78] sm:$0xff] %vm264_vm0, %v893_v49  ;;  %941 = vst.msk [vmem:[%s1378_s5 + $0xf8] sm:$0xff] %vm264_vm0, %v909_v51  ;;  %v891_v54 = vsel %vm827_vm2, %v795_v46, %v859_v52 }
 0x11c   : > { %923 = vst.msk [vmem:[%s1378_s5 + $0x68] sm:$0xff] %vm264_vm0, %v891_v54  ;;  %v907_v55 = vsel %vm843_vm3, %v811_v50, %v875_v53 }
 0x11d   : > { %939 = vst.msk [vmem:[%s1378_s5 + $0xe8] sm:$0xff] %vm264_vm0, %v907_v55 }
 0x11e PF: > { %s13_s14 = sadd.s32 1, %s1231_s14   ;;  %s1510_s12 = smov %s1227_s13 }
 0x11f   : > { %p10_p5 = scmp.ge.s32.totalorder %s13_s14, 10   ;;  %s1511_s13 = smov %s1513_s15 }
 0x121   :  { %12 = sbr.rel (!%p10_p5) target bundleno = 2 (0x2), region = 76 }

// kernel: _forward_arrays.7
= control target key start
LH: loop header
LB: loop body
LE: loop exit
PB: predicated region body
PF: predicated region fallthrough
CT: control target
= control target key end

     0   :  { %s2418_s12 = smov 0   ;;  %s2420_s13 = smov 0   ;;  %s2815_s0 = inlined_call_operand.vmem [shape: bf16[512,1024], index: 0, kind: input, shape index: {}]   ;;  %s2816_s1 = inlined_call_operand.vmem [shape: bf16[1024,128], index: 1, kind: input, shape index: {}]   ;;  %s2817_s2 = inlined_call_operand.vmem [shape: f32[1,128], index: 2, kind: input, shape index: {}]   ;;  %s2818_s3 = inlined_call_operand.vmem [shape: f32[512,128], index: 3, kind: output, shape index: {}]  }
   0x1   :  { %s2422_s14 = smov 0   ;;  %s2424_s15 = smov 0  }
   0x2   :  { %s2426_s16 = smov 0   ;;  %s2428_s17 = smov 0  }
   0x3   :  { %s2430_s18 = smov 0  }
   0x4 LB: > { %s25_s19 = sadd.s32 1, %s2387_s16  ;;  %s32_s20 = sadd.s32 1, %s2391_s17  ;;  %s2395_s18 = sphi %s2430_s18, %s13_s18   ;;  %s2391_s17 = sphi %s2428_s17, %s2824_s17   ;;  %s2387_s16 = sphi %s2426_s16, %s2823_s16   ;;  %s2383_s15 = sphi %s2424_s15, %s2822_s15   ;;  %s2379_s14 = sphi %s2422_s14, %s2821_s14   ;;  %s2375_s13 = sphi %s2420_s13, %s2820_s13   ;;  %s2371_s12 = sphi %s2418_s12, %s2819_s12  }
   0x5   : > { %p26_p0 = scmp.ge.s32.totalorder %s25_s19, 2  ;;  %p48_p1 = scmp.ne.s32.totalorder %s2375_s13, %s2371_s12 }
   0x6   : > { %p49_p2 = scmp.eq.s32.totalorder %s2395_s18, 0  ;;  %s41_s24 = sadd.s32 1, %s2375_s13 }
   0x7   : > { %s2826_s19 = smov (%p26_p0, %s25_s19), 0  ;;  %s2828_s20 = smov (!%p26_p0, %s32_s20), %s2391_s17 }
   0x8   : > { %p50_p3 = por %p49_p2, %p48_p1  ;;  %p34_p4 = scmp.ge.s32.totalorder %s2828_s20, 2 }
   0x9   : > { %s37_s21 = ssub.s32 %s2387_s16, %s2826_s19  ;;  %p1818_p6 = scmp.ge.s32.totalorder %s2395_s18, 4 }
   0xa   : > { %s2830_s20 = smov (%p34_p4, %s2828_s20), 0 }
   0xb   : > { %s36_s22 = ssub.s32 %s2391_s17, %s2830_s20  ;;  %162 = sbr.rel (%p1818_p6) target bundleno = 57 (0x39), region = 20 }
   0xc   : > { %s38_s23 = sor.u32 %s37_s21, %s36_s22 }
   0xd   : > { %p39_p5 = scmp.eq.s32.totalorder %s38_s23, 0 }
   0xf   : > { %s2469_s25 = scalar_select %p39_p5, %s2375_s13, %s41_s24  }
  0x12   : > { %165 = sbr.rel (!%p50_p3) target bundleno = 57 (0x39), region = 24  ;;  %s167_s26 = sand.u32 (%p50_p3), 1, %s2375_s13  }
  0x13   : > { %s1821_s27 = sshll.u32 (%p50_p3), %s2387_s16, 2  ;;  %s1819_s28 = sshll.u32 (%p50_p3), %s167_s26, 9 }
  0x14   : > { %s1931_s29 = sshll.u32 (%p50_p3), %s2391_s17, 8  ;;  %s2483_s8 = scalar_lea.vmem (%p50_p3), [#allocation3], %s1819_s28 }
  0x15   : > { %s173_s30 = sadd.s32 (%p50_p3), %s1931_s29, %s1821_s27 }
  0x16   : > { %s1823_s4 = sshll.u32 (%p50_p3), %s173_s30, 2 }
  0x17   : > { %s2478_s7 = scalar_lea.vmem (%p50_p3), %s2815_s0, %s1823_s4 }
  0x18   : > { %v188_v0 = vld [vmem:[%s2478_s7] sm:$0xff] (%p50_p3)  ;;  %v190_v1 = vld [vmem:[%s2478_s7 + $0x8] sm:$0xff] (%p50_p3) }
  0x19   : > { %v192_v2 = vld [vmem:[%s2478_s7 + $0x20] sm:$0xff]  ;;  %189 = vst [vmem:[%s2483_s8] sm:$0xff] %v188_v0  ;;  %191 = vst [vmem:[%s2483_s8 + $0x8] sm:$0xff] %v190_v1  ;;  %v194_v3 = vld [vmem:[%s2478_s7 + $0x28] sm:$0xff] }
  0x1a   : > { %193 = vst [vmem:[%s2483_s8 + $0x10] sm:$0xff] %v192_v2  ;;  %v196_v4 = vld [vmem:[%s2478_s7 + $0x40] sm:$0xff]  ;;  %v198_v5 = vld [vmem:[%s2478_s7 + $0x48] sm:$0xff]  ;;  %195 = vst [vmem:[%s2483_s8 + $0x18] sm:$0xff] %v194_v3 }
  0x1b   : > { %197 = vst [vmem:[%s2483_s8 + $0x20] sm:$0xff] %v196_v4  ;;  %199 = vst [vmem:[%s2483_s8 + $0x28] sm:$0xff] %v198_v5  ;;  %v200_v6 = vld [vmem:[%s2478_s7 + $0x60] sm:$0xff]  ;;  %v202_v7 = vld [vmem:[%s2478_s7 + $0x68] sm:$0xff] }
  0x1c   : > { %v204_v8 = vld [vmem:[%s2478_s7 + $0x80] sm:$0xff]  ;;  %201 = vst [vmem:[%s2483_s8 + $0x30] sm:$0xff] %v200_v6  ;;  %203 = vst [vmem:[%s2483_s8 + $0x38] sm:$0xff] %v202_v7  ;;  %v206_v9 = vld [vmem:[%s2478_s7 + $0x88] sm:$0xff] }
  0x1d   : > { %205 = vst [vmem:[%s2483_s8 + $0x40] sm:$0xff] %v204_v8  ;;  %v208_v10 = vld [vmem:[%s2478_s7 + $0xa0] sm:$0xff]  ;;  %v210_v11 = vld [vmem:[%s2478_s7 + $0xa8] sm:$0xff]  ;;  %207 = vst [vmem:[%s2483_s8 + $0x48] sm:$0xff] %v206_v9 }
  0x1e   : > { %209 = vst [vmem:[%s2483_s8 + $0x50] sm:$0xff] %v208_v10  ;;  %211 = vst [vmem:[%s2483_s8 + $0x58] sm:$0xff] %v210_v11  ;;  %v212_v12 = vld [vmem:[%s2478_s7 + $0xc0] sm:$0xff]  ;;  %v214_v13 = vld [vmem:[%s2478_s7 + $0xc8] sm:$0xff] }
  0x1f   : > { %v216_v14 = vld [vmem:[%s2478_s7 + $0xe0] sm:$0xff]  ;;  %213 = vst [vmem:[%s2483_s8 + $0x60] sm:$0xff] %v212_v12  ;;  %215 = vst [vmem:[%s2483_s8 + $0x68] sm:$0xff] %v214_v13  ;;  %v218_v15 = vld [vmem:[%s2478_s7 + $0xe8] sm:$0xff] }
  0x20   : > { %217 = vst [vmem:[%s2483_s8 + $0x70] sm:$0xff] %v216_v14  ;;  %v220_v16 = vld [vmem:[%s2478_s7 + $0x100] sm:$0xff]  ;;  %v222_v17 = vld [vmem:[%s2478_s7 + $0x108] sm:$0xff]  ;;  %219 = vst [vmem:[%s2483_s8 + $0x78] sm:$0xff] %v218_v15 }
  0x21   : > { %221 = vst [vmem:[%s2483_s8 + $0x80] sm:$0xff] %v220_v16  ;;  %223 = vst [vmem:[%s2483_s8 + $0x88] sm:$0xff] %v222_v17  ;;  %v224_v18 = vld [vmem:[%s2478_s7 + $0x120] sm:$0xff]  ;;  %v226_v19 = vld [vmem:[%s2478_s7 + $0x128] sm:$0xff] }
  0x22   : > { %v228_v20 = vld [vmem:[%s2478_s7 + $0x140] sm:$0xff]  ;;  %225 = vst [vmem:[%s2483_s8 + $0x90] sm:$0xff] %v224_v18  ;;  %227 = vst [vmem:[%s2483_s8 + $0x98] sm:$0xff] %v226_v19  ;;  %v230_v21 = vld [vmem:[%s2478_s7 + $0x148] sm:$0xff] }
  0x23   : > { %229 = vst [vmem:[%s2483_s8 + $0xa0] sm:$0xff] %v228_v20  ;;  %v232_v22 = vld [vmem:[%s2478_s7 + $0x160] sm:$0xff]  ;;  %v234_v23 = vld [vmem:[%s2478_s7 + $0x168] sm:$0xff]  ;;  %231 = vst [vmem:[%s2483_s8 + $0xa8] sm:$0xff] %v230_v21 }
  0x24   : > { %233 = vst [vmem:[%s2483_s8 + $0xb0] sm:$0xff] %v232_v22  ;;  %235 = vst [vmem:[%s2483_s8 + $0xb8] sm:$0xff] %v234_v23  ;;  %v236_v24 = vld [vmem:[%s2478_s7 + $0x180] sm:$0xff]  ;;  %v238_v25 = vld [vmem:[%s2478_s7 + $0x188] sm:$0xff] }
  0x25   : > { %v240_v26 = vld [vmem:[%s2478_s7 + $0x1a0] sm:$0xff]  ;;  %237 = vst [vmem:[%s2483_s8 + $0xc0] sm:$0xff] %v236_v24  ;;  %239 = vst [vmem:[%s2483_s8 + $0xc8] sm:$0xff] %v238_v25  ;;  %v242_v27 = vld [vmem:[%s2478_s7 + $0x1a8] sm:$0xff] }
  0x26   : > { %241 = vst [vmem:[%s2483_s8 + $0xd0] sm:$0xff] %v240_v26  ;;  %v244_v28 = vld [vmem:[%s2478_s7 + $0x1c0] sm:$0xff]  ;;  %v246_v29 = vld [vmem:[%s2478_s7 + $0x1c8] sm:$0xff]  ;;  %243 = vst [vmem:[%s2483_s8 + $0xd8] sm:$0xff] %v242_v27 }
  0x27   : > { %245 = vst [vmem:[%s2483_s8 + $0xe0] sm:$0xff] %v244_v28  ;;  %247 = vst [vmem:[%s2483_s8 + $0xe8] sm:$0xff] %v246_v29  ;;  %v248_v30 = vld [vmem:[%s2478_s7 + $0x1e0] sm:$0xff]  ;;  %v250_v31 = vld [vmem:[%s2478_s7 + $0x1e8] sm:$0xff] }
  0x28   : > { %v252_v32 = vld [vmem:[%s2478_s7 + $0x200] sm:$0xff]  ;;  %249 = vst [vmem:[%s2483_s8 + $0xf0] sm:$0xff] %v248_v30  ;;  %251 = vst [vmem:[%s2483_s8 + $0xf8] sm:$0xff] %v250_v31  ;;  %v254_v33 = vld [vmem:[%s2478_s7 + $0x208] sm:$0xff] }
  0x29   : > { %253 = vst [vmem:[%s2483_s8 + $0x100] sm:$0xff] %v252_v32  ;;  %v256_v34 = vld [vmem:[%s2478_s7 + $0x220] sm:$0xff]  ;;  %v258_v35 = vld [vmem:[%s2478_s7 + $0x228] sm:$0xff]  ;;  %255 = vst [vmem:[%s2483_s8 + $0x108] sm:$0xff] %v254_v33 }
  0x2a   : > { %257 = vst [vmem:[%s2483_s8 + $0x110] sm:$0xff] %v256_v34  ;;  %259 = vst [vmem:[%s2483_s8 + $0x118] sm:$0xff] %v258_v35  ;;  %v260_v36 = vld [vmem:[%s2478_s7 + $0x240] sm:$0xff]  ;;  %v262_v37 = vld [vmem:[%s2478_s7 + $0x248] sm:$0xff] }
  0x2b   : > { %v264_v38 = vld [vmem:[%s2478_s7 + $0x260] sm:$0xff]  ;;  %261 = vst [vmem:[%s2483_s8 + $0x120] sm:$0xff] %v260_v36  ;;  %263 = vst [vmem:[%s2483_s8 + $0x128] sm:$0xff] %v262_v37  ;;  %v266_v39 = vld [vmem:[%s2478_s7 + $0x268] sm:$0xff] }
  0x2c   : > { %265 = vst [vmem:[%s2483_s8 + $0x130] sm:$0xff] %v264_v38  ;;  %v268_v40 = vld [vmem:[%s2478_s7 + $0x280] sm:$0xff]  ;;  %v270_v41 = vld [vmem:[%s2478_s7 + $0x288] sm:$0xff]  ;;  %267 = vst [vmem:[%s2483_s8 + $0x138] sm:$0xff] %v266_v39 }
  0x2d   : > { %269 = vst [vmem:[%s2483_s8 + $0x140] sm:$0xff] %v268_v40  ;;  %271 = vst [vmem:[%s2483_s8 + $0x148] sm:$0xff] %v270_v41  ;;  %v272_v42 = vld [vmem:[%s2478_s7 + $0x2a0] sm:$0xff]  ;;  %v274_v43 = vld [vmem:[%s2478_s7 + $0x2a8] sm:$0xff] }
  0x2e   : > { %v276_v44 = vld [vmem:[%s2478_s7 + $0x2c0] sm:$0xff]  ;;  %273 = vst [vmem:[%s2483_s8 + $0x150] sm:$0xff] %v272_v42  ;;  %275 = vst [vmem:[%s2483_s8 + $0x158] sm:$0xff] %v274_v43  ;;  %v278_v45 = vld [vmem:[%s2478_s7 + $0x2c8] sm:$0xff] }
  0x2f   : > { %277 = vst [vmem:[%s2483_s8 + $0x160] sm:$0xff] %v276_v44  ;;  %v280_v46 = vld [vmem:[%s2478_s7 + $0x2e0] sm:$0xff]  ;;  %v282_v47 = vld [vmem:[%s2478_s7 + $0x2e8] sm:$0xff]  ;;  %279 = vst [vmem:[%s2483_s8 + $0x168] sm:$0xff] %v278_v45 }
  0x30   : > { %281 = vst [vmem:[%s2483_s8 + $0x170] sm:$0xff] %v280_v46  ;;  %283 = vst [vmem:[%s2483_s8 + $0x178] sm:$0xff] %v282_v47  ;;  %v284_v48 = vld [vmem:[%s2478_s7 + $0x300] sm:$0xff]  ;;  %v286_v49 = vld [vmem:[%s2478_s7 + $0x308] sm:$0xff] }
  0x31   : > { %v288_v50 = vld [vmem:[%s2478_s7 + $0x320] sm:$0xff]  ;;  %285 = vst [vmem:[%s2483_s8 + $0x180] sm:$0xff] %v284_v48  ;;  %287 = vst [vmem:[%s2483_s8 + $0x188] sm:$0xff] %v286_v49  ;;  %v290_v51 = vld [vmem:[%s2478_s7 + $0x328] sm:$0xff] }
  0x32   : > { %289 = vst [vmem:[%s2483_s8 + $0x190] sm:$0xff] %v288_v50  ;;  %v292_v52 = vld [vmem:[%s2478_s7 + $0x340] sm:$0xff]  ;;  %v294_v53 = vld [vmem:[%s2478_s7 + $0x348] sm:$0xff]  ;;  %291 = vst [vmem:[%s2483_s8 + $0x198] sm:$0xff] %v290_v51 }
  0x33   : > { %293 = vst [vmem:[%s2483_s8 + $0x1a0] sm:$0xff] %v292_v52  ;;  %295 = vst [vmem:[%s2483_s8 + $0x1a8] sm:$0xff] %v294_v53  ;;  %v296_v54 = vld [vmem:[%s2478_s7 + $0x360] sm:$0xff]  ;;  %v298_v55 = vld [vmem:[%s2478_s7 + $0x368] sm:$0xff] }
  0x34   : > { %v300_v56 = vld [vmem:[%s2478_s7 + $0x380] sm:$0xff]  ;;  %297 = vst [vmem:[%s2483_s8 + $0x1b0] sm:$0xff] %v296_v54  ;;  %299 = vst [vmem:[%s2483_s8 + $0x1b8] sm:$0xff] %v298_v55  ;;  %v302_v57 = vld [vmem:[%s2478_s7 + $0x388] sm:$0xff] }
  0x35   : > { %301 = vst [vmem:[%s2483_s8 + $0x1c0] sm:$0xff] %v300_v56  ;;  %v304_v58 = vld [vmem:[%s2478_s7 + $0x3a0] sm:$0xff]  ;;  %v306_v59 = vld [vmem:[%s2478_s7 + $0x3a8] sm:$0xff]  ;;  %303 = vst [vmem:[%s2483_s8 + $0x1c8] sm:$0xff] %v302_v57 }
  0x36   : > { %305 = vst [vmem:[%s2483_s8 + $0x1d0] sm:$0xff] %v304_v58  ;;  %307 = vst [vmem:[%s2483_s8 + $0x1d8] sm:$0xff] %v306_v59  ;;  %v308_v60 = vld [vmem:[%s2478_s7 + $0x3c0] sm:$0xff]  ;;  %v310_v61 = vld [vmem:[%s2478_s7 + $0x3c8] sm:$0xff] }
  0x37   : > { %v312_v62 = vld [vmem:[%s2478_s7 + $0x3e0] sm:$0xff]  ;;  %309 = vst [vmem:[%s2483_s8 + $0x1e0] sm:$0xff] %v308_v60  ;;  %311 = vst [vmem:[%s2483_s8 + $0x1e8] sm:$0xff] %v310_v61  ;;  %v314_v63 = vld [vmem:[%s2478_s7 + $0x3e8] sm:$0xff] }
  0x38   : > { %313 = vst [vmem:[%s2483_s8 + $0x1f0] sm:$0xff] %v312_v62  ;;  %315 = vst [vmem:[%s2483_s8 + $0x1f8] sm:$0xff] %v314_v63 }
  0x39 PF: > { %p1824_p7 = scmp.ge.s32.totalorder %s2395_s18, 1  ;;  %p332_p8 = scmp.lt.s32.totalorder %s2395_s18, 5 }
  0x3b   : > { %p333_p9 = pnand %p1824_p7, %p332_p8 }
  0x3c   : > { %s339_s9 = sand.u32 (!%p333_p9), 1, %s2371_s12   ;;  %s1826_s10 = sshll.u32 (!%p333_p9), %s2379_s14, 6 }
  0x3d   : > { %336 = sbr.rel (%p333_p9) target bundleno = 479 (0x1df), region = 51  ;;  %s1825_s11 = sshll.u32 (!%p333_p9), %s339_s9, 9 }
  0x3e   : > { %p379_p10 = scmp.lt.s32.totalorder (!%p333_p9), %s1826_s10, 127  ;;  %s1828_s21 = sshll.u32 (!%p333_p9), %s2383_s15, 5 }
  0x3f   : > { %p391_p11 = scmp.lt.s32.totalorder (!%p333_p9), %s1828_s21, 63  ;;  %s2625_s12 = scalar_lea.vmem (!%p333_p9), [#allocation3], %s1825_s11 }
  0x40   : > { %p1830_p12 = scmp.ne.s32.totalorder (!%p333_p9), %s2379_s14, 0 }
  0x44   : > { %s2832_s10 = smov (!%p379_p10, %s1826_s10), 127  ;;  %s2834_s21 = smov (!%p391_p11, %s1828_s21), 63 }
  0x45   : > { %s1827_s22 = sshll.u32 %s2832_s10, 2  ;;  %s1829_s27 = sshll.u32 %s2834_s21, 3  ;;  %v2397_v0 = vmov (!%p1830_p12), 0.0  }
  0x46   : > { %s2618_s26 = scalar_lea.vmem %s2816_s1, %s1827_s22  ;;  %s2623_s30 = scalar_lea.vmem %s2818_s3, %s1829_s27  ;;  %404 = vst [vmem:[#allocation2] sm:$0xff] (!%p1830_p12), %v2397_v0  ;;  %405 = vst [vmem:[#allocation2 + $0x8] sm:$0xff] (!%p1830_p12), %v2397_v0 }
  0x47   : > { %403 = sbr.rel (%p1830_p12) target bundleno = 86 (0x56), region = 59  ;;  %406 = vst [vmem:[#allocation2 + $0x10] sm:$0xff] (!%p1830_p12), %v2397_v0  ;;  %407 = vst [vmem:[#allocation2 + $0x18] sm:$0xff] (!%p1830_p12), %v2397_v0 }
  0x48   : > { %408 = vst [vmem:[#allocation2 + $0x20] sm:$0xff] (!%p1830_p12), %v2397_v0  ;;  %409 = vst [vmem:[#allocation2 + $0x28] sm:$0xff] (!%p1830_p12), %v2397_v0 }
  0x49   : > { %410 = vst [vmem:[#allocation2 + $0x30] sm:$0xff] (!%p1830_p12), %v2397_v0  ;;  %411 = vst [vmem:[#allocation2 + $0x38] sm:$0xff] (!%p1830_p12), %v2397_v0 }
  0x4a   : > { %412 = vst [vmem:[#allocation2 + $0x40] sm:$0xff] (!%p1830_p12), %v2397_v0  ;;  %413 = vst [vmem:[#allocation2 + $0x48] sm:$0xff] (!%p1830_p12), %v2397_v0 }
  0x4b   : > { %414 = vst [vmem:[#allocation2 + $0x50] sm:$0xff] (!%p1830_p12), %v2397_v0  ;;  %415 = vst [vmem:[#allocation2 + $0x58] sm:$0xff] (!%p1830_p12), %v2397_v0 }
  0x4c   : > { %416 = vst [vmem:[#allocation2 + $0x60] sm:$0xff] (!%p1830_p12), %v2397_v0  ;;  %417 = vst [vmem:[#allocation2 + $0x68] sm:$0xff] (!%p1830_p12), %v2397_v0 }
  0x4d   : > { %418 = vst [vmem:[#allocation2 + $0x70] sm:$0xff] (!%p1830_p12), %v2397_v0  ;;  %419 = vst [vmem:[#allocation2 + $0x78] sm:$0xff] (!%p1830_p12), %v2397_v0 }
  0x4e   : > { %420 = vst [vmem:[#allocation2 + $0x80] sm:$0xff] %v2397_v0  ;;  %421 = vst [vmem:[#allocation2 + $0x88] sm:$0xff] %v2397_v0 }
  0x4f   : > { %422 = vst [vmem:[#allocation2 + $0x90] sm:$0xff] %v2397_v0  ;;  %423 = vst [vmem:[#allocation2 + $0x98] sm:$0xff] %v2397_v0 }
  0x50   : > { %424 = vst [vmem:[#allocation2 + $0xa0] sm:$0xff] %v2397_v0  ;;  %425 = vst [vmem:[#allocation2 + $0xa8] sm:$0xff] %v2397_v0 }
  0x51   : > { %426 = vst [vmem:[#allocation2 + $0xb0] sm:$0xff] %v2397_v0  ;;  %427 = vst [vmem:[#allocation2 + $0xb8] sm:$0xff] %v2397_v0 }
  0x52   : > { %428 = vst [vmem:[#allocation2 + $0xc0] sm:$0xff] %v2397_v0  ;;  %429 = vst [vmem:[#allocation2 + $0xc8] sm:$0xff] %v2397_v0 }
  0x53   : > { %430 = vst [vmem:[#allocation2 + $0xd0] sm:$0xff] %v2397_v0  ;;  %431 = vst [vmem:[#allocation2 + $0xd8] sm:$0xff] %v2397_v0 }
  0x54   : > { %432 = vst [vmem:[#allocation2 + $0xe0] sm:$0xff] %v2397_v0  ;;  %433 = vst [vmem:[#allocation2 + $0xe8] sm:$0xff] %v2397_v0 }
  0x55   : > { %434 = vst [vmem:[#allocation2 + $0xf0] sm:$0xff] %v2397_v0  ;;  %435 = vst [vmem:[#allocation2 + $0xf8] sm:$0xff] %v2397_v0 }
  0x56 PF: > { %v2213_v1 = vld [vmem:[%s2618_s26 + $0x40] sm:$0xff]   ;;  %v2217_v5 = vld [vmem:[%s2618_s26 + $0x48] sm:$0xff]   ;;  %v2221_v9 = vld [vmem:[%s2618_s26 + $0x50] sm:$0xff]   ;;  %p1927_p13 = scmp.ne.s32.totalorder %s2379_s14, 1 }
  0x57   : > { %v2214_v2 = vld [vmem:[%s2618_s26 + $0xc0] sm:$0xff]   ;;  %1932 = vmatprep.subr.bf16.mxu0 %v2213_v1  ;;  %v2218_v6 = vld [vmem:[%s2618_s26 + $0xc8] sm:$0xff]   ;;  %v2222_v10 = vld [vmem:[%s2618_s26 + $0xd0] sm:$0xff]  }
  0x58   : > { %v2215_v3 = vld [vmem:[%s2618_s26] sm:$0xff]   ;;  %2044 = vmatprep.subr.bf16.mxu1 %v2214_v2  ;;  %v2219_v7 = vld [vmem:[%s2618_s26 + $0x8] sm:$0xff]   ;;  %v2223_v11 = vld [vmem:[%s2618_s26 + $0x10] sm:$0xff]  }
  0x59   : > { %v2216_v4 = vld [vmem:[%s2618_s26 + $0x80] sm:$0xff]   ;;  %1933 = vmatpush3.bf16.msra.mxu0 %v2215_v3  ;;  %v2220_v8 = vld [vmem:[%s2618_s26 + $0x88] sm:$0xff]   ;;  %v2224_v12 = vld [vmem:[%s2618_s26 + $0x90] sm:$0xff]  }
  0x5a   : > { %2045 = vmatpush3.bf16.msra.mxu1 %v2216_v4  ;;  %1934 = vmatprep.subr.bf16.mxu0 %v2217_v5  ;;  %v2225_v13 = vld [vmem:[%s2618_s26 + $0x58] sm:$0xff]   ;;  %v2229_v17 = vld [vmem:[%s2618_s26 + $0x60] sm:$0xff]   ;;  %v2233_v21 = vld [vmem:[%s2618_s26 + $0x68] sm:$0xff]  }
  0x5b   : > { %2046 = vmatprep.subr.bf16.mxu1 %v2218_v6  ;;  %v2226_v14 = vld [vmem:[%s2618_s26 + $0xd8] sm:$0xff]   ;;  %v2230_v18 = vld [vmem:[%s2618_s26 + $0xe0] sm:$0xff]   ;;  %v2234_v22 = vld [vmem:[%s2618_s26 + $0xe8] sm:$0xff]  }
  0x5c   : > { %v2227_v15 = vld [vmem:[%s2618_s26 + $0x18] sm:$0xff]   ;;  %v2231_v19 = vld [vmem:[%s2618_s26 + $0x20] sm:$0xff]   ;;  %v2235_v23 = vld [vmem:[%s2618_s26 + $0x28] sm:$0xff]  }
  0x5d   : > { %1935 = vmatpush3.bf16.msra.mxu0 %v2219_v7  ;;  %v2228_v16 = vld [vmem:[%s2618_s26 + $0x98] sm:$0xff]   ;;  %v2232_v20 = vld [vmem:[%s2618_s26 + $0xa0] sm:$0xff]   ;;  %v2236_v24 = vld [vmem:[%s2618_s26 + $0xa8] sm:$0xff]  }
  0x5e   : > { %2047 = vmatpush3.bf16.msra.mxu1 %v2220_v8  ;;  %1936 = vmatprep.subr.bf16.mxu0 %v2221_v9  ;;  %v2237_v25 = vld [vmem:[%s2618_s26 + $0x70] sm:$0xff]   ;;  %v2241_v29 = vld [vmem:[%s2618_s26 + $0x78] sm:$0xff]  }
  0x5f   : > { %2048 = vmatprep.subr.bf16.mxu1 %v2222_v10  ;;  %v2238_v26 = vld [vmem:[%s2618_s26 + $0xf0] sm:$0xff]   ;;  %v2242_v30 = vld [vmem:[%s2618_s26 + $0xf8] sm:$0xff]  }
  0x60   : > { %v2239_v27 = vld [vmem:[%s2618_s26 + $0x30] sm:$0xff]   ;;  %v2243_v31 = vld [vmem:[%s2618_s26 + $0x38] sm:$0xff]  }
  0x61   : > { %1937 = vmatpush3.bf16.msra.mxu0 %v2223_v11  ;;  %v2240_v28 = vld [vmem:[%s2618_s26 + $0xb0] sm:$0xff]   ;;  %v2244_v32 = vld [vmem:[%s2618_s26 + $0xb8] sm:$0xff]  }
  0x62   : > { %2049 = vmatpush3.bf16.msra.mxu1 %v2224_v12  ;;  %1938 = vmatprep.subr.bf16.mxu0 %v2225_v13  ;;  %v2245_v33 = vld [vmem:[%s2625_s12] ss:$16 sps:$4 sm:$0xff]   ;;  %v2247_v34 = vld [vmem:[%s2625_s12 + $0x4] ss:$16 sps:$4 sm:$0xff]   ;;  %v2248_v35 = vld [vmem:[%s2625_s12 + $0x8] ss:$16 sps:$4 sm:$0xff]  }
  0x63   : > { %2050 = vmatprep.subr.bf16.mxu1 %v2226_v14  ;;  %v2250_v36 = vld [vmem:[%s2625_s12 + $0xc] ss:$16 sps:$4 sm:$0xff]   ;;  %1140 = vmatprep.mubr.bf16.mxu0 %v2247_v34  ;;  %v2251_v37 = vld [vmem:[%s2625_s12 + $0x24] ss:$16 sps:$4 sm:$0xff]   ;;  %v2255_v39 = vld [vmem:[%s2625_s12 + $0x20] ss:$16 sps:$4 sm:$0xff]  }
  0x64   : > { %1301 = vmatprep.mubr.bf16.mxu1 %v2250_v36  ;;  %v2253_v38 = vld [vmem:[%s2625_s12 + $0x2c] ss:$16 sps:$4 sm:$0xff]   ;;  %v2256_v40 = vld [vmem:[%s2625_s12 + $0x28] ss:$16 sps:$4 sm:$0xff]   ;;  %v2257_v41 = vld [vmem:[%s2625_s12 + $0x44] ss:$16 sps:$4 sm:$0xff]  }
  0x65   : > { %1939 = vmatpush3.bf16.msra.mxu0 %v2227_v15  ;;  %v2259_v42 = vld [vmem:[%s2625_s12 + $0x4c] ss:$16 sps:$4 sm:$0xff]   ;;  %v2261_v43 = vld [vmem:[%s2625_s12 + $0x40] ss:$16 sps:$4 sm:$0xff]   ;;  %v2262_v44 = vld [vmem:[%s2625_s12 + $0x48] ss:$16 sps:$4 sm:$0xff]  }
  0x66   : > { %2051 = vmatpush3.bf16.msra.mxu1 %v2228_v16  ;;  %1940 = vmatprep.subr.bf16.mxu0 %v2229_v17  ;;  %v2263_v45 = vld [vmem:[%s2625_s12 + $0x64] ss:$16 sps:$4 sm:$0xff]   ;;  %v2265_v46 = vld [vmem:[%s2625_s12 + $0x6c] ss:$16 sps:$4 sm:$0xff]   ;;  %v2267_v47 = vld [vmem:[%s2625_s12 + $0x60] ss:$16 sps:$4 sm:$0xff]  }
  0x67   : > { %2052 = vmatprep.subr.bf16.mxu1 %v2230_v18  ;;  %v2268_v48 = vld [vmem:[%s2625_s12 + $0x68] ss:$16 sps:$4 sm:$0xff]   ;;  %v2269_v49 = vld [vmem:[%s2625_s12 + $0x84] ss:$16 sps:$4 sm:$0xff]   ;;  %v2271_v50 = vld [vmem:[%s2625_s12 + $0x8c] ss:$16 sps:$4 sm:$0xff]  }
  0x68   : > { %v2273_v51 = vld [vmem:[%s2625_s12 + $0x80] ss:$16 sps:$4 sm:$0xff]   ;;  %v2274_v52 = vld [vmem:[%s2625_s12 + $0x88] ss:$16 sps:$4 sm:$0xff]   ;;  %v2275_v53 = vld [vmem:[%s2625_s12 + $0xa4] ss:$16 sps:$4 sm:$0xff]  }
  0x69   : > { %1941 = vmatpush3.bf16.msra.mxu0 %v2231_v19  ;;  %v2277_v54 = vld [vmem:[%s2625_s12 + $0xac] ss:$16 sps:$4 sm:$0xff]   ;;  %v2279_v55 = vld [vmem:[%s2625_s12 + $0xa0] ss:$16 sps:$4 sm:$0xff]   ;;  %v2280_v56 = vld [vmem:[%s2625_s12 + $0xa8] ss:$16 sps:$4 sm:$0xff]  }
  0x6a   : > { %2053 = vmatpush3.bf16.msra.mxu1 %v2232_v20  ;;  %1942 = vmatprep.subr.bf16.mxu0 %v2233_v21  ;;  %v2281_v57 = vld [vmem:[%s2625_s12 + $0xc4] ss:$16 sps:$4 sm:$0xff]   ;;  %v2283_v58 = vld [vmem:[%s2625_s12 + $0xcc] ss:$16 sps:$4 sm:$0xff]   ;;  %v2285_v59 = vld [vmem:[%s2625_s12 + $0xc0] ss:$16 sps:$4 sm:$0xff]  }
  0x6b   : > { %2054 = vmatprep.subr.bf16.mxu1 %v2234_v22  ;;  %v2286_v60 = vld [vmem:[%s2625_s12 + $0xc8] ss:$16 sps:$4 sm:$0xff]   ;;  %v2287_v61 = vld [vmem:[%s2625_s12 + $0xe4] ss:$16 sps:$4 sm:$0xff]   ;;  %v2289_v62 = vld [vmem:[%s2625_s12 + $0xec] ss:$16 sps:$4 sm:$0xff]  }
  0x6c   : > { %v2291_v63 = vld [vmem:[%s2625_s12 + $0xe0] ss:$16 sps:$4 sm:$0xff]   ;;  %v2292_v0 = vld [vmem:[%s2625_s12 + $0xe8] ss:$16 sps:$4 sm:$0xff]   ;;  %v2293_v1 = vld [vmem:[%s2625_s12 + $0x104] ss:$16 sps:$4 sm:$0xff]  }
  0x6d   : > { %1943 = vmatpush3.bf16.msra.mxu0 %v2235_v23  ;;  %v2295_v2 = vld [vmem:[%s2625_s12 + $0x10c] ss:$16 sps:$4 sm:$0xff]   ;;  %v2297_v3 = vld [vmem:[%s2625_s12 + $0x100] ss:$16 sps:$4 sm:$0xff]   ;;  %v2298_v4 = vld [vmem:[%s2625_s12 + $0x108] ss:$16 sps:$4 sm:$0xff]  }
  0x6e   : > { %2055 = vmatpush3.bf16.msra.mxu1 %v2236_v24  ;;  %1944 = vmatprep.subr.bf16.mxu0 %v2237_v25  ;;  %v2299_v5 = vld [vmem:[%s2625_s12 + $0x124] ss:$16 sps:$4 sm:$0xff]   ;;  %v2301_v6 = vld [vmem:[%s2625_s12 + $0x12c] ss:$16 sps:$4 sm:$0xff]   ;;  %v2303_v7 = vld [vmem:[%s2625_s12 + $0x120] ss:$16 sps:$4 sm:$0xff]  }
  0x6f   : > { %2056 = vmatprep.subr.bf16.mxu1 %v2238_v26  ;;  %v2304_v8 = vld [vmem:[%s2625_s12 + $0x128] ss:$16 sps:$4 sm:$0xff]   ;;  %v2305_v9 = vld [vmem:[%s2625_s12 + $0x144] ss:$16 sps:$4 sm:$0xff]   ;;  %v2307_v10 = vld [vmem:[%s2625_s12 + $0x14c] ss:$16 sps:$4 sm:$0xff]  }
  0x70   : > { %v2309_v11 = vld [vmem:[%s2625_s12 + $0x140] ss:$16 sps:$4 sm:$0xff]   ;;  %v2310_v12 = vld [vmem:[%s2625_s12 + $0x148] ss:$16 sps:$4 sm:$0xff]   ;;  %v2311_v13 = vld [vmem:[%s2625_s12 + $0x164] ss:$16 sps:$4 sm:$0xff]  }
  0x71   : > { %1945 = vmatpush3.bf16.msra.mxu0 %v2239_v27  ;;  %v2313_v14 = vld [vmem:[%s2625_s12 + $0x16c] ss:$16 sps:$4 sm:$0xff]   ;;  %v2315_v15 = vld [vmem:[%s2625_s12 + $0x160] ss:$16 sps:$4 sm:$0xff]   ;;  %v2316_v16 = vld [vmem:[%s2625_s12 + $0x168] ss:$16 sps:$4 sm:$0xff]  }
  0x72   : > { %2057 = vmatpush3.bf16.msra.mxu1 %v2240_v28  ;;  %1946 = vmatprep.subr.bf16.mxu0 %v2241_v29  ;;  %v2317_v17 = vld [vmem:[%s2625_s12 + $0x184] ss:$16 sps:$4 sm:$0xff]   ;;  %v2319_v18 = vld [vmem:[%s2625_s12 + $0x18c] ss:$16 sps:$4 sm:$0xff]   ;;  %v2321_v19 = vld [vmem:[%s2625_s12 + $0x180] ss:$16 sps:$4 sm:$0xff]  }
  0x73   : > { %2058 = vmatprep.subr.bf16.mxu1 %v2242_v30  ;;  %v2322_v20 = vld [vmem:[%s2625_s12 + $0x188] ss:$16 sps:$4 sm:$0xff]   ;;  %v2323_v21 = vld [vmem:[%s2625_s12 + $0x1a4] ss:$16 sps:$4 sm:$0xff]   ;;  %v2325_v22 = vld [vmem:[%s2625_s12 + $0x1ac] ss:$16 sps:$4 sm:$0xff]  }
  0x74   : > { %v2327_v23 = vld [vmem:[%s2625_s12 + $0x1a0] ss:$16 sps:$4 sm:$0xff]   ;;  %v2328_v24 = vld [vmem:[%s2625_s12 + $0x1a8] ss:$16 sps:$4 sm:$0xff]   ;;  %v2329_v25 = vld [vmem:[%s2625_s12 + $0x1c4] ss:$16 sps:$4 sm:$0xff]  }
  0x75   : > { %1947 = vmatpush3.bf16.msra.mxu0 %v2243_v31  ;;  %v2331_v26 = vld [vmem:[%s2625_s12 + $0x1cc] ss:$16 sps:$4 sm:$0xff]   ;;  %v2333_v27 = vld [vmem:[%s2625_s12 + $0x1c0] ss:$16 sps:$4 sm:$0xff]   ;;  %v2334_v28 = vld [vmem:[%s2625_s12 + $0x1c8] ss:$16 sps:$4 sm:$0xff]  }
  0x76   : > { %2059 = vmatpush3.bf16.msra.mxu1 %v2244_v32  ;;  %v2335_v29 = vld [vmem:[%s2625_s12 + $0x1e4] ss:$16 sps:$4 sm:$0xff]   ;;  %v2337_v30 = vld [vmem:[%s2625_s12 + $0x1ec] ss:$16 sps:$4 sm:$0xff]   ;;  %v2339_v31 = vld [vmem:[%s2625_s12 + $0x1e0] ss:$16 sps:$4 sm:$0xff]  }
  0x77   : > { %v2340_v32 = vld [vmem:[%s2625_s12 + $0x1e8] ss:$16 sps:$4 sm:$0xff]  }
  0x78   : > { %1141 = vmatmul.mubr.bf16.vlgmr.msra.gmra.mrb[0].mxu0 %v2245_v33 }
  0x79   : > { %1302 = vmatmul.mubr.bf16.vlgmr.msra.gmra.mrb[0].mxu1 %v2248_v35  ;;  %1148 = vmatprep.mubr.bf16.mxu0 %v2251_v37 }
  0x7a   : > { %1309 = vmatprep.mubr.bf16.mxu1 %v2253_v38 }
  0x80   : > { %1149 = vmatmul.mubr.bf16.gmra.mrb[4].mxu0 %v2255_v39 }
  0x81   : > { %1310 = vmatmul.mubr.bf16.gmra.mrb[4].mxu1 %v2256_v40  ;;  %1156 = vmatprep.mubr.bf16.mxu0 %v2257_v41 }
  0x82   : > { %1317 = vmatprep.mubr.bf16.mxu1 %v2259_v42  ;;  %v436_v42 = vld [vmem:[#allocation2] sm:$0xff] }
  0x88   : > { %1157 = vmatmul.mubr.bf16.gmra.mrb[8].mxu0 %v2261_v43 }
  0x89   : > { %1318 = vmatmul.mubr.bf16.gmra.mrb[8].mxu1 %v2262_v44  ;;  %1164 = vmatprep.mubr.bf16.mxu0 %v2263_v45 }
  0x8a   : > { %1325 = vmatprep.mubr.bf16.mxu1 %v2265_v46 }
  0x90   : > { %1165 = vmatmul.mubr.bf16.gmra.mrb[12].mxu0 %v2267_v47  ;;  %v437_v47 = vld [vmem:[#allocation2 + $0x8] sm:$0xff] }
  0x91   : > { %1326 = vmatmul.mubr.bf16.gmra.mrb[12].mxu1 %v2268_v48  ;;  %1172 = vmatprep.mubr.bf16.mxu0 %v2269_v49 }
  0x92   : > { %1333 = vmatprep.mubr.bf16.mxu1 %v2271_v50 }
  0x98   : > { %1173 = vmatmul.mubr.bf16.gmra.mrb[16].mxu0 %v2273_v51 }
  0x99   : > { %1334 = vmatmul.mubr.bf16.gmra.mrb[16].mxu1 %v2274_v52  ;;  %1180 = vmatprep.mubr.bf16.mxu0 %v2275_v53 }
  0x9a   : > { %1341 = vmatprep.mubr.bf16.mxu1 %v2277_v54 }
  0xa0   : > { %1181 = vmatmul.mubr.bf16.gmra.mrb[20].mxu0 %v2279_v55 }
  0xa1   : > { %1342 = vmatmul.mubr.bf16.gmra.mrb[20].mxu1 %v2280_v56  ;;  %1188 = vmatprep.mubr.bf16.mxu0 %v2281_v57 }
  0xa2   : > { %1349 = vmatprep.mubr.bf16.mxu1 %v2283_v58 }
  0xa8   : > { %1189 = vmatmul.mubr.bf16.gmra.mrb[24].mxu0 %v2285_v59 }
  0xa9   : > { %1350 = vmatmul.mubr.bf16.gmra.mrb[24].mxu1 %v2286_v60  ;;  %1196 = vmatprep.mubr.bf16.mxu0 %v2287_v61  ;;  %v438_v60 = vld [vmem:[#allocation2 + $0x10] sm:$0xff] }
  0xaa   : > { %1357 = vmatprep.mubr.bf16.mxu1 %v2289_v62 }
  0xb0   : > { %1197 = vmatmul.mubr.bf16.gmra.mrb[28].mxu0 %v2291_v63 }
  0xb1   : > { %1358 = vmatmul.mubr.bf16.gmra.mrb[28].mxu1 %v2292_v0  ;;  %1204 = vmatprep.mubr.bf16.mxu0 %v2293_v1  ;;  %v439_v1 = vld [vmem:[#allocation2 + $0x18] sm:$0xff] }
  0xb2   : > { %1365 = vmatprep.mubr.bf16.mxu1 %v2295_v2 }
  0xb8   : > { %1205 = vmatmul.mubr.bf16.gmra.mrb[32].mxu0 %v2297_v3 }
  0xb9   : > { %1366 = vmatmul.mubr.bf16.gmra.mrb[32].mxu1 %v2298_v4  ;;  %1212 = vmatprep.mubr.bf16.mxu0 %v2299_v5 }
  0xba   : > { %1373 = vmatprep.mubr.bf16.mxu1 %v2301_v6 }
  0xc0   : > { %1213 = vmatmul.mubr.bf16.gmra.mrb[36].mxu0 %v2303_v7 }
  0xc1   : > { %1374 = vmatmul.mubr.bf16.gmra.mrb[36].mxu1 %v2304_v8  ;;  %1220 = vmatprep.mubr.bf16.mxu0 %v2305_v9 }
  0xc2   : > { %1381 = vmatprep.mubr.bf16.mxu1 %v2307_v10 }
  0xc8   : > { %1221 = vmatmul.mubr.bf16.gmra.mrb[40].mxu0 %v2309_v11 }
  0xc9   : > { %1382 = vmatmul.mubr.bf16.gmra.mrb[40].mxu1 %v2310_v12  ;;  %1228 = vmatprep.mubr.bf16.mxu0 %v2311_v13 }
  0xca   : > { %1389 = vmatprep.mubr.bf16.mxu1 %v2313_v14  ;;  %v440_v14 = vld [vmem:[#allocation2 + $0x20] sm:$0xff] }
  0xd0   : > { %1229 = vmatmul.mubr.bf16.gmra.mrb[44].mxu0 %v2315_v15 }
  0xd1   : > { %1390 = vmatmul.mubr.bf16.gmra.mrb[44].mxu1 %v2316_v16  ;;  %1236 = vmatprep.mubr.bf16.mxu0 %v2317_v17 }
  0xd2   : > { %1397 = vmatprep.mubr.bf16.mxu1 %v2319_v18 }
  0xd8   : > { %1237 = vmatmul.mubr.bf16.gmra.mrb[48].mxu0 %v2321_v19  ;;  %v441_v19 = vld [vmem:[#allocation2 + $0x28] sm:$0xff] }
  0xd9   : > { %1398 = vmatmul.mubr.bf16.gmra.mrb[48].mxu1 %v2322_v20  ;;  %1244 = vmatprep.mubr.bf16.mxu0 %v2323_v21 }
  0xda   : > { %1405 = vmatprep.mubr.bf16.mxu1 %v2325_v22 }
  0xe0   : > { %1245 = vmatmul.mubr.bf16.gmra.mrb[52].mxu0 %v2327_v23 }
  0xe1   : > { %1406 = vmatmul.mubr.bf16.gmra.mrb[52].mxu1 %v2328_v24  ;;  %1252 = vmatprep.mubr.bf16.mxu0 %v2329_v25 }
  0xe2   : > { %1413 = vmatprep.mubr.bf16.mxu1 %v2331_v26 }
  0xe8   : > { %1253 = vmatmul.mubr.bf16.gmra.mrb[56].mxu0 %v2333_v27 }
  0xe9   : > { %1414 = vmatmul.mubr.bf16.gmra.mrb[56].mxu1 %v2334_v28  ;;  %1260 = vmatprep.mubr.bf16.mxu0 %v2335_v29 }
  0xea   : > { %1421 = vmatprep.mubr.bf16.mxu1 %v2337_v30 }
  0xf0   : > { %1261 = vmatmul.mubr.bf16.gmra.mrb[60].mxu0 %v2339_v31 }
  0xf1   : > { %1422 = vmatmul.mubr.bf16.gmra.mrb[60].mxu1 %v2340_v32  ;;  %v442_v32 = vld [vmem:[#allocation2 + $0x30] sm:$0xff] }
 0x14b   : > { %v1948_v33 = vpop.f32.mrb[0].mxu0 }
 0x14c   : > { %v2060_v34 = vpop.f32.mrb[0].mxu1  ;;  %v1949_v35 = vpop.f32.mrb[1].mxu0 }
 0x14d   : > { %v1950_v36 = vadd.f32 %v1949_v35, %v1948_v33  ;;  %v2061_v37 = vpop.f32.mrb[1].mxu1  ;;  %v1951_v38 = vpop.f32.mrb[2].mxu0 }
 0x14e   : > { %v2062_v39 = vadd.f32 %v2061_v37, %v2060_v34  ;;  %v2063_v40 = vpop.f32.mrb[2].mxu1  ;;  %v1952_v41 = vpop.f32.mrb[3].mxu0  ;;  %v443_v37 = vld [vmem:[#allocation2 + $0x38] sm:$0xff] }
 0x14f   : > { %v1953_v43 = vadd.f32 %v1952_v41, %v1951_v38  ;;  %v2064_v44 = vpop.f32.mrb[3].mxu1 }
 0x150   : > { %v1304_v45 = vadd.f32 %v2062_v39, %v1950_v36  ;;  %v2065_v46 = vadd.f32 %v2064_v44, %v2063_v40 }
 0x152   : > { %v1430_v48 = vadd.f32 %v1304_v45, %v436_v42  ;;  %v1307_v49 = vadd.f32 %v2065_v46, %v1953_v43 }
 0x153   : > { %v1954_v50 = vpop.f32.mrb[4].mxu0 }
 0x154   : > { %1462 = vst [vmem:[#allocation2] sm:$0xff] %v1430_v48  ;;  %v1431_v51 = vadd.f32 %v1307_v49, %v437_v47  ;;  %v2066_v52 = vpop.f32.mrb[4].mxu1  ;;  %v1955_v53 = vpop.f32.mrb[5].mxu0 }
 0x155   : > { %v1956_v54 = vadd.f32 %v1955_v53, %v1954_v50  ;;  %v2067_v55 = vpop.f32.mrb[5].mxu1  ;;  %v1957_v56 = vpop.f32.mrb[6].mxu0  ;;  %v444_v50 = vld [vmem:[#allocation2 + $0x40] sm:$0xff] }
 0x156   : > { %1463 = vst [vmem:[#allocation2 + $0x8] sm:$0xff] %v1431_v51  ;;  %v2068_v57 = vadd.f32 %v2067_v55, %v2066_v52  ;;  %v2069_v58 = vpop.f32.mrb[6].mxu1  ;;  %v1958_v59 = vpop.f32.mrb[7].mxu0  ;;  %v445_v55 = vld [vmem:[#allocation2 + $0x48] sm:$0xff] }
 0x157   : > { %v1959_v61 = vadd.f32 %v1958_v59, %v1957_v56  ;;  %v2070_v62 = vpop.f32.mrb[7].mxu1 }
 0x158   : > { %v1312_v63 = vadd.f32 %v2068_v57, %v1956_v54  ;;  %v2071_v0 = vadd.f32 %v2070_v62, %v2069_v58 }
 0x15a   : > { %v1432_v2 = vadd.f32 %v1312_v63, %v438_v60  ;;  %v1315_v3 = vadd.f32 %v2071_v0, %v1959_v61 }
 0x15b   : > { %v1960_v4 = vpop.f32.mrb[8].mxu0 }
 0x15c   : > { %1464 = vst [vmem:[#allocation2 + $0x10] sm:$0xff] %v1432_v2  ;;  %v1433_v5 = vadd.f32 %v1315_v3, %v439_v1  ;;  %v2072_v6 = vpop.f32.mrb[8].mxu1  ;;  %v1961_v7 = vpop.f32.mrb[9].mxu0 }
 0x15d   : > { %v1962_v8 = vadd.f32 %v1961_v7, %v1960_v4  ;;  %v2073_v9 = vpop.f32.mrb[9].mxu1  ;;  %v1963_v10 = vpop.f32.mrb[10].mxu0  ;;  %v446_v4 = vld [vmem:[#allocation2 + $0x50] sm:$0xff] }
 0x15e   : > { %1465 = vst [vmem:[#allocation2 + $0x18] sm:$0xff] %v1433_v5  ;;  %v2074_v11 = vadd.f32 %v2073_v9, %v2072_v6  ;;  %v2075_v12 = vpop.f32.mrb[10].mxu1  ;;  %v1964_v13 = vpop.f32.mrb[11].mxu0  ;;  %v447_v9 = vld [vmem:[#allocation2 + $0x58] sm:$0xff] }
 0x15f   : > { %v1965_v15 = vadd.f32 %v1964_v13, %v1963_v10  ;;  %v2076_v16 = vpop.f32.mrb[11].mxu1 }
 0x160   : > { %v1320_v17 = vadd.f32 %v2074_v11, %v1962_v8  ;;  %v2077_v18 = vadd.f32 %v2076_v16, %v2075_v12 }
 0x162   : > { %v1434_v20 = vadd.f32 %v1320_v17, %v440_v14  ;;  %v1323_v21 = vadd.f32 %v2077_v18, %v1965_v15 }
 0x163   : > { %v1966_v22 = vpop.f32.mrb[12].mxu0 }
 0x164   : > { %1466 = vst [vmem:[#allocation2 + $0x20] sm:$0xff] %v1434_v20  ;;  %v1435_v23 = vadd.f32 %v1323_v21, %v441_v19  ;;  %v2078_v24 = vpop.f32.mrb[12].mxu1  ;;  %v1967_v25 = vpop.f32.mrb[13].mxu0 }
 0x165   : > { %v1968_v26 = vadd.f32 %v1967_v25, %v1966_v22  ;;  %v2079_v27 = vpop.f32.mrb[13].mxu1  ;;  %v1969_v28 = vpop.f32.mrb[14].mxu0  ;;  %v448_v22 = vld [vmem:[#allocation2 + $0x60] sm:$0xff] }
 0x166   : > { %1467 = vst [vmem:[#allocation2 + $0x28] sm:$0xff] %v1435_v23  ;;  %v2080_v29 = vadd.f32 %v2079_v27, %v2078_v24  ;;  %v2081_v30 = vpop.f32.mrb[14].mxu1  ;;  %v1970_v31 = vpop.f32.mrb[15].mxu0  ;;  %v449_v27 = vld [vmem:[#allocation2 + $0x68] sm:$0xff] }
 0x167   : > { %v1971_v33 = vadd.f32 %v1970_v31, %v1969_v28  ;;  %v2082_v34 = vpop.f32.mrb[15].mxu1 }
 0x168   : > { %v1328_v35 = vadd.f32 %v2080_v29, %v1968_v26  ;;  %v2083_v36 = vadd.f32 %v2082_v34, %v2081_v30 }
 0x16a   : > { %v1436_v38 = vadd.f32 %v1328_v35, %v442_v32  ;;  %v1331_v39 = vadd.f32 %v2083_v36, %v1971_v33 }
 0x16b   : > { %v1972_v40 = vpop.f32.mrb[16].mxu0 }
 0x16c   : > { %1468 = vst [vmem:[#allocation2 + $0x30] sm:$0xff] %v1436_v38  ;;  %v1437_v41 = vadd.f32 %v1331_v39, %v443_v37  ;;  %v2084_v42 = vpop.f32.mrb[16].mxu1  ;;  %v1973_v43 = vpop.f32.mrb[17].mxu0 }
 0x16d   : > { %v1974_v44 = vadd.f32 %v1973_v43, %v1972_v40  ;;  %v2085_v45 = vpop.f32.mrb[17].mxu1  ;;  %v1975_v46 = vpop.f32.mrb[18].mxu0  ;;  %v450_v40 = vld [vmem:[#allocation2 + $0x70] sm:$0xff] }
 0x16e   : > { %1469 = vst [vmem:[#allocation2 + $0x38] sm:$0xff] %v1437_v41  ;;  %v2086_v47 = vadd.f32 %v2085_v45, %v2084_v42  ;;  %v2087_v48 = vpop.f32.mrb[18].mxu1  ;;  %v1976_v49 = vpop.f32.mrb[19].mxu0  ;;  %v451_v45 = vld [vmem:[#allocation2 + $0x78] sm:$0xff] }
 0x16f   : > { %v1977_v51 = vadd.f32 %v1976_v49, %v1975_v46  ;;  %v2088_v52 = vpop.f32.mrb[19].mxu1 }
 0x170   : > { %v1336_v53 = vadd.f32 %v2086_v47, %v1974_v44  ;;  %v2089_v54 = vadd.f32 %v2088_v52, %v2087_v48 }
 0x172   : > { %v1438_v56 = vadd.f32 %v1336_v53, %v444_v50  ;;  %v1339_v57 = vadd.f32 %v2089_v54, %v1977_v51 }
 0x173   : > { %v1978_v58 = vpop.f32.mrb[20].mxu0 }
 0x174   : > { %1470 = vst [vmem:[#allocation2 + $0x40] sm:$0xff] %v1438_v56  ;;  %v1439_v59 = vadd.f32 %v1339_v57, %v445_v55  ;;  %v2090_v60 = vpop.f32.mrb[20].mxu1  ;;  %v1979_v61 = vpop.f32.mrb[21].mxu0 }
 0x175   : > { %v1980_v62 = vadd.f32 %v1979_v61, %v1978_v58  ;;  %v2091_v63 = vpop.f32.mrb[21].mxu1  ;;  %v1981_v0 = vpop.f32.mrb[22].mxu0  ;;  %v452_v58 = vld [vmem:[#allocation2 + $0x80] sm:$0xff] }
 0x176   : > { %1471 = vst [vmem:[#allocation2 + $0x48] sm:$0xff] %v1439_v59  ;;  %v2092_v1 = vadd.f32 %v2091_v63, %v2090_v60  ;;  %v2093_v2 = vpop.f32.mrb[22].mxu1  ;;  %v1982_v3 = vpop.f32.mrb[23].mxu0  ;;  %v453_v63 = vld [vmem:[#allocation2 + $0x88] sm:$0xff] }
 0x177   : > { %v1983_v5 = vadd.f32 %v1982_v3, %v1981_v0  ;;  %v2094_v6 = vpop.f32.mrb[23].mxu1 }
 0x178   : > { %v1344_v7 = vadd.f32 %v2092_v1, %v1980_v62  ;;  %v2095_v8 = vadd.f32 %v2094_v6, %v2093_v2 }
 0x17a   : > { %v1440_v10 = vadd.f32 %v1344_v7, %v446_v4  ;;  %v1347_v11 = vadd.f32 %v2095_v8, %v1983_v5 }
 0x17b   : > { %v1984_v12 = vpop.f32.mrb[24].mxu0 }
 0x17c   : > { %1472 = vst [vmem:[#allocation2 + $0x50] sm:$0xff] %v1440_v10  ;;  %v1441_v13 = vadd.f32 %v1347_v11, %v447_v9  ;;  %v2096_v14 = vpop.f32.mrb[24].mxu1  ;;  %v1985_v15 = vpop.f32.mrb[25].mxu0 }
 0x17d   : > { %v1986_v16 = vadd.f32 %v1985_v15, %v1984_v12  ;;  %v2097_v17 = vpop.f32.mrb[25].mxu1  ;;  %v1987_v18 = vpop.f32.mrb[26].mxu0  ;;  %v454_v12 = vld [vmem:[#allocation2 + $0x90] sm:$0xff] }
 0x17e   : > { %1473 = vst [vmem:[#allocation2 + $0x58] sm:$0xff] %v1441_v13  ;;  %v2098_v19 = vadd.f32 %v2097_v17, %v2096_v14  ;;  %v2099_v20 = vpop.f32.mrb[26].mxu1  ;;  %v1988_v21 = vpop.f32.mrb[27].mxu0  ;;  %v455_v17 = vld [vmem:[#allocation2 + $0x98] sm:$0xff] }
 0x17f   : > { %v1989_v23 = vadd.f32 %v1988_v21, %v1987_v18  ;;  %v2100_v24 = vpop.f32.mrb[27].mxu1 }
 0x180   : > { %v1352_v25 = vadd.f32 %v2098_v19, %v1986_v16  ;;  %v2101_v26 = vadd.f32 %v2100_v24, %v2099_v20 }
 0x182   : > { %v1442_v28 = vadd.f32 %v1352_v25, %v448_v22  ;;  %v1355_v29 = vadd.f32 %v2101_v26, %v1989_v23 }
 0x183   : > { %v1990_v30 = vpop.f32.mrb[28].mxu0 }
 0x184   : > { %1474 = vst [vmem:[#allocation2 + $0x60] sm:$0xff] %v1442_v28  ;;  %v1443_v31 = vadd.f32 %v1355_v29, %v449_v27  ;;  %v2102_v32 = vpop.f32.mrb[28].mxu1  ;;  %v1991_v33 = vpop.f32.mrb[29].mxu0 }
 0x185   : > { %v1992_v34 = vadd.f32 %v1991_v33, %v1990_v30  ;;  %v2103_v35 = vpop.f32.mrb[29].mxu1  ;;  %v1993_v36 = vpop.f32.mrb[30].mxu0  ;;  %v456_v30 = vld [vmem:[#allocation2 + $0xa0] sm:$0xff] }
 0x186   : > { %1475 = vst [vmem:[#allocation2 + $0x68] sm:$0xff] %v1443_v31  ;;  %v2104_v37 = vadd.f32 %v2103_v35, %v2102_v32  ;;  %v2105_v38 = vpop.f32.mrb[30].mxu1  ;;  %v1994_v39 = vpop.f32.mrb[31].mxu0  ;;  %v457_v35 = vld [vmem:[#allocation2 + $0xa8] sm:$0xff] }
 0x187   : > { %v1995_v41 = vadd.f32 %v1994_v39, %v1993_v36  ;;  %v2106_v42 = vpop.f32.mrb[31].mxu1 }
 0x188   : > { %v1360_v43 = vadd.f32 %v2104_v37, %v1992_v34  ;;  %v2107_v44 = vadd.f32 %v2106_v42, %v2105_v38 }
 0x18a   : > { %v1444_v46 = vadd.f32 %v1360_v43, %v450_v40  ;;  %v1363_v47 = vadd.f32 %v2107_v44, %v1995_v41 }
 0x18b   : > { %v1996_v48 = vpop.f32.mrb[32].mxu0 }
 0x18c   : > { %1476 = vst [vmem:[#allocation2 + $0x70] sm:$0xff] %v1444_v46  ;;  %v1445_v49 = vadd.f32 %v1363_v47, %v451_v45  ;;  %v2108_v50 = vpop.f32.mrb[32].mxu1  ;;  %v1997_v51 = vpop.f32.mrb[33].mxu0 }
 0x18d   : > { %v1998_v52 = vadd.f32 %v1997_v51, %v1996_v48  ;;  %v2109_v53 = vpop.f32.mrb[33].mxu1  ;;  %v1999_v54 = vpop.f32.mrb[34].mxu0  ;;  %v458_v48 = vld [vmem:[#allocation2 + $0xb0] sm:$0xff] }
 0x18e   : > { %1477 = vst [vmem:[#allocation2 + $0x78] sm:$0xff] %v1445_v49  ;;  %v2110_v55 = vadd.f32 %v2109_v53, %v2108_v50  ;;  %v2111_v56 = vpop.f32.mrb[34].mxu1  ;;  %v2000_v57 = vpop.f32.mrb[35].mxu0  ;;  %v459_v53 = vld [vmem:[#allocation2 + $0xb8] sm:$0xff] }
 0x18f   : > { %v2001_v59 = vadd.f32 %v2000_v57, %v1999_v54  ;;  %v2112_v60 = vpop.f32.mrb[35].mxu1 }
 0x190   : > { %v1368_v61 = vadd.f32 %v2110_v55, %v1998_v52  ;;  %v2113_v62 = vadd.f32 %v2112_v60, %v2111_v56 }
 0x192   : > { %v1446_v0 = vadd.f32 %v1368_v61, %v452_v58  ;;  %v1371_v1 = vadd.f32 %v2113_v62, %v2001_v59 }
 0x193   : > { %v2002_v2 = vpop.f32.mrb[36].mxu0 }
 0x194   : > { %1478 = vst [vmem:[#allocation2 + $0x80] sm:$0xff] %v1446_v0  ;;  %v1447_v3 = vadd.f32 %v1371_v1, %v453_v63  ;;  %v2114_v4 = vpop.f32.mrb[36].mxu1  ;;  %v2003_v5 = vpop.f32.mrb[37].mxu0 }
 0x195   : > { %v2004_v6 = vadd.f32 %v2003_v5, %v2002_v2  ;;  %v2115_v7 = vpop.f32.mrb[37].mxu1  ;;  %v2005_v8 = vpop.f32.mrb[38].mxu0  ;;  %v460_v2 = vld [vmem:[#allocation2 + $0xc0] sm:$0xff] }
 0x196   : > { %1479 = vst [vmem:[#allocation2 + $0x88] sm:$0xff] %v1447_v3  ;;  %v2116_v9 = vadd.f32 %v2115_v7, %v2114_v4  ;;  %v2117_v10 = vpop.f32.mrb[38].mxu1  ;;  %v2006_v11 = vpop.f32.mrb[39].mxu0  ;;  %v461_v7 = vld [vmem:[#allocation2 + $0xc8] sm:$0xff] }
 0x197   : > { %v2007_v13 = vadd.f32 %v2006_v11, %v2005_v8  ;;  %v2118_v14 = vpop.f32.mrb[39].mxu1 }
 0x198   : > { %v1376_v15 = vadd.f32 %v2116_v9, %v2004_v6  ;;  %v2119_v16 = vadd.f32 %v2118_v14, %v2117_v10 }
 0x19a   : > { %v1448_v18 = vadd.f32 %v1376_v15, %v454_v12  ;;  %v1379_v19 = vadd.f32 %v2119_v16, %v2007_v13 }
 0x19b   : > { %v2008_v20 = vpop.f32.mrb[40].mxu0 }
 0x19c   : > { %1480 = vst [vmem:[#allocation2 + $0x90] sm:$0xff] %v1448_v18  ;;  %v1449_v21 = vadd.f32 %v1379_v19, %v455_v17  ;;  %v2120_v22 = vpop.f32.mrb[40].mxu1  ;;  %v2009_v23 = vpop.f32.mrb[41].mxu0 }
 0x19d   : > { %v2010_v24 = vadd.f32 %v2009_v23, %v2008_v20  ;;  %v2121_v25 = vpop.f32.mrb[41].mxu1  ;;  %v2011_v26 = vpop.f32.mrb[42].mxu0  ;;  %v462_v20 = vld [vmem:[#allocation2 + $0xd0] sm:$0xff] }
 0x19e   : > { %1481 = vst [vmem:[#allocation2 + $0x98] sm:$0xff] %v1449_v21  ;;  %v2122_v27 = vadd.f32 %v2121_v25, %v2120_v22  ;;  %v2123_v28 = vpop.f32.mrb[42].mxu1  ;;  %v2012_v29 = vpop.f32.mrb[43].mxu0  ;;  %v463_v25 = vld [vmem:[#allocation2 + $0xd8] sm:$0xff] }
 0x19f   : > { %v2013_v31 = vadd.f32 %v2012_v29, %v2011_v26  ;;  %v2124_v32 = vpop.f32.mrb[43].mxu1 }
 0x1a0   : > { %v1384_v33 = vadd.f32 %v2122_v27, %v2010_v24  ;;  %v2125_v34 = vadd.f32 %v2124_v32, %v2123_v28 }
 0x1a2   : > { %v1450_v36 = vadd.f32 %v1384_v33, %v456_v30  ;;  %v1387_v37 = vadd.f32 %v2125_v34, %v2013_v31 }
 0x1a3   : > { %v2014_v38 = vpop.f32.mrb[44].mxu0 }
 0x1a4   : > { %1482 = vst [vmem:[#allocation2 + $0xa0] sm:$0xff] %v1450_v36  ;;  %v1451_v39 = vadd.f32 %v1387_v37, %v457_v35  ;;  %v2126_v40 = vpop.f32.mrb[44].mxu1  ;;  %v2015_v41 = vpop.f32.mrb[45].mxu0 }
 0x1a5   : > { %v2016_v42 = vadd.f32 %v2015_v41, %v2014_v38  ;;  %v2127_v43 = vpop.f32.mrb[45].mxu1  ;;  %v2017_v44 = vpop.f32.mrb[46].mxu0  ;;  %v464_v38 = vld [vmem:[#allocation2 + $0xe0] sm:$0xff] }
 0x1a6   : > { %1483 = vst [vmem:[#allocation2 + $0xa8] sm:$0xff] %v1451_v39  ;;  %v2128_v45 = vadd.f32 %v2127_v43, %v2126_v40  ;;  %v2129_v46 = vpop.f32.mrb[46].mxu1  ;;  %v2018_v47 = vpop.f32.mrb[47].mxu0  ;;  %v465_v43 = vld [vmem:[#allocation2 + $0xe8] sm:$0xff] }
 0x1a7   : > { %v2019_v49 = vadd.f32 %v2018_v47, %v2017_v44  ;;  %v2130_v50 = vpop.f32.mrb[47].mxu1 }
 0x1a8   : > { %v1392_v51 = vadd.f32 %v2128_v45, %v2016_v42  ;;  %v2131_v52 = vadd.f32 %v2130_v50, %v2129_v46 }
 0x1aa   : > { %v1452_v54 = vadd.f32 %v1392_v51, %v458_v48  ;;  %v1395_v55 = vadd.f32 %v2131_v52, %v2019_v49 }
 0x1ab   : > { %v2020_v56 = vpop.f32.mrb[48].mxu0 }
 0x1ac   : > { %1484 = vst [vmem:[#allocation2 + $0xb0] sm:$0xff] %v1452_v54  ;;  %v1453_v57 = vadd.f32 %v1395_v55, %v459_v53  ;;  %v2132_v58 = vpop.f32.mrb[48].mxu1  ;;  %v2021_v59 = vpop.f32.mrb[49].mxu0 }
 0x1ad   : > { %v2022_v60 = vadd.f32 %v2021_v59, %v2020_v56  ;;  %v2133_v61 = vpop.f32.mrb[49].mxu1  ;;  %v2023_v62 = vpop.f32.mrb[50].mxu0  ;;  %v466_v56 = vld [vmem:[#allocation2 + $0xf0] sm:$0xff] }
 0x1ae   : > { %1485 = vst [vmem:[#allocation2 + $0xb8] sm:$0xff] %v1453_v57  ;;  %v2134_v63 = vadd.f32 %v2133_v61, %v2132_v58  ;;  %v2135_v0 = vpop.f32.mrb[50].mxu1  ;;  %v2024_v1 = vpop.f32.mrb[51].mxu0  ;;  %v467_v61 = vld [vmem:[#allocation2 + $0xf8] sm:$0xff] }
 0x1af   : > { %v2025_v3 = vadd.f32 %v2024_v1, %v2023_v62  ;;  %v2136_v4 = vpop.f32.mrb[51].mxu1  ;;  %v1498_v1 = vld [vmem:[#allocation2] sm:$0xff] (!%p1927_p13) }
 0x1b0   : > { %v1400_v5 = vadd.f32 %v2134_v63, %v2022_v60  ;;  %v2137_v6 = vadd.f32 %v2136_v4, %v2135_v0 }
 0x1b2   : > { %v1454_v8 = vadd.f32 %v1400_v5, %v460_v2  ;;  %v1403_v9 = vadd.f32 %v2137_v6, %v2025_v3  ;;  %v2728_v2 = vld [vmem:[%s2817_s2] ss:$0 sm:$0xff] (!%p1927_p13)  ;;  %v1499_v3 = vld [vmem:[#allocation2 + $0x8] sm:$0xff] (!%p1927_p13)  ;;  %v1500_v6 = vld [vmem:[#allocation2 + $0x10] sm:$0xff] (!%p1927_p13) }
 0x1b3   : > { %v2026_v10 = vpop.f32.mrb[52].mxu0  ;;  %v1537_v4 = vadd.f32 (!%p1927_p13), %v2728_v2, %v1498_v1  ;;  %v1538_v5 = vadd.f32 (!%p1927_p13), %v2728_v2, %v1499_v3 }
 0x1b4   : > { %1486 = vst [vmem:[#allocation2 + $0xc0] sm:$0xff] %v1454_v8  ;;  %v1455_v11 = vadd.f32 %v1403_v9, %v461_v7  ;;  %v2138_v12 = vpop.f32.mrb[52].mxu1  ;;  %v2027_v13 = vpop.f32.mrb[53].mxu0  ;;  %v1501_v7 = vld [vmem:[#allocation2 + $0x18] sm:$0xff] (!%p1927_p13)  ;;  %v1502_v8 = vld [vmem:[#allocation2 + $0x20] sm:$0xff] (!%p1927_p13)  ;;  %v1539_v9 = vadd.f32 (!%p1927_p13), %v2728_v2, %v1500_v6  ;;  %v1519_v6 = vld [vmem:[#allocation2 + $0xa8] sm:$0xff] (!%p1927_p13) }
 0x1b5   : > { %v2028_v14 = vadd.f32 %v2027_v13, %v2026_v10  ;;  %v2139_v15 = vpop.f32.mrb[53].mxu1  ;;  %v2029_v16 = vpop.f32.mrb[54].mxu0  ;;  %v1540_v10 = vadd.f32 (!%p1927_p13), %v2728_v2, %v1501_v7  ;;  %v1504_v13 = vld [vmem:[#allocation2 + $0x30] sm:$0xff] (!%p1927_p13)  ;;  %vm1569_vm0 = vcmp.ge.f32.partialorder (!%p1927_p13), %v1537_v4, 0.0  ;;  %vm1570_vm1 = vcmp.ge.f32.partialorder (!%p1927_p13), %v1538_v5, 0.0 }
 0x1b6   : > { %1487 = vst [vmem:[#allocation2 + $0xc8] sm:$0xff] %v1455_v11  ;;  %v2140_v17 = vadd.f32 %v2139_v15, %v2138_v12  ;;  %v2141_v18 = vpop.f32.mrb[54].mxu1  ;;  %v2030_v19 = vpop.f32.mrb[55].mxu0  ;;  %v1541_v11 = vadd.f32 (!%p1927_p13), %v2728_v2, %v1502_v8  ;;  %v1503_v12 = vld [vmem:[#allocation2 + $0x28] sm:$0xff] (!%p1927_p13)  ;;  %v1601_v15 = vmul.f32 (!%p1927_p13), 0.1, %v1537_v4 }
 0x1b7   : > { %v2031_v21 = vadd.f32 %v2030_v19, %v2029_v16  ;;  %v2142_v22 = vpop.f32.mrb[55].mxu1  ;;  %v1602_v16 = vmul.f32 (!%p1927_p13), 0.1, %v1538_v5  ;;  %vm1571_vm2 = vcmp.ge.f32.partialorder (!%p1927_p13), %v1539_v9, 0.0  ;;  %vm1572_vm3 = vcmp.ge.f32.partialorder (!%p1927_p13), %v1540_v10, 0.0 }
 0x1b8   : > { %v1408_v23 = vadd.f32 %v2140_v17, %v2028_v14  ;;  %v2143_v24 = vadd.f32 %v2142_v22, %v2141_v18  ;;  %v1505_v14 = vld [vmem:[#allocation2 + $0x38] sm:$0xff] (!%p1927_p13)  ;;  %v1603_v17 = vmul.f32 (!%p1927_p13), 0.1, %v1539_v9  ;;  %v1604_v18 = vmul.f32 (!%p1927_p13), 0.1, %v1540_v10  ;;  %v1506_v22 = vld [vmem:[#allocation2 + $0x40] sm:$0xff] (!%p1927_p13) }
 0x1b9   : > { %v1633_v19 = vsel (!%p1927_p13), %vm1569_vm0, %v1537_v4, %v1601_v15  ;;  %vm1573_vm4 = vcmp.ge.f32.partialorder (!%p1927_p13), %v1541_v11, 0.0 }
 0x1ba   : > { %v1456_v26 = vadd.f32 %v1408_v23, %v462_v20  ;;  %v1411_v27 = vadd.f32 %v2143_v24, %v2031_v21  ;;  %v1634_v20 = vsel (!%p1927_p13), %vm1570_vm1, %v1538_v5, %v1602_v16  ;;  %v1605_v21 = vmul.f32 (!%p1927_p13), 0.1, %v1541_v11  ;;  %v1507_v23 = vld [vmem:[#allocation2 + $0x48] sm:$0xff] (!%p1927_p13)  ;;  %1665 = vst [vmem:[%s2623_s30] sm:$0xff] (!%p1927_p13), %v1633_v19  ;;  %v1518_v5 = vld [vmem:[#allocation2 + $0xa0] sm:$0xff] (!%p1927_p13) }
 0x1bb   : > { %v2032_v28 = vpop.f32.mrb[56].mxu0  ;;  %1666 = vst [vmem:[%s2623_s30 + $0x8] sm:$0xff] (!%p1927_p13), %v1634_v20  ;;  %v1635_v24 = vsel (!%p1927_p13), %vm1571_vm2, %v1539_v9, %v1603_v17 }
 0x1bc   : > { %1488 = vst [vmem:[#allocation2 + $0xd0] sm:$0xff] %v1456_v26  ;;  %v1457_v29 = vadd.f32 %v1411_v27, %v463_v25  ;;  %v2144_v30 = vpop.f32.mrb[56].mxu1  ;;  %v2033_v31 = vpop.f32.mrb[57].mxu0  ;;  %v1636_v25 = vsel (!%p1927_p13), %vm1572_vm3, %v1540_v10, %v1604_v18  ;;  %v1542_v26 = vadd.f32 (!%p1927_p13), %v2728_v2, %v1503_v12  ;;  %v1543_v27 = vadd.f32 (!%p1927_p13), %v2728_v2, %v1504_v13  ;;  %v1521_v12 = vld [vmem:[#allocation2 + $0xb8] sm:$0xff] (!%p1927_p13)  ;;  %v1522_v13 = vld [vmem:[#allocation2 + $0xc0] sm:$0xff] (!%p1927_p13) }
 0x1bd   : > { %v2034_v32 = vadd.f32 %v2033_v31, %v2032_v28  ;;  %v2145_v33 = vpop.f32.mrb[57].mxu1  ;;  %v2035_v34 = vpop.f32.mrb[58].mxu0  ;;  %v1508_v28 = vld [vmem:[#allocation2 + $0x50] sm:$0xff] (!%p1927_p13)  ;;  %1667 = vst [vmem:[%s2623_s30 + $0x10] sm:$0xff] (!%p1927_p13), %v1635_v24  ;;  %1668 = vst [vmem:[%s2623_s30 + $0x18] sm:$0xff] (!%p1927_p13), %v1636_v25  ;;  %v1544_v31 = vadd.f32 (!%p1927_p13), %v2728_v2, %v1505_v14  ;;  %v1558_v24 = vadd.f32 (!%p1927_p13), %v2728_v2, %v1519_v6  ;;  %v1523_v25 = vld [vmem:[#allocation2 + $0xc8] sm:$0xff] (!%p1927_p13) }
 0x1be   : > { %1489 = vst [vmem:[#allocation2 + $0xd8] sm:$0xff] %v1457_v29  ;;  %v2146_v35 = vadd.f32 %v2145_v33, %v2144_v30  ;;  %v2147_v36 = vpop.f32.mrb[58].mxu1  ;;  %v2036_v37 = vpop.f32.mrb[59].mxu0  ;;  %v1509_v29 = vld [vmem:[#allocation2 + $0x58] sm:$0xff] (!%p1927_p13)  ;;  %v1637_v30 = vsel (!%p1927_p13), %vm1573_vm4, %v1541_v11, %v1605_v21  ;;  %v1546_v33 = vadd.f32 (!%p1927_p13), %v2728_v2, %v1507_v23  ;;  %vm1574_vm5 = vcmp.ge.f32.partialorder (!%p1927_p13), %v1542_v26, 0.0  ;;  %v1520_v11 = vld [vmem:[#allocation2 + $0xb0] sm:$0xff] (!%p1927_p13) }
 0x1bf   : > { %v2037_v39 = vadd.f32 %v2036_v37, %v2035_v34  ;;  %v2148_v40 = vpop.f32.mrb[59].mxu1  ;;  %v1510_v34 = vld [vmem:[#allocation2 + $0x60] sm:$0xff] (!%p1927_p13)  ;;  %1669 = vst [vmem:[%s2623_s30 + $0x20] sm:$0xff] (!%p1927_p13), %v1637_v30  ;;  %v1606_v37 = vmul.f32 (!%p1927_p13), 0.1, %v1542_v26  ;;  %vm1575_vm6 = vcmp.ge.f32.partialorder (!%p1927_p13), %v1543_v27, 0.0  ;;  %v1557_v23 = vadd.f32 (!%p1927_p13), %v2728_v2, %v1518_v5 }
 0x1c0   : > { %v1416_v41 = vadd.f32 %v2146_v35, %v2034_v32  ;;  %v2149_v42 = vadd.f32 %v2148_v40, %v2147_v36  ;;  %v1545_v32 = vadd.f32 (!%p1927_p13), %v2728_v2, %v1506_v22  ;;  %v1511_v35 = vld [vmem:[#allocation2 + $0x68] sm:$0xff] (!%p1927_p13)  ;;  %v1512_v36 = vld [vmem:[#allocation2 + $0x70] sm:$0xff] (!%p1927_p13)  ;;  %vm1576_vm7 = vcmp.ge.f32.partialorder (!%p1927_p13), %v1544_v31, 0.0 }
 0x1c1   : > { %vm1578_vm9 = vcmp.ge.f32.partialorder (!%p1927_p13), %v1546_v33, 0.0  ;;  %v1561_v30 = vadd.f32 (!%p1927_p13), %v2728_v2, %v1522_v13  ;;  %vm1589_vm4 = vcmp.ge.f32.partialorder (!%p1927_p13), %v1557_v23, 0.0 }
 0x1c2   : > { %v1458_v44 = vadd.f32 %v1416_v41, %v464_v38  ;;  %v1419_v45 = vadd.f32 %v2149_v42, %v2037_v39  ;;  %v1607_v38 = vmul.f32 (!%p1927_p13), 0.1, %v1543_v27  ;;  %v1608_v39 = vmul.f32 (!%p1927_p13), 0.1, %v1544_v31 }
 0x1c3   : > { %v2038_v46 = vpop.f32.mrb[60].mxu0  ;;  %vm1577_vm8 = vcmp.ge.f32.partialorder (!%p1927_p13), %v1545_v32, 0.0  ;;  %v1609_v40 = vmul.f32 (!%p1927_p13), 0.1, %v1545_v32  ;;  %v1638_v41 = vsel (!%p1927_p13), %vm1574_vm5, %v1542_v26, %v1606_v37  ;;  %v1524_v26 = vld [vmem:[#allocation2 + $0xd0] sm:$0xff] (!%p1927_p13)  ;;  %vm1590_vm5 = vcmp.ge.f32.partialorder (!%p1927_p13), %v1558_v24, 0.0 }
 0x1c4   : > { %1490 = vst [vmem:[#allocation2 + $0xe0] sm:$0xff] %v1458_v44  ;;  %v1459_v47 = vadd.f32 %v1419_v45, %v465_v43  ;;  %v2150_v48 = vpop.f32.mrb[60].mxu1  ;;  %v2039_v49 = vpop.f32.mrb[61].mxu0  ;;  %v1639_v42 = vsel (!%p1927_p13), %vm1575_vm6, %v1543_v27, %v1607_v38  ;;  %v1610_v43 = vmul.f32 (!%p1927_p13), 0.1, %v1546_v33  ;;  %1670 = vst [vmem:[%s2623_s30 + $0x28] sm:$0xff] (!%p1927_p13), %v1638_v41  ;;  %v1640_v44 = vsel (!%p1927_p13), %vm1576_vm7, %v1544_v31, %v1608_v39 }
 0x1c5   : > { %v2040_v50 = vadd.f32 %v2039_v49, %v2038_v46  ;;  %v2151_v51 = vpop.f32.mrb[61].mxu1  ;;  %v2041_v52 = vpop.f32.mrb[62].mxu0  ;;  %1671 = vst [vmem:[%s2623_s30 + $0x30] sm:$0xff] (!%p1927_p13), %v1639_v42  ;;  %v1641_v45 = vsel (!%p1927_p13), %vm1577_vm8, %v1545_v32, %v1609_v40  ;;  %v1547_v46 = vadd.f32 (!%p1927_p13), %v2728_v2, %v1508_v28  ;;  %v1514_v49 = vld [vmem:[#allocation2 + $0x80] sm:$0xff] (!%p1927_p13)  ;;  %1672 = vst [vmem:[%s2623_s30 + $0x38] sm:$0xff] (!%p1927_p13), %v1640_v44  ;;  %v1525_v31 = vld [vmem:[#allocation2 + $0xd8] sm:$0xff] (!%p1927_p13) }
 0x1c6   : > { %1491 = vst [vmem:[#allocation2 + $0xe8] sm:$0xff] %v1459_v47  ;;  %v2152_v53 = vadd.f32 %v2151_v51, %v2150_v48  ;;  %v2153_v54 = vpop.f32.mrb[62].mxu1  ;;  %v2042_v55 = vpop.f32.mrb[63].mxu0  ;;  %v1548_v47 = vadd.f32 (!%p1927_p13), %v2728_v2, %v1509_v29  ;;  %v1513_v48 = vld [vmem:[#allocation2 + $0x78] sm:$0xff] (!%p1927_p13)  ;;  %1673 = vst [vmem:[%s2623_s30 + $0x40] sm:$0xff] (!%p1927_p13), %v1641_v45  ;;  %v1549_v51 = vadd.f32 (!%p1927_p13), %v2728_v2, %v1510_v34  ;;  %vm1593_vm8 = vcmp.ge.f32.partialorder (!%p1927_p13), %v1561_v30, 0.0 }
 0x1c7   : > { %v2043_v57 = vadd.f32 %v2042_v55, %v2041_v52  ;;  %v2154_v58 = vpop.f32.mrb[63].mxu1  ;;  %v1550_v52 = vadd.f32 (!%p1927_p13), %v2728_v2, %v1511_v35  ;;  %v1516_v55 = vld [vmem:[#allocation2 + $0x90] sm:$0xff] (!%p1927_p13)  ;;  %vm1579_vm10 = vcmp.ge.f32.partialorder (!%p1927_p13), %v1547_v46, 0.0  ;;  %v1552_v3 = vadd.f32 (!%p1927_p13), %v2728_v2, %v1513_v48 }
 0x1c8   : > { %v1424_v59 = vadd.f32 %v2152_v53, %v2040_v50  ;;  %v2155_v60 = vadd.f32 %v2154_v58, %v2153_v54  ;;  %1497 = sbr.rel (%p1927_p13) target bundleno = 479 (0x1df), region = 63  ;;  %v1642_v50 = vsel (!%p1927_p13), %vm1578_vm9, %v1546_v33, %v1610_v43  ;;  %v1551_v53 = vadd.f32 (!%p1927_p13), %v2728_v2, %v1512_v36  ;;  %v1515_v54 = vld [vmem:[#allocation2 + $0x88] sm:$0xff] (!%p1927_p13) }
 0x1c9   : > { %1674 = vst [vmem:[%s2623_s30 + $0x48] sm:$0xff] (!%p1927_p13), %v1642_v50  ;;  %vm1580_vm11 = vcmp.ge.f32.partialorder (!%p1927_p13), %v1548_v47, 0.0  ;;  %v1612_v58 = vmul.f32 (!%p1927_p13), 0.1, %v1548_v47  ;;  %vm1581_vm12 = vcmp.ge.f32.partialorder (!%p1927_p13), %v1549_v51, 0.0  ;;  %vm1582_vm13 = vcmp.ge.f32.partialorder (!%p1927_p13), %v1550_v52, 0.0 }
 0x1ca   : > { %v1460_v62 = vadd.f32 %v1424_v59, %v466_v56  ;;  %v1427_v63 = vadd.f32 %v2155_v60, %v2043_v57  ;;  %v1517_v56 = vld [vmem:[#allocation2 + $0x98] sm:$0xff] (!%p1927_p13)  ;;  %v1611_v57 = vmul.f32 (!%p1927_p13), 0.1, %v1547_v46  ;;  %v1613_v59 = vmul.f32 (!%p1927_p13), 0.1, %v1549_v51 }
 0x1cb   : > { %v1614_v60 = vmul.f32 (!%p1927_p13), 0.1, %v1550_v52  ;;  %vm1583_vm14 = vcmp.ge.f32.partialorder (!%p1927_p13), %v1551_v53, 0.0  ;;  %v1553_v4 = vadd.f32 (!%p1927_p13), %v2728_v2, %v1514_v49  ;;  %v1554_v8 = vadd.f32 (!%p1927_p13), %v2728_v2, %v1515_v54  ;;  %v1526_v32 = vld [vmem:[#allocation2 + $0xe0] sm:$0xff] (!%p1927_p13) }
 0x1cc   : > { %1492 = vst [vmem:[#allocation2 + $0xf0] sm:$0xff] %v1460_v62  ;;  %v1461_v0 = vadd.f32 %v1427_v63, %v467_v61  ;;  %v1643_v61 = vsel (!%p1927_p13), %vm1579_vm10, %v1547_v46, %v1611_v57  ;;  %v1644_v62 = vsel (!%p1927_p13), %vm1580_vm11, %v1548_v47, %v1612_v58  ;;  %v1615_v63 = vmul.f32 (!%p1927_p13), 0.1, %v1551_v53 }
 0x1cd   : > { %1675 = vst [vmem:[%s2623_s30 + $0x50] sm:$0xff] (!%p1927_p13), %v1643_v61  ;;  %1676 = vst [vmem:[%s2623_s30 + $0x58] sm:$0xff] (!%p1927_p13), %v1644_v62  ;;  %v1646_v1 = vsel (!%p1927_p13), %vm1582_vm13, %v1550_v52, %v1614_v60  ;;  %v1555_v9 = vadd.f32 (!%p1927_p13), %v2728_v2, %v1516_v55  ;;  %v1556_v10 = vadd.f32 (!%p1927_p13), %v2728_v2, %v1517_v56  ;;  %vm1584_vm15 = vcmp.ge.f32.partialorder (!%p1927_p13), %v1552_v3, 0.0  ;;  %v1527_v33 = vld [vmem:[#allocation2 + $0xe8] sm:$0xff] (!%p1927_p13) }
 0x1ce   : > { %1493 = vst [vmem:[#allocation2 + $0xf8] sm:$0xff] %v1461_v0  ;;  %v1645_v0 = vsel (!%p1927_p13), %vm1581_vm12, %v1549_v51, %v1613_v59  ;;  %1678 = vst [vmem:[%s2623_s30 + $0x68] sm:$0xff] (!%p1927_p13), %v1646_v1  ;;  %v1647_v7 = vsel (!%p1927_p13), %vm1583_vm14, %v1551_v53, %v1615_v63  ;;  %v1616_v14 = vmul.f32 (!%p1927_p13), 0.1, %v1552_v3  ;;  %vm1585_vm0 = vcmp.ge.f32.partialorder (!%p1927_p13), %v1553_v4, 0.0 }
 0x1cf   : > { %1677 = vst [vmem:[%s2623_s30 + $0x60] sm:$0xff] %v1645_v0  ;;  %1679 = vst [vmem:[%s2623_s30 + $0x70] sm:$0xff] %v1647_v7  ;;  %v1617_v15 = vmul.f32 0.1, %v1553_v4  ;;  %vm1586_vm1 = vcmp.ge.f32.partialorder %v1554_v8, 0.0  ;;  %vm1587_vm2 = vcmp.ge.f32.partialorder %v1555_v9, 0.0  ;;  %v1559_v28 = vadd.f32 %v2728_v2, %v1520_v11 }
 0x1d0   : > { %v1618_v16 = vmul.f32 0.1, %v1554_v8  ;;  %v1619_v17 = vmul.f32 0.1, %v1555_v9  ;;  %v1648_v18 = vsel %vm1584_vm15, %v1552_v3, %v1616_v14  ;;  %vm1588_vm3 = vcmp.ge.f32.partialorder %v1556_v10, 0.0 }
 0x1d1   : > { %v1649_v19 = vsel %vm1585_vm0, %v1553_v4, %v1617_v15  ;;  %v1620_v20 = vmul.f32 0.1, %v1556_v10  ;;  %1680 = vst [vmem:[%s2623_s30 + $0x78] sm:$0xff] %v1648_v18  ;;  %v1560_v29 = vadd.f32 %v2728_v2, %v1521_v12  ;;  %v1621_v34 = vmul.f32 0.1, %v1557_v23 }
 0x1d2   : > { %1681 = vst [vmem:[%s2623_s30 + $0x80] sm:$0xff] %v1649_v19  ;;  %v1650_v21 = vsel %vm1586_vm1, %v1554_v8, %v1618_v16  ;;  %v1651_v22 = vsel %vm1587_vm2, %v1555_v9, %v1619_v17  ;;  %v1622_v35 = vmul.f32 0.1, %v1558_v24  ;;  %vm1591_vm6 = vcmp.ge.f32.partialorder %v1559_v28, 0.0 }
 0x1d3   : > { %1682 = vst [vmem:[%s2623_s30 + $0x88] sm:$0xff] %v1650_v21  ;;  %1683 = vst [vmem:[%s2623_s30 + $0x90] sm:$0xff] %v1651_v22  ;;  %v1652_v27 = vsel %vm1588_vm3, %v1556_v10, %v1620_v20  ;;  %v1623_v36 = vmul.f32 0.1, %v1559_v28  ;;  %vm1592_vm7 = vcmp.ge.f32.partialorder %v1560_v29, 0.0  ;;  %v1653_v38 = vsel %vm1589_vm4, %v1557_v23, %v1621_v34  ;;  %v1528_v49 = vld [vmem:[#allocation2 + $0xf0] sm:$0xff] }
 0x1d4   : > { %1684 = vst [vmem:[%s2623_s30 + $0x98] sm:$0xff] %v1652_v27  ;;  %v1624_v37 = vmul.f32 0.1, %v1560_v29  ;;  %v1654_v39 = vsel %vm1590_vm5, %v1558_v24, %v1622_v35  ;;  %v1625_v40 = vmul.f32 0.1, %v1561_v30  ;;  %1685 = vst [vmem:[%s2623_s30 + $0xa0] sm:$0xff] %v1653_v38  ;;  %v1562_v43 = vadd.f32 %v2728_v2, %v1523_v25 }
 0x1d5   : > { %1686 = vst [vmem:[%s2623_s30 + $0xa8] sm:$0xff] %v1654_v39  ;;  %v1655_v41 = vsel %vm1591_vm6, %v1559_v28, %v1623_v36  ;;  %v1563_v44 = vadd.f32 %v2728_v2, %v1524_v26  ;;  %v1564_v46 = vadd.f32 %v2728_v2, %v1525_v31  ;;  %v1565_v47 = vadd.f32 %v2728_v2, %v1526_v32  ;;  %v1529_v50 = vld [vmem:[#allocation2 + $0xf8] sm:$0xff] }
 0x1d6   : > { %v1656_v42 = vsel %vm1592_vm7, %v1560_v29, %v1624_v37  ;;  %1687 = vst [vmem:[%s2623_s30 + $0xb0] sm:$0xff] %v1655_v41  ;;  %v1657_v45 = vsel %vm1593_vm8, %v1561_v30, %v1625_v40  ;;  %v1566_v48 = vadd.f32 %v2728_v2, %v1527_v33  ;;  %vm1594_vm9 = vcmp.ge.f32.partialorder %v1562_v43, 0.0 }
 0x1d7   : > { %1688 = vst [vmem:[%s2623_s30 + $0xb8] sm:$0xff] %v1656_v42  ;;  %1689 = vst [vmem:[%s2623_s30 + $0xc0] sm:$0xff] %v1657_v45  ;;  %v1626_v51 = vmul.f32 0.1, %v1562_v43  ;;  %vm1595_vm10 = vcmp.ge.f32.partialorder %v1563_v44, 0.0  ;;  %vm1596_vm11 = vcmp.ge.f32.partialorder %v1564_v46, 0.0  ;;  %v1567_v60 = vadd.f32 %v2728_v2, %v1528_v49 }
 0x1d8   : > { %v1627_v52 = vmul.f32 0.1, %v1563_v44  ;;  %v1628_v53 = vmul.f32 0.1, %v1564_v46  ;;  %vm1597_vm12 = vcmp.ge.f32.partialorder %v1565_v47, 0.0  ;;  %vm1598_vm13 = vcmp.ge.f32.partialorder %v1566_v48, 0.0 }
 0x1d9   : > { %v1629_v54 = vmul.f32 0.1, %v1565_v47  ;;  %v1658_v55 = vsel %vm1594_vm9, %v1562_v43, %v1626_v51  ;;  %v1630_v57 = vmul.f32 0.1, %v1566_v48  ;;  %v1568_v61 = vadd.f32 %v2728_v2, %v1529_v50 }
 0x1da   : > { %v1659_v56 = vsel %vm1595_vm10, %v1563_v44, %v1627_v52  ;;  %1690 = vst [vmem:[%s2623_s30 + $0xc8] sm:$0xff] %v1658_v55  ;;  %v1660_v58 = vsel %vm1596_vm11, %v1564_v46, %v1628_v53  ;;  %vm1599_vm14 = vcmp.ge.f32.partialorder %v1567_v60, 0.0  ;;  %v1631_v63 = vmul.f32 0.1, %v1567_v60 }
 0x1db   : > { %1691 = vst [vmem:[%s2623_s30 + $0xd0] sm:$0xff] %v1659_v56  ;;  %v1661_v59 = vsel %vm1597_vm12, %v1565_v47, %v1629_v54  ;;  %1692 = vst [vmem:[%s2623_s30 + $0xd8] sm:$0xff] %v1660_v58  ;;  %v1662_v62 = vsel %vm1598_vm13, %v1566_v48, %v1630_v57  ;;  %vm1600_vm15 = vcmp.ge.f32.partialorder %v1568_v61, 0.0  ;;  %v1632_v0 = vmul.f32 0.1, %v1568_v61 }
 0x1dc   : > { %1693 = vst [vmem:[%s2623_s30 + $0xe0] sm:$0xff] %v1661_v59  ;;  %1694 = vst [vmem:[%s2623_s30 + $0xe8] sm:$0xff] %v1662_v62  ;;  %v1663_v1 = vsel %vm1599_vm14, %v1567_v60, %v1631_v63 }
 0x1dd   : > { %v1664_v3 = vsel %vm1600_vm15, %v1568_v61, %v1632_v0  ;;  %1695 = vst [vmem:[%s2623_s30 + $0xf0] sm:$0xff] %v1663_v1 }
 0x1de   : > { %1696 = vst [vmem:[%s2623_s30 + $0xf8] sm:$0xff] %v1664_v3 }
 0x1df PF: > { %s13_s18 = sadd.s32 1, %s2395_s18   ;;  %s2819_s12 = smov %s2375_s13 }
 0x1e0   : > { %p10_p0 = scmp.ge.s32.totalorder %s13_s18, 6   ;;  %s2820_s13 = smov %s2469_s25 }
 0x1e1   : > { %s2821_s14 = smov %s2387_s16  ;;  %s2822_s15 = smov %s2391_s17 }
 0x1e2   : > { %s2823_s16 = smov %s2826_s19  ;;  %s2824_s17 = smov %s2830_s20 }
 0x1e3   :  { %12 = sbr.rel (!%p10_p0) target bundleno = 4 (0x4), region = 104 }

// kernel: _forward_arrays.8
= control target key start
LH: loop header
LB: loop body
LE: loop exit
PB: predicated region body
PF: predicated region fallthrough
CT: control target
= control target key end

     0   :  { %s2631_s23 = smov 0   ;;  %s3723_s0 = inlined_call_operand.vmem [shape: f32[2,256,128], index: 0, kind: input, shape index: {}]   ;;  %s3724_s1 = inlined_call_operand.vmem [shape: bf16[128,32], index: 1, kind: input, shape index: {}]   ;;  %s3725_s2 = inlined_call_operand.vmem [shape: f32[1,32], index: 2, kind: input, shape index: {}]   ;;  %s3726_s3 = inlined_call_operand.vmem [shape: bf16[128,128], index: 3, kind: input, shape index: {}]   ;;  %s3727_s4 = inlined_call_operand.vmem [shape: f32[1,128], index: 4, kind: input, shape index: {}]   ;;  %s3728_s5 = inlined_call_operand.<no memory space> [shape: f32[1,1], index: 5, kind: input, shape index: {}]   ;;  %s3729_s6 = inlined_call_operand.vmem [shape: f32[2,256,128], index: 6, kind: output, shape index: {}]  }
   0x1   :  { %v11_v0 = vstv %s3728_s5 }
   0x2   :  { %12 = vst [vmem:[#allocation2] sm:$0x1] %v11_v0 }
   0x3 LB: > { %s1971_s24 = sadd.s32 4294967295, %s2589_s23   ;;  %p1975_p0 = scmp.ge.s32.totalorder %s2589_s23, 1  ;;  %s2589_s23 = sphi %s2631_s23, %s18_s23  }
   0x4   : > { %p214_p1 = scmp.lt.s32.totalorder %s2589_s23, 3 }
   0x6   : > { %p215_p2 = pnand %p1975_p0, %p214_p1 }
   0x8   : > { %218 = sbr.rel (%p215_p2) target bundleno = 1425 (0x591), region = 44 }
   0xf   : > { %v2343_v1 = vld [vmem:[%s3724_s1] sm:$0xff]   ;;  %p244_p3 = scmp.lt.s32.totalorder %s1971_s24, 1  ;;  %v2344_v2 = vld [vmem:[%s3724_s1 + $0x8] sm:$0xff]   ;;  %v2345_v3 = vld [vmem:[%s3724_s1 + $0x10] sm:$0xff]   ;;  %vm847_vm0 = vcmask 130048   ;;  %s2591_s22 = smov 112  }
  0x10   : > { %2227 = vmatprep.subr.bf16.mxu0 %v2343_v1  ;;  %v2346_v4 = vld [vmem:[%s3724_s1 + $0x18] sm:$0xff]   ;;  %v2347_v8 = vld [vmem:[%s3724_s1 + $0x20] sm:$0xff]   ;;  %v2348_v9 = vld [vmem:[%s3724_s1 + $0x28] sm:$0xff]  }
  0x11   : > { %s3883_s24 = smov (!%p244_p3, %s1971_s24), 1  ;;  %2228 = vmatpush3.bf16.msra.mxu0 %v2343_v1  ;;  %v2349_v10 = vld [vmem:[%s3724_s1 + $0x30] sm:$0xff]   ;;  %v2350_v11 = vld [vmem:[%s3724_s1 + $0x38] sm:$0xff]   ;;  %v2753_v58 = vld [vmem:[%s3725_s2] ss:$0 sm:$0xff] }
  0x12   : > { %2229 = vmatprep.subr.bf16.mxu0 %v2344_v2  ;;  %s2017_s30 = sshll.u32 %s3883_s24, 8 }
  0x13   : > { %s2656_s9 = scalar_lea.vmem %s3723_s0, %s2017_s30 }
  0x14   : > { %v255_v5 = vld [vmem:[%s2656_s9] sm:$0xff]  ;;  %v256_v6 = vld [vmem:[%s2656_s9 + $0x8] sm:$0xff]  ;;  %v257_v12 = vld [vmem:[%s2656_s9 + $0x10] sm:$0xff] }
  0x15   : > { %2230 = vmatpush3.bf16.msra.mxu0 %v2344_v2  ;;  %v287_v7 = vpack.c.bf16 %v256_v6, %v255_v5  ;;  %v258_v13 = vld [vmem:[%s2656_s9 + $0x18] sm:$0xff]  ;;  %v259_v14 = vld [vmem:[%s2656_s9 + $0x20] sm:$0xff]  ;;  %v260_v15 = vld [vmem:[%s2656_s9 + $0x28] sm:$0xff] }
  0x16   : > { %2231 = vmatprep.subr.bf16.mxu0 %v2345_v3  ;;  %v2679_v16 = vpack.c.bf16 %v258_v13, %v257_v12  ;;  %v2681_v17 = vpack.c.bf16 %v260_v15, %v259_v14  ;;  %v261_v18 = vld [vmem:[%s2656_s9 + $0x30] sm:$0xff]  ;;  %v262_v19 = vld [vmem:[%s2656_s9 + $0x38] sm:$0xff]  ;;  %v263_v20 = vld [vmem:[%s2656_s9 + $0x40] sm:$0xff] }
  0x17   : > { %2243 = vmatprep.mubr.bf16.mxu0 %v287_v7  ;;  %2291 = vmatprep.mubr.bf16.mxu1 %v287_v7  ;;  %v264_v21 = vld [vmem:[%s2656_s9 + $0x48] sm:$0xff]  ;;  %v2689_v22 = vpack.c.bf16 %v262_v19, %v261_v18  ;;  %v265_v24 = vld [vmem:[%s2656_s9 + $0x50] sm:$0xff]  ;;  %v266_v25 = vld [vmem:[%s2656_s9 + $0x58] sm:$0xff] }
  0x18   : > { %v2691_v23 = vpack.c.bf16 %v264_v21, %v263_v20  ;;  %v267_v26 = vld [vmem:[%s2656_s9 + $0x60] sm:$0xff]  ;;  %v268_v27 = vld [vmem:[%s2656_s9 + $0x68] sm:$0xff]  ;;  %v2699_v28 = vpack.c.bf16 %v266_v25, %v265_v24  ;;  %v269_v30 = vld [vmem:[%s2656_s9 + $0x70] sm:$0xff] }
  0x19   : > { %2232 = vmatpush3.bf16.msra.mxu0 %v2345_v3  ;;  %v2701_v29 = vpack.c.bf16 %v268_v27, %v267_v26  ;;  %v270_v31 = vld [vmem:[%s2656_s9 + $0x78] sm:$0xff]  ;;  %v271_v32 = vld [vmem:[%s2656_s9 + $0x80] sm:$0xff]  ;;  %v272_v33 = vld [vmem:[%s2656_s9 + $0x88] sm:$0xff] }
  0x1a   : > { %2233 = vmatprep.subr.bf16.mxu0 %v2346_v4  ;;  %v2709_v34 = vpack.c.bf16 %v270_v31, %v269_v30  ;;  %v2711_v35 = vpack.c.bf16 %v272_v33, %v271_v32  ;;  %v273_v36 = vld [vmem:[%s2656_s9 + $0x90] sm:$0xff]  ;;  %v274_v37 = vld [vmem:[%s2656_s9 + $0x98] sm:$0xff]  ;;  %v275_v38 = vld [vmem:[%s2656_s9 + $0xa0] sm:$0xff] }
  0x1b   : > { %v276_v39 = vld [vmem:[%s2656_s9 + $0xa8] sm:$0xff]  ;;  %v2719_v40 = vpack.c.bf16 %v274_v37, %v273_v36  ;;  %v277_v42 = vld [vmem:[%s2656_s9 + $0xb0] sm:$0xff]  ;;  %v278_v43 = vld [vmem:[%s2656_s9 + $0xb8] sm:$0xff] }
  0x1c   : > { %v2721_v41 = vpack.c.bf16 %v276_v39, %v275_v38  ;;  %v279_v44 = vld [vmem:[%s2656_s9 + $0xc0] sm:$0xff]  ;;  %v280_v45 = vld [vmem:[%s2656_s9 + $0xc8] sm:$0xff]  ;;  %v2729_v46 = vpack.c.bf16 %v278_v43, %v277_v42  ;;  %v281_v48 = vld [vmem:[%s2656_s9 + $0xd0] sm:$0xff] }
  0x1d   : > { %2234 = vmatpush3.bf16.msra.mxu0 %v2346_v4  ;;  %v2731_v47 = vpack.c.bf16 %v280_v45, %v279_v44  ;;  %v282_v49 = vld [vmem:[%s2656_s9 + $0xd8] sm:$0xff]  ;;  %v283_v50 = vld [vmem:[%s2656_s9 + $0xe0] sm:$0xff]  ;;  %v284_v51 = vld [vmem:[%s2656_s9 + $0xe8] sm:$0xff] }
  0x1e   : > { %2235 = vmatprep.subr.bf16.mxu0 %v2347_v8  ;;  %v2739_v52 = vpack.c.bf16 %v282_v49, %v281_v48  ;;  %v2741_v53 = vpack.c.bf16 %v284_v51, %v283_v50  ;;  %v285_v54 = vld [vmem:[%s2656_s9 + $0xf0] sm:$0xff]  ;;  %v286_v55 = vld [vmem:[%s2656_s9 + $0xf8] sm:$0xff] }
  0x1f   : > { %v2747_v56 = vpack.c.bf16 %v286_v55, %v285_v54 }
  0x21   : > { %2236 = vmatpush3.bf16.msra.mxu0 %v2347_v8 }
  0x22   : > { %2237 = vmatprep.subr.bf16.mxu0 %v2348_v9 }
  0x25   : > { %2238 = vmatpush3.bf16.msra.mxu0 %v2348_v9 }
  0x26   : > { %2239 = vmatprep.subr.bf16.mxu0 %v2349_v10 }
  0x29   : > { %2240 = vmatpush3.bf16.msra.mxu0 %v2349_v10 }
  0x2a   : > { %2241 = vmatprep.subr.bf16.mxu0 %v2350_v11 }
  0x2d   : > { %2242 = vmatpush3.bf16.msra.mxu0 %v2350_v11 }
  0x30   : > { %2244 = vmatmul.mubr.bf16.vlgmr.msra.gmra.mrb[0].mxu0 %v2679_v16 }
  0x31   : > { %2247 = vmatprep.mubr.bf16.mxu0 %v2681_v17 }
  0x38   : > { %2248 = vmatmul.mubr.bf16.gmra.mrb[4].mxu0 %v2689_v22 }
  0x39   : > { %2251 = vmatprep.mubr.bf16.mxu0 %v2691_v23 }
  0x40   : > { %2252 = vmatmul.mubr.bf16.gmra.mrb[8].mxu0 %v2699_v28 }
  0x41   : > { %2255 = vmatprep.mubr.bf16.mxu0 %v2701_v29 }
  0x48   : > { %2256 = vmatmul.mubr.bf16.gmra.mrb[12].mxu0 %v2709_v34 }
  0x49   : > { %2259 = vmatprep.mubr.bf16.mxu0 %v2711_v35 }
  0x50   : > { %2260 = vmatmul.mubr.bf16.gmra.mrb[16].mxu0 %v2719_v40 }
  0x51   : > { %2263 = vmatprep.mubr.bf16.mxu0 %v2721_v41 }
  0x58   : > { %2264 = vmatmul.mubr.bf16.gmra.mrb[20].mxu0 %v2729_v46 }
  0x59   : > { %2267 = vmatprep.mubr.bf16.mxu0 %v2731_v47 }
  0x60   : > { %2268 = vmatmul.mubr.bf16.gmra.mrb[24].mxu0 %v2739_v52 }
  0x61   : > { %2271 = vmatprep.mubr.bf16.mxu0 %v2741_v53 }
  0x68   : > { %2272 = vmatmul.mubr.bf16.gmra.mrb[28].mxu0 %v2747_v56 }
 0x103   : > { %v2245_v57 = vpop.f32.mrb[0].mxu0 }
 0x104   : > { %v408_v59 = vpop.f32.mrb[1].mxu0  ;;  %v417_v61 = vadd.f32 %v2245_v57, %v2753_v58 }
 0x105   : > { %v2246_v60 = vpop.f32.mrb[2].mxu0  ;;  %v409_v0 = vadd.f32 %v2753_v58, %v408_v59 }
 0x106   : > { %v420_v62 = vadd.f32 %v2246_v60, %v2753_v58  ;;  %v411_v63 = vpop.f32.mrb[3].mxu0 }
 0x107   : > { %v412_v1 = vadd.f32 %v2753_v58, %v411_v63 }
 0x108   : > { %v2759_v2 = vpack.c.bf16 %v420_v62, %v417_v61 }
 0x109   : > { %v2761_v3 = vpack.c.bf16 %v412_v1, %v409_v0 }
 0x10a   : > { %817 = vrot.lane.b32.xlu1 %v2759_v2, %s2591_s22 }
 0x10b   : > { %v2249_v4 = vpop.f32.mrb[4].mxu0  ;;  %815 = vrot.lane.b32.xlu0 %v2761_v3, %s2591_s22  ;;  %2083 = vmatprep.mubr.msk.bf16.mxu0 %vm847_vm0, %v2761_v3 }
 0x10c   : > { %v424_v5 = vpop.f32.mrb[5].mxu0  ;;  %v433_v7 = vadd.f32 %v2249_v4, %v2753_v58 }
 0x10d   : > { %v2250_v6 = vpop.f32.mrb[6].mxu0  ;;  %v425_v10 = vadd.f32 %v2753_v58, %v424_v5 }
 0x10e   : > { %v436_v8 = vadd.f32 %v2250_v6, %v2753_v58  ;;  %v427_v9 = vpop.f32.mrb[7].mxu0 }
 0x10f   : > { %v428_v11 = vadd.f32 %v2753_v58, %v427_v9 }
 0x110   : > { %v2773_v12 = vpack.c.bf16 %v436_v8, %v433_v7 }
 0x111   : > { %v2775_v13 = vpack.c.bf16 %v428_v11, %v425_v10 }
 0x113   : > { %v2253_v14 = vpop.f32.mrb[8].mxu0 }
 0x114   : > { %v440_v15 = vpop.f32.mrb[9].mxu0  ;;  %v449_v19 = vadd.f32 %v2253_v14, %v2753_v58 }
 0x115   : > { %v2254_v18 = vpop.f32.mrb[10].mxu0  ;;  %v441_v24 = vadd.f32 %v2753_v58, %v440_v15 }
 0x116   : > { %v452_v20 = vadd.f32 %v2254_v18, %v2753_v58  ;;  %v443_v21 = vpop.f32.mrb[11].mxu0 }
 0x117   : > { %v444_v25 = vadd.f32 %v2753_v58, %v443_v21 }
 0x118   : > { %v2781_v26 = vpack.c.bf16 %v452_v20, %v449_v19 }
 0x119   : > { %v2783_v27 = vpack.c.bf16 %v444_v25, %v441_v24 }
 0x11b   : > { %v2257_v30 = vpop.f32.mrb[12].mxu0 }
 0x11c   : > { %v456_v31 = vpop.f32.mrb[13].mxu0  ;;  %v465_v33 = vadd.f32 %v2257_v30, %v2753_v58 }
 0x11d   : > { %v2258_v32 = vpop.f32.mrb[14].mxu0  ;;  %v457_v38 = vadd.f32 %v2753_v58, %v456_v31 }
 0x11e   : > { %v468_v36 = vadd.f32 %v2258_v32, %v2753_v58  ;;  %v459_v37 = vpop.f32.mrb[15].mxu0 }
 0x11f   : > { %v460_v39 = vadd.f32 %v2753_v58, %v459_v37 }
 0x120   : > { %v2789_v42 = vpack.c.bf16 %v468_v36, %v465_v33 }
 0x121   : > { %v2791_v43 = vpack.c.bf16 %v460_v39, %v457_v38 }
 0x123   : > { %v2261_v44 = vpop.f32.mrb[16].mxu0 }
 0x124   : > { %v472_v45 = vpop.f32.mrb[17].mxu0  ;;  %v481_v49 = vadd.f32 %v2261_v44, %v2753_v58 }
 0x125   : > { %v2262_v48 = vpop.f32.mrb[18].mxu0  ;;  %v473_v54 = vadd.f32 %v2753_v58, %v472_v45 }
 0x126   : > { %v484_v50 = vadd.f32 %v2262_v48, %v2753_v58  ;;  %v475_v51 = vpop.f32.mrb[19].mxu0 }
 0x127   : > { %v476_v55 = vadd.f32 %v2753_v58, %v475_v51 }
 0x128   : > { %v2797_v57 = vpack.c.bf16 %v484_v50, %v481_v49 }
 0x129   : > { %v2799_v59 = vpack.c.bf16 %v476_v55, %v473_v54 }
 0x12a   : > { %833 = vrot.lane.b32.xlu1 %v2797_v57, %s2591_s22 }
 0x12b   : > { %831 = vrot.lane.b32.xlu0 %v2799_v59, %s2591_s22  ;;  %v2265_v60 = vpop.f32.mrb[20].mxu0 }
 0x12c   : > { %v497_v61 = vadd.f32 %v2265_v60, %v2753_v58  ;;  %v488_v62 = vpop.f32.mrb[21].mxu0 }
 0x12d   : > { %v489_v63 = vadd.f32 %v2753_v58, %v488_v62  ;;  %v2266_v0 = vpop.f32.mrb[22].mxu0 }
 0x12e   : > { %v500_v1 = vadd.f32 %v2266_v0, %v2753_v58  ;;  %v491_v4 = vpop.f32.mrb[23].mxu0 }
 0x12f   : > { %v492_v5 = vadd.f32 %v2753_v58, %v491_v4  ;;  %819 = vrot.lane.b32.xlu0 %v2775_v13, %s2591_s22 }
 0x130   : > { %v2811_v6 = vpack.c.bf16 %v500_v1, %v497_v61 }
 0x131   : > { %v2813_v7 = vpack.c.bf16 %v492_v5, %v489_v63 }
 0x133   : > { %821 = vrot.lane.b32.xlu0 %v2773_v12, %s2591_s22  ;;  %835 = vrot.lane.b32.xlu1 %v2813_v7, %s2591_s22  ;;  %v2269_v8 = vpop.f32.mrb[24].mxu0 }
 0x134   : > { %v513_v9 = vadd.f32 %v2269_v8, %v2753_v58  ;;  %v504_v10 = vpop.f32.mrb[25].mxu0 }
 0x135   : > { %v505_v11 = vadd.f32 %v2753_v58, %v504_v10  ;;  %v2270_v14 = vpop.f32.mrb[26].mxu0 }
 0x136   : > { %v516_v15 = vadd.f32 %v2270_v14, %v2753_v58  ;;  %v507_v18 = vpop.f32.mrb[27].mxu0 }
 0x137   : > { %823 = vrot.lane.b32.xlu0 %v2783_v27, %s2591_s22  ;;  %837 = vrot.lane.b32.xlu1 %v2811_v6, %s2591_s22  ;;  %v508_v19 = vadd.f32 %v2753_v58, %v507_v18 }
 0x138   : > { %v2827_v20 = vpack.c.bf16 %v516_v15, %v513_v9 }
 0x139   : > { %v2829_v21 = vpack.c.bf16 %v508_v19, %v505_v11 }
 0x13b   : > { %825 = vrot.lane.b32.xlu0 %v2781_v26, %s2591_s22  ;;  %839 = vrot.lane.b32.xlu1 %v2829_v21, %s2591_s22  ;;  %v2273_v24 = vpop.f32.mrb[28].mxu0 }
 0x13c   : > { %v529_v25 = vadd.f32 %v2273_v24, %v2753_v58  ;;  %v520_v30 = vpop.f32.mrb[29].mxu0 }
 0x13d   : > { %v521_v31 = vadd.f32 %v2753_v58, %v520_v30  ;;  %v2274_v32 = vpop.f32.mrb[30].mxu0 }
 0x13e   : > { %v532_v33 = vadd.f32 %v2274_v32, %v2753_v58  ;;  %v523_v36 = vpop.f32.mrb[31].mxu0 }
 0x13f   : > { %827 = vrot.lane.b32.xlu0 %v2791_v43, %s2591_s22  ;;  %841 = vrot.lane.b32.xlu1 %v2827_v20, %s2591_s22  ;;  %v524_v37 = vadd.f32 %v2753_v58, %v523_v36 }
 0x140   : > { %v2843_v38 = vpack.c.bf16 %v532_v33, %v529_v25 }
 0x141   : > { %v2845_v39 = vpack.c.bf16 %v524_v37, %v521_v31 }
 0x143   : > { %829 = vrot.lane.b32.xlu0 %v2789_v42, %s2591_s22  ;;  %843 = vrot.lane.b32.xlu1 %v2845_v39, %s2591_s22 }
 0x147   : > { %845 = vrot.lane.b32.xlu1 %v2843_v38, %s2591_s22  ;;  %s3623_s22 = scalar_lea.vmem %s3729_s6, %s2017_s30 }
 0x17c   : > { %v818_v45 = vpop.permute.xlu1 %817 }
 0x17d   : > { %v816_v44 = vpop.permute.xlu0 %815  ;;  %v900_v50 = vsel %vm847_vm0, %v818_v45, 0 }
 0x17e   : > { %v897_v49 = vsel %vm847_vm0, %v816_v44, 0 }
 0x19c   : > { %v834_v58 = vpop.permute.xlu1 %833 }
 0x19d   : > { %v832_v48 = vpop.permute.xlu0 %831 }
 0x19e   : > { %2323 = vmatprep.subr.msk.bf16.mxu0 %vm847_vm0, %v832_v48 }
 0x19f   : > { %2068 = vmatpush3.bf16.xpose.msra.mxu0 %v897_v49 }
 0x1a0   : > { %2324 = vmatprep.subr.msk.bf16.mxu0 %vm847_vm0, %v834_v58 }
 0x1a1   : > { %v820_v54 = vpop.permute.xlu0 %819 }
 0x1a2   : > { %v903_v55 = vsel %vm847_vm0, %v820_v54, 0 }
 0x1a5   : > { %v836_v51 = vpop.permute.xlu1 %835  ;;  %v822_v61 = vpop.permute.xlu0 %821 }
 0x1a6   : > { %v906_v62 = vsel %vm847_vm0, %v822_v61, 0 }
 0x1a7   : > { %2070 = vmatpush3.bf16.xpose.msra.mxu0 %v900_v50 }
 0x1a8   : > { %2325 = vmatprep.subr.msk.bf16.mxu0 %vm847_vm0, %v836_v51 }
 0x1a9   : > { %v838_v60 = vpop.permute.xlu1 %837  ;;  %v824_v0 = vpop.permute.xlu0 %823 }
 0x1aa   : > { %v909_v1 = vsel %vm847_vm0, %v824_v0, 0 }
 0x1ad   : > { %v840_v63 = vpop.permute.xlu1 %839  ;;  %v826_v5 = vpop.permute.xlu0 %825 }
 0x1ae   : > { %v912_v8 = vsel %vm847_vm0, %v826_v5, 0 }
 0x1af   : > { %2072 = vmatpush3.bf16.xpose.msra.mxu0 %v903_v55 }
 0x1b0   : > { %2326 = vmatprep.subr.msk.bf16.mxu0 %vm847_vm0, %v838_v60 }
 0x1b1   : > { %v842_v4 = vpop.permute.xlu1 %841  ;;  %v828_v10 = vpop.permute.xlu0 %827 }
 0x1b2   : > { %v915_v11 = vsel %vm847_vm0, %v828_v10, 0 }
 0x1b5   : > { %v844_v9 = vpop.permute.xlu1 %843  ;;  %v830_v15 = vpop.permute.xlu0 %829 }
 0x1b6   : > { %v918_v18 = vsel %vm847_vm0, %v830_v15, 0 }
 0x1b7   : > { %2074 = vmatpush3.bf16.xpose.msra.mxu0 %v906_v62 }
 0x1b8   : > { %2327 = vmatprep.subr.msk.bf16.mxu0 %vm847_vm0, %v840_v63 }
 0x1b9   : > { %v846_v14 = vpop.permute.xlu1 %845 }
 0x1bf   : > { %2076 = vmatpush3.bf16.xpose.msra.mxu0 %v909_v1 }
 0x1c0   : > { %2328 = vmatprep.subr.msk.bf16.mxu0 %vm847_vm0, %v842_v4 }
 0x1c7   : > { %2078 = vmatpush3.bf16.xpose.msra.mxu0 %v912_v8 }
 0x1c8   : > { %2329 = vmatprep.subr.msk.bf16.mxu0 %vm847_vm0, %v844_v9 }
 0x1cf   : > { %2080 = vmatpush3.bf16.xpose.msra.mxu0 %v915_v11 }
 0x1d0   : > { %2330 = vmatprep.subr.msk.bf16.mxu0 %vm847_vm0, %v846_v14 }
 0x1d7   : > { %2082 = vmatpush3.bf16.xpose.msra.mxu0 %v918_v18 }
 0x1de   : > { %2084 = vmatmul.mubr.msk.bf16.vlgmr.msra.gmra.mrb[32].mxu0 %vm847_vm0, %v2761_v3  ;;  %v2352_v3 = vld [vmem:[%s3726_s3 + $0x8] sm:$0xff]  }
 0x1df   : > { %2085 = vmatprep.mubr.msk.bf16.mxu0 %vm847_vm0, %v2759_v2 }
 0x1e6   : > { %2086 = vmatmul.mubr.msk.bf16.gmra.mrb[36].mxu0 %vm847_vm0, %v2759_v2  ;;  %v2351_v2 = vld [vmem:[%s3726_s3] sm:$0xff]  }
 0x1e7   : > { %2087 = vmatprep.mubr.msk.bf16.mxu0 %vm847_vm0, %v2775_v13  ;;  %2275 = vmatprep.subr.bf16.mxu1 %v2351_v2 }
 0x1e8   : > { %2276 = vmatpush3.bf16.msra.mxu1 %v2351_v2 }
 0x1e9   : > { %2277 = vmatprep.subr.bf16.mxu1 %v2352_v3 }
 0x1ec   : > { %2278 = vmatpush3.bf16.msra.mxu1 %v2352_v3 }
 0x1ee   : > { %2088 = vmatmul.mubr.msk.bf16.gmra.mrb[40].mxu0 %vm847_vm0, %v2775_v13  ;;  %v2354_v13 = vld [vmem:[%s3726_s3 + $0x18] sm:$0xff]  }
 0x1ef   : > { %2089 = vmatprep.mubr.msk.bf16.mxu0 %vm847_vm0, %v2773_v12 }
 0x1f6   : > { %2090 = vmatmul.mubr.msk.bf16.gmra.mrb[44].mxu0 %vm847_vm0, %v2773_v12  ;;  %v2353_v12 = vld [vmem:[%s3726_s3 + $0x10] sm:$0xff]  }
 0x1f7   : > { %2091 = vmatprep.mubr.msk.bf16.mxu0 %vm847_vm0, %v2783_v27  ;;  %2279 = vmatprep.subr.bf16.mxu1 %v2353_v12 }
 0x1f8   : > { %2280 = vmatpush3.bf16.msra.mxu1 %v2353_v12 }
 0x1f9   : > { %2281 = vmatprep.subr.bf16.mxu1 %v2354_v13 }
 0x1fc   : > { %2282 = vmatpush3.bf16.msra.mxu1 %v2354_v13 }
 0x1fe   : > { %2092 = vmatmul.mubr.msk.bf16.gmra.mrb[48].mxu0 %vm847_vm0, %v2783_v27  ;;  %v2356_v27 = vld [vmem:[%s3726_s3 + $0x28] sm:$0xff]  }
 0x1ff   : > { %2093 = vmatprep.mubr.msk.bf16.mxu0 %vm847_vm0, %v2781_v26 }
 0x206   : > { %2094 = vmatmul.mubr.msk.bf16.gmra.mrb[52].mxu0 %vm847_vm0, %v2781_v26  ;;  %v2355_v26 = vld [vmem:[%s3726_s3 + $0x20] sm:$0xff]  }
 0x207   : > { %2095 = vmatprep.mubr.msk.bf16.mxu0 %vm847_vm0, %v2791_v43  ;;  %2283 = vmatprep.subr.bf16.mxu1 %v2355_v26 }
 0x208   : > { %2284 = vmatpush3.bf16.msra.mxu1 %v2355_v26 }
 0x209   : > { %2285 = vmatprep.subr.bf16.mxu1 %v2356_v27 }
 0x20c   : > { %2286 = vmatpush3.bf16.msra.mxu1 %v2356_v27 }
 0x20e   : > { %2096 = vmatmul.mubr.msk.bf16.gmra.mrb[56].mxu0 %vm847_vm0, %v2791_v43  ;;  %v2358_v43 = vld [vmem:[%s3726_s3 + $0x38] sm:$0xff]  }
 0x20f   : > { %2097 = vmatprep.mubr.msk.bf16.mxu0 %vm847_vm0, %v2789_v42 }
 0x216   : > { %2098 = vmatmul.mubr.msk.bf16.gmra.mrb[60].mxu0 %vm847_vm0, %v2789_v42  ;;  %v2357_v42 = vld [vmem:[%s3726_s3 + $0x30] sm:$0xff]  }
 0x217   : > { %2099 = vmatprep.mubr.msk.bf16.mxu0 %vm847_vm0, %v2799_v59  ;;  %2287 = vmatprep.subr.bf16.mxu1 %v2357_v42 }
 0x218   : > { %2288 = vmatpush3.bf16.msra.mxu1 %v2357_v42 }
 0x219   : > { %2289 = vmatprep.subr.bf16.mxu1 %v2358_v43 }
 0x21c   : > { %2290 = vmatpush3.bf16.msra.mxu1 %v2358_v43 }
 0x21e   : > { %2100 = vmatmul.mubr.msk.bf16.gmra.mrb[64].mxu0 %vm847_vm0, %v2799_v59 }
 0x21f   : > { %2101 = vmatprep.mubr.msk.bf16.mxu0 %vm847_vm0, %v2797_v57  ;;  %2292 = vmatmul.mubr.bf16.vlgmr.msra.gmra.mrb[0].mxu1 %v2679_v16 }
 0x220   : > { %2295 = vmatprep.mubr.bf16.mxu1 %v2681_v17 }
 0x226   : > { %2102 = vmatmul.mubr.msk.bf16.gmra.mrb[68].mxu0 %vm847_vm0, %v2797_v57 }
 0x227   : > { %2103 = vmatprep.mubr.msk.bf16.mxu0 %vm847_vm0, %v2813_v7  ;;  %2296 = vmatmul.mubr.bf16.gmra.mrb[4].mxu1 %v2689_v22 }
 0x228   : > { %2299 = vmatprep.mubr.bf16.mxu1 %v2691_v23 }
 0x22e   : > { %2104 = vmatmul.mubr.msk.bf16.gmra.mrb[72].mxu0 %vm847_vm0, %v2813_v7 }
 0x22f   : > { %2105 = vmatprep.mubr.msk.bf16.mxu0 %vm847_vm0, %v2811_v6  ;;  %2300 = vmatmul.mubr.bf16.gmra.mrb[8].mxu1 %v2699_v28 }
 0x230   : > { %2303 = vmatprep.mubr.bf16.mxu1 %v2701_v29 }
 0x236   : > { %2106 = vmatmul.mubr.msk.bf16.gmra.mrb[76].mxu0 %vm847_vm0, %v2811_v6 }
 0x237   : > { %2107 = vmatprep.mubr.msk.bf16.mxu0 %vm847_vm0, %v2829_v21  ;;  %2304 = vmatmul.mubr.bf16.gmra.mrb[12].mxu1 %v2709_v34 }
 0x238   : > { %2307 = vmatprep.mubr.bf16.mxu1 %v2711_v35 }
 0x23e   : > { %2108 = vmatmul.mubr.msk.bf16.gmra.mrb[80].mxu0 %vm847_vm0, %v2829_v21 }
 0x23f   : > { %2109 = vmatprep.mubr.msk.bf16.mxu0 %vm847_vm0, %v2827_v20  ;;  %2308 = vmatmul.mubr.bf16.gmra.mrb[16].mxu1 %v2719_v40 }
 0x240   : > { %2311 = vmatprep.mubr.bf16.mxu1 %v2721_v41 }
 0x246   : > { %2110 = vmatmul.mubr.msk.bf16.gmra.mrb[84].mxu0 %vm847_vm0, %v2827_v20 }
 0x247   : > { %2111 = vmatprep.mubr.msk.bf16.mxu0 %vm847_vm0, %v2845_v39  ;;  %2312 = vmatmul.mubr.bf16.gmra.mrb[20].mxu1 %v2729_v46 }
 0x248   : > { %2315 = vmatprep.mubr.bf16.mxu1 %v2731_v47 }
 0x24e   : > { %2112 = vmatmul.mubr.msk.bf16.gmra.mrb[88].mxu0 %vm847_vm0, %v2845_v39 }
 0x24f   : > { %2113 = vmatprep.mubr.msk.bf16.mxu0 %vm847_vm0, %v2843_v38  ;;  %2316 = vmatmul.mubr.bf16.gmra.mrb[24].mxu1 %v2739_v52 }
 0x250   : > { %2319 = vmatprep.mubr.bf16.mxu1 %v2741_v53 }
 0x256   : > { %2114 = vmatmul.mubr.msk.bf16.gmra.mrb[92].mxu0 %vm847_vm0, %v2843_v38 }
 0x257   : > { %2320 = vmatmul.mubr.bf16.gmra.mrb[28].mxu1 %v2747_v56 }
 0x2b1   : > { %v2970_v16 = vpop.f32.mrb[32].mxu0 }
 0x2b2   : > { %v2972_v17 = vpop.f32.mrb[33].mxu0 }
 0x2b3   : > { %v2974_v22 = vpop.f32.mrb[34].mxu0  ;;  %v1137_v23 = vmax.f32 %v2970_v16, %v2972_v17 }
 0x2b4   : > { %v2978_v28 = vpop.f32.mrb[35].mxu0 }
 0x2b5   : > { %1138 = vmax.xlane.f32.xlu0 %v1137_v23  ;;  %v1140_v29 = vmax.f32 %v2974_v22, %v2978_v28 }
 0x2b7   : > { %1141 = vmax.xlane.f32.xlu1 %v1140_v29 }
 0x2b9   : > { %v2982_v34 = vpop.f32.mrb[36].mxu0 }
 0x2ba   : > { %v2984_v35 = vpop.f32.mrb[37].mxu0 }
 0x2bb   : > { %v2986_v40 = vpop.f32.mrb[38].mxu0  ;;  %v1143_v41 = vmax.f32 %v2982_v34, %v2984_v35 }
 0x2bc   : > { %v2990_v46 = vpop.f32.mrb[39].mxu0 }
 0x2bd   : > { %1144 = vmax.xlane.f32.xlu0 %v1143_v41  ;;  %v1146_v47 = vmax.f32 %v2986_v40, %v2990_v46 }
 0x2c1   : > { %1147 = vmax.xlane.f32.xlu0 %v1146_v47  ;;  %v2994_v52 = vpop.f32.mrb[40].mxu0 }
 0x2c2   : > { %v2996_v53 = vpop.f32.mrb[41].mxu0 }
 0x2c3   : > { %v2998_v56 = vpop.f32.mrb[42].mxu0  ;;  %v1149_v57 = vmax.f32 %v2994_v52, %v2996_v53 }
 0x2c4   : > { %v3002_v59 = vpop.f32.mrb[43].mxu0 }
 0x2c5   : > { %1150 = vmax.xlane.f32.xlu1 %v1149_v57  ;;  %v1152_v6 = vmax.f32 %v2998_v56, %v3002_v59 }
 0x2c7   : > { %1153 = vmax.xlane.f32.xlu0 %v1152_v6 }
 0x2c9   : > { %v3006_v7 = vpop.f32.mrb[44].mxu0 }
 0x2ca   : > { %v3008_v19 = vpop.f32.mrb[45].mxu0 }
 0x2cb   : > { %v3010_v20 = vpop.f32.mrb[46].mxu0  ;;  %v1155_v21 = vmax.f32 %v3006_v7, %v3008_v19 }
 0x2cc   : > { %v3014_v24 = vpop.f32.mrb[47].mxu0 }
 0x2cd   : > { %1156 = vmax.xlane.f32.xlu1 %v1155_v21  ;;  %v1158_v25 = vmax.f32 %v3010_v20, %v3014_v24 }
 0x2cf   : > { %1159 = vmax.xlane.f32.xlu0 %v1158_v25 }
 0x2d1   : > { %v3018_v30 = vpop.f32.mrb[48].mxu0 }
 0x2d2   : > { %v3020_v31 = vpop.f32.mrb[49].mxu0 }
 0x2d3   : > { %v3022_v32 = vpop.f32.mrb[50].mxu0  ;;  %v1161_v33 = vmax.f32 %v3018_v30, %v3020_v31 }
 0x2d4   : > { %v3026_v36 = vpop.f32.mrb[51].mxu0 }
 0x2d5   : > { %1162 = vmax.xlane.f32.xlu1 %v1161_v33  ;;  %v1164_v37 = vmax.f32 %v3022_v32, %v3026_v36 }
 0x2d7   : > { %1165 = vmax.xlane.f32.xlu0 %v1164_v37 }
 0x2d9   : > { %v3030_v38 = vpop.f32.mrb[52].mxu0 }
 0x2da   : > { %v3032_v39 = vpop.f32.mrb[53].mxu0 }
 0x2db   : > { %v3034_v44 = vpop.f32.mrb[54].mxu0  ;;  %v1167_v45 = vmax.f32 %v3030_v38, %v3032_v39 }
 0x2dc   : > { %v3038_v48 = vpop.f32.mrb[55].mxu0 }
 0x2dd   : > { %1168 = vmax.xlane.f32.xlu1 %v1167_v45  ;;  %v1170_v49 = vmax.f32 %v3034_v44, %v3038_v48 }
 0x2df   : > { %1171 = vmax.xlane.f32.xlu0 %v1170_v49 }
 0x2e1   : > { %v3042_v58 = vpop.f32.mrb[56].mxu0 }
 0x2e2   : > { %3778 = vst [vmem:[#allocation3_spill] sm:$0xff] %v3042_v58  ;;  %v3044_v50 = vpop.f32.mrb[57].mxu0 }
 0x2e3   : > { %3779 = vst [vmem:[#allocation4_spill] sm:$0xff] %v3044_v50  ;;  %v3046_v51 = vpop.f32.mrb[58].mxu0  ;;  %v1173_v54 = vmax.f32 %v3042_v58, %v3044_v50 }
 0x2e4   : > { %3780 = vst [vmem:[#allocation5_spill] sm:$0xff] %v3046_v51  ;;  %v3050_v55 = vpop.f32.mrb[59].mxu0 }
 0x2e5   : > { %3781 = vst [vmem:[#allocation6_spill] sm:$0xff] %v3050_v55  ;;  %1174 = vmax.xlane.f32.xlu1 %v1173_v54  ;;  %v1176_v60 = vmax.f32 %v3046_v51, %v3050_v55 }
 0x2e7   : > { %1177 = vmax.xlane.f32.xlu0 %v1176_v60 }
 0x2e9   : > { %v3054_v61 = vpop.f32.mrb[60].mxu0 }
 0x2ea   : > { %3782 = vst [vmem:[#allocation7_spill] sm:$0xff] %v3054_v61  ;;  %v3056_v62 = vpop.f32.mrb[61].mxu0 }
 0x2eb   : > { %3783 = vst [vmem:[#allocation8_spill] sm:$0xff] %v3056_v62  ;;  %v3058_v63 = vpop.f32.mrb[62].mxu0  ;;  %v1179_v0 = vmax.f32 %v3054_v61, %v3056_v62 }
 0x2ec   : > { %3784 = vst [vmem:[#allocation9_spill] sm:$0xff] %v3058_v63  ;;  %v3062_v1 = vpop.f32.mrb[63].mxu0 }
 0x2ed   : > { %3785 = vst [vmem:[#allocation10_spill] sm:$0xff] %v3062_v1  ;;  %1180 = vmax.xlane.f32.xlu1 %v1179_v0  ;;  %v1182_v4 = vmax.f32 %v3058_v63, %v3062_v1 }
 0x2ef   : > { %1183 = vmax.xlane.f32.xlu0 %v1182_v4 }
 0x2f1   : > { %v3066_v5 = vpop.f32.mrb[64].mxu0 }
 0x2f2   : > { %3786 = vst [vmem:[#allocation11_spill] sm:$0xff] %v3066_v5  ;;  %v3068_v8 = vpop.f32.mrb[65].mxu0 }
 0x2f3   : > { %3787 = vst [vmem:[#allocation12_spill] sm:$0xff] %v3068_v8  ;;  %v3070_v9 = vpop.f32.mrb[66].mxu0  ;;  %v1185_v10 = vmax.f32 %v3066_v5, %v3068_v8 }
 0x2f4   : > { %3788 = vst [vmem:[#allocation13_spill] sm:$0xff] %v3070_v9  ;;  %v3074_v11 = vpop.f32.mrb[67].mxu0 }
 0x2f5   : > { %3789 = vst [vmem:[#allocation14_spill] sm:$0xff] %v3074_v11  ;;  %1186 = vmax.xlane.f32.xlu1 %v1185_v10  ;;  %v1188_v14 = vmax.f32 %v3070_v9, %v3074_v11 }
 0x2f7   : > { %1189 = vmax.xlane.f32.xlu0 %v1188_v14 }
 0x2f9   : > { %v3078_v15 = vpop.f32.mrb[68].mxu0 }
 0x2fa   : > { %3790 = vst [vmem:[#allocation15_spill] sm:$0xff] %v3078_v15  ;;  %v3080_v18 = vpop.f32.mrb[69].mxu0 }
 0x2fb   : > { %3791 = vst [vmem:[#allocation16_spill] sm:$0xff] %v3080_v18  ;;  %v3082_v2 = vpop.f32.mrb[70].mxu0  ;;  %v1191_v3 = vmax.f32 %v3078_v15, %v3080_v18 }
 0x2fc   : > { %3792 = vst [vmem:[#allocation17_spill] sm:$0xff] %v3082_v2  ;;  %v3086_v12 = vpop.f32.mrb[71].mxu0 }
 0x2fd   : > { %3793 = vst [vmem:[#allocation18_spill] sm:$0xff] %v3086_v12  ;;  %1192 = vmax.xlane.f32.xlu1 %v1191_v3  ;;  %v1194_v13 = vmax.f32 %v3082_v2, %v3086_v12 }
 0x2ff   : > { %1195 = vmax.xlane.f32.xlu0 %v1194_v13 }
 0x301   : > { %v3090_v26 = vpop.f32.mrb[72].mxu0 }
 0x302   : > { %3794 = vst [vmem:[#allocation19_spill] sm:$0xff] %v3090_v26  ;;  %v3092_v27 = vpop.f32.mrb[73].mxu0 }
 0x303   : > { %3795 = vst [vmem:[#allocation20_spill] sm:$0xff] %v3092_v27  ;;  %v3094_v42 = vpop.f32.mrb[74].mxu0  ;;  %v1197_v43 = vmax.f32 %v3090_v26, %v3092_v27 }
 0x304   : > { %3796 = vst [vmem:[#allocation21_spill] sm:$0xff] %v3094_v42  ;;  %v3098_v23 = vpop.f32.mrb[75].mxu0 }
 0x305   : > { %3797 = vst [vmem:[#allocation22_spill] sm:$0xff] %v3098_v23  ;;  %1198 = vmax.xlane.f32.xlu1 %v1197_v43  ;;  %v1200_v29 = vmax.f32 %v3094_v42, %v3098_v23  ;;  %v3165_v23 = vld [vmem:[%s3727_s4] ss:$0 sm:$0xff] }
 0x307   : > { %1201 = vmax.xlane.f32.xlu0 %v1200_v29 }
 0x309   : > { %v3102_v41 = vpop.f32.mrb[76].mxu0 }
 0x30a   : > { %3798 = vst [vmem:[#allocation23_spill] sm:$0xff] %v3102_v41  ;;  %v3104_v47 = vpop.f32.mrb[77].mxu0 }
 0x30b   : > { %3799 = vst [vmem:[#allocation24_spill] sm:$0xff] %v3104_v47  ;;  %v3106_v57 = vpop.f32.mrb[78].mxu0  ;;  %v1203_v6 = vmax.f32 %v3102_v41, %v3104_v47 }
 0x30c   : > { %3800 = vst [vmem:[#allocation25_spill] sm:$0xff] %v3106_v57  ;;  %v3110_v21 = vpop.f32.mrb[79].mxu0 }
 0x30d   : > { %3801 = vst [vmem:[#allocation26_spill] sm:$0xff] %v3110_v21  ;;  %1204 = vmax.xlane.f32.xlu1 %v1203_v6  ;;  %v1206_v25 = vmax.f32 %v3106_v57, %v3110_v21 }
 0x30f   : > { %1207 = vmax.xlane.f32.xlu0 %v1206_v25  ;;  %v2293_v25 = vpop.f32.mrb[0].mxu1 }
 0x310   : > { %v3168_v49 = vadd.f32 %v2293_v25, %v3165_v23  ;;  %v656_v42 = vpop.f32.mrb[1].mxu1 }
 0x311   : > { %v3114_v33 = vpop.f32.mrb[80].mxu0  ;;  %v3171_v27 = vadd.f32 %v3165_v23, %v656_v42  ;;  %v2294_v26 = vpop.f32.mrb[2].mxu1 }
 0x312   : > { %v3116_v37 = vpop.f32.mrb[81].mxu0  ;;  %v3174_v13 = vadd.f32 %v2294_v26, %v3165_v23  ;;  %v659_v12 = vpop.f32.mrb[3].mxu1 }
 0x313   : > { %v3118_v45 = vpop.f32.mrb[82].mxu0  ;;  %v3177_v41 = vadd.f32 %v3165_v23, %v659_v12  ;;  %v2297_v2 = vpop.f32.mrb[4].mxu1 }
 0x314   : > { %v3122_v54 = vpop.f32.mrb[83].mxu0  ;;  %v3182_v15 = vadd.f32 %v2297_v2, %v3165_v23  ;;  %v672_v25 = vpop.f32.mrb[5].mxu1 }
 0x315   : > { %v3187_v11 = vadd.f32 %v3165_v23, %v672_v25  ;;  %v2298_v26 = vpop.f32.mrb[6].mxu1 }
 0x316   : > { %v3190_v9 = vadd.f32 %v2298_v26, %v3165_v23  ;;  %v675_v12 = vpop.f32.mrb[7].mxu1 }
 0x317   : > { %v3193_v8 = vadd.f32 %v3165_v23, %v675_v12  ;;  %v2301_v5 = vpop.f32.mrb[8].mxu1 }
 0x318   : > { %v3200_v42 = vadd.f32 %v2301_v5, %v3165_v23  ;;  %v688_v25 = vpop.f32.mrb[9].mxu1 }
 0x319   : > { %v3126_v0 = vpop.f32.mrb[84].mxu0  ;;  %v3203_v1 = vadd.f32 %v3165_v23, %v688_v25  ;;  %v2302_v26 = vpop.f32.mrb[10].mxu1 }
 0x31a   : > { %v3128_v4 = vpop.f32.mrb[85].mxu0  ;;  %v3206_v63 = vadd.f32 %v2302_v26, %v3165_v23  ;;  %v691_v12 = vpop.f32.mrb[11].mxu1 }
 0x31b   : > { %v3130_v10 = vpop.f32.mrb[86].mxu0  ;;  %v3209_v62 = vadd.f32 %v3165_v23, %v691_v12  ;;  %v2305_v61 = vpop.f32.mrb[12].mxu1 }
 0x31c   : > { %v3134_v3 = vpop.f32.mrb[87].mxu0  ;;  %v3218_v26 = vadd.f32 %v2305_v61, %v3165_v23 }
 0x31e   : > { %3806 = vst [vmem:[#allocation31_spill] sm:$0xff] %v3218_v26 }
 0x321   : > { %v3138_v43 = vpop.f32.mrb[88].mxu0 }
 0x322   : > { %v3140_v29 = vpop.f32.mrb[89].mxu0 }
 0x323   : > { %v3142_v6 = vpop.f32.mrb[90].mxu0 }
 0x324   : > { %v3146_v60 = vpop.f32.mrb[91].mxu0 }
 0x329   : > { %v3150_v14 = vpop.f32.mrb[92].mxu0 }
 0x32a   : > { %3802 = vst [vmem:[#allocation27_spill] sm:$0xff] %v3150_v14  ;;  %v3152_v21 = vpop.f32.mrb[93].mxu0 }
 0x32b   : > { %3803 = vst [vmem:[#allocation28_spill] sm:$0xff] %v3152_v21  ;;  %v3154_v57 = vpop.f32.mrb[94].mxu0 }
 0x32c   : > { %3804 = vst [vmem:[#allocation29_spill] sm:$0xff] %v3154_v57  ;;  %v3158_v47 = vpop.f32.mrb[95].mxu0  ;;  %v704_v57 = vpop.f32.mrb[13].mxu1 }
 0x32d   : > { %3805 = vst [vmem:[#allocation30_spill] sm:$0xff] %v3158_v47  ;;  %v3221_v12 = vadd.f32 %v3165_v23, %v704_v57  ;;  %v2306_v51 = vpop.f32.mrb[14].mxu1 }
 0x32e   : > { %v707_v21 = vpop.f32.mrb[15].mxu1 }
 0x342   : > { %v1139_v5 = vpop.xlane.xlu0 %1138 }
 0x343   : > { %v1233_v47 = vsub.f32 %v2970_v16, %v1139_v5  ;;  %v1234_v25 = vsub.f32 %v2972_v17, %v1139_v5  ;;  %v3226_v16 = vadd.f32 %v2306_v51, %v3165_v23  ;;  %v3229_v17 = vadd.f32 %v3165_v23, %v707_v21 }
 0x344   : > { %v1142_v55 = vpop.xlane.xlu1 %1141 }
 0x345   : > { %v1297_v50 = vmul.f32 1.442695, %v1233_v47  ;;  %v1299_v18 = vmul.f32 1.442695, %v1234_v25  ;;  %v1235_v58 = vsub.f32 %v2974_v22, %v1142_v55  ;;  %v1236_v2 = vsub.f32 %v2978_v28, %v1142_v55  ;;  %3807 = vst [vmem:[#allocation32_spill] sm:$0xff] %v3226_v16  ;;  %v2309_v28 = vpop.f32.mrb[16].mxu1 }
 0x346   : > { %v729_v21 = vadd.f32 %v2309_v28, %v3165_v23 }
 0x347   : > { %2359 = vpow2.f32 %v1297_v50  ;;  %v1301_v61 = vmul.f32 1.442695, %v1235_v58  ;;  %v1303_v5 = vmul.f32 1.442695, %v1236_v2  ;;  %v720_v50 = vpop.f32.mrb[17].mxu1 }
 0x348   : > { %2361 = vpow2.f32 %v1299_v18  ;;  %v721_v58 = vadd.f32 %v3165_v23, %v720_v50  ;;  %v2310_v18 = vpop.f32.mrb[18].mxu1 }
 0x349   : > { %2363 = vpow2.f32 %v1301_v61  ;;  %v732_v57 = vadd.f32 %v2310_v18, %v3165_v23  ;;  %v723_v26 = vpop.f32.mrb[19].mxu1 }
 0x34a   : > { %2365 = vpow2.f32 %v1303_v5  ;;  %v1145_v22 = vpop.xlane.xlu0 %1144  ;;  %v724_v61 = vadd.f32 %v3165_v23, %v723_v26  ;;  %v2313_v18 = vpop.f32.mrb[20].mxu1 }
 0x34b   : > { %v1237_v51 = vsub.f32 %v2982_v34, %v1145_v22  ;;  %v1238_v55 = vsub.f32 %v2984_v35, %v1145_v22  ;;  %v792_v35 = vpack.c.bf16 %v732_v57, %v729_v21  ;;  %v736_v57 = vpop.f32.mrb[21].mxu1 }
 0x34c   : > { %v791_v22 = vpack.c.bf16 %v724_v61, %v721_v58  ;;  %v2314_v61 = vpop.f32.mrb[22].mxu1 }
 0x34d   : > { %v1305_v2 = vmul.f32 1.442695, %v1237_v51  ;;  %v1307_v25 = vmul.f32 1.442695, %v1238_v55 }
 0x34e   : > { %v1148_v47 = vpop.xlane.xlu0 %1147  ;;  %2115 = vmatprep.subr.bf16.mxu1 %v791_v22  ;;  %v739_v22 = vpop.f32.mrb[23].mxu1 }
 0x34f   : > { %2367 = vpow2.f32 %v1305_v2  ;;  %v1239_v5 = vsub.f32 %v2986_v40, %v1148_v47  ;;  %v1240_v34 = vsub.f32 %v2990_v46, %v1148_v47  ;;  %v3808_v47 = vpack.c.bf16 %v3177_v41, %v3171_v27 }
 0x350   : > { %2369 = vpow2.f32 %v1307_v25  ;;  %v745_v2 = vadd.f32 %v2313_v18, %v3165_v23  ;;  %v737_v25 = vadd.f32 %v3165_v23, %v736_v57  ;;  %v748_v41 = vadd.f32 %v2314_v61, %v3165_v23  ;;  %v2317_v57 = vpop.f32.mrb[24].mxu1 }
 0x351   : > { %v3243_v28 = vpop.eup %2359  ;;  %v1309_v50 = vmul.f32 1.442695, %v1239_v5  ;;  %v1311_v16 = vmul.f32 1.442695, %v1240_v34  ;;  %2116 = vmatpush3.bf16.msra.mxu1 %v3808_v47 }
 0x352   : > { %v3245_v51 = vpop.eup %2361  ;;  %v1151_v55 = vpop.xlane.xlu1 %1150  ;;  %2117 = vmatprep.subr.bf16.mxu1 %v792_v35  ;;  %v3809_v35 = vpack.c.bf16 %v3174_v13, %v3168_v49 }
 0x353   : > { %v3247_v14 = vpop.eup %2363  ;;  %2371 = vpow2.f32 %v1309_v50  ;;  %v1241_v26 = vsub.f32 %v2994_v52, %v1151_v55  ;;  %v1242_v40 = vsub.f32 %v2996_v53, %v1151_v55  ;;  %v1425_v46 = vadd.f32 %v3245_v51, %v3243_v28 }
 0x354   : > { %v3256_v21 = vpop.eup %2365  ;;  %2373 = vpow2.f32 %v1311_v16  ;;  %v1154_v58 = vpop.xlane.xlu0 %1153  ;;  %v740_v16 = vadd.f32 %v3165_v23, %v739_v22 }
 0x355   : > { %v1313_v52 = vmul.f32 1.442695, %v1241_v26  ;;  %v1315_v53 = vmul.f32 1.442695, %v1242_v40  ;;  %v1243_v5 = vsub.f32 %v2998_v56, %v1154_v58  ;;  %v1244_v34 = vsub.f32 %v3002_v59, %v1154_v58  ;;  %1426 = vadd.xlane.f32.xlu1 %v1425_v46  ;;  %2118 = vmatpush3.bf16.msra.mxu1 %v3809_v35  ;;  %v752_v58 = vpop.f32.mrb[25].mxu1 }
 0x356   : > { %v1428_v27 = vadd.f32 %v3256_v21, %v3247_v14  ;;  %v794_v56 = vpack.c.bf16 %v748_v41, %v745_v2  ;;  %v793_v59 = vpack.c.bf16 %v740_v16, %v737_v25  ;;  %v3810_v26 = vmax.f32 %v3114_v33, %v3116_v37 }
 0x357   : > { %2375 = vpow2.f32 %v1313_v52  ;;  %v1317_v50 = vmul.f32 1.442695, %v1243_v5  ;;  %v1319_v55 = vmul.f32 1.442695, %v1244_v34  ;;  %v3811_v2 = vpack.c.bf16 %v3193_v8, %v3187_v11 }
 0x358   : > { %2377 = vpow2.f32 %v1315_v53  ;;  %1429 = vadd.xlane.f32.xlu0 %v1428_v27  ;;  %2119 = vmatprep.subr.bf16.mxu1 %v793_v59  ;;  %v3812_v25 = vmax.f32 %v3118_v45, %v3122_v54  ;;  %v761_v52 = vadd.f32 %v2317_v57, %v3165_v23  ;;  %v753_v53 = vadd.f32 %v3165_v23, %v752_v58 }
 0x359   : > { %v3269_v18 = vpop.eup %2367  ;;  %2379 = vpow2.f32 %v1317_v50  ;;  %1210 = vmax.xlane.f32.xlu1 %v3810_v26  ;;  %2120 = vmatpush3.bf16.msra.mxu1 %v3811_v2  ;;  %v3814_v26 = vmax.f32 %v3126_v0, %v3128_v4  ;;  %v3815_v58 = vpack.c.bf16 %v3209_v62, %v3203_v1 }
 0x35a   : > { %v3274_v40 = vpop.eup %2369  ;;  %2381 = vpow2.f32 %v1319_v55  ;;  %v1157_v46 = vpop.xlane.xlu1 %1156  ;;  %2121 = vmatprep.subr.bf16.mxu1 %v794_v56  ;;  %v3813_v56 = vpack.c.bf16 %v3190_v9, %v3182_v15 }
 0x35b   : > { %v1245_v49 = vsub.f32 %v3006_v7, %v1157_v46  ;;  %v1246_v13 = vsub.f32 %v3008_v19, %v1157_v46  ;;  %v1431_v47 = vadd.f32 %v3274_v40, %v3269_v18  ;;  %v2318_v7 = vpop.f32.mrb[26].mxu1 }
 0x35c   : > { %1213 = vmax.xlane.f32.xlu0 %v3812_v25  ;;  %v1160_v61 = vpop.xlane.xlu0 %1159  ;;  %v755_v11 = vpop.f32.mrb[27].mxu1  ;;  %v764_v41 = vadd.f32 %v2318_v7, %v3165_v23 }
 0x35d   : > { %v3288_v19 = vpop.eup %2371  ;;  %v1321_v5 = vmul.f32 1.442695, %v1245_v49  ;;  %v1323_v34 = vmul.f32 1.442695, %v1246_v13  ;;  %v1247_v22 = vsub.f32 %v3010_v20, %v1160_v61  ;;  %v1248_v8 = vsub.f32 %v3014_v24, %v1160_v61  ;;  %1432 = vadd.xlane.f32.xlu1 %v1431_v47  ;;  %2122 = vmatpush3.bf16.msra.mxu1 %v3813_v56  ;;  %v2321_v49 = vpop.f32.mrb[28].mxu1 }
 0x35e   : > { %v3292_v27 = vpop.eup %2373  ;;  %v756_v16 = vadd.f32 %v3165_v23, %v755_v11  ;;  %v796_v20 = vpack.c.bf16 %v764_v41, %v761_v52  ;;  %v768_v1 = vpop.f32.mrb[29].mxu1 }
 0x35f   : > { %2383 = vpow2.f32 %v1321_v5  ;;  %v1325_v50 = vmul.f32 1.442695, %v1247_v22  ;;  %v1327_v55 = vmul.f32 1.442695, %v1248_v8  ;;  %v1434_v35 = vadd.f32 %v3292_v27, %v3288_v19 }
 0x360   : > { %2385 = vpow2.f32 %v1323_v34  ;;  %v795_v24 = vpack.c.bf16 %v756_v16, %v753_v53  ;;  %v3817_v34 = vpack.c.bf16 %v3206_v63, %v3200_v42  ;;  %v769_v16 = vadd.f32 %v3165_v23, %v768_v1 }
 0x361   : > { %v3301_v59 = vpop.eup %2375  ;;  %2387 = vpow2.f32 %v1325_v50  ;;  %1435 = vadd.xlane.f32.xlu0 %v1434_v35  ;;  %1216 = vmax.xlane.f32.xlu1 %v3814_v26 }
 0x362   : > { %v3306_v46 = vpop.eup %2377  ;;  %2389 = vpow2.f32 %v1327_v55  ;;  %v1163_v57 = vpop.xlane.xlu1 %1162  ;;  %2123 = vmatprep.subr.bf16.mxu1 %v795_v24  ;;  %v777_v24 = vadd.f32 %v2321_v49, %v3165_v23 }
 0x363   : > { %v3308_v13 = vpop.eup %2379  ;;  %v1249_v9 = vsub.f32 %v3018_v30, %v1163_v57  ;;  %v1250_v15 = vsub.f32 %v3020_v31, %v1163_v57  ;;  %v1437_v47 = vadd.f32 %v3306_v46, %v3301_v59  ;;  %2124 = vmatpush3.bf16.msra.mxu1 %v3815_v58  ;;  %v3816_v30 = vmax.f32 %v3130_v10, %v3134_v3 }
 0x364   : > { %v3317_v2 = vpop.eup %2381  ;;  %v1166_v25 = vpop.xlane.xlu0 %1165  ;;  %2125 = vmatprep.subr.bf16.mxu1 %v796_v20 }
 0x365   : > { %v1329_v61 = vmul.f32 1.442695, %v1249_v9  ;;  %v1331_v52 = vmul.f32 1.442695, %v1250_v15  ;;  %v1251_v53 = vsub.f32 %v3022_v32, %v1166_v25  ;;  %v1252_v7 = vsub.f32 %v3026_v36, %v1166_v25  ;;  %1438 = vadd.xlane.f32.xlu1 %v1437_v47  ;;  %1219 = vmax.xlane.f32.xlu0 %v3816_v30  ;;  %v2322_v32 = vpop.f32.mrb[30].mxu1 }
 0x366   : > { %v1440_v62 = vadd.f32 %v3317_v2, %v3308_v13  ;;  %v3818_v36 = vmax.f32 %v3138_v43, %v3140_v29  ;;  %v771_v8 = vpop.f32.mrb[31].mxu1 }
 0x367   : > { %2391 = vpow2.f32 %v1329_v61  ;;  %v1333_v31 = vmul.f32 1.442695, %v1251_v53  ;;  %v1335_v5 = vmul.f32 1.442695, %v1252_v7  ;;  %2126 = vmatpush3.bf16.msra.mxu1 %v3817_v34  ;;  %v772_v63 = vadd.f32 %v3165_v23, %v771_v8  ;;  %v3822_v53 = vld [vmem:[#allocation28_spill] sm:$0xff] }
 0x368   : > { %2393 = vpow2.f32 %v1331_v52  ;;  %v3820_v61 = vpack.c.bf16 %v3229_v17, %v3221_v12  ;;  %v3821_v52 = vld [vmem:[#allocation27_spill] sm:$0xff]  ;;  %v3825_v17 = vld [vmem:[#allocation4_spill] sm:$0xff] }
 0x369   : > { %v3329_v22 = vpop.eup %2383  ;;  %2395 = vpow2.f32 %v1333_v31  ;;  %1441 = vadd.xlane.f32.xlu0 %v1440_v62  ;;  %1222 = vmax.xlane.f32.xlu1 %v3818_v36  ;;  %v797_v26 = vpack.c.bf16 %v772_v63, %v769_v16  ;;  %v3826_v34 = vld [vmem:[#allocation32_spill] sm:$0xff] }
 0x36a   : > { %v3334_v11 = vpop.eup %2385  ;;  %2397 = vpow2.f32 %v1335_v5  ;;  %v1169_v41 = vpop.xlane.xlu1 %1168  ;;  %v3824_v5 = vld [vmem:[#allocation3_spill] sm:$0xff] }
 0x36b   : > { %v3338_v42 = vpop.eup %2387  ;;  %v1253_v50 = vsub.f32 %v3030_v38, %v1169_v41  ;;  %v1254_v55 = vsub.f32 %v3032_v39, %v1169_v41  ;;  %v1443_v35 = vadd.f32 %v3334_v11, %v3329_v22  ;;  %v3819_v38 = vmax.f32 %v3142_v6, %v3146_v60  ;;  %2127 = vmatprep.subr.bf16.mxu1 %v797_v26  ;;  %v3832_v26 = vld [vmem:[#allocation30_spill] sm:$0xff] }
 0x36c   : > { %v3344_v56 = vpop.eup %2389  ;;  %v1172_v20 = vpop.xlane.xlu0 %1171  ;;  %v780_v39 = vadd.f32 %v2322_v32, %v3165_v23  ;;  %2128 = vmatpush3.bf16.msra.mxu1 %v3820_v61  ;;  %v3823_v23 = vmax.f32 %v3821_v52, %v3822_v53  ;;  %v3827_v32 = vld [vmem:[#allocation31_spill] sm:$0xff] }
 0x36d   : > { %v1337_v57 = vmul.f32 1.442695, %v1253_v50  ;;  %v1339_v9 = vmul.f32 1.442695, %v1254_v55  ;;  %v1255_v15 = vsub.f32 %v3034_v44, %v1172_v20  ;;  %v1256_v47 = vsub.f32 %v3038_v48, %v1172_v20  ;;  %1444 = vadd.xlane.f32.xlu1 %v1443_v35  ;;  %1225 = vmax.xlane.f32.xlu0 %v3819_v38  ;;  %v3829_v50 = vld [vmem:[#allocation5_spill] sm:$0xff]  ;;  %v3830_v35 = vld [vmem:[#allocation6_spill] sm:$0xff] }
 0x36e   : > { %v1446_v49 = vadd.f32 %v3344_v56, %v3338_v42  ;;  %v798_v44 = vpack.c.bf16 %v780_v39, %v777_v24  ;;  %v3828_v36 = vpack.c.bf16 %v3826_v34, %v3827_v32  ;;  %v3831_v24 = vld [vmem:[#allocation29_spill] sm:$0xff]  ;;  %v3837_v32 = vld [vmem:[#allocation10_spill] sm:$0xff] }
 0x36f   : > { %2399 = vpow2.f32 %v1337_v57  ;;  %v1341_v58 = vmul.f32 1.442695, %v1255_v15  ;;  %v1343_v25 = vmul.f32 1.442695, %v1256_v47  ;;  %v3833_v57 = vmax.f32 %v3831_v24, %v3832_v26 }
 0x370   : > { %2401 = vpow2.f32 %v1339_v9  ;;  %2129 = vmatprep.subr.bf16.mxu1 %v798_v44  ;;  %v3835_v44 = vld [vmem:[#allocation8_spill] sm:$0xff] }
 0x371   : > { %v3358_v48 = vpop.eup %2391  ;;  %2403 = vpow2.f32 %v1341_v58  ;;  %1447 = vadd.xlane.f32.xlu0 %v1446_v49  ;;  %1228 = vmax.xlane.f32.xlu1 %v3823_v23  ;;  %v3834_v49 = vld [vmem:[#allocation7_spill] sm:$0xff] }
 0x372   : > { %v3363_v7 = vpop.eup %2393  ;;  %2405 = vpow2.f32 %v1343_v25  ;;  %v1175_v30 = vpop.xlane.xlu1 %1174  ;;  %2130 = vmatpush3.bf16.msra.mxu1 %v3828_v36 }
 0x373   : > { %v3365_v31 = vpop.eup %2395  ;;  %v1257_v12 = vsub.f32 %v3824_v5, %v1175_v30  ;;  %v1258_v62 = vsub.f32 %v3825_v17, %v1175_v30  ;;  %v1449_v1 = vadd.f32 %v3363_v7, %v3358_v48 }
 0x374   : > { %v3374_v8 = vpop.eup %2397  ;;  %v1178_v41 = vpop.xlane.xlu0 %1177 }
 0x375   : > { %v1345_v16 = vmul.f32 1.442695, %v1257_v12  ;;  %v1347_v63 = vmul.f32 1.442695, %v1258_v62  ;;  %v1259_v55 = vsub.f32 %v3829_v50, %v1178_v41  ;;  %v1260_v20 = vsub.f32 %v3830_v35, %v1178_v41  ;;  %1450 = vadd.xlane.f32.xlu1 %v1449_v1  ;;  %1231 = vmax.xlane.f32.xlu0 %v3833_v57  ;;  %v3836_v1 = vld [vmem:[#allocation9_spill] sm:$0xff]  ;;  %v3838_v57 = vld [vmem:[#allocation11_spill] sm:$0xff] }
 0x376   : > { %v1452_v47 = vadd.f32 %v3374_v8, %v3365_v31 }
 0x377   : > { %2407 = vpow2.f32 %v1345_v16  ;;  %v1349_v9 = vmul.f32 1.442695, %v1259_v55  ;;  %v1351_v15 = vmul.f32 1.442695, %v1260_v20 }
 0x378   : > { %2409 = vpow2.f32 %v1347_v63 }
 0x379   : > { %v3383_v38 = vpop.eup %2399  ;;  %2411 = vpow2.f32 %v1349_v9  ;;  %1453 = vadd.xlane.f32.xlu0 %v1452_v47 }
 0x37a   : > { %v3385_v39 = vpop.eup %2401  ;;  %2413 = vpow2.f32 %v1351_v15  ;;  %v1181_v58 = vpop.xlane.xlu1 %1180  ;;  %v3839_v15 = vld [vmem:[#allocation12_spill] sm:$0xff] }
 0x37b   : > { %v3387_v25 = vpop.eup %2403  ;;  %v1261_v61 = vsub.f32 %v3834_v49, %v1181_v58  ;;  %v1262_v23 = vsub.f32 %v3835_v44, %v1181_v58  ;;  %v1455_v30 = vadd.f32 %v3385_v39, %v3383_v38 }
 0x37c   : > { %v3393_v5 = vpop.eup %2405  ;;  %v1184_v12 = vpop.xlane.xlu0 %1183 }
 0x37d   : > { %v1353_v17 = vmul.f32 1.442695, %v1261_v61  ;;  %v1355_v62 = vmul.f32 1.442695, %v1262_v23  ;;  %v1263_v34 = vsub.f32 %v3836_v1, %v1184_v12  ;;  %v1264_v36 = vsub.f32 %v3837_v32, %v1184_v12  ;;  %1456 = vadd.xlane.f32.xlu1 %v1455_v30  ;;  %v3840_v30 = vld [vmem:[#allocation13_spill] sm:$0xff] }
 0x37e   : > { %v1458_v41 = vadd.f32 %v3393_v5, %v3387_v25 }
 0x37f   : > { %2415 = vpow2.f32 %v1353_v17  ;;  %v1357_v16 = vmul.f32 1.442695, %v1263_v34  ;;  %v1359_v63 = vmul.f32 1.442695, %v1264_v36  ;;  %v3841_v17 = vld [vmem:[#allocation14_spill] sm:$0xff] }
 0x380   : > { %2417 = vpow2.f32 %v1355_v62  ;;  %1459 = vadd.xlane.f32.xlu0 %v1458_v41 }
 0x381   : > { %v3399_v50 = vpop.eup %2407  ;;  %2419 = vpow2.f32 %v1357_v16 }
 0x382   : > { %v3401_v55 = vpop.eup %2409  ;;  %2421 = vpow2.f32 %v1359_v63  ;;  %v1187_v35 = vpop.xlane.xlu1 %1186 }
 0x383   : > { %v3403_v20 = vpop.eup %2411  ;;  %v1265_v9 = vsub.f32 %v3838_v57, %v1187_v35  ;;  %v1266_v47 = vsub.f32 %v3839_v15, %v1187_v35  ;;  %v1461_v58 = vadd.f32 %v3401_v55, %v3399_v50  ;;  %v3844_v35 = vld [vmem:[#allocation15_spill] sm:$0xff] }
 0x384   : > { %v3409_v49 = vpop.eup %2413  ;;  %v1190_v61 = vpop.xlane.xlu0 %1189 }
 0x385   : > { %v1361_v44 = vmul.f32 1.442695, %v1265_v9  ;;  %v1363_v23 = vmul.f32 1.442695, %v1266_v47  ;;  %v1267_v12 = vsub.f32 %v3840_v30, %v1190_v61  ;;  %v1268_v62 = vsub.f32 %v3841_v17, %v1190_v61  ;;  %1462 = vadd.xlane.f32.xlu1 %v1461_v58  ;;  %v3845_v9 = vld [vmem:[#allocation16_spill] sm:$0xff]  ;;  %v3847_v30 = vld [vmem:[#allocation17_spill] sm:$0xff] }
 0x386   : > { %v1464_v1 = vadd.f32 %v3409_v49, %v3403_v20  ;;  %v3848_v17 = vld [vmem:[#allocation18_spill] sm:$0xff] }
 0x387   : > { %2423 = vpow2.f32 %v1361_v44  ;;  %v1365_v34 = vmul.f32 1.442695, %v1267_v12  ;;  %v1367_v32 = vmul.f32 1.442695, %v1268_v62 }
 0x388   : > { %2425 = vpow2.f32 %v1363_v23  ;;  %1465 = vadd.xlane.f32.xlu0 %v1464_v1 }
 0x389   : > { %v3415_v36 = vpop.eup %2415  ;;  %2427 = vpow2.f32 %v1365_v34 }
 0x38a   : > { %3842 = vst [vmem:[#allocation27_spill] sm:$0xff] %v3415_v36  ;;  %v3417_v41 = vpop.eup %2417  ;;  %2429 = vpow2.f32 %v1367_v32  ;;  %v1193_v16 = vpop.xlane.xlu1 %1192 }
 0x38b   : > { %v3419_v63 = vpop.eup %2419  ;;  %v1269_v57 = vsub.f32 %v3844_v35, %v1193_v16  ;;  %v1270_v15 = vsub.f32 %v3845_v9, %v1193_v16  ;;  %v1467_v47 = vadd.f32 %v3417_v41, %v3415_v36  ;;  %v3856_v36 = vld [vmem:[#allocation22_spill] sm:$0xff] }
 0x38c   : > { %3843 = vst [vmem:[#allocation28_spill] sm:$0xff] %v3419_v63  ;;  %v3425_v58 = vpop.eup %2421  ;;  %v1196_v61 = vpop.xlane.xlu0 %1195 }
 0x38d   : > { %3846 = vst [vmem:[#allocation3_spill] sm:$0xff] %v3425_v58  ;;  %v1369_v44 = vmul.f32 1.442695, %v1269_v57  ;;  %v1371_v23 = vmul.f32 1.442695, %v1270_v15  ;;  %v1271_v12 = vsub.f32 %v3847_v30, %v1196_v61  ;;  %v1272_v62 = vsub.f32 %v3848_v17, %v1196_v61  ;;  %1468 = vadd.xlane.f32.xlu1 %v1467_v47  ;;  %v3852_v15 = vld [vmem:[#allocation19_spill] sm:$0xff] }
 0x38e   : > { %v1470_v1 = vadd.f32 %v3425_v58, %v3419_v63  ;;  %v3853_v47 = vld [vmem:[#allocation20_spill] sm:$0xff] }
 0x38f   : > { %2431 = vpow2.f32 %v1369_v44  ;;  %v1373_v34 = vmul.f32 1.442695, %v1271_v12  ;;  %v1375_v32 = vmul.f32 1.442695, %v1272_v62 }
 0x390   : > { %2433 = vpow2.f32 %v1371_v23  ;;  %1471 = vadd.xlane.f32.xlu0 %v1470_v1  ;;  %v3855_v1 = vld [vmem:[#allocation21_spill] sm:$0xff] }
 0x391   : > { %v3431_v16 = vpop.eup %2423  ;;  %2435 = vpow2.f32 %v1373_v34 }
 0x392   : > { %3849 = vst [vmem:[#allocation4_spill] sm:$0xff] %v3431_v16  ;;  %v3433_v35 = vpop.eup %2425  ;;  %2437 = vpow2.f32 %v1375_v32  ;;  %v1199_v57 = vpop.xlane.xlu1 %1198 }
 0x393   : > { %3850 = vst [vmem:[#allocation32_spill] sm:$0xff] %v3433_v35  ;;  %v3435_v9 = vpop.eup %2427  ;;  %v1273_v61 = vsub.f32 %v3852_v15, %v1199_v57  ;;  %v1274_v30 = vsub.f32 %v3853_v47, %v1199_v57  ;;  %v1473_v44 = vadd.f32 %v3433_v35, %v3431_v16  ;;  %v3859_v16 = vld [vmem:[#allocation25_spill] sm:$0xff] }
 0x394   : > { %3851 = vst [vmem:[#allocation31_spill] sm:$0xff] %v3435_v9  ;;  %v3441_v12 = vpop.eup %2429  ;;  %v1202_v23 = vpop.xlane.xlu0 %1201 }
 0x395   : > { %3854 = vst [vmem:[#allocation5_spill] sm:$0xff] %v3441_v12  ;;  %v1377_v17 = vmul.f32 1.442695, %v1273_v61  ;;  %v1379_v62 = vmul.f32 1.442695, %v1274_v30  ;;  %v1275_v34 = vsub.f32 %v3855_v1, %v1202_v23  ;;  %v1276_v63 = vsub.f32 %v3856_v36, %v1202_v23  ;;  %1474 = vadd.xlane.f32.xlu1 %v1473_v44  ;;  %v3857_v1 = vld [vmem:[#allocation23_spill] sm:$0xff] }
 0x396   : > { %v1476_v32 = vadd.f32 %v3441_v12, %v3435_v9  ;;  %v3858_v44 = vld [vmem:[#allocation24_spill] sm:$0xff]  ;;  %v3860_v9 = vld [vmem:[#allocation26_spill] sm:$0xff] }
 0x397   : > { %2439 = vpow2.f32 %v1377_v17  ;;  %v1381_v15 = vmul.f32 1.442695, %v1275_v34  ;;  %v1383_v58 = vmul.f32 1.442695, %v1276_v63 }
 0x398   : > { %2441 = vpow2.f32 %v1379_v62  ;;  %1477 = vadd.xlane.f32.xlu0 %v1476_v32 }
 0x399   : > { %v3447_v57 = vpop.eup %2431  ;;  %2443 = vpow2.f32 %v1381_v15 }
 0x39a   : > { %v3449_v47 = vpop.eup %2433  ;;  %2445 = vpow2.f32 %v1383_v58  ;;  %v1205_v61 = vpop.xlane.xlu1 %1204 }
 0x39b   : > { %v3451_v30 = vpop.eup %2435  ;;  %v1277_v36 = vsub.f32 %v3857_v1, %v1205_v61  ;;  %v1278_v23 = vsub.f32 %v3858_v44, %v1205_v61  ;;  %v1479_v17 = vadd.f32 %v3449_v47, %v3447_v57 }
 0x39c   : > { %v3457_v34 = vpop.eup %2437  ;;  %v1208_v63 = vpop.xlane.xlu0 %1207 }
 0x39d   : > { %v1385_v62 = vmul.f32 1.442695, %v1277_v36  ;;  %v1387_v32 = vmul.f32 1.442695, %v1278_v23  ;;  %v1279_v15 = vsub.f32 %v3859_v16, %v1208_v63  ;;  %v1280_v12 = vsub.f32 %v3860_v9, %v1208_v63  ;;  %1480 = vadd.xlane.f32.xlu1 %v1479_v17 }
 0x39e   : > { %v1482_v58 = vadd.f32 %v3457_v34, %v3451_v30 }
 0x39f   : > { %2447 = vpow2.f32 %v1385_v62  ;;  %v1389_v1 = vmul.f32 1.442695, %v1279_v15  ;;  %v1391_v35 = vmul.f32 1.442695, %v1280_v12  ;;  %v2592_v15 = vmov 0  }
 0x3a0   : > { %2449 = vpow2.f32 %v1387_v32  ;;  %1483 = vadd.xlane.f32.xlu0 %v1482_v58  ;;  %2341 = vset.pattern.permute.xlu1 %v2592_v15 }
 0x3a1   : > { %v3463_v61 = vpop.eup %2439  ;;  %2451 = vpow2.f32 %v1389_v1  ;;  %2342 = vset.pattern.permute.xlu0 %v2592_v15 }
 0x3a2   : > { %3861 = vst [vmem:[#allocation6_spill] sm:$0xff] %v3463_v61  ;;  %v3465_v44 = vpop.eup %2441  ;;  %2453 = vpow2.f32 %v1391_v35 }
 0x3a3   : > { %v3467_v36 = vpop.eup %2443  ;;  %v1485_v16 = vadd.f32 %v3465_v44, %v3463_v61 }
 0x3a4   : > { %3862 = vst [vmem:[#allocation29_spill] sm:$0xff] %v3467_v36  ;;  %v3471_v9 = vpop.eup %2445 }
 0x3a5   : > { %3863 = vst [vmem:[#allocation30_spill] sm:$0xff] %v3471_v9  ;;  %1486 = vadd.xlane.f32.xlu1 %v1485_v16  ;;  %v1488_v23 = vadd.f32 %v3471_v9, %v3467_v36 }
 0x3a7   : > { %1489 = vadd.xlane.f32.xlu0 %v1488_v23 }
 0x3a9   : > { %v3475_v12 = vpop.eup %2447 }
 0x3aa   : > { %3864 = vst [vmem:[#allocation7_spill] sm:$0xff] %v3475_v12  ;;  %v3477_v17 = vpop.eup %2449 }
 0x3ab   : > { %3865 = vst [vmem:[#allocation8_spill] sm:$0xff] %v3477_v17  ;;  %v3479_v63 = vpop.eup %2451  ;;  %v1491_v35 = vadd.f32 %v3477_v17, %v3475_v12 }
 0x3ac   : > { %3866 = vst [vmem:[#allocation9_spill] sm:$0xff] %v3479_v63  ;;  %v3483_v62 = vpop.eup %2453 }
 0x3ad   : > { %3867 = vst [vmem:[#allocation10_spill] sm:$0xff] %v3483_v62  ;;  %1492 = vadd.xlane.f32.xlu1 %v1491_v35  ;;  %v1494_v32 = vadd.f32 %v3483_v62, %v3479_v63 }
 0x3af   : > { %1495 = vadd.xlane.f32.xlu0 %v1494_v32 }
 0x3e2   : > { %v1427_v58 = vpop.xlane.xlu1 %1426 }
 0x3e3   : > { %2455 = vrcp.f32 %v1427_v58 }
 0x3e5   : > { %v1430_v1 = vpop.xlane.xlu0 %1429 }
 0x3e6   : > { %2457 = vrcp.f32 %v1430_v1  ;;  %v1211_v16 = vpop.xlane.xlu1 %1210 }
 0x3e7   : > { %v1281_v23 = vsub.f32 %v3114_v33, %v1211_v16  ;;  %v1282_v61 = vsub.f32 %v3116_v37, %v1211_v16 }
 0x3e9   : > { %v1393_v12 = vmul.f32 1.442695, %v1281_v23  ;;  %v1395_v17 = vmul.f32 1.442695, %v1282_v61  ;;  %v1214_v36 = vpop.xlane.xlu0 %1213 }
 0x3ea   : > { %v1283_v35 = vsub.f32 %v3118_v45, %v1214_v36  ;;  %v1284_v63 = vsub.f32 %v3122_v54, %v1214_v36  ;;  %v1433_v32 = vpop.xlane.xlu1 %1432 }
 0x3eb   : > { %2459 = vpow2.f32 %v1393_v12 }
 0x3ec   : > { %2461 = vpow2.f32 %v1395_v17  ;;  %v1397_v15 = vmul.f32 1.442695, %v1283_v35  ;;  %v1399_v62 = vmul.f32 1.442695, %v1284_v63 }
 0x3ed   : > { %v2456_v58 = vpop.eup %2455  ;;  %2463 = vrcp.f32 %v1433_v32 }
 0x3ee   : > { %2465 = vpow2.f32 %v1397_v15  ;;  %v1436_v1 = vpop.xlane.xlu0 %1435  ;;  %v1217_v9 = vpop.xlane.xlu1 %1216  ;;  %v1554_v45 = vmul.f32 %v2456_v58, %v3245_v51  ;;  %v1553_v63 = vmul.f32 %v2456_v58, %v3243_v28 }
 0x3ef   : > { %2467 = vpow2.f32 %v1399_v62  ;;  %v1285_v33 = vsub.f32 %v3126_v0, %v1217_v9  ;;  %v1286_v37 = vsub.f32 %v3128_v4, %v1217_v9 }
 0x3f0   : > { %v2458_v61 = vpop.eup %2457  ;;  %2469 = vrcp.f32 %v1436_v1 }
 0x3f1   : > { %v1555_v54 = vmul.f32 %v2458_v61, %v3247_v14  ;;  %v1401_v36 = vmul.f32 1.442695, %v1285_v33  ;;  %v1403_v12 = vmul.f32 1.442695, %v1286_v37  ;;  %v1556_v17 = vmul.f32 %v2458_v61, %v3256_v21 }
 0x3f2   : > { %v1439_v16 = vpop.xlane.xlu1 %1438  ;;  %v1220_v23 = vpop.xlane.xlu0 %1219 }
 0x3f3   : > { %2471 = vpow2.f32 %v1401_v36  ;;  %v1287_v62 = vsub.f32 %v3130_v10, %v1220_v23  ;;  %v1288_v0 = vsub.f32 %v3134_v3, %v1220_v23  ;;  %v1618_v4 = vpack.c.bf16 %v1556_v17, %v1554_v45 }
 0x3f4   : > { %2473 = vpow2.f32 %v1403_v12  ;;  %v1617_v9 = vpack.c.bf16 %v1555_v54, %v1553_v63 }
 0x3f5   : > { %v3499_v35 = vpop.eup %2459  ;;  %2475 = vrcp.f32 %v1439_v16  ;;  %v1405_v14 = vmul.f32 1.442695, %v1287_v62  ;;  %v1407_v51 = vmul.f32 1.442695, %v1288_v0  ;;  %1681 = vmatprep.mubr.bf16.mxu1 %v1618_v4 }
 0x3f6   : > { %v3501_v32 = vpop.eup %2461  ;;  %1682 = vmatmul.mubr.bf16.vlgmr.msra.gmra.mrb[32].mxu1 %v1617_v9  ;;  %v1442_v28 = vpop.xlane.xlu0 %1441 }
 0x3f7   : > { %v1223_v21 = vpop.xlane.xlu1 %1222  ;;  %v2464_v15 = vpop.eup %2463  ;;  %2477 = vpow2.f32 %v1405_v14  ;;  %v1497_v58 = vadd.f32 %v3501_v32, %v3499_v35 }
 0x3f8   : > { %v1289_v10 = vsub.f32 %v3138_v43, %v1223_v21  ;;  %v1290_v3 = vsub.f32 %v3140_v29, %v1223_v21  ;;  %v3507_v1 = vpop.eup %2465  ;;  %2479 = vpow2.f32 %v1407_v51  ;;  %v1558_v29 = vmul.f32 %v2464_v15, %v3274_v40 }
 0x3f9   : > { %v3509_v33 = vpop.eup %2467  ;;  %2481 = vrcp.f32 %v1442_v28  ;;  %1498 = vadd.xlane.f32.xlu1 %v1497_v58  ;;  %v1557_v16 = vmul.f32 %v2464_v15, %v3269_v18 }
 0x3fa   : > { %v1409_v37 = vmul.f32 1.442695, %v1289_v10  ;;  %v1411_v61 = vmul.f32 1.442695, %v1290_v3  ;;  %v2470_v45 = vpop.eup %2469  ;;  %v1226_v36 = vpop.xlane.xlu0 %1225  ;;  %v1500_v43 = vadd.f32 %v3509_v33, %v3507_v1 }
 0x3fb   : > { %v1445_v54 = vpop.xlane.xlu1 %1444  ;;  %v1291_v12 = vsub.f32 %v3142_v6, %v1226_v36  ;;  %v1292_v17 = vsub.f32 %v3146_v60, %v1226_v36  ;;  %v1560_v63 = vmul.f32 %v2470_v45, %v3292_v27  ;;  %v1559_v23 = vmul.f32 %v2470_v45, %v3288_v19 }
 0x3fc   : > { %2483 = vpow2.f32 %v1409_v37  ;;  %1501 = vadd.xlane.f32.xlu0 %v1500_v43 }
 0x3fd   : > { %2485 = vpow2.f32 %v1411_v61  ;;  %v3519_v62 = vpop.eup %2471  ;;  %v1413_v0 = vmul.f32 1.442695, %v1291_v12  ;;  %v1415_v4 = vmul.f32 1.442695, %v1292_v17  ;;  %v1620_v9 = vpack.c.bf16 %v1560_v63, %v1558_v29 }
 0x3fe   : > { %v3521_v14 = vpop.eup %2473  ;;  %2487 = vrcp.f32 %v1445_v54  ;;  %v1448_v40 = vpop.xlane.xlu0 %1447  ;;  %v1619_v51 = vpack.c.bf16 %v1559_v23, %v1557_v16 }
 0x3ff   : > { %v1229_v6 = vpop.xlane.xlu1 %1228  ;;  %v2476_v60 = vpop.eup %2475  ;;  %2489 = vpow2.f32 %v1413_v0  ;;  %1689 = vmatprep.mubr.bf16.mxu1 %v1620_v9  ;;  %v1503_v19 = vadd.f32 %v3521_v14, %v3519_v62 }
 0x400   : > { %v1293_v27 = vsub.f32 %v3821_v52, %v1229_v6  ;;  %v1294_v18 = vsub.f32 %v3822_v53, %v1229_v6  ;;  %2491 = vpow2.f32 %v1415_v4  ;;  %1690 = vmatmul.mubr.bf16.gmra.mrb[36].mxu1 %v1619_v51  ;;  %v1562_v58 = vmul.f32 %v2476_v60, %v3306_v46 }
 0x401   : > { %v3527_v28 = vpop.eup %2477  ;;  %2493 = vrcp.f32 %v1448_v40  ;;  %1504 = vadd.xlane.f32.xlu1 %v1503_v19  ;;  %v1561_v36 = vmul.f32 %v2476_v60, %v3301_v59 }
 0x402   : > { %v1417_v21 = vmul.f32 1.442695, %v1293_v27  ;;  %v1419_v15 = vmul.f32 1.442695, %v1294_v18  ;;  %v3529_v10 = vpop.eup %2479  ;;  %v1232_v3 = vpop.xlane.xlu0 %1231 }
 0x403   : > { %v2482_v37 = vpop.eup %2481  ;;  %v1451_v52 = vpop.xlane.xlu1 %1450  ;;  %v1295_v53 = vsub.f32 %v3831_v24, %v1232_v3  ;;  %v1296_v61 = vsub.f32 %v3832_v26, %v1232_v3  ;;  %v1506_v45 = vadd.f32 %v3529_v10, %v3527_v28 }
 0x404   : > { %2495 = vpow2.f32 %v1417_v21  ;;  %v1564_v54 = vmul.f32 %v2482_v37, %v3317_v2  ;;  %v1563_v43 = vmul.f32 %v2482_v37, %v3308_v13 }
 0x405   : > { %2497 = vpow2.f32 %v1419_v15  ;;  %v1421_v46 = vmul.f32 1.442695, %v1295_v53  ;;  %v1423_v12 = vmul.f32 1.442695, %v1296_v61  ;;  %1507 = vadd.xlane.f32.xlu0 %v1506_v45 }
 0x406   : > { %v3539_v29 = vpop.eup %2483  ;;  %2499 = vrcp.f32 %v1451_v52  ;;  %v1622_v24 = vpack.c.bf16 %v1564_v54, %v1562_v58  ;;  %v1454_v26 = vpop.xlane.xlu0 %1453  ;;  %v1621_v63 = vpack.c.bf16 %v1563_v43, %v1561_v36 }
 0x407   : > { %v3541_v17 = vpop.eup %2485  ;;  %2501 = vpow2.f32 %v1421_v46 }
 0x408   : > { %v1509_v16 = vadd.f32 %v3541_v17, %v3539_v29  ;;  %v2488_v2 = vpop.eup %2487  ;;  %2503 = vpow2.f32 %v1423_v12  ;;  %1697 = vmatprep.mubr.bf16.mxu1 %v1622_v24 }
 0x409   : > { %v3545_v59 = vpop.eup %2489  ;;  %2505 = vrcp.f32 %v1454_v26  ;;  %1698 = vmatmul.mubr.bf16.gmra.mrb[40].mxu1 %v1621_v63  ;;  %v1566_v9 = vmul.f32 %v2488_v2, %v3334_v11  ;;  %v1565_v6 = vmul.f32 %v2488_v2, %v3329_v22  ;;  %v2014_v2 = vld [vmem:[#allocation2] ss:$0 sm:$0xff] }
 0x40a   : > { %1510 = vadd.xlane.f32.xlu1 %v1509_v16  ;;  %v3547_v13 = vpop.eup %2491  ;;  %v1457_v23 = vpop.xlane.xlu1 %1456 }
 0x40b   : > { %v2494_v0 = vpop.eup %2493  ;;  %v1512_v4 = vadd.f32 %v3547_v13, %v3545_v59  ;;  %2507 = vrcp.f32 %v1457_v23 }
 0x40c   : > { %v1568_v40 = vmul.f32 %v2494_v0, %v3344_v56  ;;  %v1567_v51 = vmul.f32 %v2494_v0, %v3338_v42 }
 0x40d   : > { %1513 = vadd.xlane.f32.xlu0 %v1512_v4  ;;  %v1460_v27 = vpop.xlane.xlu0 %1459 }
 0x40e   : > { %v3555_v60 = vpop.eup %2495  ;;  %2509 = vrcp.f32 %v1460_v27  ;;  %v1624_v19 = vpack.c.bf16 %v1568_v40, %v1566_v9  ;;  %v1623_v21 = vpack.c.bf16 %v1567_v51, %v1565_v6 }
 0x40f   : > { %v3557_v18 = vpop.eup %2497 }
 0x410   : > { %v1515_v15 = vadd.f32 %v3557_v18, %v3555_v60  ;;  %v2500_v11 = vpop.eup %2499  ;;  %1705 = vmatprep.mubr.bf16.mxu1 %v1624_v19 }
 0x411   : > { %v3561_v3 = vpop.eup %2501  ;;  %1706 = vmatmul.mubr.bf16.gmra.mrb[44].mxu1 %v1623_v21  ;;  %v1570_v37 = vmul.f32 %v2500_v11, %v3363_v7  ;;  %v1569_v53 = vmul.f32 %v2500_v11, %v3358_v48 }
 0x412   : > { %1516 = vadd.xlane.f32.xlu1 %v1515_v15  ;;  %v3563_v22 = vpop.eup %2503  ;;  %v1463_v42 = vpop.xlane.xlu1 %1462  ;;  %v3869_v15 = vld [vmem:[#allocation28_spill] sm:$0xff] }
 0x413   : > { %v2506_v56 = vpop.eup %2505  ;;  %v1518_v58 = vadd.f32 %v3563_v22, %v3561_v3  ;;  %2511 = vrcp.f32 %v1463_v42  ;;  %v3870_v42 = vld [vmem:[#allocation27_spill] sm:$0xff] }
 0x414   : > { %v1572_v52 = vmul.f32 %v2506_v56, %v3374_v8  ;;  %v1571_v61 = vmul.f32 %v2506_v56, %v3365_v31 }
 0x415   : > { %1519 = vadd.xlane.f32.xlu0 %v1518_v58  ;;  %v1466_v45 = vpop.xlane.xlu0 %1465  ;;  %v2508_v54 = vpop.eup %2507 }
 0x416   : > { %2513 = vrcp.f32 %v1466_v45  ;;  %v1626_v36 = vpack.c.bf16 %v1572_v52, %v1570_v37  ;;  %v1625_v43 = vpack.c.bf16 %v1571_v61, %v1569_v53  ;;  %v1574_v12 = vmul.f32 %v2508_v54, %v3385_v39  ;;  %v3871_v52 = vld [vmem:[#allocation32_spill] sm:$0xff]  ;;  %v3872_v61 = vld [vmem:[#allocation5_spill] sm:$0xff] }
 0x417   : > { %v1573_v31 = vmul.f32 %v2508_v54, %v3383_v38 }
 0x418   : > { %v2510_v46 = vpop.eup %2509  ;;  %1713 = vmatprep.mubr.bf16.mxu1 %v1626_v36  ;;  %v3873_v36 = vld [vmem:[#allocation31_spill] sm:$0xff] }
 0x419   : > { %1714 = vmatmul.mubr.bf16.gmra.mrb[48].mxu1 %v1625_v43  ;;  %v1576_v7 = vmul.f32 %v2510_v46, %v3393_v5  ;;  %v1575_v8 = vmul.f32 %v2510_v46, %v3387_v25 }
 0x41a   : > { %v1469_v24 = vpop.xlane.xlu1 %1468 }
 0x41b   : > { %v1628_v26 = vpack.c.bf16 %v1576_v7, %v1574_v12  ;;  %2515 = vrcp.f32 %v1469_v24  ;;  %v1627_v16 = vpack.c.bf16 %v1575_v8, %v1573_v31  ;;  %v3874_v12 = vld [vmem:[#allocation4_spill] sm:$0xff] }
 0x41d   : > { %1721 = vmatprep.mubr.bf16.mxu1 %v1628_v26  ;;  %v1472_v48 = vpop.xlane.xlu0 %1471  ;;  %v2512_v63 = vpop.eup %2511 }
 0x41e   : > { %2517 = vrcp.f32 %v1472_v48  ;;  %v1578_v0 = vmul.f32 %v2512_v63, %v3401_v55  ;;  %v1577_v38 = vmul.f32 %v2512_v63, %v3399_v50  ;;  %v3868_v55 = vld [vmem:[#allocation3_spill] sm:$0xff] }
 0x420   : > { %v2514_v23 = vpop.eup %2513 }
 0x421   : > { %1722 = vmatmul.mubr.bf16.gmra.mrb[52].mxu1 %v1627_v16  ;;  %v1580_v39 = vmul.f32 %v2514_v23, %v3409_v49  ;;  %v1579_v25 = vmul.f32 %v2514_v23, %v3403_v20 }
 0x422   : > { %v1475_v5 = vpop.xlane.xlu1 %1474 }
 0x423   : > { %1817 = vperm.xlu1 %2341, %v2014_v2   ;;  %v1630_v4 = vpack.c.bf16 %v1580_v39, %v1578_v0  ;;  %2519 = vrcp.f32 %v1475_v5  ;;  %v1629_v6 = vpack.c.bf16 %v1579_v25, %v1577_v38 }
 0x425   : > { %1729 = vmatprep.mubr.bf16.mxu1 %v1630_v4  ;;  %v1478_v9 = vpop.xlane.xlu0 %1477  ;;  %v2516_v40 = vpop.eup %2515 }
 0x426   : > { %2521 = vrcp.f32 %v1478_v9  ;;  %v1582_v27 = vmul.f32 %v2516_v40, %v3417_v41  ;;  %v1581_v56 = vmul.f32 %v2516_v40, %v3870_v42  ;;  %v3875_v9 = vld [vmem:[#allocation30_spill] sm:$0xff] }
 0x428   : > { %v2518_v51 = vpop.eup %2517 }
 0x429   : > { %1730 = vmatmul.mubr.bf16.gmra.mrb[56].mxu1 %v1629_v6  ;;  %v1584_v19 = vmul.f32 %v2518_v51, %v3868_v55  ;;  %v1583_v11 = vmul.f32 %v2518_v51, %v3869_v15  ;;  %v3877_v51 = vld [vmem:[#allocation6_spill] sm:$0xff] }
 0x42a   : > { %v1481_v49 = vpop.xlane.xlu1 %1480 }
 0x42b   : > { %v1632_v21 = vpack.c.bf16 %v1584_v19, %v1582_v27  ;;  %2523 = vrcp.f32 %v1481_v49  ;;  %v1631_v50 = vpack.c.bf16 %v1583_v11, %v1581_v56  ;;  %v3878_v19 = vld [vmem:[#allocation8_spill] sm:$0xff]  ;;  %v3880_v11 = vld [vmem:[#allocation9_spill] sm:$0xff] }
 0x42d   : > { %1737 = vmatprep.mubr.bf16.mxu1 %v1632_v21  ;;  %v1484_v20 = vpop.xlane.xlu0 %1483  ;;  %v2520_v58 = vpop.eup %2519  ;;  %v3879_v21 = vld [vmem:[#allocation10_spill] sm:$0xff] }
 0x42e   : > { %2525 = vrcp.f32 %v1484_v20  ;;  %v1586_v53 = vmul.f32 %v2520_v58, %v3871_v52  ;;  %v1585_v7 = vmul.f32 %v2520_v58, %v3874_v12  ;;  %v3881_v20 = vld [vmem:[#allocation7_spill] sm:$0xff] }
 0x430   : > { %v2522_v37 = vpop.eup %2521 }
 0x431   : > { %1738 = vmatmul.mubr.bf16.gmra.mrb[60].mxu1 %v1631_v50  ;;  %v1588_v41 = vmul.f32 %v2522_v37, %v3872_v61  ;;  %v1587_v43 = vmul.f32 %v2522_v37, %v3873_v36 }
 0x432   : > { %v1487_v45 = vpop.xlane.xlu1 %1486 }
 0x433   : > { %2527 = vrcp.f32 %v1487_v45  ;;  %v1634_v54 = vpack.c.bf16 %v1588_v41, %v1586_v53  ;;  %v1633_v26 = vpack.c.bf16 %v1587_v43, %v1585_v7 }
 0x434   : > { %v1490_v46 = vpop.xlane.xlu0 %1489 }
 0x435   : > { %1745 = vmatprep.mubr.bf16.mxu1 %v1634_v54  ;;  %2529 = vrcp.f32 %v1490_v46  ;;  %v2524_v24 = vpop.eup %2523 }
 0x436   : > { %v1590_v48 = vmul.f32 %v2524_v24, %v3449_v47  ;;  %v1589_v39 = vmul.f32 %v2524_v24, %v3447_v57 }
 0x438   : > { %v2526_v8 = vpop.eup %2525 }
 0x439   : > { %1746 = vmatmul.mubr.bf16.gmra.mrb[64].mxu1 %v1633_v26  ;;  %v1592_v31 = vmul.f32 %v2526_v8, %v3457_v34  ;;  %v1591_v2 = vmul.f32 %v2526_v8, %v3451_v30  ;;  %v3876_v34 = vld [vmem:[#allocation29_spill] sm:$0xff] }
 0x43a   : > { %v1493_v63 = vpop.xlane.xlu1 %1492 }
 0x43b   : > { %2531 = vrcp.f32 %v1493_v63  ;;  %v1636_v16 = vpack.c.bf16 %v1592_v31, %v1590_v48  ;;  %v1635_v4 = vpack.c.bf16 %v1591_v2, %v1589_v39 }
 0x43c   : > { %v1496_v23 = vpop.xlane.xlu0 %1495 }
 0x43d   : > { %v2528_v0 = vpop.eup %2527  ;;  %1753 = vmatprep.mubr.bf16.mxu1 %v1636_v16  ;;  %2533 = vrcp.f32 %v1496_v23 }
 0x43e   : > { %v1594_v25 = vmul.f32 %v2528_v0, %v3465_v44  ;;  %v1593_v30 = vmul.f32 %v2528_v0, %v3877_v51 }
 0x43f   : > { %v2530_v5 = vpop.eup %2529 }
 0x440   : > { %v1596_v38 = vmul.f32 %v2530_v5, %v3875_v9  ;;  %v1595_v40 = vmul.f32 %v2530_v5, %v3876_v34 }
 0x441   : > { %1754 = vmatmul.mubr.bf16.gmra.mrb[68].mxu1 %v1635_v4 }
 0x442   : > { %v1638_v47 = vpack.c.bf16 %v1596_v38, %v1594_v25  ;;  %v1637_v55 = vpack.c.bf16 %v1595_v40, %v1593_v30  ;;  %v2552_v30 = vld [vmem:[%s2656_s9 + $0x8] sm:$0xff] }
 0x444   : > { %1761 = vmatprep.mubr.bf16.mxu1 %v1638_v47 }
 0x445   : > { %v2532_v6 = vpop.eup %2531 }
 0x446   : > { %v1598_v49 = vmul.f32 %v2532_v6, %v3878_v19  ;;  %v1597_v42 = vmul.f32 %v2532_v6, %v3881_v20 }
 0x447   : > { %v2534_v27 = vpop.eup %2533 }
 0x448   : > { %v1600_v57 = vmul.f32 %v2534_v27, %v3879_v21  ;;  %v1599_v44 = vmul.f32 %v2534_v27, %v3880_v11 }
 0x449   : > { %1762 = vmatmul.mubr.bf16.gmra.mrb[72].mxu1 %v1637_v55 }
 0x44a   : > { %v1640_v15 = vpack.c.bf16 %v1600_v57, %v1598_v49  ;;  %v1639_v56 = vpack.c.bf16 %v1599_v44, %v1597_v42  ;;  %v2553_v44 = vld [vmem:[%s2656_s9 + $0x10] sm:$0xff] }
 0x44c   : > { %1769 = vmatprep.mubr.bf16.mxu1 %v1640_v15 }
 0x451   : > { %1770 = vmatmul.mubr.bf16.gmra.mrb[76].mxu1 %v1639_v56  ;;  %v2554_v56 = vld [vmem:[%s2656_s9 + $0x18] sm:$0xff] }
 0x486   : > { %v1499_v58 = vpop.xlane.xlu1 %1498 }
 0x487   : > { %2535 = vrcp.f32 %v1499_v58 }
 0x489   : > { %v1502_v50 = vpop.xlane.xlu0 %1501 }
 0x48a   : > { %2537 = vrcp.f32 %v1502_v50 }
 0x48e   : > { %v1505_v37 = vpop.xlane.xlu1 %1504 }
 0x48f   : > { %2539 = vrcp.f32 %v1505_v37 }
 0x491   : > { %v2536_v52 = vpop.eup %2535 }
 0x492   : > { %v1508_v53 = vpop.xlane.xlu0 %1507  ;;  %v1602_v41 = vmul.f32 %v2536_v52, %v3501_v32  ;;  %v1601_v54 = vmul.f32 %v2536_v52, %v3499_v35 }
 0x493   : > { %2541 = vrcp.f32 %v1508_v53 }
 0x494   : > { %v2538_v61 = vpop.eup %2537 }
 0x495   : > { %v1604_v45 = vmul.f32 %v2538_v61, %v3509_v33  ;;  %v1603_v36 = vmul.f32 %v2538_v61, %v3507_v1 }
 0x497   : > { %v1511_v43 = vpop.xlane.xlu1 %1510  ;;  %v1642_v46 = vpack.c.bf16 %v1604_v45, %v1602_v41  ;;  %v1641_v12 = vpack.c.bf16 %v1603_v36, %v1601_v54  ;;  %v2555_v54 = vld [vmem:[%s2656_s9 + $0x20] sm:$0xff] }
 0x498   : > { %2543 = vrcp.f32 %v1511_v43 }
 0x499   : > { %1777 = vmatprep.mubr.bf16.mxu1 %v1642_v46  ;;  %v2540_v24 = vpop.eup %2539  ;;  %v2556_v46 = vld [vmem:[%s2656_s9 + $0x28] sm:$0xff] }
 0x49a   : > { %1778 = vmatmul.mubr.bf16.gmra.mrb[80].mxu1 %v1641_v12  ;;  %v1514_v7 = vpop.xlane.xlu0 %1513  ;;  %v1606_v48 = vmul.f32 %v2540_v24, %v3521_v14  ;;  %v1605_v33 = vmul.f32 %v2540_v24, %v3519_v62 }
 0x49b   : > { %2545 = vrcp.f32 %v1514_v7 }
 0x49d   : > { %v2542_v26 = vpop.eup %2541 }
 0x49e   : > { %v1608_v32 = vmul.f32 %v2542_v26, %v3529_v10  ;;  %v1607_v35 = vmul.f32 %v2542_v26, %v3527_v28 }
 0x49f   : > { %v1517_v8 = vpop.xlane.xlu1 %1516 }
 0x4a0   : > { %v1644_v1 = vpack.c.bf16 %v1608_v32, %v1606_v48  ;;  %v1643_v31 = vpack.c.bf16 %v1607_v35, %v1605_v33  ;;  %2547 = vrcp.f32 %v1517_v8  ;;  %v2557_v35 = vld [vmem:[%s2656_s9 + $0x30] sm:$0xff] }
 0x4a2   : > { %1785 = vmatprep.mubr.bf16.mxu1 %v1644_v1  ;;  %v1520_v63 = vpop.xlane.xlu0 %1519  ;;  %v2544_v16 = vpop.eup %2543 }
 0x4a3   : > { %2549 = vrcp.f32 %v1520_v63  ;;  %1786 = vmatmul.mubr.bf16.gmra.mrb[84].mxu1 %v1643_v31  ;;  %v1610_v23 = vmul.f32 %v2544_v16, %v3541_v17  ;;  %v1609_v14 = vmul.f32 %v2544_v16, %v3539_v29  ;;  %v3615_v47 = vpop.permute.xlu1 %1817  ;;  %v2558_v63 = vld [vmem:[%s2656_s9 + $0x38] sm:$0xff] }
 0x4a5   : > { %v2546_v2 = vpop.eup %2545 }
 0x4a6   : > { %v1612_v0 = vmul.f32 %v2546_v2, %v3547_v13  ;;  %v1611_v10 = vmul.f32 %v2546_v2, %v3545_v59 }
 0x4a8   : > { %v1646_v62 = vpack.c.bf16 %v1612_v0, %v1610_v23  ;;  %v1645_v39 = vpack.c.bf16 %v1611_v10, %v1609_v14 }
 0x4aa   : > { %1793 = vmatprep.mubr.bf16.mxu1 %v1646_v62  ;;  %v2548_v28 = vpop.eup %2547 }
 0x4ab   : > { %1794 = vmatmul.mubr.bf16.gmra.mrb[88].mxu1 %v1645_v39  ;;  %v1614_v4 = vmul.f32 %v2548_v28, %v3557_v18  ;;  %v1613_v9 = vmul.f32 %v2548_v28, %v3555_v60  ;;  %v2559_v28 = vld [vmem:[%s2656_s9 + $0x40] sm:$0xff] }
 0x4ad   : > { %v2550_v5 = vpop.eup %2549 }
 0x4ae   : > { %v1616_v25 = vmul.f32 %v2550_v5, %v3563_v22  ;;  %v1615_v17 = vmul.f32 %v2550_v5, %v3561_v3  ;;  %v2551_v3 = vld [vmem:[%s2656_s9] sm:$0xff] }
 0x4b0   : > { %v1648_v13 = vpack.c.bf16 %v1616_v25, %v1614_v4  ;;  %v1647_v29 = vpack.c.bf16 %v1615_v17, %v1613_v9  ;;  %v2560_v25 = vld [vmem:[%s2656_s9 + $0x48] sm:$0xff] }
 0x4b2   : > { %1801 = vmatprep.mubr.bf16.mxu1 %v1648_v13 }
 0x4b3   : > { %1802 = vmatmul.mubr.bf16.gmra.mrb[92].mxu1 %v1647_v29 }
 0x4c9   : > { %v2131_v59 = vpop.f32.mrb[32].mxu1 }
 0x4ca   : > { %v2132_v38 = vpop.f32.mrb[33].mxu1 }
 0x4cb   : > { %v2133_v34 = vadd.f32 %v2132_v38, %v2131_v59  ;;  %v2134_v40 = vpop.f32.mrb[34].mxu1 }
 0x4cc   : > { %v2135_v18 = vpop.f32.mrb[35].mxu1 }
 0x4cd   : > { %v2136_v6 = vadd.f32 %v2135_v18, %v2134_v40  ;;  %v1820_v22 = vmul.f32 %v2133_v34, %v3615_v47  ;;  %v2561_v18 = vld [vmem:[%s2656_s9 + $0x50] sm:$0xff] }
 0x4cf   : > { %v1821_v60 = vmul.f32 %v2136_v6, %v3615_v47  ;;  %v1852_v51 = vadd.f32 %v2551_v3, %v1820_v22 }
 0x4d1   : > { %v1853_v27 = vadd.f32 %v2552_v30, %v1821_v60  ;;  %1884 = vst [vmem:[%s3623_s22] sm:$0xff] %v1852_v51  ;;  %v2562_v60 = vld [vmem:[%s2656_s9 + $0x58] sm:$0xff] }
 0x4d3   : > { %1885 = vst [vmem:[%s3623_s22 + $0x8] sm:$0xff] %v1853_v27  ;;  %v2137_v55 = vpop.f32.mrb[36].mxu1 }
 0x4d4   : > { %v2138_v19 = vpop.f32.mrb[37].mxu1 }
 0x4d5   : > { %v2139_v49 = vadd.f32 %v2138_v19, %v2137_v55  ;;  %v2140_v21 = vpop.f32.mrb[38].mxu1 }
 0x4d6   : > { %v2141_v57 = vpop.f32.mrb[39].mxu1 }
 0x4d7   : > { %v1822_v15 = vmul.f32 %v2139_v49, %v3615_v47  ;;  %v2142_v11 = vadd.f32 %v2141_v57, %v2140_v21  ;;  %v2563_v57 = vld [vmem:[%s2656_s9 + $0x60] sm:$0xff] }
 0x4d9   : > { %v1854_v20 = vadd.f32 %v2553_v44, %v1822_v15  ;;  %v1823_v42 = vmul.f32 %v2142_v11, %v3615_v47  ;;  %v2564_v44 = vld [vmem:[%s2656_s9 + $0x68] sm:$0xff] }
 0x4db   : > { %1886 = vst [vmem:[%s3623_s22 + $0x10] sm:$0xff] %v1854_v20  ;;  %v1855_v58 = vadd.f32 %v2554_v56, %v1823_v42 }
 0x4dc   : > { %v2143_v50 = vpop.f32.mrb[40].mxu1 }
 0x4dd   : > { %1887 = vst [vmem:[%s3623_s22 + $0x18] sm:$0xff] %v1855_v58  ;;  %v2144_v37 = vpop.f32.mrb[41].mxu1 }
 0x4de   : > { %v2145_v52 = vadd.f32 %v2144_v37, %v2143_v50  ;;  %v2146_v53 = vpop.f32.mrb[42].mxu1 }
 0x4df   : > { %v2147_v61 = vpop.f32.mrb[43].mxu1 }
 0x4e0   : > { %v1824_v41 = vmul.f32 %v2145_v52, %v3615_v47  ;;  %v2148_v45 = vadd.f32 %v2147_v61, %v2146_v53  ;;  %v2565_v61 = vld [vmem:[%s2656_s9 + $0x70] sm:$0xff] }
 0x4e2   : > { %v1856_v36 = vadd.f32 %v2555_v54, %v1824_v41  ;;  %v1825_v43 = vmul.f32 %v2148_v45, %v3615_v47  ;;  %v2566_v54 = vld [vmem:[%s2656_s9 + $0x78] sm:$0xff] }
 0x4e4   : > { %1888 = vst [vmem:[%s3623_s22 + $0x20] sm:$0xff] %v1856_v36  ;;  %v1857_v12 = vadd.f32 %v2556_v46, %v1825_v43  ;;  %v2149_v7 = vpop.f32.mrb[44].mxu1 }
 0x4e5   : > { %v2150_v24 = vpop.f32.mrb[45].mxu1 }
 0x4e6   : > { %1889 = vst [vmem:[%s3623_s22 + $0x28] sm:$0xff] %v1857_v12  ;;  %v2151_v26 = vadd.f32 %v2150_v24, %v2149_v7  ;;  %v2152_v8 = vpop.f32.mrb[46].mxu1 }
 0x4e7   : > { %v2153_v48 = vpop.f32.mrb[47].mxu1 }
 0x4e8   : > { %v1826_v32 = vmul.f32 %v2151_v26, %v3615_v47  ;;  %v2154_v33 = vadd.f32 %v2153_v48, %v2152_v8  ;;  %v2567_v48 = vld [vmem:[%s2656_s9 + $0x80] sm:$0xff] }
 0x4ea   : > { %v1858_v1 = vadd.f32 %v2557_v35, %v1826_v32  ;;  %v1827_v31 = vmul.f32 %v2154_v33, %v3615_v47  ;;  %v2568_v35 = vld [vmem:[%s2656_s9 + $0x88] sm:$0xff] }
 0x4ec   : > { %1890 = vst [vmem:[%s3623_s22 + $0x30] sm:$0xff] %v1858_v1  ;;  %v1859_v16 = vadd.f32 %v2558_v63, %v1827_v31  ;;  %v2155_v2 = vpop.f32.mrb[48].mxu1 }
 0x4ed   : > { %v2156_v23 = vpop.f32.mrb[49].mxu1 }
 0x4ee   : > { %1891 = vst [vmem:[%s3623_s22 + $0x38] sm:$0xff] %v1859_v16  ;;  %v2157_v0 = vadd.f32 %v2156_v23, %v2155_v2  ;;  %v2158_v14 = vpop.f32.mrb[50].mxu1 }
 0x4ef   : > { %v2159_v10 = vpop.f32.mrb[51].mxu1 }
 0x4f0   : > { %v1828_v62 = vmul.f32 %v2157_v0, %v3615_v47  ;;  %v2160_v39 = vadd.f32 %v2159_v10, %v2158_v14  ;;  %v2569_v10 = vld [vmem:[%s2656_s9 + $0x90] sm:$0xff] }
 0x4f2   : > { %v1860_v5 = vadd.f32 %v2559_v28, %v1828_v62  ;;  %v1829_v4 = vmul.f32 %v2160_v39, %v3615_v47  ;;  %v2570_v28 = vld [vmem:[%s2656_s9 + $0x98] sm:$0xff] }
 0x4f4   : > { %1892 = vst [vmem:[%s3623_s22 + $0x40] sm:$0xff] %v1860_v5  ;;  %v1861_v9 = vadd.f32 %v2560_v25, %v1829_v4  ;;  %v2161_v17 = vpop.f32.mrb[52].mxu1 }
 0x4f5   : > { %v2162_v13 = vpop.f32.mrb[53].mxu1 }
 0x4f6   : > { %1893 = vst [vmem:[%s3623_s22 + $0x48] sm:$0xff] %v1861_v9  ;;  %v2163_v29 = vadd.f32 %v2162_v13, %v2161_v17  ;;  %v2164_v59 = vpop.f32.mrb[54].mxu1 }
 0x4f7   : > { %v2165_v38 = vpop.f32.mrb[55].mxu1 }
 0x4f8   : > { %v1830_v34 = vmul.f32 %v2163_v29, %v3615_v47  ;;  %v2166_v40 = vadd.f32 %v2165_v38, %v2164_v59  ;;  %v2571_v38 = vld [vmem:[%s2656_s9 + $0xa0] sm:$0xff] }
 0x4fa   : > { %v1862_v6 = vadd.f32 %v2561_v18, %v1830_v34  ;;  %v1831_v22 = vmul.f32 %v2166_v40, %v3615_v47  ;;  %v2572_v18 = vld [vmem:[%s2656_s9 + $0xa8] sm:$0xff] }
 0x4fc   : > { %1894 = vst [vmem:[%s3623_s22 + $0x50] sm:$0xff] %v1862_v6  ;;  %v1863_v3 = vadd.f32 %v2562_v60, %v1831_v22  ;;  %v2167_v51 = vpop.f32.mrb[56].mxu1 }
 0x4fd   : > { %v2168_v30 = vpop.f32.mrb[57].mxu1 }
 0x4fe   : > { %1895 = vst [vmem:[%s3623_s22 + $0x58] sm:$0xff] %v1863_v3  ;;  %v2169_v27 = vadd.f32 %v2168_v30, %v2167_v51  ;;  %v2170_v55 = vpop.f32.mrb[58].mxu1 }
 0x4ff   : > { %v2171_v19 = vpop.f32.mrb[59].mxu1 }
 0x500   : > { %v1832_v49 = vmul.f32 %v2169_v27, %v3615_v47  ;;  %v2172_v21 = vadd.f32 %v2171_v19, %v2170_v55  ;;  %v2573_v19 = vld [vmem:[%s2656_s9 + $0xb0] sm:$0xff] }
 0x502   : > { %v1864_v15 = vadd.f32 %v2563_v57, %v1832_v49  ;;  %v1833_v11 = vmul.f32 %v2172_v21, %v3615_v47  ;;  %v2574_v57 = vld [vmem:[%s2656_s9 + $0xb8] sm:$0xff] }
 0x504   : > { %1896 = vst [vmem:[%s3623_s22 + $0x60] sm:$0xff] %v1864_v15  ;;  %v1865_v20 = vadd.f32 %v2564_v44, %v1833_v11  ;;  %v2173_v42 = vpop.f32.mrb[60].mxu1 }
 0x505   : > { %v2174_v56 = vpop.f32.mrb[61].mxu1 }
 0x506   : > { %1897 = vst [vmem:[%s3623_s22 + $0x68] sm:$0xff] %v1865_v20  ;;  %v2175_v58 = vadd.f32 %v2174_v56, %v2173_v42  ;;  %v2176_v50 = vpop.f32.mrb[62].mxu1 }
 0x507   : > { %v2177_v37 = vpop.f32.mrb[63].mxu1 }
 0x508   : > { %v1834_v52 = vmul.f32 %v2175_v58, %v3615_v47  ;;  %v2178_v53 = vadd.f32 %v2177_v37, %v2176_v50  ;;  %v2575_v37 = vld [vmem:[%s2656_s9 + $0xc0] sm:$0xff] }
 0x50a   : > { %v1866_v41 = vadd.f32 %v2565_v61, %v1834_v52  ;;  %v1835_v45 = vmul.f32 %v2178_v53, %v3615_v47  ;;  %v2576_v61 = vld [vmem:[%s2656_s9 + $0xc8] sm:$0xff] }
 0x50c   : > { %1898 = vst [vmem:[%s3623_s22 + $0x70] sm:$0xff] %v1866_v41  ;;  %v1867_v36 = vadd.f32 %v2566_v54, %v1835_v45  ;;  %v2179_v43 = vpop.f32.mrb[64].mxu1 }
 0x50d   : > { %v2180_v46 = vpop.f32.mrb[65].mxu1 }
 0x50e   : > { %1899 = vst [vmem:[%s3623_s22 + $0x78] sm:$0xff] %v1867_v36  ;;  %v2181_v12 = vadd.f32 %v2180_v46, %v2179_v43  ;;  %v2182_v7 = vpop.f32.mrb[66].mxu1 }
 0x50f   : > { %v2183_v24 = vpop.f32.mrb[67].mxu1 }
 0x510   : > { %v1836_v26 = vmul.f32 %v2181_v12, %v3615_v47  ;;  %v2184_v8 = vadd.f32 %v2183_v24, %v2182_v7  ;;  %v2577_v24 = vld [vmem:[%s2656_s9 + $0xd0] sm:$0xff] }
 0x512   : > { %v1868_v32 = vadd.f32 %v2567_v48, %v1836_v26  ;;  %v1837_v33 = vmul.f32 %v2184_v8, %v3615_v47  ;;  %v2578_v48 = vld [vmem:[%s2656_s9 + $0xd8] sm:$0xff] }
 0x514   : > { %1900 = vst [vmem:[%s3623_s22 + $0x80] sm:$0xff] %v1868_v32  ;;  %v1869_v1 = vadd.f32 %v2568_v35, %v1837_v33  ;;  %v2185_v31 = vpop.f32.mrb[68].mxu1 }
 0x515   : > { %v2186_v63 = vpop.f32.mrb[69].mxu1 }
 0x516   : > { %1901 = vst [vmem:[%s3623_s22 + $0x88] sm:$0xff] %v1869_v1  ;;  %v2187_v16 = vadd.f32 %v2186_v63, %v2185_v31  ;;  %v2188_v2 = vpop.f32.mrb[70].mxu1 }
 0x517   : > { %v2189_v23 = vpop.f32.mrb[71].mxu1 }
 0x518   : > { %v1838_v0 = vmul.f32 %v2187_v16, %v3615_v47  ;;  %v2190_v14 = vadd.f32 %v2189_v23, %v2188_v2  ;;  %v2579_v23 = vld [vmem:[%s2656_s9 + $0xe0] sm:$0xff] }
 0x51a   : > { %v1870_v62 = vadd.f32 %v2569_v10, %v1838_v0  ;;  %v1839_v39 = vmul.f32 %v2190_v14, %v3615_v47  ;;  %v2580_v10 = vld [vmem:[%s2656_s9 + $0xe8] sm:$0xff] }
 0x51c   : > { %1902 = vst [vmem:[%s3623_s22 + $0x90] sm:$0xff] %v1870_v62  ;;  %v1871_v5 = vadd.f32 %v2570_v28, %v1839_v39  ;;  %v2191_v4 = vpop.f32.mrb[72].mxu1 }
 0x51d   : > { %v2192_v25 = vpop.f32.mrb[73].mxu1 }
 0x51e   : > { %1903 = vst [vmem:[%s3623_s22 + $0x98] sm:$0xff] %v1871_v5  ;;  %v2193_v9 = vadd.f32 %v2192_v25, %v2191_v4  ;;  %v2194_v17 = vpop.f32.mrb[74].mxu1 }
 0x51f   : > { %v2195_v13 = vpop.f32.mrb[75].mxu1 }
 0x520   : > { %v1840_v29 = vmul.f32 %v2193_v9, %v3615_v47  ;;  %v2196_v59 = vadd.f32 %v2195_v13, %v2194_v17  ;;  %v2581_v13 = vld [vmem:[%s2656_s9 + $0xf0] sm:$0xff] }
 0x522   : > { %v1872_v34 = vadd.f32 %v2571_v38, %v1840_v29  ;;  %v1841_v40 = vmul.f32 %v2196_v59, %v3615_v47  ;;  %v2582_v38 = vld [vmem:[%s2656_s9 + $0xf8] sm:$0xff] }
 0x524   : > { %1904 = vst [vmem:[%s3623_s22 + $0xa0] sm:$0xff] %v1872_v34  ;;  %v1873_v6 = vadd.f32 %v2572_v18, %v1841_v40  ;;  %v2197_v22 = vpop.f32.mrb[76].mxu1 }
 0x525   : > { %v2198_v60 = vpop.f32.mrb[77].mxu1 }
 0x526   : > { %1905 = vst [vmem:[%s3623_s22 + $0xa8] sm:$0xff] %v1873_v6  ;;  %v2199_v3 = vadd.f32 %v2198_v60, %v2197_v22  ;;  %v2200_v51 = vpop.f32.mrb[78].mxu1 }
 0x527   : > { %v2201_v30 = vpop.f32.mrb[79].mxu1 }
 0x528   : > { %v1842_v27 = vmul.f32 %v2199_v3, %v3615_v47  ;;  %v2202_v55 = vadd.f32 %v2201_v30, %v2200_v51 }
 0x52a   : > { %v1874_v49 = vadd.f32 %v2573_v19, %v1842_v27  ;;  %v1843_v21 = vmul.f32 %v2202_v55, %v3615_v47 }
 0x52c   : > { %1906 = vst [vmem:[%s3623_s22 + $0xb0] sm:$0xff] %v1874_v49  ;;  %v1875_v15 = vadd.f32 %v2574_v57, %v1843_v21 }
 0x52e   : > { %1907 = vst [vmem:[%s3623_s22 + $0xb8] sm:$0xff] %v1875_v15 }
 0x56d   : > { %v2203_v11 = vpop.f32.mrb[80].mxu1 }
 0x56e   : > { %v2204_v44 = vpop.f32.mrb[81].mxu1 }
 0x56f   : > { %v2205_v20 = vadd.f32 %v2204_v44, %v2203_v11  ;;  %v2206_v42 = vpop.f32.mrb[82].mxu1 }
 0x570   : > { %v2207_v56 = vpop.f32.mrb[83].mxu1 }
 0x571   : > { %v1844_v58 = vmul.f32 %v2205_v20, %v3615_v47  ;;  %v2208_v50 = vadd.f32 %v2207_v56, %v2206_v42 }
 0x573   : > { %v1876_v52 = vadd.f32 %v2575_v37, %v1844_v58  ;;  %v1845_v53 = vmul.f32 %v2208_v50, %v3615_v47 }
 0x575   : > { %1908 = vst [vmem:[%s3623_s22 + $0xc0] sm:$0xff] %v1876_v52  ;;  %v1877_v41 = vadd.f32 %v2576_v61, %v1845_v53 }
 0x576   : > { %v2209_v45 = vpop.f32.mrb[84].mxu1 }
 0x577   : > { %1909 = vst [vmem:[%s3623_s22 + $0xc8] sm:$0xff] %v1877_v41  ;;  %v2210_v54 = vpop.f32.mrb[85].mxu1 }
 0x578   : > { %v2211_v36 = vadd.f32 %v2210_v54, %v2209_v45  ;;  %v2212_v43 = vpop.f32.mrb[86].mxu1 }
 0x579   : > { %v2213_v46 = vpop.f32.mrb[87].mxu1 }
 0x57a   : > { %v1846_v12 = vmul.f32 %v2211_v36, %v3615_v47  ;;  %v2214_v7 = vadd.f32 %v2213_v46, %v2212_v43 }
 0x57c   : > { %v1878_v26 = vadd.f32 %v2577_v24, %v1846_v12  ;;  %v1847_v8 = vmul.f32 %v2214_v7, %v3615_v47 }
 0x57e   : > { %1910 = vst [vmem:[%s3623_s22 + $0xd0] sm:$0xff] %v1878_v26  ;;  %v1879_v32 = vadd.f32 %v2578_v48, %v1847_v8  ;;  %v2215_v33 = vpop.f32.mrb[88].mxu1 }
 0x57f   : > { %v2216_v35 = vpop.f32.mrb[89].mxu1 }
 0x580   : > { %1911 = vst [vmem:[%s3623_s22 + $0xd8] sm:$0xff] %v1879_v32  ;;  %v2217_v1 = vadd.f32 %v2216_v35, %v2215_v33  ;;  %v2218_v31 = vpop.f32.mrb[90].mxu1 }
 0x581   : > { %v2219_v63 = vpop.f32.mrb[91].mxu1 }
 0x582   : > { %v1848_v16 = vmul.f32 %v2217_v1, %v3615_v47  ;;  %v2220_v2 = vadd.f32 %v2219_v63, %v2218_v31 }
 0x584   : > { %v1880_v0 = vadd.f32 %v2579_v23, %v1848_v16  ;;  %v1849_v14 = vmul.f32 %v2220_v2, %v3615_v47 }
 0x586   : > { %1912 = vst [vmem:[%s3623_s22 + $0xe0] sm:$0xff] %v1880_v0  ;;  %v1881_v62 = vadd.f32 %v2580_v10, %v1849_v14  ;;  %v2221_v39 = vpop.f32.mrb[92].mxu1 }
 0x587   : > { %v2222_v28 = vpop.f32.mrb[93].mxu1 }
 0x588   : > { %1913 = vst [vmem:[%s3623_s22 + $0xe8] sm:$0xff] %v1881_v62  ;;  %v2223_v5 = vadd.f32 %v2222_v28, %v2221_v39  ;;  %v2224_v4 = vpop.f32.mrb[94].mxu1 }
 0x589   : > { %v2225_v25 = vpop.f32.mrb[95].mxu1 }
 0x58a   : > { %v1850_v9 = vmul.f32 %v2223_v5, %v3615_v47  ;;  %v2226_v17 = vadd.f32 %v2225_v25, %v2224_v4 }
 0x58c   : > { %v1882_v29 = vadd.f32 %v2581_v13, %v1850_v9  ;;  %v1851_v59 = vmul.f32 %v2226_v17, %v3615_v47 }
 0x58e   : > { %1914 = vst [vmem:[%s3623_s22 + $0xf0] sm:$0xff] %v1882_v29  ;;  %v1883_v34 = vadd.f32 %v2582_v38, %v1851_v59 }
 0x590   : > { %1915 = vst [vmem:[%s3623_s22 + $0xf8] sm:$0xff] %v1883_v34 }
 0x591 PF: > { %s18_s23 = sadd.s32 1, %s2589_s23  }
 0x592   : > { %p15_p4 = scmp.ge.s32.totalorder %s18_s23, 4  }
 0x594   :  { %17 = sbr.rel (!%p15_p4) target bundleno = 3 (0x3), region = 74 }

// kernel: _forward_arrays.9
= control target key start
LH: loop header
LB: loop body
LE: loop exit
PB: predicated region body
PF: predicated region fallthrough
CT: control target
= control target key end

     0   :  { %s2012_s12 = smov 0   ;;  %s2014_s13 = smov 0   ;;  %s2382_s0 = inlined_call_operand.vmem [shape: bf16[128,2048], index: 0, kind: input, shape index: {}]   ;;  %s2383_s1 = inlined_call_operand.vmem [shape: bf16[2048,256], index: 1, kind: input, shape index: {}]   ;;  %s2384_s2 = inlined_call_operand.vmem [shape: f32[1,256], index: 2, kind: input, shape index: {}]   ;;  %s2385_s3 = inlined_call_operand.vmem [shape: f32[128,256], index: 3, kind: output, shape index: {}]  }
   0x1   :  { %s2016_s14 = smov 0   ;;  %s2018_s15 = smov 0  }
   0x2   :  { %s2020_s16 = smov 0  }
   0x3 LB: > { %s25_s17 = sadd.s32 1, %s1985_s15  ;;  %p48_p1 = scmp.ne.s32.totalorder %s1977_s13, %s1973_s12  ;;  %s1989_s16 = sphi %s2020_s16, %s13_s16   ;;  %s1985_s15 = sphi %s2018_s15, %s2389_s15   ;;  %s1981_s14 = sphi %s2016_s14, %s2388_s14   ;;  %s1977_s13 = sphi %s2014_s13, %s2387_s13   ;;  %s1973_s12 = sphi %s2012_s12, %s2386_s12  }
   0x4   : > { %p26_p0 = scmp.ge.s32.totalorder %s25_s17, 4  ;;  %p49_p2 = scmp.eq.s32.totalorder %s1989_s16, 0 }
   0x5   : > { %s41_s19 = sadd.s32 1, %s1977_s13  ;;  %p1621_p5 = scmp.ge.s32.totalorder %s1989_s16, 4 }
   0x6   : > { %s2391_s17 = smov (%p26_p0, %s25_s17), 0  ;;  %p50_p3 = por %p49_p2, %p48_p1 }
   0x7   : > { %s37_s18 = ssub.s32 %s1985_s15, %s2391_s17  ;;  %164 = sbr.rel (%p1621_p5) target bundleno = 34 (0x22), region = 20 }
   0x8   : > { %p39_p4 = scmp.eq.s32.totalorder %s37_s18, 0 }
   0xa   : > { %s2047_s20 = scalar_select %p39_p4, %s1977_s13, %s41_s19  }
   0xe   : > { %167 = sbr.rel (!%p50_p3) target bundleno = 34 (0x22), region = 24  ;;  %s169_s21 = sand.u32 (%p50_p3), 1, %s1977_s13  }
   0xf   : > { %s1732_s22 = sshll.u32 (%p50_p3), %s1985_s15, 4  ;;  %s1622_s23 = sshll.u32 (%p50_p3), %s169_s21, 8 }
  0x10   : > { %s2055_s26 = scalar_lea.vmem (%p50_p3), %s2382_s0, %s1732_s22  ;;  %s2060_s27 = scalar_lea.vmem (%p50_p3), [#allocation3], %s1622_s23 }
  0x11   : > { %v190_v0 = vld [vmem:[%s2055_s26] sm:$0xff] (%p50_p3)  ;;  %v192_v1 = vld [vmem:[%s2055_s26 + $0x8] sm:$0xff] (%p50_p3) }
  0x12   : > { %v194_v2 = vld [vmem:[%s2055_s26 + $0x40] sm:$0xff] (%p50_p3)  ;;  %191 = vst [vmem:[%s2060_s27] sm:$0xff] (%p50_p3), %v190_v0  ;;  %193 = vst [vmem:[%s2060_s27 + $0x8] sm:$0xff] (%p50_p3), %v192_v1  ;;  %v196_v3 = vld [vmem:[%s2055_s26 + $0x48] sm:$0xff] (%p50_p3) }
  0x13   : > { %195 = vst [vmem:[%s2060_s27 + $0x10] sm:$0xff] (%p50_p3), %v194_v2  ;;  %v198_v4 = vld [vmem:[%s2055_s26 + $0x80] sm:$0xff] (%p50_p3)  ;;  %v200_v5 = vld [vmem:[%s2055_s26 + $0x88] sm:$0xff] (%p50_p3)  ;;  %197 = vst [vmem:[%s2060_s27 + $0x18] sm:$0xff] (%p50_p3), %v196_v3 }
  0x14   : > { %199 = vst [vmem:[%s2060_s27 + $0x20] sm:$0xff] (%p50_p3), %v198_v4  ;;  %201 = vst [vmem:[%s2060_s27 + $0x28] sm:$0xff] (%p50_p3), %v200_v5  ;;  %v202_v6 = vld [vmem:[%s2055_s26 + $0xc0] sm:$0xff] (%p50_p3)  ;;  %v204_v7 = vld [vmem:[%s2055_s26 + $0xc8] sm:$0xff] (%p50_p3) }
  0x15   : > { %v206_v8 = vld [vmem:[%s2055_s26 + $0x100] sm:$0xff]  ;;  %203 = vst [vmem:[%s2060_s27 + $0x30] sm:$0xff] %v202_v6  ;;  %205 = vst [vmem:[%s2060_s27 + $0x38] sm:$0xff] %v204_v7  ;;  %v208_v9 = vld [vmem:[%s2055_s26 + $0x108] sm:$0xff] }
  0x16   : > { %207 = vst [vmem:[%s2060_s27 + $0x40] sm:$0xff] %v206_v8  ;;  %v210_v10 = vld [vmem:[%s2055_s26 + $0x140] sm:$0xff]  ;;  %v212_v11 = vld [vmem:[%s2055_s26 + $0x148] sm:$0xff]  ;;  %209 = vst [vmem:[%s2060_s27 + $0x48] sm:$0xff] %v208_v9 }
  0x17   : > { %211 = vst [vmem:[%s2060_s27 + $0x50] sm:$0xff] %v210_v10  ;;  %213 = vst [vmem:[%s2060_s27 + $0x58] sm:$0xff] %v212_v11  ;;  %v214_v12 = vld [vmem:[%s2055_s26 + $0x180] sm:$0xff]  ;;  %v216_v13 = vld [vmem:[%s2055_s26 + $0x188] sm:$0xff] }
  0x18   : > { %v218_v14 = vld [vmem:[%s2055_s26 + $0x1c0] sm:$0xff]  ;;  %215 = vst [vmem:[%s2060_s27 + $0x60] sm:$0xff] %v214_v12  ;;  %217 = vst [vmem:[%s2060_s27 + $0x68] sm:$0xff] %v216_v13  ;;  %v220_v15 = vld [vmem:[%s2055_s26 + $0x1c8] sm:$0xff] }
  0x19   : > { %219 = vst [vmem:[%s2060_s27 + $0x70] sm:$0xff] %v218_v14  ;;  %v222_v16 = vld [vmem:[%s2055_s26 + $0x200] sm:$0xff]  ;;  %v224_v17 = vld [vmem:[%s2055_s26 + $0x208] sm:$0xff]  ;;  %221 = vst [vmem:[%s2060_s27 + $0x78] sm:$0xff] %v220_v15 }
  0x1a   : > { %223 = vst [vmem:[%s2060_s27 + $0x80] sm:$0xff] %v222_v16  ;;  %225 = vst [vmem:[%s2060_s27 + $0x88] sm:$0xff] %v224_v17  ;;  %v226_v18 = vld [vmem:[%s2055_s26 + $0x240] sm:$0xff]  ;;  %v228_v19 = vld [vmem:[%s2055_s26 + $0x248] sm:$0xff] }
  0x1b   : > { %v230_v20 = vld [vmem:[%s2055_s26 + $0x280] sm:$0xff]  ;;  %227 = vst [vmem:[%s2060_s27 + $0x90] sm:$0xff] %v226_v18  ;;  %229 = vst [vmem:[%s2060_s27 + $0x98] sm:$0xff] %v228_v19  ;;  %v232_v21 = vld [vmem:[%s2055_s26 + $0x288] sm:$0xff] }
  0x1c   : > { %231 = vst [vmem:[%s2060_s27 + $0xa0] sm:$0xff] %v230_v20  ;;  %v234_v22 = vld [vmem:[%s2055_s26 + $0x2c0] sm:$0xff]  ;;  %v236_v23 = vld [vmem:[%s2055_s26 + $0x2c8] sm:$0xff]  ;;  %233 = vst [vmem:[%s2060_s27 + $0xa8] sm:$0xff] %v232_v21 }
  0x1d   : > { %235 = vst [vmem:[%s2060_s27 + $0xb0] sm:$0xff] %v234_v22  ;;  %237 = vst [vmem:[%s2060_s27 + $0xb8] sm:$0xff] %v236_v23  ;;  %v238_v24 = vld [vmem:[%s2055_s26 + $0x300] sm:$0xff]  ;;  %v240_v25 = vld [vmem:[%s2055_s26 + $0x308] sm:$0xff] }
  0x1e   : > { %v242_v26 = vld [vmem:[%s2055_s26 + $0x340] sm:$0xff]  ;;  %239 = vst [vmem:[%s2060_s27 + $0xc0] sm:$0xff] %v238_v24  ;;  %241 = vst [vmem:[%s2060_s27 + $0xc8] sm:$0xff] %v240_v25  ;;  %v244_v27 = vld [vmem:[%s2055_s26 + $0x348] sm:$0xff] }
  0x1f   : > { %243 = vst [vmem:[%s2060_s27 + $0xd0] sm:$0xff] %v242_v26  ;;  %v246_v28 = vld [vmem:[%s2055_s26 + $0x380] sm:$0xff]  ;;  %v248_v29 = vld [vmem:[%s2055_s26 + $0x388] sm:$0xff]  ;;  %245 = vst [vmem:[%s2060_s27 + $0xd8] sm:$0xff] %v244_v27 }
  0x20   : > { %247 = vst [vmem:[%s2060_s27 + $0xe0] sm:$0xff] %v246_v28  ;;  %249 = vst [vmem:[%s2060_s27 + $0xe8] sm:$0xff] %v248_v29  ;;  %v250_v30 = vld [vmem:[%s2055_s26 + $0x3c0] sm:$0xff]  ;;  %v252_v31 = vld [vmem:[%s2055_s26 + $0x3c8] sm:$0xff] }
  0x21   : > { %251 = vst [vmem:[%s2060_s27 + $0xf0] sm:$0xff] %v250_v30  ;;  %253 = vst [vmem:[%s2060_s27 + $0xf8] sm:$0xff] %v252_v31 }
  0x22 PF: > { %p1625_p6 = scmp.ge.s32.totalorder %s1989_s16, 1  ;;  %p273_p7 = scmp.lt.s32.totalorder %s1989_s16, 5 }
  0x24   : > { %p274_p8 = pnand %p1625_p6, %p273_p7 }
  0x25   : > { %s280_s28 = sand.u32 (!%p274_p8), 1, %s1973_s12   ;;  %s1627_s29 = sshll.u32 (!%p274_p8), %s1981_s14, 6 }
  0x26   : > { %277 = sbr.rel (%p274_p8) target bundleno = 426 (0x1aa), region = 51  ;;  %s1626_s30 = sshll.u32 (!%p274_p8), %s280_s28, 8 }
  0x27   : > { %p326_p9 = scmp.lt.s32.totalorder (!%p274_p8), %s1627_s29, 255  ;;  %s2132_s8 = scalar_lea.vmem (!%p274_p8), [#allocation3], %s1626_s30 }
  0x28   : > { %p1630_p10 = scmp.ne.s32.totalorder (!%p274_p8), %s1981_s14, 0 }
  0x2d   : > { %s2393_s29 = smov (!%p326_p9, %s1627_s29), 255  ;;  %356 = sbr.rel (%p1630_p10) target bundleno = 63 (0x3f), region = 59 }
  0x2e   : > { %s1733_s4 = sshll.u32 %s2393_s29, 3  ;;  %v1991_v32 = vmov (!%p1630_p10), 0.0  }
  0x2f   : > { %s2130_s7 = scalar_lea.vmem %s2383_s1, %s1733_s4  ;;  %357 = vst [vmem:[#allocation2] sm:$0xff] (!%p1630_p10), %v1991_v32  ;;  %358 = vst [vmem:[#allocation2 + $0x8] sm:$0xff] (!%p1630_p10), %v1991_v32 }
  0x30   : > { %359 = vst [vmem:[#allocation2 + $0x10] sm:$0xff] (!%p1630_p10), %v1991_v32  ;;  %360 = vst [vmem:[#allocation2 + $0x18] sm:$0xff] (!%p1630_p10), %v1991_v32 }
  0x31   : > { %361 = vst [vmem:[#allocation2 + $0x20] sm:$0xff] (!%p1630_p10), %v1991_v32  ;;  %362 = vst [vmem:[#allocation2 + $0x28] sm:$0xff] (!%p1630_p10), %v1991_v32 }
  0x32   : > { %363 = vst [vmem:[#allocation2 + $0x30] sm:$0xff] (!%p1630_p10), %v1991_v32  ;;  %364 = vst [vmem:[#allocation2 + $0x38] sm:$0xff] (!%p1630_p10), %v1991_v32 }
  0x33   : > { %365 = vst [vmem:[#allocation2 + $0x40] sm:$0xff] (!%p1630_p10), %v1991_v32  ;;  %366 = vst [vmem:[#allocation2 + $0x48] sm:$0xff] (!%p1630_p10), %v1991_v32 }
  0x34   : > { %367 = vst [vmem:[#allocation2 + $0x50] sm:$0xff] %v1991_v32  ;;  %368 = vst [vmem:[#allocation2 + $0x58] sm:$0xff] %v1991_v32 }
  0x35   : > { %369 = vst [vmem:[#allocation2 + $0x60] sm:$0xff] %v1991_v32  ;;  %370 = vst [vmem:[#allocation2 + $0x68] sm:$0xff] %v1991_v32 }
  0x36   : > { %371 = vst [vmem:[#allocation2 + $0x70] sm:$0xff] %v1991_v32  ;;  %372 = vst [vmem:[#allocation2 + $0x78] sm:$0xff] %v1991_v32 }
  0x37   : > { %373 = vst [vmem:[#allocation2 + $0x80] sm:$0xff] %v1991_v32  ;;  %374 = vst [vmem:[#allocation2 + $0x88] sm:$0xff] %v1991_v32 }
  0x38   : > { %375 = vst [vmem:[#allocation2 + $0x90] sm:$0xff] %v1991_v32  ;;  %376 = vst [vmem:[#allocation2 + $0x98] sm:$0xff] %v1991_v32 }
  0x39   : > { %377 = vst [vmem:[#allocation2 + $0xa0] sm:$0xff] %v1991_v32  ;;  %378 = vst [vmem:[#allocation2 + $0xa8] sm:$0xff] %v1991_v32 }
  0x3a   : > { %379 = vst [vmem:[#allocation2 + $0xb0] sm:$0xff] %v1991_v32  ;;  %380 = vst [vmem:[#allocation2 + $0xb8] sm:$0xff] %v1991_v32 }
  0x3b   : > { %381 = vst [vmem:[#allocation2 + $0xc0] sm:$0xff] %v1991_v32  ;;  %382 = vst [vmem:[#allocation2 + $0xc8] sm:$0xff] %v1991_v32 }
  0x3c   : > { %383 = vst [vmem:[#allocation2 + $0xd0] sm:$0xff] %v1991_v32  ;;  %384 = vst [vmem:[#allocation2 + $0xd8] sm:$0xff] %v1991_v32 }
  0x3d   : > { %385 = vst [vmem:[#allocation2 + $0xe0] sm:$0xff] %v1991_v32  ;;  %386 = vst [vmem:[#allocation2 + $0xe8] sm:$0xff] %v1991_v32 }
  0x3e   : > { %387 = vst [vmem:[#allocation2 + $0xf0] sm:$0xff] %v1991_v32  ;;  %388 = vst [vmem:[#allocation2 + $0xf8] sm:$0xff] %v1991_v32 }
  0x3f PF: > { %v1807_v33 = vld [vmem:[%s2130_s7 + $0x4] ss:$8 sps:$4 sm:$0xff]   ;;  %v1811_v35 = vld [vmem:[%s2130_s7] ss:$8 sps:$4 sm:$0xff]   ;;  %v1813_v37 = vld [vmem:[%s2130_s7 + $0x14] ss:$8 sps:$4 sm:$0xff]  }
  0x40   : > { %v1809_v34 = vld [vmem:[%s2130_s7 + $0x104] ss:$8 sps:$4 sm:$0xff]   ;;  %997 = vmatprep.subr.bf16.mxu1 %v1807_v33  ;;  %v1812_v36 = vld [vmem:[%s2130_s7 + $0x100] ss:$8 sps:$4 sm:$0xff]   ;;  %v1815_v38 = vld [vmem:[%s2130_s7 + $0x114] ss:$8 sps:$4 sm:$0xff]  }
  0x41   : > { %1110 = vmatprep.subr.bf16.mxu0 %v1809_v34  ;;  %998 = vmatpush1.bf16.msra.mxu1 %v1811_v35  ;;  %v1817_v39 = vld [vmem:[%s2130_s7 + $0x10] ss:$8 sps:$4 sm:$0xff]   ;;  %v1819_v41 = vld [vmem:[%s2130_s7 + $0x24] ss:$8 sps:$4 sm:$0xff]   ;;  %v1823_v43 = vld [vmem:[%s2130_s7 + $0x20] ss:$8 sps:$4 sm:$0xff]  }
  0x42   : > { %1111 = vmatpush1.bf16.msra.mxu0 %v1812_v36  ;;  %999 = vmatprep.subr.bf16.mxu1 %v1813_v37  ;;  %v1818_v40 = vld [vmem:[%s2130_s7 + $0x110] ss:$8 sps:$4 sm:$0xff]   ;;  %v1821_v42 = vld [vmem:[%s2130_s7 + $0x124] ss:$8 sps:$4 sm:$0xff]   ;;  %v1824_v44 = vld [vmem:[%s2130_s7 + $0x120] ss:$8 sps:$4 sm:$0xff]  }
  0x43   : > { %1112 = vmatprep.subr.bf16.mxu0 %v1815_v38  ;;  %v1825_v45 = vld [vmem:[%s2130_s7 + $0x34] ss:$8 sps:$4 sm:$0xff]   ;;  %v1829_v47 = vld [vmem:[%s2130_s7 + $0x30] ss:$8 sps:$4 sm:$0xff]   ;;  %v1831_v49 = vld [vmem:[%s2130_s7 + $0x44] ss:$8 sps:$4 sm:$0xff]  }
  0x44   : > { %v1827_v46 = vld [vmem:[%s2130_s7 + $0x134] ss:$8 sps:$4 sm:$0xff]   ;;  %v1830_v48 = vld [vmem:[%s2130_s7 + $0x130] ss:$8 sps:$4 sm:$0xff]   ;;  %v1833_v50 = vld [vmem:[%s2130_s7 + $0x144] ss:$8 sps:$4 sm:$0xff]  }
  0x45   : > { %1000 = vmatpush1.bf16.msra.mxu1 %v1817_v39  ;;  %v1835_v51 = vld [vmem:[%s2130_s7 + $0x40] ss:$8 sps:$4 sm:$0xff]   ;;  %v1837_v53 = vld [vmem:[%s2130_s7 + $0x54] ss:$8 sps:$4 sm:$0xff]   ;;  %v1841_v55 = vld [vmem:[%s2130_s7 + $0x50] ss:$8 sps:$4 sm:$0xff]  }
  0x46   : > { %1113 = vmatpush1.bf16.msra.mxu0 %v1818_v40  ;;  %1001 = vmatprep.subr.bf16.mxu1 %v1819_v41  ;;  %v1836_v52 = vld [vmem:[%s2130_s7 + $0x140] ss:$8 sps:$4 sm:$0xff]   ;;  %v1839_v54 = vld [vmem:[%s2130_s7 + $0x154] ss:$8 sps:$4 sm:$0xff]   ;;  %v1842_v56 = vld [vmem:[%s2130_s7 + $0x150] ss:$8 sps:$4 sm:$0xff]  }
  0x47   : > { %1114 = vmatprep.subr.bf16.mxu0 %v1821_v42  ;;  %v1843_v57 = vld [vmem:[%s2130_s7 + $0x64] ss:$8 sps:$4 sm:$0xff]   ;;  %v1847_v59 = vld [vmem:[%s2130_s7 + $0x60] ss:$8 sps:$4 sm:$0xff]   ;;  %v1849_v61 = vld [vmem:[%s2130_s7 + $0x74] ss:$8 sps:$4 sm:$0xff]  }
  0x48   : > { %v1845_v58 = vld [vmem:[%s2130_s7 + $0x164] ss:$8 sps:$4 sm:$0xff]   ;;  %v1848_v60 = vld [vmem:[%s2130_s7 + $0x160] ss:$8 sps:$4 sm:$0xff]   ;;  %v1851_v62 = vld [vmem:[%s2130_s7 + $0x174] ss:$8 sps:$4 sm:$0xff]  }
  0x49   : > { %1002 = vmatpush1.bf16.msra.mxu1 %v1823_v43  ;;  %v1853_v63 = vld [vmem:[%s2130_s7 + $0x70] ss:$8 sps:$4 sm:$0xff]   ;;  %v1855_v1 = vld [vmem:[%s2130_s7 + $0x84] ss:$8 sps:$4 sm:$0xff]   ;;  %v1859_v3 = vld [vmem:[%s2130_s7 + $0x80] ss:$8 sps:$4 sm:$0xff]  }
  0x4a   : > { %1115 = vmatpush1.bf16.msra.mxu0 %v1824_v44  ;;  %1003 = vmatprep.subr.bf16.mxu1 %v1825_v45  ;;  %v1854_v0 = vld [vmem:[%s2130_s7 + $0x170] ss:$8 sps:$4 sm:$0xff]   ;;  %v1857_v2 = vld [vmem:[%s2130_s7 + $0x184] ss:$8 sps:$4 sm:$0xff]   ;;  %v1860_v4 = vld [vmem:[%s2130_s7 + $0x180] ss:$8 sps:$4 sm:$0xff]  }
  0x4b   : > { %1116 = vmatprep.subr.bf16.mxu0 %v1827_v46  ;;  %v1861_v5 = vld [vmem:[%s2130_s7 + $0x94] ss:$8 sps:$4 sm:$0xff]   ;;  %v1865_v7 = vld [vmem:[%s2130_s7 + $0x90] ss:$8 sps:$4 sm:$0xff]   ;;  %v1867_v9 = vld [vmem:[%s2130_s7 + $0xa4] ss:$8 sps:$4 sm:$0xff]  }
  0x4c   : > { %v1863_v6 = vld [vmem:[%s2130_s7 + $0x194] ss:$8 sps:$4 sm:$0xff]   ;;  %v1866_v8 = vld [vmem:[%s2130_s7 + $0x190] ss:$8 sps:$4 sm:$0xff]   ;;  %v1869_v10 = vld [vmem:[%s2130_s7 + $0x1a4] ss:$8 sps:$4 sm:$0xff]  }
  0x4d   : > { %1004 = vmatpush1.bf16.msra.mxu1 %v1829_v47  ;;  %v1871_v11 = vld [vmem:[%s2130_s7 + $0xa0] ss:$8 sps:$4 sm:$0xff]   ;;  %v1873_v13 = vld [vmem:[%s2130_s7 + $0xb4] ss:$8 sps:$4 sm:$0xff]   ;;  %v1877_v15 = vld [vmem:[%s2130_s7 + $0xb0] ss:$8 sps:$4 sm:$0xff]  }
  0x4e   : > { %1117 = vmatpush1.bf16.msra.mxu0 %v1830_v48  ;;  %1005 = vmatprep.subr.bf16.mxu1 %v1831_v49  ;;  %v1872_v12 = vld [vmem:[%s2130_s7 + $0x1a0] ss:$8 sps:$4 sm:$0xff]   ;;  %v1875_v14 = vld [vmem:[%s2130_s7 + $0x1b4] ss:$8 sps:$4 sm:$0xff]   ;;  %v1878_v16 = vld [vmem:[%s2130_s7 + $0x1b0] ss:$8 sps:$4 sm:$0xff]  }
  0x4f   : > { %1118 = vmatprep.subr.bf16.mxu0 %v1833_v50  ;;  %v1879_v17 = vld [vmem:[%s2130_s7 + $0xc4] ss:$8 sps:$4 sm:$0xff]   ;;  %v1883_v21 = vld [vmem:[%s2130_s7 + $0xc0] ss:$8 sps:$4 sm:$0xff]   ;;  %v1885_v23 = vld [vmem:[%s2130_s7 + $0xd4] ss:$8 sps:$4 sm:$0xff]  }
  0x50   : > { %v1905_v18 = vld [vmem:[%s2132_s8 + $0x4] ss:$16 sps:$4 sm:$0xff]   ;;  %v1908_v20 = vld [vmem:[%s2132_s8 + $0xc] ss:$16 sps:$4 sm:$0xff]   ;;  %v1884_v22 = vld [vmem:[%s2130_s7 + $0x1c0] ss:$8 sps:$4 sm:$0xff]  }
  0x51   : > { %1006 = vmatpush1.bf16.msra.mxu1 %v1835_v51  ;;  %v1881_v19 = vld [vmem:[%s2130_s7 + $0x1c4] ss:$8 sps:$4 sm:$0xff]   ;;  %1029 = vmatprep.mubr.bf16.mxu1 %v1905_v18  ;;  %v1887_v24 = vld [vmem:[%s2130_s7 + $0x1d4] ss:$8 sps:$4 sm:$0xff]   ;;  %v1889_v25 = vld [vmem:[%s2130_s7 + $0xd0] ss:$8 sps:$4 sm:$0xff]  }
  0x52   : > { %1119 = vmatpush1.bf16.msra.mxu0 %v1836_v52  ;;  %1007 = vmatprep.subr.bf16.mxu1 %v1837_v53  ;;  %v1890_v26 = vld [vmem:[%s2130_s7 + $0x1d0] ss:$8 sps:$4 sm:$0xff]   ;;  %v1891_v27 = vld [vmem:[%s2130_s7 + $0xe4] ss:$8 sps:$4 sm:$0xff]   ;;  %v1895_v29 = vld [vmem:[%s2130_s7 + $0xe0] ss:$8 sps:$4 sm:$0xff]  }
  0x53   : > { %1120 = vmatprep.subr.bf16.mxu0 %v1839_v54  ;;  %1142 = vmatprep.mubr.bf16.mxu0 %v1908_v20  ;;  %v1893_v28 = vld [vmem:[%s2130_s7 + $0x1e4] ss:$8 sps:$4 sm:$0xff]   ;;  %v1896_v30 = vld [vmem:[%s2130_s7 + $0x1e0] ss:$8 sps:$4 sm:$0xff]   ;;  %v1897_v31 = vld [vmem:[%s2130_s7 + $0xf4] ss:$8 sps:$4 sm:$0xff]  }
  0x54   : > { %v1899_v32 = vld [vmem:[%s2130_s7 + $0x1f4] ss:$8 sps:$4 sm:$0xff]   ;;  %v1901_v33 = vld [vmem:[%s2130_s7 + $0xf0] ss:$8 sps:$4 sm:$0xff]   ;;  %p1727_p11 = scmp.ne.s32.totalorder %s1981_s14, 3 }
  0x55   : > { %1008 = vmatpush1.bf16.msra.mxu1 %v1841_v55  ;;  %v1902_v34 = vld [vmem:[%s2130_s7 + $0x1f0] ss:$8 sps:$4 sm:$0xff]   ;;  %v1909_v37 = vld [vmem:[%s2132_s8 + $0x24] ss:$16 sps:$4 sm:$0xff]   ;;  %v1911_v38 = vld [vmem:[%s2132_s8 + $0x2c] ss:$16 sps:$4 sm:$0xff]  }
  0x56   : > { %1121 = vmatpush1.bf16.msra.mxu0 %v1842_v56  ;;  %1009 = vmatprep.subr.bf16.mxu1 %v1843_v57  ;;  %v1903_v35 = vld [vmem:[%s2132_s8] ss:$16 sps:$4 sm:$0xff]   ;;  %v1906_v36 = vld [vmem:[%s2132_s8 + $0x8] ss:$16 sps:$4 sm:$0xff]   ;;  %v1915_v41 = vld [vmem:[%s2132_s8 + $0x44] ss:$16 sps:$4 sm:$0xff]  }
  0x57   : > { %1122 = vmatprep.subr.bf16.mxu0 %v1845_v58  ;;  %v1913_v39 = vld [vmem:[%s2132_s8 + $0x20] ss:$16 sps:$4 sm:$0xff]   ;;  %v1914_v40 = vld [vmem:[%s2132_s8 + $0x28] ss:$16 sps:$4 sm:$0xff]   ;;  %v1917_v42 = vld [vmem:[%s2132_s8 + $0x4c] ss:$16 sps:$4 sm:$0xff]  }
  0x58   : > { %v1919_v43 = vld [vmem:[%s2132_s8 + $0x40] ss:$16 sps:$4 sm:$0xff]   ;;  %v1920_v44 = vld [vmem:[%s2132_s8 + $0x48] ss:$16 sps:$4 sm:$0xff]   ;;  %v1921_v45 = vld [vmem:[%s2132_s8 + $0x64] ss:$16 sps:$4 sm:$0xff]  }
  0x59   : > { %1010 = vmatpush1.bf16.msra.mxu1 %v1847_v59  ;;  %v1923_v46 = vld [vmem:[%s2132_s8 + $0x6c] ss:$16 sps:$4 sm:$0xff]   ;;  %v1925_v47 = vld [vmem:[%s2132_s8 + $0x60] ss:$16 sps:$4 sm:$0xff]   ;;  %v1926_v48 = vld [vmem:[%s2132_s8 + $0x68] ss:$16 sps:$4 sm:$0xff]  }
  0x5a   : > { %1123 = vmatpush1.bf16.msra.mxu0 %v1848_v60  ;;  %1011 = vmatprep.subr.bf16.mxu1 %v1849_v61  ;;  %v1927_v49 = vld [vmem:[%s2132_s8 + $0x84] ss:$16 sps:$4 sm:$0xff]   ;;  %v1929_v50 = vld [vmem:[%s2132_s8 + $0x8c] ss:$16 sps:$4 sm:$0xff]   ;;  %v1931_v51 = vld [vmem:[%s2132_s8 + $0x80] ss:$16 sps:$4 sm:$0xff]  }
  0x5b   : > { %1124 = vmatprep.subr.bf16.mxu0 %v1851_v62  ;;  %v1932_v52 = vld [vmem:[%s2132_s8 + $0x88] ss:$16 sps:$4 sm:$0xff]   ;;  %v1933_v53 = vld [vmem:[%s2132_s8 + $0xa4] ss:$16 sps:$4 sm:$0xff]   ;;  %v1935_v54 = vld [vmem:[%s2132_s8 + $0xac] ss:$16 sps:$4 sm:$0xff]  }
  0x5c   : > { %v1937_v55 = vld [vmem:[%s2132_s8 + $0xa0] ss:$16 sps:$4 sm:$0xff]   ;;  %v1938_v56 = vld [vmem:[%s2132_s8 + $0xa8] ss:$16 sps:$4 sm:$0xff]   ;;  %v1939_v57 = vld [vmem:[%s2132_s8 + $0xc4] ss:$16 sps:$4 sm:$0xff]  }
  0x5d   : > { %1012 = vmatpush1.bf16.msra.mxu1 %v1853_v63  ;;  %v1941_v58 = vld [vmem:[%s2132_s8 + $0xcc] ss:$16 sps:$4 sm:$0xff]   ;;  %v1943_v59 = vld [vmem:[%s2132_s8 + $0xc0] ss:$16 sps:$4 sm:$0xff]   ;;  %v1944_v60 = vld [vmem:[%s2132_s8 + $0xc8] ss:$16 sps:$4 sm:$0xff]  }
  0x5e   : > { %1125 = vmatpush1.bf16.msra.mxu0 %v1854_v0  ;;  %1013 = vmatprep.subr.bf16.mxu1 %v1855_v1  ;;  %v1945_v61 = vld [vmem:[%s2132_s8 + $0xe4] ss:$16 sps:$4 sm:$0xff]   ;;  %v1947_v62 = vld [vmem:[%s2132_s8 + $0xec] ss:$16 sps:$4 sm:$0xff]   ;;  %v1949_v63 = vld [vmem:[%s2132_s8 + $0xe0] ss:$16 sps:$4 sm:$0xff]  }
  0x5f   : > { %1126 = vmatprep.subr.bf16.mxu0 %v1857_v2  ;;  %v1950_v0 = vld [vmem:[%s2132_s8 + $0xe8] ss:$16 sps:$4 sm:$0xff]   ;;  %v389_v2 = vld [vmem:[#allocation2] sm:$0xff] }
  0x61   : > { %1014 = vmatpush1.bf16.msra.mxu1 %v1859_v3 }
  0x62   : > { %1127 = vmatpush1.bf16.msra.mxu0 %v1860_v4  ;;  %1015 = vmatprep.subr.bf16.mxu1 %v1861_v5 }
  0x63   : > { %1128 = vmatprep.subr.bf16.mxu0 %v1863_v6  ;;  %v390_v6 = vld [vmem:[#allocation2 + $0x8] sm:$0xff] }
  0x65   : > { %1016 = vmatpush1.bf16.msra.mxu1 %v1865_v7 }
  0x66   : > { %1129 = vmatpush1.bf16.msra.mxu0 %v1866_v8  ;;  %1017 = vmatprep.subr.bf16.mxu1 %v1867_v9 }
  0x67   : > { %1130 = vmatprep.subr.bf16.mxu0 %v1869_v10  ;;  %v391_v10 = vld [vmem:[#allocation2 + $0x10] sm:$0xff] }
  0x69   : > { %1018 = vmatpush1.bf16.msra.mxu1 %v1871_v11 }
  0x6a   : > { %1131 = vmatpush1.bf16.msra.mxu0 %v1872_v12  ;;  %1019 = vmatprep.subr.bf16.mxu1 %v1873_v13 }
  0x6b   : > { %1132 = vmatprep.subr.bf16.mxu0 %v1875_v14 }
  0x6d   : > { %1020 = vmatpush1.bf16.msra.mxu1 %v1877_v15  ;;  %v392_v15 = vld [vmem:[#allocation2 + $0x18] sm:$0xff] }
  0x6e   : > { %1133 = vmatpush1.bf16.msra.mxu0 %v1878_v16  ;;  %1021 = vmatprep.subr.bf16.mxu1 %v1879_v17 }
  0x6f   : > { %1134 = vmatprep.subr.bf16.mxu0 %v1881_v19 }
  0x71   : > { %1022 = vmatpush1.bf16.msra.mxu1 %v1883_v21 }
  0x72   : > { %1135 = vmatpush1.bf16.msra.mxu0 %v1884_v22  ;;  %1023 = vmatprep.subr.bf16.mxu1 %v1885_v23  ;;  %v393_v22 = vld [vmem:[#allocation2 + $0x20] sm:$0xff] }
  0x73   : > { %1136 = vmatprep.subr.bf16.mxu0 %v1887_v24 }
  0x75   : > { %1024 = vmatpush1.bf16.msra.mxu1 %v1889_v25 }
  0x76   : > { %1137 = vmatpush1.bf16.msra.mxu0 %v1890_v26  ;;  %1025 = vmatprep.subr.bf16.mxu1 %v1891_v27  ;;  %v394_v26 = vld [vmem:[#allocation2 + $0x28] sm:$0xff] }
  0x77   : > { %1138 = vmatprep.subr.bf16.mxu0 %v1893_v28 }
  0x79   : > { %1026 = vmatpush1.bf16.msra.mxu1 %v1895_v29 }
  0x7a   : > { %1139 = vmatpush1.bf16.msra.mxu0 %v1896_v30  ;;  %1027 = vmatprep.subr.bf16.mxu1 %v1897_v31  ;;  %v395_v30 = vld [vmem:[#allocation2 + $0x30] sm:$0xff] }
  0x7b   : > { %1140 = vmatprep.subr.bf16.mxu0 %v1899_v32 }
  0x7d   : > { %1028 = vmatpush1.bf16.msra.mxu1 %v1901_v33 }
  0x7e   : > { %1141 = vmatpush1.bf16.msra.mxu0 %v1902_v34 }
  0x80   : > { %1030 = vmatmul.mubr.bf16.vlgmr.msra.gmra.mrb[0].mxu1 %v1903_v35  ;;  %v396_v35 = vld [vmem:[#allocation2 + $0x38] sm:$0xff] }
  0x81   : > { %1143 = vmatmul.mubr.bf16.vlgmr.msra.gmra.mrb[0].mxu0 %v1906_v36  ;;  %1039 = vmatprep.mubr.bf16.mxu1 %v1909_v37 }
  0x82   : > { %1152 = vmatprep.mubr.bf16.mxu0 %v1911_v38 }
  0x88   : > { %1040 = vmatmul.mubr.bf16.gmra.mrb[4].mxu1 %v1913_v39 }
  0x89   : > { %1153 = vmatmul.mubr.bf16.gmra.mrb[4].mxu0 %v1914_v40  ;;  %1049 = vmatprep.mubr.bf16.mxu1 %v1915_v41 }
  0x8a   : > { %1162 = vmatprep.mubr.bf16.mxu0 %v1917_v42  ;;  %v397_v42 = vld [vmem:[#allocation2 + $0x40] sm:$0xff] }
  0x90   : > { %1050 = vmatmul.mubr.bf16.gmra.mrb[8].mxu1 %v1919_v43 }
  0x91   : > { %1163 = vmatmul.mubr.bf16.gmra.mrb[8].mxu0 %v1920_v44  ;;  %1059 = vmatprep.mubr.bf16.mxu1 %v1921_v45 }
  0x92   : > { %1172 = vmatprep.mubr.bf16.mxu0 %v1923_v46  ;;  %v398_v46 = vld [vmem:[#allocation2 + $0x48] sm:$0xff] }
  0x98   : > { %1060 = vmatmul.mubr.bf16.gmra.mrb[12].mxu1 %v1925_v47 }
  0x99   : > { %1173 = vmatmul.mubr.bf16.gmra.mrb[12].mxu0 %v1926_v48  ;;  %1069 = vmatprep.mubr.bf16.mxu1 %v1927_v49 }
  0x9a   : > { %1182 = vmatprep.mubr.bf16.mxu0 %v1929_v50  ;;  %v399_v50 = vld [vmem:[#allocation2 + $0x50] sm:$0xff] }
  0xa0   : > { %1070 = vmatmul.mubr.bf16.gmra.mrb[16].mxu1 %v1931_v51 }
  0xa1   : > { %1183 = vmatmul.mubr.bf16.gmra.mrb[16].mxu0 %v1932_v52  ;;  %1079 = vmatprep.mubr.bf16.mxu1 %v1933_v53 }
  0xa2   : > { %1192 = vmatprep.mubr.bf16.mxu0 %v1935_v54 }
  0xa8   : > { %1080 = vmatmul.mubr.bf16.gmra.mrb[20].mxu1 %v1937_v55  ;;  %v400_v55 = vld [vmem:[#allocation2 + $0x58] sm:$0xff] }
  0xa9   : > { %1193 = vmatmul.mubr.bf16.gmra.mrb[20].mxu0 %v1938_v56  ;;  %1089 = vmatprep.mubr.bf16.mxu1 %v1939_v57 }
  0xaa   : > { %1202 = vmatprep.mubr.bf16.mxu0 %v1941_v58 }
  0xb0   : > { %1090 = vmatmul.mubr.bf16.gmra.mrb[24].mxu1 %v1943_v59 }
  0xb1   : > { %1203 = vmatmul.mubr.bf16.gmra.mrb[24].mxu0 %v1944_v60  ;;  %1099 = vmatprep.mubr.bf16.mxu1 %v1945_v61 }
  0xb2   : > { %1212 = vmatprep.mubr.bf16.mxu0 %v1947_v62  ;;  %v401_v62 = vld [vmem:[#allocation2 + $0x60] sm:$0xff] }
  0xb8   : > { %1100 = vmatmul.mubr.bf16.gmra.mrb[28].mxu1 %v1949_v63 }
  0xb9   : > { %1213 = vmatmul.mubr.bf16.gmra.mrb[28].mxu0 %v1950_v0 }
 0x153   : > { %v1031_v1 = vpop.f32.mrb[0].mxu1 }
 0x154   : > { %v1144_v3 = vpop.f32.mrb[0].mxu0  ;;  %v1033_v5 = vpop.f32.mrb[1].mxu1 }
 0x155   : > { %v1145_v4 = vadd.f32 %v1144_v3, %v1031_v1  ;;  %v1146_v7 = vpop.f32.mrb[1].mxu0  ;;  %v1035_v9 = vpop.f32.mrb[2].mxu1 }
 0x156   : > { %v1147_v8 = vadd.f32 %v1146_v7, %v1033_v5  ;;  %v1148_v11 = vpop.f32.mrb[2].mxu0  ;;  %v1037_v14 = vpop.f32.mrb[3].mxu1 }
 0x157   : > { %v1223_v12 = vadd.f32 %v1145_v4, %v389_v2  ;;  %v1149_v13 = vadd.f32 %v1148_v11, %v1035_v9  ;;  %v1150_v16 = vpop.f32.mrb[3].mxu0  ;;  %v402_v2 = vld [vmem:[#allocation2 + $0x68] sm:$0xff]  ;;  %v404_v11 = vld [vmem:[#allocation2 + $0x78] sm:$0xff] }
 0x158   : > { %v1224_v17 = vadd.f32 %v1147_v8, %v390_v6  ;;  %v1151_v18 = vadd.f32 %v1150_v16, %v1037_v14  ;;  %v403_v6 = vld [vmem:[#allocation2 + $0x70] sm:$0xff] }
 0x159   : > { %1255 = vst [vmem:[#allocation2] sm:$0xff] %v1223_v12  ;;  %v1225_v19 = vadd.f32 %v1149_v13, %v391_v10 }
 0x15a   : > { %1256 = vst [vmem:[#allocation2 + $0x8] sm:$0xff] %v1224_v17  ;;  %v1226_v20 = vadd.f32 %v1151_v18, %v392_v15  ;;  %v405_v18 = vld [vmem:[#allocation2 + $0x80] sm:$0xff] }
 0x15b   : > { %1257 = vst [vmem:[#allocation2 + $0x10] sm:$0xff] %v1225_v19  ;;  %v1041_v21 = vpop.f32.mrb[4].mxu1 }
 0x15c   : > { %1258 = vst [vmem:[#allocation2 + $0x18] sm:$0xff] %v1226_v20  ;;  %v1154_v23 = vpop.f32.mrb[4].mxu0  ;;  %v1043_v25 = vpop.f32.mrb[5].mxu1 }
 0x15d   : > { %v1155_v24 = vadd.f32 %v1154_v23, %v1041_v21  ;;  %v1156_v27 = vpop.f32.mrb[5].mxu0  ;;  %v1045_v29 = vpop.f32.mrb[6].mxu1 }
 0x15e   : > { %v1157_v28 = vadd.f32 %v1156_v27, %v1043_v25  ;;  %v1158_v31 = vpop.f32.mrb[6].mxu0  ;;  %v1047_v34 = vpop.f32.mrb[7].mxu1 }
 0x15f   : > { %v1227_v32 = vadd.f32 %v1155_v24, %v393_v22  ;;  %v1159_v33 = vadd.f32 %v1158_v31, %v1045_v29  ;;  %v1160_v36 = vpop.f32.mrb[7].mxu0  ;;  %v406_v22 = vld [vmem:[#allocation2 + $0x88] sm:$0xff]  ;;  %v408_v31 = vld [vmem:[#allocation2 + $0x98] sm:$0xff] }
 0x160   : > { %v1228_v37 = vadd.f32 %v1157_v28, %v394_v26  ;;  %v1161_v38 = vadd.f32 %v1160_v36, %v1047_v34  ;;  %v407_v26 = vld [vmem:[#allocation2 + $0x90] sm:$0xff] }
 0x161   : > { %1259 = vst [vmem:[#allocation2 + $0x20] sm:$0xff] %v1227_v32  ;;  %v1229_v39 = vadd.f32 %v1159_v33, %v395_v30 }
 0x162   : > { %1260 = vst [vmem:[#allocation2 + $0x28] sm:$0xff] %v1228_v37  ;;  %v1230_v40 = vadd.f32 %v1161_v38, %v396_v35  ;;  %v409_v38 = vld [vmem:[#allocation2 + $0xa0] sm:$0xff] }
 0x163   : > { %1261 = vst [vmem:[#allocation2 + $0x30] sm:$0xff] %v1229_v39  ;;  %v1051_v41 = vpop.f32.mrb[8].mxu1 }
 0x164   : > { %1262 = vst [vmem:[#allocation2 + $0x38] sm:$0xff] %v1230_v40  ;;  %v1164_v43 = vpop.f32.mrb[8].mxu0  ;;  %v1053_v45 = vpop.f32.mrb[9].mxu1 }
 0x165   : > { %v1165_v44 = vadd.f32 %v1164_v43, %v1051_v41  ;;  %v1166_v47 = vpop.f32.mrb[9].mxu0  ;;  %v1055_v49 = vpop.f32.mrb[10].mxu1 }
 0x166   : > { %v1167_v48 = vadd.f32 %v1166_v47, %v1053_v45  ;;  %v1168_v51 = vpop.f32.mrb[10].mxu0  ;;  %v1057_v54 = vpop.f32.mrb[11].mxu1 }
 0x167   : > { %v1231_v52 = vadd.f32 %v1165_v44, %v397_v42  ;;  %v1169_v53 = vadd.f32 %v1168_v51, %v1055_v49  ;;  %v1170_v56 = vpop.f32.mrb[11].mxu0  ;;  %v410_v42 = vld [vmem:[#allocation2 + $0xa8] sm:$0xff]  ;;  %v412_v51 = vld [vmem:[#allocation2 + $0xb8] sm:$0xff] }
 0x168   : > { %v1232_v57 = vadd.f32 %v1167_v48, %v398_v46  ;;  %v1171_v58 = vadd.f32 %v1170_v56, %v1057_v54  ;;  %v411_v46 = vld [vmem:[#allocation2 + $0xb0] sm:$0xff] }
 0x169   : > { %1263 = vst [vmem:[#allocation2 + $0x40] sm:$0xff] %v1231_v52  ;;  %v1233_v59 = vadd.f32 %v1169_v53, %v399_v50 }
 0x16a   : > { %1264 = vst [vmem:[#allocation2 + $0x48] sm:$0xff] %v1232_v57  ;;  %v1234_v60 = vadd.f32 %v1171_v58, %v400_v55  ;;  %v413_v58 = vld [vmem:[#allocation2 + $0xc0] sm:$0xff] }
 0x16b   : > { %1265 = vst [vmem:[#allocation2 + $0x50] sm:$0xff] %v1233_v59  ;;  %v1061_v61 = vpop.f32.mrb[12].mxu1 }
 0x16c   : > { %1266 = vst [vmem:[#allocation2 + $0x58] sm:$0xff] %v1234_v60  ;;  %v1174_v63 = vpop.f32.mrb[12].mxu0  ;;  %v1063_v1 = vpop.f32.mrb[13].mxu1 }
 0x16d   : > { %v1175_v0 = vadd.f32 %v1174_v63, %v1061_v61  ;;  %v1176_v3 = vpop.f32.mrb[13].mxu0  ;;  %v1065_v5 = vpop.f32.mrb[14].mxu1 }
 0x16e   : > { %v1177_v4 = vadd.f32 %v1176_v3, %v1063_v1  ;;  %v1178_v7 = vpop.f32.mrb[14].mxu0  ;;  %v1067_v10 = vpop.f32.mrb[15].mxu1 }
 0x16f   : > { %v1235_v8 = vadd.f32 %v1175_v0, %v401_v62  ;;  %v1179_v9 = vadd.f32 %v1178_v7, %v1065_v5  ;;  %v1180_v12 = vpop.f32.mrb[15].mxu0  ;;  %v414_v62 = vld [vmem:[#allocation2 + $0xc8] sm:$0xff]  ;;  %v416_v7 = vld [vmem:[#allocation2 + $0xd8] sm:$0xff] }
 0x170   : > { %v1236_v13 = vadd.f32 %v1177_v4, %v402_v2  ;;  %v1181_v14 = vadd.f32 %v1180_v12, %v1067_v10  ;;  %v415_v2 = vld [vmem:[#allocation2 + $0xd0] sm:$0xff] }
 0x171   : > { %1267 = vst [vmem:[#allocation2 + $0x60] sm:$0xff] %v1235_v8  ;;  %v1237_v15 = vadd.f32 %v1179_v9, %v403_v6 }
 0x172   : > { %1268 = vst [vmem:[#allocation2 + $0x68] sm:$0xff] %v1236_v13  ;;  %v1238_v16 = vadd.f32 %v1181_v14, %v404_v11  ;;  %v417_v14 = vld [vmem:[#allocation2 + $0xe0] sm:$0xff] }
 0x173   : > { %1269 = vst [vmem:[#allocation2 + $0x70] sm:$0xff] %v1237_v15  ;;  %v1071_v17 = vpop.f32.mrb[16].mxu1 }
 0x174   : > { %1270 = vst [vmem:[#allocation2 + $0x78] sm:$0xff] %v1238_v16  ;;  %v1184_v19 = vpop.f32.mrb[16].mxu0  ;;  %v1073_v21 = vpop.f32.mrb[17].mxu1 }
 0x175   : > { %v1185_v20 = vadd.f32 %v1184_v19, %v1071_v17  ;;  %v1186_v23 = vpop.f32.mrb[17].mxu0  ;;  %v1075_v25 = vpop.f32.mrb[18].mxu1 }
 0x176   : > { %v1187_v24 = vadd.f32 %v1186_v23, %v1073_v21  ;;  %v1188_v27 = vpop.f32.mrb[18].mxu0  ;;  %v1077_v30 = vpop.f32.mrb[19].mxu1 }
 0x177   : > { %v1239_v28 = vadd.f32 %v1185_v20, %v405_v18  ;;  %v1189_v29 = vadd.f32 %v1188_v27, %v1075_v25  ;;  %v1190_v32 = vpop.f32.mrb[19].mxu0  ;;  %v418_v18 = vld [vmem:[#allocation2 + $0xe8] sm:$0xff]  ;;  %v420_v27 = vld [vmem:[#allocation2 + $0xf8] sm:$0xff] }
 0x178   : > { %v1240_v33 = vadd.f32 %v1187_v24, %v406_v22  ;;  %v1191_v34 = vadd.f32 %v1190_v32, %v1077_v30  ;;  %v419_v22 = vld [vmem:[#allocation2 + $0xf0] sm:$0xff] }
 0x179   : > { %1271 = vst [vmem:[#allocation2 + $0x80] sm:$0xff] %v1239_v28  ;;  %v1241_v35 = vadd.f32 %v1189_v29, %v407_v26 }
 0x17a   : > { %1272 = vst [vmem:[#allocation2 + $0x88] sm:$0xff] %v1240_v33  ;;  %v1242_v36 = vadd.f32 %v1191_v34, %v408_v31  ;;  %v1325_v33 = vlaneseq (!%p1727_p11) }
 0x17b   : > { %1273 = vst [vmem:[#allocation2 + $0x90] sm:$0xff] %v1241_v35  ;;  %v1081_v37 = vpop.f32.mrb[20].mxu1  ;;  %v1323_v35 = vld [vmem:[%s2384_s2] sm:$0x3] (!%p1727_p11) }
 0x17c   : > { %1274 = vst [vmem:[#allocation2 + $0x98] sm:$0xff] %v1242_v36  ;;  %v1194_v39 = vpop.f32.mrb[20].mxu0  ;;  %v1083_v41 = vpop.f32.mrb[21].mxu1  ;;  %v1326_v34 = vshrl.u32 (!%p1727_p11), %v1325_v33, 7  ;;  %v1291_v36 = vld [vmem:[#allocation2] sm:$0xff] (!%p1727_p11) }
 0x17d   : > { %v1195_v40 = vadd.f32 %v1194_v39, %v1081_v37  ;;  %v1196_v43 = vpop.f32.mrb[21].mxu0  ;;  %v1085_v45 = vpop.f32.mrb[22].mxu1 }
 0x17e   : > { %v1197_v44 = vadd.f32 %v1196_v43, %v1083_v41  ;;  %v1198_v47 = vpop.f32.mrb[22].mxu0  ;;  %v1087_v50 = vpop.f32.mrb[23].mxu1  ;;  %v1327_v37 = vsub.s32 (!%p1727_p11), 0, %v1326_v34  ;;  %v1331_v39 = vsub.s32 (!%p1727_p11), 1, %v1326_v34  ;;  %v1294_v41 = vld [vmem:[#allocation2 + $0x18] sm:$0xff] (!%p1727_p11) }
 0x17f   : > { %v1243_v48 = vadd.f32 %v1195_v40, %v409_v38  ;;  %v1199_v49 = vadd.f32 %v1198_v47, %v1085_v45  ;;  %v1200_v52 = vpop.f32.mrb[23].mxu0  ;;  %v1292_v38 = vld [vmem:[#allocation2 + $0x8] sm:$0xff] (!%p1727_p11)  ;;  %v1293_v40 = vld [vmem:[#allocation2 + $0x10] sm:$0xff] (!%p1727_p11)  ;;  %v1298_v47 = vld [vmem:[#allocation2 + $0x38] sm:$0xff] (!%p1727_p11) }
 0x180   : > { %v1244_v53 = vadd.f32 %v1197_v44, %v410_v42  ;;  %v1201_v54 = vadd.f32 %v1200_v52, %v1087_v50  ;;  %v1295_v42 = vld [vmem:[#allocation2 + $0x20] sm:$0xff] (!%p1727_p11)  ;;  %v2235_v43 = vrot.slane (!%p1727_p11), %v1323_v35, %v1327_v37  ;;  %v2237_v44 = vrot.slane (!%p1727_p11), %v1323_v35, %v1331_v39  ;;  %v1296_v45 = vld [vmem:[#allocation2 + $0x28] sm:$0xff] (!%p1727_p11) }
 0x181   : > { %1275 = vst [vmem:[#allocation2 + $0xa0] sm:$0xff] %v1243_v48  ;;  %v1245_v55 = vadd.f32 %v1199_v49, %v411_v46  ;;  %v1297_v46 = vld [vmem:[#allocation2 + $0x30] sm:$0xff] (!%p1727_p11) }
 0x182   : > { %1276 = vst [vmem:[#allocation2 + $0xa8] sm:$0xff] %v1244_v53  ;;  %v1246_v56 = vadd.f32 %v1201_v54, %v412_v51  ;;  %v1335_v48 = vadd.f32 (!%p1727_p11), %v2235_v43, %v1291_v36  ;;  %v1336_v49 = vadd.f32 (!%p1727_p11), %v2237_v44, %v1292_v38  ;;  %v1337_v50 = vadd.f32 (!%p1727_p11), %v2235_v43, %v1293_v40  ;;  %v1309_v37 = vld [vmem:[#allocation2 + $0x90] sm:$0xff] (!%p1727_p11) }
 0x183   : > { %1277 = vst [vmem:[#allocation2 + $0xb0] sm:$0xff] %v1245_v55  ;;  %v1091_v57 = vpop.f32.mrb[24].mxu1  ;;  %v1338_v51 = vadd.f32 (!%p1727_p11), %v2237_v44, %v1294_v41  ;;  %v1339_v52 = vadd.f32 (!%p1727_p11), %v2235_v43, %v1295_v42  ;;  %v1340_v53 = vadd.f32 (!%p1727_p11), %v2237_v44, %v1296_v45  ;;  %v1341_v54 = vadd.f32 (!%p1727_p11), %v2235_v43, %v1297_v46  ;;  %v1310_v38 = vld [vmem:[#allocation2 + $0x98] sm:$0xff] (!%p1727_p11) }
 0x184   : > { %1278 = vst [vmem:[#allocation2 + $0xb8] sm:$0xff] %v1246_v56  ;;  %v1204_v59 = vpop.f32.mrb[24].mxu0  ;;  %v1093_v61 = vpop.f32.mrb[25].mxu1  ;;  %v1342_v55 = vadd.f32 (!%p1727_p11), %v2237_v44, %v1298_v47  ;;  %vm1367_vm0 = vcmp.ge.f32.partialorder (!%p1727_p11), %v1335_v48, 0.0  ;;  %v1399_v56 = vmul.f32 (!%p1727_p11), 0.1, %v1335_v48 }
 0x185   : > { %v1205_v60 = vadd.f32 %v1204_v59, %v1091_v57  ;;  %v1206_v63 = vpop.f32.mrb[25].mxu0  ;;  %v1095_v1 = vpop.f32.mrb[26].mxu1  ;;  %vm1368_vm1 = vcmp.ge.f32.partialorder (!%p1727_p11), %v1336_v49, 0.0  ;;  %v1400_v57 = vmul.f32 (!%p1727_p11), 0.1, %v1336_v49  ;;  %vm1369_vm2 = vcmp.ge.f32.partialorder (!%p1727_p11), %v1337_v50, 0.0 }
 0x186   : > { %v1207_v0 = vadd.f32 %v1206_v63, %v1093_v61  ;;  %v1208_v3 = vpop.f32.mrb[26].mxu0  ;;  %v1097_v6 = vpop.f32.mrb[27].mxu1  ;;  %vm1370_vm3 = vcmp.ge.f32.partialorder (!%p1727_p11), %v1338_v51, 0.0  ;;  %v1402_v59 = vmul.f32 (!%p1727_p11), 0.1, %v1338_v51  ;;  %vm1371_vm4 = vcmp.ge.f32.partialorder (!%p1727_p11), %v1339_v52, 0.0 }
 0x187   : > { %v1247_v4 = vadd.f32 %v1205_v60, %v413_v58  ;;  %v1209_v5 = vadd.f32 %v1208_v3, %v1095_v1  ;;  %v1210_v8 = vpop.f32.mrb[27].mxu0  ;;  %v1401_v58 = vmul.f32 (!%p1727_p11), 0.1, %v1337_v50  ;;  %v1431_v60 = vsel (!%p1727_p11), %vm1367_vm0, %v1335_v48, %v1399_v56  ;;  %v1299_v63 = vld [vmem:[#allocation2 + $0x40] sm:$0xff] (!%p1727_p11) }
 0x188   : > { %v1248_v9 = vadd.f32 %v1207_v0, %v414_v62  ;;  %v1211_v10 = vadd.f32 %v1210_v8, %v1097_v6  ;;  %v1432_v61 = vsel (!%p1727_p11), %vm1368_vm1, %v1336_v49, %v1400_v57  ;;  %v1403_v62 = vmul.f32 (!%p1727_p11), 0.1, %v1339_v52  ;;  %v1300_v0 = vld [vmem:[#allocation2 + $0x48] sm:$0xff] (!%p1727_p11)  ;;  %1463 = vst [vmem:[%s2385_s3] sm:$0xff] (!%p1727_p11), %v1431_v60  ;;  %v1303_v6 = vld [vmem:[#allocation2 + $0x60] sm:$0xff] (!%p1727_p11) }
 0x189   : > { %1279 = vst [vmem:[#allocation2 + $0xc0] sm:$0xff] %v1247_v4  ;;  %v1249_v11 = vadd.f32 %v1209_v5, %v415_v2  ;;  %1464 = vst [vmem:[%s2385_s3 + $0x8] sm:$0xff] (!%p1727_p11), %v1432_v61  ;;  %v1433_v1 = vsel (!%p1727_p11), %vm1369_vm2, %v1337_v50, %v1401_v58  ;;  %v1434_v2 = vsel (!%p1727_p11), %vm1370_vm3, %v1338_v51, %v1402_v59  ;;  %vm1372_vm5 = vcmp.ge.f32.partialorder (!%p1727_p11), %v1340_v53, 0.0  ;;  %v1301_v4 = vld [vmem:[#allocation2 + $0x50] sm:$0xff] (!%p1727_p11)  ;;  %v1302_v5 = vld [vmem:[#allocation2 + $0x58] sm:$0xff] (!%p1727_p11) }
 0x18a   : > { %1280 = vst [vmem:[#allocation2 + $0xc8] sm:$0xff] %v1248_v9  ;;  %v1250_v12 = vadd.f32 %v1211_v10, %v416_v7  ;;  %v1404_v3 = vmul.f32 (!%p1727_p11), 0.1, %v1340_v53  ;;  %1465 = vst [vmem:[%s2385_s3 + $0x10] sm:$0xff] (!%p1727_p11), %v1433_v1  ;;  %v1435_v7 = vsel (!%p1727_p11), %vm1371_vm4, %v1339_v52, %v1403_v62  ;;  %vm1373_vm6 = vcmp.ge.f32.partialorder (!%p1727_p11), %v1341_v54, 0.0  ;;  %v1311_v39 = vld [vmem:[#allocation2 + $0xa0] sm:$0xff] (!%p1727_p11) }
 0x18b   : > { %1281 = vst [vmem:[#allocation2 + $0xd0] sm:$0xff] %v1249_v11  ;;  %v1101_v13 = vpop.f32.mrb[28].mxu1  ;;  %1466 = vst [vmem:[%s2385_s3 + $0x18] sm:$0xff] (!%p1727_p11), %v1434_v2  ;;  %v1405_v8 = vmul.f32 (!%p1727_p11), 0.1, %v1341_v54  ;;  %vm1374_vm7 = vcmp.ge.f32.partialorder (!%p1727_p11), %v1342_v55, 0.0  ;;  %v1343_v11 = vadd.f32 (!%p1727_p11), %v2235_v43, %v1299_v63  ;;  %v1353_v49 = vadd.f32 (!%p1727_p11), %v2235_v43, %v1309_v37 }
 0x18c   : > { %1282 = vst [vmem:[#allocation2 + $0xd8] sm:$0xff] %v1250_v12  ;;  %v1214_v15 = vpop.f32.mrb[28].mxu0  ;;  %v1103_v17 = vpop.f32.mrb[29].mxu1  ;;  %1467 = vst [vmem:[%s2385_s3 + $0x20] sm:$0xff] (!%p1727_p11), %v1435_v7  ;;  %v1436_v9 = vsel (!%p1727_p11), %vm1372_vm5, %v1340_v53, %v1404_v3  ;;  %v1406_v10 = vmul.f32 (!%p1727_p11), 0.1, %v1342_v55  ;;  %v1344_v12 = vadd.f32 (!%p1727_p11), %v2237_v44, %v1300_v0  ;;  %v1354_v53 = vadd.f32 (!%p1727_p11), %v2237_v44, %v1310_v38 }
 0x18d   : > { %v1215_v16 = vadd.f32 %v1214_v15, %v1101_v13  ;;  %v1216_v19 = vpop.f32.mrb[29].mxu0  ;;  %v1105_v21 = vpop.f32.mrb[30].mxu1  ;;  %1468 = vst [vmem:[%s2385_s3 + $0x28] sm:$0xff] (!%p1727_p11), %v1436_v9  ;;  %v1437_v13 = vsel (!%p1727_p11), %vm1373_vm6, %v1341_v54, %v1405_v8  ;;  %v1346_v15 = vadd.f32 (!%p1727_p11), %v2237_v44, %v1302_v5  ;;  %vm1375_vm8 = vcmp.ge.f32.partialorder (!%p1727_p11), %v1343_v11, 0.0  ;;  %v1312_v50 = vld [vmem:[#allocation2 + $0xa8] sm:$0xff] (!%p1727_p11)  ;;  %v1314_v56 = vld [vmem:[#allocation2 + $0xb8] sm:$0xff] (!%p1727_p11) }
 0x18e   : > { %v1217_v20 = vadd.f32 %v1216_v19, %v1103_v17  ;;  %v1218_v23 = vpop.f32.mrb[30].mxu0  ;;  %v1107_v26 = vpop.f32.mrb[31].mxu1  ;;  %1290 = sbr.rel (%p1727_p11) target bundleno = 426 (0x1aa), region = 63  ;;  %v1304_v17 = vld [vmem:[#allocation2 + $0x68] sm:$0xff] (!%p1727_p11)  ;;  %1469 = vst [vmem:[%s2385_s3 + $0x30] sm:$0xff] (!%p1727_p11), %v1437_v13  ;;  %v1438_v19 = vsel (!%p1727_p11), %vm1374_vm7, %v1342_v55, %v1406_v10  ;;  %vm1376_vm9 = vcmp.ge.f32.partialorder (!%p1727_p11), %v1344_v12, 0.0  ;;  %v1355_v54 = vadd.f32 (!%p1727_p11), %v2235_v43, %v1311_v39 }
 0x18f   : > { %v1251_v24 = vadd.f32 %v1215_v16, %v417_v14  ;;  %v1219_v25 = vadd.f32 %v1218_v23, %v1105_v21  ;;  %v1220_v28 = vpop.f32.mrb[31].mxu0  ;;  %v1345_v14 = vadd.f32 (!%p1727_p11), %v2235_v43, %v1301_v4  ;;  %v1347_v16 = vadd.f32 (!%p1727_p11), %v2235_v43, %v1303_v6  ;;  %v1306_v21 = vld [vmem:[#allocation2 + $0x78] sm:$0xff] (!%p1727_p11)  ;;  %1470 = vst [vmem:[%s2385_s3 + $0x38] sm:$0xff] (!%p1727_p11), %v1438_v19  ;;  %v1313_v55 = vld [vmem:[#allocation2 + $0xb0] sm:$0xff] (!%p1727_p11) }
 0x190   : > { %v1252_v29 = vadd.f32 %v1217_v20, %v418_v18  ;;  %v1221_v30 = vadd.f32 %v1220_v28, %v1107_v26  ;;  %v1305_v18 = vld [vmem:[#allocation2 + $0x70] sm:$0xff] (!%p1727_p11)  ;;  %v1407_v20 = vmul.f32 (!%p1727_p11), 0.1, %v1343_v11  ;;  %v1408_v23 = vmul.f32 (!%p1727_p11), 0.1, %v1344_v12  ;;  %v1315_v57 = vld [vmem:[#allocation2 + $0xc0] sm:$0xff] (!%p1727_p11) }
 0x191   : > { %1283 = vst [vmem:[#allocation2 + $0xe0] sm:$0xff] %v1251_v24  ;;  %v1253_v31 = vadd.f32 %v1219_v25, %v419_v22  ;;  %v1307_v22 = vld [vmem:[#allocation2 + $0x80] sm:$0xff] (!%p1727_p11)  ;;  %vm1377_vm10 = vcmp.ge.f32.partialorder (!%p1727_p11), %v1345_v14, 0.0  ;;  %v1409_v24 = vmul.f32 (!%p1727_p11), 0.1, %v1345_v14  ;;  %vm1378_vm11 = vcmp.ge.f32.partialorder (!%p1727_p11), %v1346_v15, 0.0 }
 0x192   : > { %1284 = vst [vmem:[#allocation2 + $0xe8] sm:$0xff] %v1252_v29  ;;  %v1254_v32 = vadd.f32 %v1221_v30, %v420_v27  ;;  %v1439_v25 = vsel (!%p1727_p11), %vm1375_vm8, %v1343_v11, %v1407_v20  ;;  %v1410_v26 = vmul.f32 (!%p1727_p11), 0.1, %v1346_v15  ;;  %vm1379_vm12 = vcmp.ge.f32.partialorder (!%p1727_p11), %v1347_v16, 0.0  ;;  %v1316_v2 = vld [vmem:[#allocation2 + $0xc8] sm:$0xff] (!%p1727_p11)  ;;  %v1317_v7 = vld [vmem:[#allocation2 + $0xd0] sm:$0xff] (!%p1727_p11) }
 0x193   : > { %1285 = vst [vmem:[#allocation2 + $0xf0] sm:$0xff] %v1253_v31  ;;  %v1411_v27 = vmul.f32 (!%p1727_p11), 0.1, %v1347_v16  ;;  %1471 = vst [vmem:[%s2385_s3 + $0x40] sm:$0xff] (!%p1727_p11), %v1439_v25  ;;  %v1440_v28 = vsel (!%p1727_p11), %vm1376_vm9, %v1344_v12, %v1408_v23  ;;  %v1441_v29 = vsel (!%p1727_p11), %vm1377_vm10, %v1345_v14, %v1409_v24  ;;  %v1348_v30 = vadd.f32 (!%p1727_p11), %v2237_v44, %v1304_v17  ;;  %v1318_v8 = vld [vmem:[#allocation2 + $0xd8] sm:$0xff] (!%p1727_p11) }
 0x194   : > { %1286 = vst [vmem:[#allocation2 + $0xf8] sm:$0xff] %v1254_v32  ;;  %v1349_v31 = vadd.f32 (!%p1727_p11), %v2235_v43, %v1305_v18  ;;  %v1308_v32 = vld [vmem:[#allocation2 + $0x88] sm:$0xff] (!%p1727_p11)  ;;  %1472 = vst [vmem:[%s2385_s3 + $0x48] sm:$0xff] (!%p1727_p11), %v1440_v28  ;;  %v1442_v33 = vsel (!%p1727_p11), %vm1378_vm11, %v1346_v15, %v1410_v26  ;;  %v1350_v35 = vadd.f32 (!%p1727_p11), %v2237_v44, %v1306_v21  ;;  %vm1385_vm2 = vcmp.ge.f32.partialorder (!%p1727_p11), %v1353_v49, 0.0 }
 0x195   : > { %1473 = vst [vmem:[%s2385_s3 + $0x50] sm:$0xff] %v1441_v29  ;;  %v1443_v34 = vsel %vm1379_vm12, %v1347_v16, %v1411_v27  ;;  %v1351_v36 = vadd.f32 %v2235_v43, %v1307_v22  ;;  %1474 = vst [vmem:[%s2385_s3 + $0x58] sm:$0xff] %v1442_v33  ;;  %vm1380_vm13 = vcmp.ge.f32.partialorder %v1348_v30, 0.0  ;;  %v1412_v40 = vmul.f32 0.1, %v1348_v30 }
 0x196   : > { %1475 = vst [vmem:[%s2385_s3 + $0x60] sm:$0xff] %v1443_v34  ;;  %vm1381_vm14 = vcmp.ge.f32.partialorder %v1349_v31, 0.0  ;;  %v1413_v41 = vmul.f32 0.1, %v1349_v31  ;;  %vm1382_vm15 = vcmp.ge.f32.partialorder %v1350_v35, 0.0  ;;  %v1352_v48 = vadd.f32 %v2237_v44, %v1308_v32 }
 0x197   : > { %v1414_v42 = vmul.f32 0.1, %v1350_v35  ;;  %vm1383_vm0 = vcmp.ge.f32.partialorder %v1351_v36, 0.0  ;;  %v1415_v45 = vmul.f32 0.1, %v1351_v36  ;;  %v1444_v46 = vsel %vm1380_vm13, %v1348_v30, %v1412_v40 }
 0x198   : > { %v1445_v47 = vsel %vm1381_vm14, %v1349_v31, %v1413_v41  ;;  %1476 = vst [vmem:[%s2385_s3 + $0x68] sm:$0xff] %v1444_v46  ;;  %vm1384_vm1 = vcmp.ge.f32.partialorder %v1352_v48, 0.0  ;;  %v1416_v58 = vmul.f32 0.1, %v1352_v48  ;;  %v1417_v59 = vmul.f32 0.1, %v1353_v49 }
 0x199   : > { %1477 = vst [vmem:[%s2385_s3 + $0x70] sm:$0xff] %v1445_v47  ;;  %v1446_v51 = vsel %vm1382_vm15, %v1350_v35, %v1414_v42  ;;  %v1447_v52 = vsel %vm1383_vm0, %v1351_v36, %v1415_v45  ;;  %vm1386_vm3 = vcmp.ge.f32.partialorder %v1354_v53, 0.0  ;;  %v1418_v60 = vmul.f32 0.1, %v1354_v53  ;;  %v1319_v9 = vld [vmem:[#allocation2 + $0xe0] sm:$0xff]  ;;  %v1320_v22 = vld [vmem:[#allocation2 + $0xe8] sm:$0xff] }
 0x19a   : > { %1478 = vst [vmem:[%s2385_s3 + $0x78] sm:$0xff] %v1446_v51  ;;  %1479 = vst [vmem:[%s2385_s3 + $0x80] sm:$0xff] %v1447_v52  ;;  %vm1387_vm4 = vcmp.ge.f32.partialorder %v1355_v54, 0.0  ;;  %v1419_v61 = vmul.f32 0.1, %v1355_v54  ;;  %v1448_v62 = vsel %vm1384_vm1, %v1352_v48, %v1416_v58  ;;  %v1449_v63 = vsel %vm1385_vm2, %v1353_v49, %v1417_v59  ;;  %v1321_v23 = vld [vmem:[#allocation2 + $0xf0] sm:$0xff] }
 0x19b   : > { %v1356_v0 = vadd.f32 %v2237_v44, %v1312_v50  ;;  %v1357_v1 = vadd.f32 %v2235_v43, %v1313_v55  ;;  %1480 = vst [vmem:[%s2385_s3 + $0x88] sm:$0xff] %v1448_v62  ;;  %1481 = vst [vmem:[%s2385_s3 + $0x90] sm:$0xff] %v1449_v63  ;;  %v1450_v3 = vsel %vm1386_vm3, %v1354_v53, %v1418_v60  ;;  %v1322_v24 = vld [vmem:[#allocation2 + $0xf8] sm:$0xff] }
 0x19c   : > { %v1451_v4 = vsel %vm1387_vm4, %v1355_v54, %v1419_v61  ;;  %v1358_v5 = vadd.f32 %v2237_v44, %v1314_v56  ;;  %v1359_v6 = vadd.f32 %v2235_v43, %v1315_v57  ;;  %1482 = vst [vmem:[%s2385_s3 + $0x98] sm:$0xff] %v1450_v3  ;;  %v1360_v16 = vadd.f32 %v2237_v44, %v1316_v2 }
 0x19d   : > { %1483 = vst [vmem:[%s2385_s3 + $0xa0] sm:$0xff] %v1451_v4  ;;  %vm1388_vm5 = vcmp.ge.f32.partialorder %v1356_v0, 0.0  ;;  %v1420_v10 = vmul.f32 0.1, %v1356_v0  ;;  %vm1389_vm6 = vcmp.ge.f32.partialorder %v1357_v1, 0.0  ;;  %v1361_v17 = vadd.f32 %v2235_v43, %v1317_v7 }
 0x19e   : > { %v1421_v11 = vmul.f32 0.1, %v1357_v1  ;;  %vm1390_vm7 = vcmp.ge.f32.partialorder %v1358_v5, 0.0  ;;  %v1422_v12 = vmul.f32 0.1, %v1358_v5  ;;  %vm1391_vm8 = vcmp.ge.f32.partialorder %v1359_v6, 0.0 }
 0x19f   : > { %v1423_v13 = vmul.f32 0.1, %v1359_v6  ;;  %v1452_v14 = vsel %vm1388_vm5, %v1356_v0, %v1420_v10  ;;  %v1362_v20 = vadd.f32 %v2237_v44, %v1318_v8  ;;  %v1363_v21 = vadd.f32 %v2235_v43, %v1319_v9 }
 0x1a0   : > { %v1453_v15 = vsel %vm1389_vm6, %v1357_v1, %v1421_v11  ;;  %1484 = vst [vmem:[%s2385_s3 + $0xa8] sm:$0xff] %v1452_v14  ;;  %v1454_v18 = vsel %vm1390_vm7, %v1358_v5, %v1422_v12  ;;  %vm1392_vm9 = vcmp.ge.f32.partialorder %v1360_v16, 0.0  ;;  %v1424_v25 = vmul.f32 0.1, %v1360_v16 }
 0x1a1   : > { %1485 = vst [vmem:[%s2385_s3 + $0xb0] sm:$0xff] %v1453_v15  ;;  %v1455_v19 = vsel %vm1391_vm8, %v1359_v6, %v1423_v13  ;;  %1486 = vst [vmem:[%s2385_s3 + $0xb8] sm:$0xff] %v1454_v18  ;;  %vm1393_vm10 = vcmp.ge.f32.partialorder %v1361_v17, 0.0  ;;  %v1425_v26 = vmul.f32 0.1, %v1361_v17  ;;  %vm1394_vm11 = vcmp.ge.f32.partialorder %v1362_v20, 0.0 }
 0x1a2   : > { %1487 = vst [vmem:[%s2385_s3 + $0xc0] sm:$0xff] %v1455_v19  ;;  %v1426_v27 = vmul.f32 0.1, %v1362_v20  ;;  %vm1395_vm12 = vcmp.ge.f32.partialorder %v1363_v21, 0.0  ;;  %v1427_v28 = vmul.f32 0.1, %v1363_v21  ;;  %v1456_v29 = vsel %vm1392_vm9, %v1360_v16, %v1424_v25 }
 0x1a3   : > { %v1457_v30 = vsel %vm1393_vm10, %v1361_v17, %v1425_v26  ;;  %v1364_v31 = vadd.f32 %v2237_v44, %v1320_v22  ;;  %v1365_v32 = vadd.f32 %v2235_v43, %v1321_v23  ;;  %1488 = vst [vmem:[%s2385_s3 + $0xc8] sm:$0xff] %v1456_v29  ;;  %v1366_v35 = vadd.f32 %v2237_v44, %v1322_v24 }
 0x1a4   : > { %1489 = vst [vmem:[%s2385_s3 + $0xd0] sm:$0xff] %v1457_v30  ;;  %v1458_v33 = vsel %vm1394_vm11, %v1362_v20, %v1426_v27  ;;  %v1459_v34 = vsel %vm1395_vm12, %v1363_v21, %v1427_v28 }
 0x1a5   : > { %1490 = vst [vmem:[%s2385_s3 + $0xd8] sm:$0xff] %v1458_v33  ;;  %1491 = vst [vmem:[%s2385_s3 + $0xe0] sm:$0xff] %v1459_v34  ;;  %vm1396_vm13 = vcmp.ge.f32.partialorder %v1364_v31, 0.0  ;;  %v1428_v43 = vmul.f32 0.1, %v1364_v31  ;;  %vm1397_vm14 = vcmp.ge.f32.partialorder %v1365_v32, 0.0 }
 0x1a6   : > { %v1429_v36 = vmul.f32 0.1, %v1365_v32  ;;  %vm1398_vm15 = vcmp.ge.f32.partialorder %v1366_v35, 0.0  ;;  %v1430_v37 = vmul.f32 0.1, %v1366_v35 }
 0x1a7   : > { %v1460_v38 = vsel %vm1396_vm13, %v1364_v31, %v1428_v43 }
 0x1a8   : > { %v1461_v39 = vsel %vm1397_vm14, %v1365_v32, %v1429_v36  ;;  %1492 = vst [vmem:[%s2385_s3 + $0xe8] sm:$0xff] %v1460_v38  ;;  %v1462_v44 = vsel %vm1398_vm15, %v1366_v35, %v1430_v37 }
 0x1a9   : > { %1493 = vst [vmem:[%s2385_s3 + $0xf0] sm:$0xff] %v1461_v39  ;;  %1494 = vst [vmem:[%s2385_s3 + $0xf8] sm:$0xff] %v1462_v44 }
 0x1aa PF: > { %s13_s16 = sadd.s32 1, %s1989_s16   ;;  %s2386_s12 = smov %s1977_s13 }
 0x1ab   : > { %p10_p12 = scmp.ge.s32.totalorder %s13_s16, 6   ;;  %s2387_s13 = smov %s2047_s20 }
 0x1ac   : > { %s2388_s14 = smov %s1985_s15  ;;  %s2389_s15 = smov %s2391_s17 }
 0x1ad   :  { %12 = sbr.rel (!%p10_p12) target bundleno = 3 (0x3), region = 104 }

// kernel: _forward_arrays.10
= control target key start
LH: loop header
LB: loop body
LE: loop exit
PB: predicated region body
PF: predicated region fallthrough
CT: control target
= control target key end

     0   :  { %s2162_s0 = inlined_call_operand.vmem [shape: bf16[32,4096], index: 0, kind: input, shape index: {}]   ;;  %s2163_s1 = inlined_call_operand.vmem [shape: bf16[4096,512], index: 1, kind: input, shape index: {}]   ;;  %s2164_s2 = inlined_call_operand.vmem [shape: f32[1,512], index: 2, kind: input, shape index: {}]   ;;  %s2165_s3 = inlined_call_operand.vmem [shape: f32[32,512], index: 3, kind: output, shape index: {}]  }
   0x1   :  { %2167 = sst [smem:[#allocation7_spill]] %s2162_s0 }
   0x2   :  { %2168 = sst [smem:[#allocation8_spill]] %s2163_s1 }
   0x3   :  { %s1764_s12 = smov 0   ;;  %s1766_s13 = smov 0  }
   0x4   :  { %s1768_s14 = smov 0   ;;  %s1770_s15 = smov 0  }
   0x5   :  { %s1772_s16 = smov 0   ;;  %s1774_s17 = smov 0  }
   0x6   :  { %s1776_s18 = smov 0   ;;  %s1778_s19 = smov 0  }
   0x7   :  { %s1780_s20 = smov 0   ;;  %s1782_s21 = smov 0  }
   0x8   :  { %s1784_s22 = smov 0  }
   0x9 LB: > { %s1351_s23 = sadd.s32 4294967295, %s1741_s22   ;;  %s25_s24 = sadd.s32 1, %s1733_s20  ;;  %s1741_s22 = sphi %s1784_s22, %s13_s22   ;;  %s1737_s21 = sphi %s1782_s21, %s2185_s21   ;;  %s1733_s20 = sphi %s1780_s20, %s2184_s20   ;;  %s1729_s19 = sphi %s1778_s19, %s2183_s19   ;;  %s1725_s18 = sphi %s1776_s18, %s2182_s18   ;;  %s1721_s17 = sphi %s1774_s17, %s2181_s17   ;;  %s1717_s16 = sphi %s1772_s16, %s2180_s16   ;;  %s1713_s15 = sphi %s1770_s15, %s2179_s15   ;;  %s1709_s14 = sphi %s1768_s14, %s2178_s14   ;;  %s1705_s13 = sphi %s1766_s13, %s2177_s13   ;;  %s1701_s12 = sphi %s1764_s12, %s2176_s12  }
   0xa   : > { %p26_p0 = scmp.ge.s32.totalorder %s25_s24, 8  ;;  %s28_s25 = sadd.s32 1, %s1737_s21 }
   0xb   : > { %s41_s26 = sadd.s32 1, %s1721_s17  ;;  %p48_p1 = scmp.ne.s32.totalorder %s1721_s17, %s1717_s16 }
   0xc   : > { %s2187_s24 = smov (%p26_p0, %s25_s24), 0  ;;  %s2189_s25 = smov (!%p26_p0, %s28_s25), %s1737_s21 }
   0xd   : > { %s37_s27 = ssub.s32 %s1733_s20, %s2187_s24  ;;  %p49_p2 = scmp.eq.s32.totalorder %s1741_s22, 0 }
   0xe   : > { %p30_p3 = scmp.ge.s32.totalorder %s2189_s25, 2  ;;  %p39_p4 = scmp.eq.s32.totalorder %s37_s27, 0 }
   0xf   : > { %p1831_p5 = por %p49_p2, %p48_p1  ;;  %s69_s29 = sadd.s32 1, %s1713_s15 }
  0x10   : > { %s2191_s25 = smov (%p30_p3, %s2189_s25), 0  ;;  %p76_p6 = scmp.ne.s32.totalorder %s1713_s15, %s1709_s14 }
  0x11   : > { %2170 = sst [smem:[#allocation6_spill]] %s2191_s25  ;;  %s65_s4 = ssub.s32 %s1737_s21, %s2191_s25 }
  0x12   : > { %s1839_s30 = scalar_select %p39_p4, %s1721_s17, %s41_s26  }
  0x13   : > { %s66_s5 = sor.u32 %s65_s4, %s37_s27  ;;  %p121_p7 = scmp.eq.s32.totalorder %s65_s4, 0 }
  0x14   : > { %p67_p8 = scmp.eq.s32.totalorder %s66_s5, 0  ;;  %p1845_p9 = por %p76_p6, %p49_p2 }
  0x15   : > { %s123_s7 = sadd.s32 1, %s1705_s13  ;;  %p133_p10 = scmp.ne.s32.totalorder %s1705_s13, %s1701_s12 }
  0x16   : > { %s1853_s8 = scalar_select %p67_p8, %s1713_s15, %s69_s29  }
  0x17   : > { %s1856_s9 = scalar_select %p121_p7, %s1705_s13, %s123_s7  }
  0x18   : > { %p134_p11 = scmp.eq.s32.totalorder %s1351_s23, 15  ;;  %p1354_p13 = scmp.ge.s32.totalorder %s1741_s22, 16 }
  0x1a   : > { %p1858_p12 = por %p134_p11, %p133_p10  ;;  %156 = sbr.rel (%p1354_p13) target bundleno = 89 (0x59), region = 16 }
  0x21   : > { %159 = sbr.rel (!%p1831_p5) target bundleno = 47 (0x2f), region = 20  ;;  %s161_s11 = sand.u32 (%p1831_p5), 1, %s1721_s17  }
  0x22   : > { %s1447_s26 = sshll.u32 (%p1831_p5), %s1733_s20, 4  ;;  %s1355_s27 = sshll.u32 (%p1831_p5), %s161_s11, 6 }
  0x23   : > { %s2173_s0 = sld [smem:[#allocation7_spill]] (%p1831_p5)  ;;  %s163_s23 = scalar_lea.vmem (%p1831_p5), [#allocation3], %s1355_s27 }
  0x29   : > { %s169_s5 = scalar_lea.vmem %s2173_s0, %s1447_s26 }
  0x2a   : > { %v182_v0 = vld [vmem:[%s169_s5] sm:$0xff]  ;;  %v184_v1 = vld [vmem:[%s169_s5 + $0x8] sm:$0xff] }
  0x2b   : > { %v186_v2 = vld [vmem:[%s169_s5 + $0x80] sm:$0xff]  ;;  %183 = vst [vmem:[%s163_s23] sm:$0xff] %v182_v0  ;;  %185 = vst [vmem:[%s163_s23 + $0x8] sm:$0xff] %v184_v1  ;;  %v188_v3 = vld [vmem:[%s169_s5 + $0x88] sm:$0xff] }
  0x2c   : > { %187 = vst [vmem:[%s163_s23 + $0x10] sm:$0xff] %v186_v2  ;;  %v190_v4 = vld [vmem:[%s169_s5 + $0x100] sm:$0xff]  ;;  %v192_v5 = vld [vmem:[%s169_s5 + $0x108] sm:$0xff]  ;;  %189 = vst [vmem:[%s163_s23 + $0x18] sm:$0xff] %v188_v3 }
  0x2d   : > { %191 = vst [vmem:[%s163_s23 + $0x20] sm:$0xff] %v190_v4  ;;  %193 = vst [vmem:[%s163_s23 + $0x28] sm:$0xff] %v192_v5  ;;  %v194_v6 = vld [vmem:[%s169_s5 + $0x180] sm:$0xff]  ;;  %v196_v7 = vld [vmem:[%s169_s5 + $0x188] sm:$0xff] }
  0x2e   : > { %195 = vst [vmem:[%s163_s23 + $0x30] sm:$0xff] %v194_v6  ;;  %197 = vst [vmem:[%s163_s23 + $0x38] sm:$0xff] %v196_v7 }
  0x2f PF: > { %203 = sbr.rel (!%p1845_p9) target bundleno = 89 (0x59), region = 43  ;;  %s205_s28 = sand.u32 (%p1845_p9), 1, %s1713_s15  }
  0x30   : > { %s1360_s7 = sshll.u32 (%p1845_p9), %s1737_s21, 1  ;;  %s1358_s11 = sshll.u32 (%p1845_p9), %s205_s28, 9 }
  0x31   : > { %s1448_s26 = sshll.u32 (%p1845_p9), %s1733_s20, 8  ;;  %s2174_s1 = sld [smem:[#allocation8_spill]] (%p1845_p9) }
  0x32   : > { %s211_s27 = sadd.s32 (%p1845_p9), %s1448_s26, %s1360_s7  ;;  %s1883_s6 = scalar_lea.vmem (%p1845_p9), [#allocation4], %s1358_s11 }
  0x33   : > { %s1362_s29 = sshll.u32 (%p1845_p9), %s211_s27, 2 }
  0x37   : > { %s1878_s25 = scalar_lea.vmem %s2174_s1, %s1362_s29 }
  0x38   : > { %v367_v8 = vld [vmem:[%s1878_s25] sm:$0xff]  ;;  %v369_v9 = vld [vmem:[%s1878_s25 + $0x10] sm:$0xff] }
  0x39   : > { %v371_v10 = vld [vmem:[%s1878_s25 + $0x20] sm:$0xff]  ;;  %368 = vst [vmem:[%s1883_s6] sm:$0xff] %v367_v8  ;;  %370 = vst [vmem:[%s1883_s6 + $0x8] sm:$0xff] %v369_v9  ;;  %v373_v11 = vld [vmem:[%s1878_s25 + $0x30] sm:$0xff] }
  0x3a   : > { %372 = vst [vmem:[%s1883_s6 + $0x10] sm:$0xff] %v371_v10  ;;  %v375_v12 = vld [vmem:[%s1878_s25 + $0x40] sm:$0xff]  ;;  %v377_v13 = vld [vmem:[%s1878_s25 + $0x50] sm:$0xff]  ;;  %374 = vst [vmem:[%s1883_s6 + $0x18] sm:$0xff] %v373_v11 }
  0x3b   : > { %376 = vst [vmem:[%s1883_s6 + $0x20] sm:$0xff] %v375_v12  ;;  %378 = vst [vmem:[%s1883_s6 + $0x28] sm:$0xff] %v377_v13  ;;  %v379_v14 = vld [vmem:[%s1878_s25 + $0x60] sm:$0xff]  ;;  %v381_v15 = vld [vmem:[%s1878_s25 + $0x70] sm:$0xff] }
  0x3c   : > { %v383_v16 = vld [vmem:[%s1878_s25 + $0x80] sm:$0xff]  ;;  %380 = vst [vmem:[%s1883_s6 + $0x30] sm:$0xff] %v379_v14  ;;  %382 = vst [vmem:[%s1883_s6 + $0x38] sm:$0xff] %v381_v15  ;;  %v385_v17 = vld [vmem:[%s1878_s25 + $0x90] sm:$0xff] }
  0x3d   : > { %384 = vst [vmem:[%s1883_s6 + $0x40] sm:$0xff] %v383_v16  ;;  %v387_v18 = vld [vmem:[%s1878_s25 + $0xa0] sm:$0xff]  ;;  %v389_v19 = vld [vmem:[%s1878_s25 + $0xb0] sm:$0xff]  ;;  %386 = vst [vmem:[%s1883_s6 + $0x48] sm:$0xff] %v385_v17 }
  0x3e   : > { %388 = vst [vmem:[%s1883_s6 + $0x50] sm:$0xff] %v387_v18  ;;  %390 = vst [vmem:[%s1883_s6 + $0x58] sm:$0xff] %v389_v19  ;;  %v391_v20 = vld [vmem:[%s1878_s25 + $0xc0] sm:$0xff]  ;;  %v393_v21 = vld [vmem:[%s1878_s25 + $0xd0] sm:$0xff] }
  0x3f   : > { %v395_v22 = vld [vmem:[%s1878_s25 + $0xe0] sm:$0xff]  ;;  %392 = vst [vmem:[%s1883_s6 + $0x60] sm:$0xff] %v391_v20  ;;  %394 = vst [vmem:[%s1883_s6 + $0x68] sm:$0xff] %v393_v21  ;;  %v397_v23 = vld [vmem:[%s1878_s25 + $0xf0] sm:$0xff] }
  0x40   : > { %396 = vst [vmem:[%s1883_s6 + $0x70] sm:$0xff] %v395_v22  ;;  %v399_v24 = vld [vmem:[%s1878_s25 + $0x100] sm:$0xff]  ;;  %v401_v25 = vld [vmem:[%s1878_s25 + $0x110] sm:$0xff]  ;;  %398 = vst [vmem:[%s1883_s6 + $0x78] sm:$0xff] %v397_v23 }
  0x41   : > { %400 = vst [vmem:[%s1883_s6 + $0x80] sm:$0xff] %v399_v24  ;;  %402 = vst [vmem:[%s1883_s6 + $0x88] sm:$0xff] %v401_v25  ;;  %v403_v26 = vld [vmem:[%s1878_s25 + $0x120] sm:$0xff]  ;;  %v405_v27 = vld [vmem:[%s1878_s25 + $0x130] sm:$0xff] }
  0x42   : > { %v407_v28 = vld [vmem:[%s1878_s25 + $0x140] sm:$0xff]  ;;  %404 = vst [vmem:[%s1883_s6 + $0x90] sm:$0xff] %v403_v26  ;;  %406 = vst [vmem:[%s1883_s6 + $0x98] sm:$0xff] %v405_v27  ;;  %v409_v29 = vld [vmem:[%s1878_s25 + $0x150] sm:$0xff] }
  0x43   : > { %408 = vst [vmem:[%s1883_s6 + $0xa0] sm:$0xff] %v407_v28  ;;  %v411_v30 = vld [vmem:[%s1878_s25 + $0x160] sm:$0xff]  ;;  %v413_v31 = vld [vmem:[%s1878_s25 + $0x170] sm:$0xff]  ;;  %410 = vst [vmem:[%s1883_s6 + $0xa8] sm:$0xff] %v409_v29 }
  0x44   : > { %412 = vst [vmem:[%s1883_s6 + $0xb0] sm:$0xff] %v411_v30  ;;  %414 = vst [vmem:[%s1883_s6 + $0xb8] sm:$0xff] %v413_v31  ;;  %v415_v32 = vld [vmem:[%s1878_s25 + $0x180] sm:$0xff]  ;;  %v417_v33 = vld [vmem:[%s1878_s25 + $0x190] sm:$0xff] }
  0x45   : > { %v419_v34 = vld [vmem:[%s1878_s25 + $0x1a0] sm:$0xff]  ;;  %416 = vst [vmem:[%s1883_s6 + $0xc0] sm:$0xff] %v415_v32  ;;  %418 = vst [vmem:[%s1883_s6 + $0xc8] sm:$0xff] %v417_v33  ;;  %v421_v35 = vld [vmem:[%s1878_s25 + $0x1b0] sm:$0xff] }
  0x46   : > { %420 = vst [vmem:[%s1883_s6 + $0xd0] sm:$0xff] %v419_v34  ;;  %v423_v36 = vld [vmem:[%s1878_s25 + $0x1c0] sm:$0xff]  ;;  %v425_v37 = vld [vmem:[%s1878_s25 + $0x1d0] sm:$0xff]  ;;  %422 = vst [vmem:[%s1883_s6 + $0xd8] sm:$0xff] %v421_v35 }
  0x47   : > { %424 = vst [vmem:[%s1883_s6 + $0xe0] sm:$0xff] %v423_v36  ;;  %426 = vst [vmem:[%s1883_s6 + $0xe8] sm:$0xff] %v425_v37  ;;  %v427_v38 = vld [vmem:[%s1878_s25 + $0x1e0] sm:$0xff]  ;;  %v429_v39 = vld [vmem:[%s1878_s25 + $0x1f0] sm:$0xff] }
  0x48   : > { %v431_v40 = vld [vmem:[%s1878_s25 + $0x200] sm:$0xff]  ;;  %428 = vst [vmem:[%s1883_s6 + $0xf0] sm:$0xff] %v427_v38  ;;  %430 = vst [vmem:[%s1883_s6 + $0xf8] sm:$0xff] %v429_v39  ;;  %v433_v41 = vld [vmem:[%s1878_s25 + $0x210] sm:$0xff] }
  0x49   : > { %432 = vst [vmem:[%s1883_s6 + $0x100] sm:$0xff] %v431_v40  ;;  %v435_v42 = vld [vmem:[%s1878_s25 + $0x220] sm:$0xff]  ;;  %v437_v43 = vld [vmem:[%s1878_s25 + $0x230] sm:$0xff]  ;;  %434 = vst [vmem:[%s1883_s6 + $0x108] sm:$0xff] %v433_v41 }
  0x4a   : > { %436 = vst [vmem:[%s1883_s6 + $0x110] sm:$0xff] %v435_v42  ;;  %438 = vst [vmem:[%s1883_s6 + $0x118] sm:$0xff] %v437_v43  ;;  %v439_v44 = vld [vmem:[%s1878_s25 + $0x240] sm:$0xff]  ;;  %v441_v45 = vld [vmem:[%s1878_s25 + $0x250] sm:$0xff] }
  0x4b   : > { %v443_v46 = vld [vmem:[%s1878_s25 + $0x260] sm:$0xff]  ;;  %440 = vst [vmem:[%s1883_s6 + $0x120] sm:$0xff] %v439_v44  ;;  %442 = vst [vmem:[%s1883_s6 + $0x128] sm:$0xff] %v441_v45  ;;  %v445_v47 = vld [vmem:[%s1878_s25 + $0x270] sm:$0xff] }
  0x4c   : > { %444 = vst [vmem:[%s1883_s6 + $0x130] sm:$0xff] %v443_v46  ;;  %v447_v48 = vld [vmem:[%s1878_s25 + $0x280] sm:$0xff]  ;;  %v449_v49 = vld [vmem:[%s1878_s25 + $0x290] sm:$0xff]  ;;  %446 = vst [vmem:[%s1883_s6 + $0x138] sm:$0xff] %v445_v47 }
  0x4d   : > { %448 = vst [vmem:[%s1883_s6 + $0x140] sm:$0xff] %v447_v48  ;;  %450 = vst [vmem:[%s1883_s6 + $0x148] sm:$0xff] %v449_v49  ;;  %v451_v50 = vld [vmem:[%s1878_s25 + $0x2a0] sm:$0xff]  ;;  %v453_v51 = vld [vmem:[%s1878_s25 + $0x2b0] sm:$0xff] }
  0x4e   : > { %v455_v52 = vld [vmem:[%s1878_s25 + $0x2c0] sm:$0xff]  ;;  %452 = vst [vmem:[%s1883_s6 + $0x150] sm:$0xff] %v451_v50  ;;  %454 = vst [vmem:[%s1883_s6 + $0x158] sm:$0xff] %v453_v51  ;;  %v457_v53 = vld [vmem:[%s1878_s25 + $0x2d0] sm:$0xff] }
  0x4f   : > { %456 = vst [vmem:[%s1883_s6 + $0x160] sm:$0xff] %v455_v52  ;;  %v459_v54 = vld [vmem:[%s1878_s25 + $0x2e0] sm:$0xff]  ;;  %v461_v55 = vld [vmem:[%s1878_s25 + $0x2f0] sm:$0xff]  ;;  %458 = vst [vmem:[%s1883_s6 + $0x168] sm:$0xff] %v457_v53 }
  0x50   : > { %460 = vst [vmem:[%s1883_s6 + $0x170] sm:$0xff] %v459_v54  ;;  %462 = vst [vmem:[%s1883_s6 + $0x178] sm:$0xff] %v461_v55  ;;  %v463_v56 = vld [vmem:[%s1878_s25 + $0x300] sm:$0xff]  ;;  %v465_v57 = vld [vmem:[%s1878_s25 + $0x310] sm:$0xff] }
  0x51   : > { %v467_v58 = vld [vmem:[%s1878_s25 + $0x320] sm:$0xff]  ;;  %464 = vst [vmem:[%s1883_s6 + $0x180] sm:$0xff] %v463_v56  ;;  %466 = vst [vmem:[%s1883_s6 + $0x188] sm:$0xff] %v465_v57  ;;  %v469_v59 = vld [vmem:[%s1878_s25 + $0x330] sm:$0xff] }
  0x52   : > { %468 = vst [vmem:[%s1883_s6 + $0x190] sm:$0xff] %v467_v58  ;;  %v471_v60 = vld [vmem:[%s1878_s25 + $0x340] sm:$0xff]  ;;  %v473_v61 = vld [vmem:[%s1878_s25 + $0x350] sm:$0xff]  ;;  %470 = vst [vmem:[%s1883_s6 + $0x198] sm:$0xff] %v469_v59 }
  0x53   : > { %472 = vst [vmem:[%s1883_s6 + $0x1a0] sm:$0xff] %v471_v60  ;;  %474 = vst [vmem:[%s1883_s6 + $0x1a8] sm:$0xff] %v473_v61  ;;  %v475_v62 = vld [vmem:[%s1878_s25 + $0x360] sm:$0xff]  ;;  %v477_v63 = vld [vmem:[%s1878_s25 + $0x370] sm:$0xff] }
  0x54   : > { %v479_v0 = vld [vmem:[%s1878_s25 + $0x380] sm:$0xff]  ;;  %476 = vst [vmem:[%s1883_s6 + $0x1b0] sm:$0xff] %v475_v62  ;;  %478 = vst [vmem:[%s1883_s6 + $0x1b8] sm:$0xff] %v477_v63  ;;  %v481_v1 = vld [vmem:[%s1878_s25 + $0x390] sm:$0xff] }
  0x55   : > { %480 = vst [vmem:[%s1883_s6 + $0x1c0] sm:$0xff] %v479_v0  ;;  %v483_v2 = vld [vmem:[%s1878_s25 + $0x3a0] sm:$0xff]  ;;  %v485_v3 = vld [vmem:[%s1878_s25 + $0x3b0] sm:$0xff]  ;;  %482 = vst [vmem:[%s1883_s6 + $0x1c8] sm:$0xff] %v481_v1 }
  0x56   : > { %484 = vst [vmem:[%s1883_s6 + $0x1d0] sm:$0xff] %v483_v2  ;;  %486 = vst [vmem:[%s1883_s6 + $0x1d8] sm:$0xff] %v485_v3  ;;  %v487_v4 = vld [vmem:[%s1878_s25 + $0x3c0] sm:$0xff]  ;;  %v489_v5 = vld [vmem:[%s1878_s25 + $0x3d0] sm:$0xff] }
  0x57   : > { %v491_v6 = vld [vmem:[%s1878_s25 + $0x3e0] sm:$0xff]  ;;  %488 = vst [vmem:[%s1883_s6 + $0x1e0] sm:$0xff] %v487_v4  ;;  %490 = vst [vmem:[%s1883_s6 + $0x1e8] sm:$0xff] %v489_v5  ;;  %v493_v7 = vld [vmem:[%s1878_s25 + $0x3f0] sm:$0xff] }
  0x58   : > { %492 = vst [vmem:[%s1883_s6 + $0x1f0] sm:$0xff] %v491_v6  ;;  %494 = vst [vmem:[%s1883_s6 + $0x1f8] sm:$0xff] %v493_v7 }
  0x59 PF: > { %p1363_p0 = scmp.ge.s32.totalorder %s1741_s22, 1  ;;  %p507_p1 = scmp.lt.s32.totalorder %s1741_s22, 17 }
  0x5b   : > { %p508_p2 = pnand %p1363_p0, %p507_p1 }
  0x5c   : > { %s514_s0 = sand.u32 (!%p508_p2), 1, %s1717_s16   ;;  %s521_s5 = sand.u32 (!%p508_p2), 1, %s1709_s14  }
  0x5d   : > { %511 = sbr.rel (%p508_p2) target bundleno = 422 (0x1a6), region = 85  ;;  %s1364_s23 = sshll.u32 (!%p508_p2), %s514_s0, 6 }
  0x5e   : > { %s1365_s28 = sshll.u32 (!%p508_p2), %s521_s5, 9  ;;  %s548_s7 = sand.u32 (!%p508_p2), 1, %s1701_s12  }
  0x5f   : > { %s1367_s11 = sshll.u32 (!%p508_p2), %s1729_s19, 1  ;;  %s1366_s25 = sshll.u32 (!%p508_p2), %s548_s7, 6 }
  0x60   : > { %p556_p3 = scmp.lt.s32.totalorder (!%p508_p2), %s1367_s11, 3  ;;  %s2022_s4 = scalar_lea.vmem (!%p508_p2), [#allocation3], %s1364_s23 }
  0x61   : > { %s2024_s6 = scalar_lea.vmem (!%p508_p2), [#allocation4], %s1365_s28  ;;  %s2026_s1 = scalar_lea.vmem (!%p508_p2), [#allocation5], %s1366_s25 }
  0x62   : > { %p1368_p4 = scmp.ne.s32.totalorder (!%p508_p2), %s1725_s18, 0 }
  0x64   : > { %s2193_s11 = smov (!%p556_p3, %s1367_s11), 3  ;;  %565 = sbr.rel (%p1368_p4) target bundleno = 107 (0x6b), region = 97 }
  0x65   : > { %s558_s29 = scalar_lea.vmem %s2164_s2, %s2193_s11  ;;  %v1743_v8 = vmov (!%p1368_p4), 0.0  }
  0x66   : > { %566 = vst [vmem:[#allocation2] sm:$0xff] (!%p1368_p4), %v1743_v8  ;;  %567 = vst [vmem:[#allocation2 + $0x8] sm:$0xff] (!%p1368_p4), %v1743_v8 }
  0x67   : > { %568 = vst [vmem:[#allocation2 + $0x10] sm:$0xff] (!%p1368_p4), %v1743_v8  ;;  %569 = vst [vmem:[#allocation2 + $0x18] sm:$0xff] (!%p1368_p4), %v1743_v8 }
  0x68   : > { %570 = vst [vmem:[#allocation2 + $0x20] sm:$0xff] (!%p1368_p4), %v1743_v8  ;;  %571 = vst [vmem:[#allocation2 + $0x28] sm:$0xff] (!%p1368_p4), %v1743_v8 }
  0x69   : > { %572 = vst [vmem:[#allocation2 + $0x30] sm:$0xff] (!%p1368_p4), %v1743_v8  ;;  %573 = vst [vmem:[#allocation2 + $0x38] sm:$0xff] (!%p1368_p4), %v1743_v8 }
  0x6b PF: > { %v1547_v9 = vld [vmem:[%s2024_s6 + $0x4] ss:$8 sps:$4 sm:$0xff]   ;;  %v1551_v11 = vld [vmem:[%s2024_s6] ss:$8 sps:$4 sm:$0xff]   ;;  %v1553_v13 = vld [vmem:[%s2024_s6 + $0x14] ss:$8 sps:$4 sm:$0xff]  }
  0x6c   : > { %v1549_v10 = vld [vmem:[%s2024_s6 + $0x104] ss:$8 sps:$4 sm:$0xff]   ;;  %1014 = vmatprep.subr.bf16.mxu1 %v1547_v9  ;;  %v1552_v12 = vld [vmem:[%s2024_s6 + $0x100] ss:$8 sps:$4 sm:$0xff]   ;;  %v1555_v14 = vld [vmem:[%s2024_s6 + $0x114] ss:$8 sps:$4 sm:$0xff]  }
  0x6d   : > { %1067 = vmatprep.subr.bf16.mxu0 %v1549_v10  ;;  %1015 = vmatpush1.bf16.msra.mxu1 %v1551_v11  ;;  %v1557_v15 = vld [vmem:[%s2024_s6 + $0x10] ss:$8 sps:$4 sm:$0xff]   ;;  %v1559_v17 = vld [vmem:[%s2024_s6 + $0x24] ss:$8 sps:$4 sm:$0xff]   ;;  %v1563_v19 = vld [vmem:[%s2024_s6 + $0x20] ss:$8 sps:$4 sm:$0xff]  }
  0x6e   : > { %1068 = vmatpush1.bf16.msra.mxu0 %v1552_v12  ;;  %1016 = vmatprep.subr.bf16.mxu1 %v1553_v13  ;;  %v1558_v16 = vld [vmem:[%s2024_s6 + $0x110] ss:$8 sps:$4 sm:$0xff]   ;;  %v1561_v18 = vld [vmem:[%s2024_s6 + $0x124] ss:$8 sps:$4 sm:$0xff]   ;;  %v1564_v20 = vld [vmem:[%s2024_s6 + $0x120] ss:$8 sps:$4 sm:$0xff]  }
  0x6f   : > { %1069 = vmatprep.subr.bf16.mxu0 %v1555_v14  ;;  %v1565_v21 = vld [vmem:[%s2024_s6 + $0x34] ss:$8 sps:$4 sm:$0xff]   ;;  %v1569_v23 = vld [vmem:[%s2024_s6 + $0x30] ss:$8 sps:$4 sm:$0xff]   ;;  %v1571_v25 = vld [vmem:[%s2024_s6 + $0x44] ss:$8 sps:$4 sm:$0xff]  }
  0x70   : > { %v1567_v22 = vld [vmem:[%s2024_s6 + $0x134] ss:$8 sps:$4 sm:$0xff]   ;;  %v1570_v24 = vld [vmem:[%s2024_s6 + $0x130] ss:$8 sps:$4 sm:$0xff]   ;;  %v1573_v26 = vld [vmem:[%s2024_s6 + $0x144] ss:$8 sps:$4 sm:$0xff]  }
  0x71   : > { %1017 = vmatpush1.bf16.msra.mxu1 %v1557_v15  ;;  %v1575_v27 = vld [vmem:[%s2024_s6 + $0x40] ss:$8 sps:$4 sm:$0xff]   ;;  %v1577_v29 = vld [vmem:[%s2024_s6 + $0x54] ss:$8 sps:$4 sm:$0xff]   ;;  %v1581_v31 = vld [vmem:[%s2024_s6 + $0x50] ss:$8 sps:$4 sm:$0xff]  }
  0x72   : > { %1070 = vmatpush1.bf16.msra.mxu0 %v1558_v16  ;;  %1018 = vmatprep.subr.bf16.mxu1 %v1559_v17  ;;  %v1576_v28 = vld [vmem:[%s2024_s6 + $0x140] ss:$8 sps:$4 sm:$0xff]   ;;  %v1579_v30 = vld [vmem:[%s2024_s6 + $0x154] ss:$8 sps:$4 sm:$0xff]   ;;  %v1582_v32 = vld [vmem:[%s2024_s6 + $0x150] ss:$8 sps:$4 sm:$0xff]  }
  0x73   : > { %1071 = vmatprep.subr.bf16.mxu0 %v1561_v18  ;;  %v1583_v33 = vld [vmem:[%s2024_s6 + $0x64] ss:$8 sps:$4 sm:$0xff]   ;;  %v1587_v35 = vld [vmem:[%s2024_s6 + $0x60] ss:$8 sps:$4 sm:$0xff]   ;;  %v1589_v37 = vld [vmem:[%s2024_s6 + $0x74] ss:$8 sps:$4 sm:$0xff]  }
  0x74   : > { %v1585_v34 = vld [vmem:[%s2024_s6 + $0x164] ss:$8 sps:$4 sm:$0xff]   ;;  %v1588_v36 = vld [vmem:[%s2024_s6 + $0x160] ss:$8 sps:$4 sm:$0xff]   ;;  %v1591_v38 = vld [vmem:[%s2024_s6 + $0x174] ss:$8 sps:$4 sm:$0xff]  }
  0x75   : > { %1019 = vmatpush1.bf16.msra.mxu1 %v1563_v19  ;;  %v1593_v39 = vld [vmem:[%s2024_s6 + $0x70] ss:$8 sps:$4 sm:$0xff]   ;;  %v1595_v41 = vld [vmem:[%s2024_s6 + $0x84] ss:$8 sps:$4 sm:$0xff]   ;;  %v1599_v43 = vld [vmem:[%s2024_s6 + $0x80] ss:$8 sps:$4 sm:$0xff]  }
  0x76   : > { %1072 = vmatpush1.bf16.msra.mxu0 %v1564_v20  ;;  %1020 = vmatprep.subr.bf16.mxu1 %v1565_v21  ;;  %v1594_v40 = vld [vmem:[%s2024_s6 + $0x170] ss:$8 sps:$4 sm:$0xff]   ;;  %v1597_v42 = vld [vmem:[%s2024_s6 + $0x184] ss:$8 sps:$4 sm:$0xff]   ;;  %v1600_v44 = vld [vmem:[%s2024_s6 + $0x180] ss:$8 sps:$4 sm:$0xff]  }
  0x77   : > { %1073 = vmatprep.subr.bf16.mxu0 %v1567_v22  ;;  %v1601_v45 = vld [vmem:[%s2024_s6 + $0x94] ss:$8 sps:$4 sm:$0xff]   ;;  %v1605_v47 = vld [vmem:[%s2024_s6 + $0x90] ss:$8 sps:$4 sm:$0xff]   ;;  %v1607_v49 = vld [vmem:[%s2024_s6 + $0xa4] ss:$8 sps:$4 sm:$0xff]  }
  0x78   : > { %v1603_v46 = vld [vmem:[%s2024_s6 + $0x194] ss:$8 sps:$4 sm:$0xff]   ;;  %v1606_v48 = vld [vmem:[%s2024_s6 + $0x190] ss:$8 sps:$4 sm:$0xff]   ;;  %v1609_v50 = vld [vmem:[%s2024_s6 + $0x1a4] ss:$8 sps:$4 sm:$0xff]  }
  0x79   : > { %1021 = vmatpush1.bf16.msra.mxu1 %v1569_v23  ;;  %v1611_v51 = vld [vmem:[%s2024_s6 + $0xa0] ss:$8 sps:$4 sm:$0xff]   ;;  %v1613_v53 = vld [vmem:[%s2024_s6 + $0xb4] ss:$8 sps:$4 sm:$0xff]   ;;  %v1617_v55 = vld [vmem:[%s2024_s6 + $0xb0] ss:$8 sps:$4 sm:$0xff]  }
  0x7a   : > { %1074 = vmatpush1.bf16.msra.mxu0 %v1570_v24  ;;  %1022 = vmatprep.subr.bf16.mxu1 %v1571_v25  ;;  %v1612_v52 = vld [vmem:[%s2024_s6 + $0x1a0] ss:$8 sps:$4 sm:$0xff]   ;;  %v1615_v54 = vld [vmem:[%s2024_s6 + $0x1b4] ss:$8 sps:$4 sm:$0xff]   ;;  %v1618_v56 = vld [vmem:[%s2024_s6 + $0x1b0] ss:$8 sps:$4 sm:$0xff]  }
  0x7b   : > { %1075 = vmatprep.subr.bf16.mxu0 %v1573_v26  ;;  %v1619_v57 = vld [vmem:[%s2024_s6 + $0xc4] ss:$8 sps:$4 sm:$0xff]   ;;  %v1623_v61 = vld [vmem:[%s2024_s6 + $0xc0] ss:$8 sps:$4 sm:$0xff]   ;;  %v1625_v63 = vld [vmem:[%s2024_s6 + $0xd4] ss:$8 sps:$4 sm:$0xff]  }
  0x7c   : > { %v1645_v58 = vld [vmem:[%s2022_s4 + $0x4] ss:$16 sps:$4 sm:$0xff]   ;;  %v1648_v60 = vld [vmem:[%s2022_s4 + $0xc] ss:$16 sps:$4 sm:$0xff]   ;;  %v1624_v62 = vld [vmem:[%s2024_s6 + $0x1c0] ss:$8 sps:$4 sm:$0xff]  }
  0x7d   : > { %1023 = vmatpush1.bf16.msra.mxu1 %v1575_v27  ;;  %v1621_v59 = vld [vmem:[%s2024_s6 + $0x1c4] ss:$8 sps:$4 sm:$0xff]   ;;  %1046 = vmatprep.mubr.bf16.mxu1 %v1645_v58  ;;  %v1627_v0 = vld [vmem:[%s2024_s6 + $0x1d4] ss:$8 sps:$4 sm:$0xff]   ;;  %v1629_v1 = vld [vmem:[%s2024_s6 + $0xd0] ss:$8 sps:$4 sm:$0xff]  }
  0x7e   : > { %1076 = vmatpush1.bf16.msra.mxu0 %v1576_v28  ;;  %1024 = vmatprep.subr.bf16.mxu1 %v1577_v29  ;;  %v1630_v2 = vld [vmem:[%s2024_s6 + $0x1d0] ss:$8 sps:$4 sm:$0xff]   ;;  %v1631_v3 = vld [vmem:[%s2024_s6 + $0xe4] ss:$8 sps:$4 sm:$0xff]   ;;  %v1635_v5 = vld [vmem:[%s2024_s6 + $0xe0] ss:$8 sps:$4 sm:$0xff]  }
  0x7f   : > { %1077 = vmatprep.subr.bf16.mxu0 %v1579_v30  ;;  %1099 = vmatprep.mubr.bf16.mxu0 %v1648_v60  ;;  %v1633_v4 = vld [vmem:[%s2024_s6 + $0x1e4] ss:$8 sps:$4 sm:$0xff]   ;;  %v1636_v6 = vld [vmem:[%s2024_s6 + $0x1e0] ss:$8 sps:$4 sm:$0xff]   ;;  %v1637_v7 = vld [vmem:[%s2024_s6 + $0xf4] ss:$8 sps:$4 sm:$0xff]  }
  0x80   : > { %v1639_v8 = vld [vmem:[%s2024_s6 + $0x1f4] ss:$8 sps:$4 sm:$0xff]   ;;  %v1641_v9 = vld [vmem:[%s2024_s6 + $0xf0] ss:$8 sps:$4 sm:$0xff]   ;;  %v574_v18 = vld [vmem:[#allocation2] sm:$0xff]  ;;  %p1441_p5 = scmp.ne.s32.totalorder %s1725_s18, 7 }
  0x81   : > { %1025 = vmatpush1.bf16.msra.mxu1 %v1581_v31  ;;  %v1642_v10 = vld [vmem:[%s2024_s6 + $0x1f0] ss:$8 sps:$4 sm:$0xff]   ;;  %v1649_v13 = vld [vmem:[%s2022_s4 + $0x24] ss:$16 sps:$4 sm:$0xff]   ;;  %v1651_v14 = vld [vmem:[%s2022_s4 + $0x2c] ss:$16 sps:$4 sm:$0xff]  }
  0x82   : > { %1078 = vmatpush1.bf16.msra.mxu0 %v1582_v32  ;;  %1026 = vmatprep.subr.bf16.mxu1 %v1583_v33  ;;  %v1643_v11 = vld [vmem:[%s2022_s4] ss:$16 sps:$4 sm:$0xff]   ;;  %v1646_v12 = vld [vmem:[%s2022_s4 + $0x8] ss:$16 sps:$4 sm:$0xff]  }
  0x83   : > { %1079 = vmatprep.subr.bf16.mxu0 %v1585_v34  ;;  %v1653_v15 = vld [vmem:[%s2022_s4 + $0x20] ss:$16 sps:$4 sm:$0xff]   ;;  %v1654_v16 = vld [vmem:[%s2022_s4 + $0x28] ss:$16 sps:$4 sm:$0xff]  }
  0x84   : > { %v575_v22 = vld [vmem:[#allocation2 + $0x8] sm:$0xff]  ;;  %v576_v26 = vld [vmem:[#allocation2 + $0x10] sm:$0xff]  ;;  %v577_v31 = vld [vmem:[#allocation2 + $0x18] sm:$0xff] }
  0x85   : > { %1027 = vmatpush1.bf16.msra.mxu1 %v1587_v35 }
  0x86   : > { %1080 = vmatpush1.bf16.msra.mxu0 %v1588_v36  ;;  %1028 = vmatprep.subr.bf16.mxu1 %v1589_v37 }
  0x87   : > { %1081 = vmatprep.subr.bf16.mxu0 %v1591_v38  ;;  %v578_v38 = vld [vmem:[#allocation2 + $0x20] sm:$0xff] }
  0x89   : > { %1029 = vmatpush1.bf16.msra.mxu1 %v1593_v39 }
  0x8a   : > { %1082 = vmatpush1.bf16.msra.mxu0 %v1594_v40  ;;  %1030 = vmatprep.subr.bf16.mxu1 %v1595_v41 }
  0x8b   : > { %1083 = vmatprep.subr.bf16.mxu0 %v1597_v42  ;;  %v579_v42 = vld [vmem:[#allocation2 + $0x28] sm:$0xff] }
  0x8d   : > { %1031 = vmatpush1.bf16.msra.mxu1 %v1599_v43 }
  0x8e   : > { %1084 = vmatpush1.bf16.msra.mxu0 %v1600_v44  ;;  %1032 = vmatprep.subr.bf16.mxu1 %v1601_v45 }
  0x8f   : > { %1085 = vmatprep.subr.bf16.mxu0 %v1603_v46  ;;  %v580_v46 = vld [vmem:[#allocation2 + $0x30] sm:$0xff] }
  0x91   : > { %1033 = vmatpush1.bf16.msra.mxu1 %v1605_v47 }
  0x92   : > { %1086 = vmatpush1.bf16.msra.mxu0 %v1606_v48  ;;  %1034 = vmatprep.subr.bf16.mxu1 %v1607_v49 }
  0x93   : > { %1087 = vmatprep.subr.bf16.mxu0 %v1609_v50 }
  0x95   : > { %1035 = vmatpush1.bf16.msra.mxu1 %v1611_v51  ;;  %v581_v51 = vld [vmem:[#allocation2 + $0x38] sm:$0xff] }
  0x96   : > { %1088 = vmatpush1.bf16.msra.mxu0 %v1612_v52  ;;  %1036 = vmatprep.subr.bf16.mxu1 %v1613_v53 }
  0x97   : > { %1089 = vmatprep.subr.bf16.mxu0 %v1615_v54 }
  0x99   : > { %1037 = vmatpush1.bf16.msra.mxu1 %v1617_v55 }
  0x9a   : > { %1090 = vmatpush1.bf16.msra.mxu0 %v1618_v56  ;;  %1038 = vmatprep.subr.bf16.mxu1 %v1619_v57  ;;  %v1150_v57 = vlaneseq (!%p1441_p5) }
  0x9b   : > { %1091 = vmatprep.subr.bf16.mxu0 %v1621_v59  ;;  %v1148_v59 = vld [vmem:[%s558_s29] sm:$0x3] (!%p1441_p5) }
  0x9c   : > { %v1151_v58 = vshrl.u32 (!%p1441_p5), %v1150_v57, 7 }
  0x9d   : > { %1039 = vmatpush1.bf16.msra.mxu1 %v1623_v61 }
  0x9e   : > { %1092 = vmatpush1.bf16.msra.mxu0 %v1624_v62  ;;  %1040 = vmatprep.subr.bf16.mxu1 %v1625_v63  ;;  %v1152_v61 = vsub.s32 (!%p1441_p5), 0, %v1151_v58  ;;  %v1156_v63 = vsub.s32 (!%p1441_p5), 1, %v1151_v58 }
  0x9f   : > { %1093 = vmatprep.subr.bf16.mxu0 %v1627_v0 }
  0xa1   : > { %1041 = vmatpush1.bf16.msra.mxu1 %v1629_v1 }
  0xa2   : > { %1094 = vmatpush1.bf16.msra.mxu0 %v1630_v2  ;;  %1042 = vmatprep.subr.bf16.mxu1 %v1631_v3  ;;  %v1153_v3 = vrot.slane (!%p1441_p5), %v1148_v59, %v1152_v61 }
  0xa3   : > { %1095 = vmatprep.subr.bf16.mxu0 %v1633_v4  ;;  %v1157_v4 = vrot.slane (!%p1441_p5), %v1148_v59, %v1156_v63 }
  0xa5   : > { %1043 = vmatpush1.bf16.msra.mxu1 %v1635_v5 }
  0xa6   : > { %1096 = vmatpush1.bf16.msra.mxu0 %v1636_v6  ;;  %1044 = vmatprep.subr.bf16.mxu1 %v1637_v7 }
  0xa7   : > { %1097 = vmatprep.subr.bf16.mxu0 %v1639_v8 }
  0xa9   : > { %1045 = vmatpush1.bf16.msra.mxu1 %v1641_v9 }
  0xaa   : > { %1098 = vmatpush1.bf16.msra.mxu0 %v1642_v10 }
  0xac   : > { %1047 = vmatmul.mubr.bf16.vlgmr.msra.gmra.mrb[0].mxu1 %v1643_v11 }
  0xad   : > { %1100 = vmatmul.mubr.bf16.vlgmr.msra.gmra.mrb[0].mxu0 %v1646_v12  ;;  %1056 = vmatprep.mubr.bf16.mxu1 %v1649_v13 }
  0xae   : > { %1109 = vmatprep.mubr.bf16.mxu0 %v1651_v14 }
  0xb4   : > { %1057 = vmatmul.mubr.bf16.gmra.mrb[4].mxu1 %v1653_v15 }
  0xb5   : > { %1110 = vmatmul.mubr.bf16.gmra.mrb[4].mxu0 %v1654_v16 }
 0x17f   : > { %v1048_v17 = vpop.f32.mrb[0].mxu1 }
 0x180   : > { %v1101_v19 = vpop.f32.mrb[0].mxu0  ;;  %v1050_v21 = vpop.f32.mrb[1].mxu1 }
 0x181   : > { %v1102_v20 = vadd.f32 %v1101_v19, %v1048_v17  ;;  %v1103_v23 = vpop.f32.mrb[1].mxu0  ;;  %v1052_v25 = vpop.f32.mrb[2].mxu1 }
 0x182   : > { %v1104_v24 = vadd.f32 %v1103_v23, %v1050_v21  ;;  %v1105_v27 = vpop.f32.mrb[2].mxu0  ;;  %v1054_v30 = vpop.f32.mrb[3].mxu1 }
 0x183   : > { %v1120_v28 = vadd.f32 %v1102_v20, %v574_v18  ;;  %v1106_v29 = vadd.f32 %v1105_v27, %v1052_v25  ;;  %v1107_v32 = vpop.f32.mrb[3].mxu0 }
 0x184   : > { %v1121_v33 = vadd.f32 %v1104_v24, %v575_v22  ;;  %v1108_v34 = vadd.f32 %v1107_v32, %v1054_v30 }
 0x185   : > { %1128 = vst [vmem:[#allocation2] sm:$0xff] %v1120_v28  ;;  %v1122_v35 = vadd.f32 %v1106_v29, %v576_v26 }
 0x186   : > { %1129 = vst [vmem:[#allocation2 + $0x8] sm:$0xff] %v1121_v33  ;;  %v1123_v36 = vadd.f32 %v1108_v34, %v577_v31 }
 0x187   : > { %1130 = vst [vmem:[#allocation2 + $0x10] sm:$0xff] %v1122_v35  ;;  %v1058_v37 = vpop.f32.mrb[4].mxu1 }
 0x188   : > { %1131 = vst [vmem:[#allocation2 + $0x18] sm:$0xff] %v1123_v36  ;;  %v1111_v39 = vpop.f32.mrb[4].mxu0  ;;  %v1060_v41 = vpop.f32.mrb[5].mxu1 }
 0x189   : > { %v1112_v40 = vadd.f32 %v1111_v39, %v1058_v37  ;;  %v1113_v43 = vpop.f32.mrb[5].mxu0  ;;  %v1062_v45 = vpop.f32.mrb[6].mxu1 }
 0x18a   : > { %v1114_v44 = vadd.f32 %v1113_v43, %v1060_v41  ;;  %v1115_v47 = vpop.f32.mrb[6].mxu0  ;;  %v1064_v50 = vpop.f32.mrb[7].mxu1  ;;  %1139 = sbr.rel (%p1441_p5) target bundleno = 414 (0x19e), region = 101 }
 0x18b   : > { %v1124_v48 = vadd.f32 %v1112_v40, %v578_v38  ;;  %v1116_v49 = vadd.f32 %v1115_v47, %v1062_v45  ;;  %v1117_v52 = vpop.f32.mrb[7].mxu0 }
 0x18c   : > { %v1125_v53 = vadd.f32 %v1114_v44, %v579_v42  ;;  %v1118_v54 = vadd.f32 %v1117_v52, %v1064_v50  ;;  %v1140_v60 = vld [vmem:[#allocation2] sm:$0xff] (!%p1441_p5) }
 0x18d   : > { %1132 = vst [vmem:[#allocation2 + $0x20] sm:$0xff] %v1124_v48  ;;  %v1126_v55 = vadd.f32 %v1116_v49, %v580_v46  ;;  %v1141_v62 = vld [vmem:[#allocation2 + $0x8] sm:$0xff] (!%p1441_p5)  ;;  %v1160_v8 = vadd.f32 (!%p1441_p5), %v1153_v3, %v1140_v60 }
 0x18e   : > { %1133 = vst [vmem:[#allocation2 + $0x28] sm:$0xff] %v1125_v53  ;;  %v1127_v56 = vadd.f32 %v1118_v54, %v581_v51  ;;  %v1142_v0 = vld [vmem:[#allocation2 + $0x10] sm:$0xff] (!%p1441_p5)  ;;  %v1161_v9 = vadd.f32 (!%p1441_p5), %v1157_v4, %v1141_v62 }
 0x18f   : > { %1134 = vst [vmem:[#allocation2 + $0x30] sm:$0xff] %v1126_v55  ;;  %v1143_v1 = vld [vmem:[#allocation2 + $0x18] sm:$0xff] (!%p1441_p5)  ;;  %v1162_v10 = vadd.f32 (!%p1441_p5), %v1153_v3, %v1142_v0  ;;  %vm1168_vm0 = vcmp.ge.f32.partialorder (!%p1441_p5), %v1160_v8, 0.0  ;;  %v1176_v16 = vmul.f32 (!%p1441_p5), 0.1, %v1160_v8 }
 0x190   : > { %1135 = vst [vmem:[#allocation2 + $0x38] sm:$0xff] %v1127_v56  ;;  %v1163_v11 = vadd.f32 (!%p1441_p5), %v1157_v4, %v1143_v1  ;;  %vm1169_vm1 = vcmp.ge.f32.partialorder (!%p1441_p5), %v1161_v9, 0.0  ;;  %v1177_v17 = vmul.f32 (!%p1441_p5), 0.1, %v1161_v9 }
 0x191   : > { %vm1170_vm2 = vcmp.ge.f32.partialorder %v1162_v10, 0.0  ;;  %v1178_v18 = vmul.f32 0.1, %v1162_v10  ;;  %v1184_v20 = vsel %vm1168_vm0, %v1160_v8, %v1176_v16 }
 0x192   : > { %vm1171_vm3 = vcmp.ge.f32.partialorder %v1163_v11, 0.0  ;;  %v1179_v19 = vmul.f32 0.1, %v1163_v11  ;;  %v1185_v21 = vsel %vm1169_vm1, %v1161_v9, %v1177_v17  ;;  %1192 = vst [vmem:[%s2026_s1] sm:$0xff] %v1184_v20 }
 0x193   : > { %1193 = vst [vmem:[%s2026_s1 + $0x8] sm:$0xff] %v1185_v21  ;;  %v1186_v23 = vsel %vm1170_vm2, %v1162_v10, %v1178_v18 }
 0x194   : > { %v1144_v2 = vld [vmem:[#allocation2 + $0x20] sm:$0xff]  ;;  %v1187_v24 = vsel %vm1171_vm3, %v1163_v11, %v1179_v19  ;;  %1194 = vst [vmem:[%s2026_s1 + $0x10] sm:$0xff] %v1186_v23 }
 0x195   : > { %v1145_v5 = vld [vmem:[#allocation2 + $0x28] sm:$0xff]  ;;  %v1164_v12 = vadd.f32 %v1153_v3, %v1144_v2  ;;  %1195 = vst [vmem:[%s2026_s1 + $0x18] sm:$0xff] %v1187_v24 }
 0x196   : > { %v1146_v6 = vld [vmem:[#allocation2 + $0x30] sm:$0xff]  ;;  %v1165_v13 = vadd.f32 %v1157_v4, %v1145_v5 }
 0x197   : > { %v1147_v7 = vld [vmem:[#allocation2 + $0x38] sm:$0xff]  ;;  %v1166_v14 = vadd.f32 %v1153_v3, %v1146_v6  ;;  %vm1172_vm4 = vcmp.ge.f32.partialorder %v1164_v12, 0.0  ;;  %v1180_v22 = vmul.f32 0.1, %v1164_v12 }
 0x198   : > { %v1167_v15 = vadd.f32 %v1157_v4, %v1147_v7  ;;  %vm1173_vm5 = vcmp.ge.f32.partialorder %v1165_v13, 0.0  ;;  %v1181_v25 = vmul.f32 0.1, %v1165_v13 }
 0x199   : > { %v1188_v26 = vsel %vm1172_vm4, %v1164_v12, %v1180_v22  ;;  %vm1174_vm6 = vcmp.ge.f32.partialorder %v1166_v14, 0.0  ;;  %v1182_v27 = vmul.f32 0.1, %v1166_v14 }
 0x19a   : > { %vm1175_vm7 = vcmp.ge.f32.partialorder %v1167_v15, 0.0  ;;  %1196 = vst [vmem:[%s2026_s1 + $0x20] sm:$0xff] %v1188_v26  ;;  %v1189_v28 = vsel %vm1173_vm5, %v1165_v13, %v1181_v25  ;;  %v1183_v29 = vmul.f32 0.1, %v1167_v15 }
 0x19b   : > { %1197 = vst [vmem:[%s2026_s1 + $0x28] sm:$0xff] %v1189_v28  ;;  %v1190_v30 = vsel %vm1174_vm6, %v1166_v14, %v1182_v27 }
 0x19c   : > { %1198 = vst [vmem:[%s2026_s1 + $0x30] sm:$0xff] %v1190_v30  ;;  %v1191_v31 = vsel %vm1175_vm7, %v1167_v15, %v1183_v29 }
 0x19d   : > { %1199 = vst [vmem:[%s2026_s1 + $0x38] sm:$0xff] %v1191_v31 }
 0x19e PF: > { %1206 = sbr.rel (!%p1858_p12) target bundleno = 422 (0x1a6), region = 105  ;;  %s1449_s16 = sshll.u32 (%p1858_p12), %s1729_s19, 4  ;;  %v1225_v32 = vld [vmem:[%s2026_s1] sm:$0xff] (%p1858_p12)  ;;  %v1227_v33 = vld [vmem:[%s2026_s1 + $0x8] sm:$0xff] (%p1858_p12)  ;;  %v1229_v34 = vld [vmem:[%s2026_s1 + $0x10] sm:$0xff] (%p1858_p12) }
 0x19f   : > { %s1212_s5 = scalar_lea.vmem (%p1858_p12), %s2165_s3, %s1449_s16  ;;  %v1231_v35 = vld [vmem:[%s2026_s1 + $0x18] sm:$0xff] (%p1858_p12) }
 0x1a0   : > { %1226 = vst [vmem:[%s1212_s5] sm:$0xff] (%p1858_p12), %v1225_v32  ;;  %1228 = vst [vmem:[%s1212_s5 + $0x8] sm:$0xff] (%p1858_p12), %v1227_v33 }
 0x1a1   : > { %v1233_v36 = vld [vmem:[%s2026_s1 + $0x20] sm:$0xff] (%p1858_p12)  ;;  %1230 = vst [vmem:[%s1212_s5 + $0x20] sm:$0xff] (%p1858_p12), %v1229_v34  ;;  %1232 = vst [vmem:[%s1212_s5 + $0x28] sm:$0xff] (%p1858_p12), %v1231_v35 }
 0x1a2   : > { %v1235_v37 = vld [vmem:[%s2026_s1 + $0x28] sm:$0xff] (%p1858_p12)  ;;  %1234 = vst [vmem:[%s1212_s5 + $0x40] sm:$0xff] (%p1858_p12), %v1233_v36 }
 0x1a3   : > { %1236 = vst [vmem:[%s1212_s5 + $0x48] sm:$0xff] (%p1858_p12), %v1235_v37  ;;  %v1237_v38 = vld [vmem:[%s2026_s1 + $0x30] sm:$0xff] (%p1858_p12) }
 0x1a4   : > { %v1239_v39 = vld [vmem:[%s2026_s1 + $0x38] sm:$0xff] (%p1858_p12)  ;;  %1238 = vst [vmem:[%s1212_s5 + $0x60] sm:$0xff] (%p1858_p12), %v1237_v38 }
 0x1a5   : > { %1240 = vst [vmem:[%s1212_s5 + $0x68] sm:$0xff] %v1239_v39 }
 0x1a6 PF: > { %s13_s22 = sadd.s32 1, %s1741_s22   ;;  %s2175_s10 = sld [smem:[#allocation6_spill]] }
 0x1a7   : > { %p10_p6 = scmp.ge.s32.totalorder %s13_s22, 18   ;;  %s2176_s12 = smov %s1705_s13 }
 0x1a8   : > { %s2177_s13 = smov %s1856_s9  ;;  %s2178_s14 = smov %s1713_s15 }
 0x1a9   : > { %s2179_s15 = smov %s1853_s8  ;;  %s2180_s16 = smov %s1721_s17 }
 0x1aa   : > { %s2181_s17 = smov %s1839_s30  ;;  %s2182_s18 = smov %s1733_s20 }
 0x1ab   : > { %s2183_s19 = smov %s1737_s21  ;;  %s2184_s20 = smov %s2187_s24 }
 0x1ac   : > { %s2185_s21 = smov %s2175_s10  ;;  %12 = sbr.rel (!%p10_p6) target bundleno = 9 (0x9), region = 170 }

// kernel: _forward_arrays.11
= control target key start
LH: loop header
LB: loop body
LE: loop exit
PB: predicated region body
PF: predicated region fallthrough
CT: control target
= control target key end

     0   :  { %s944_s12 = smov 0   ;;  %s946_s13 = smov 0   ;;  %s1031_s0 = inlined_call_operand.vmem [shape: bf16[2,8192], index: 0, kind: input, shape index: {}]   ;;  %s1032_s1 = inlined_call_operand.vmem [shape: bf16[8192,6], index: 1, kind: input, shape index: {}]   ;;  %s1033_s2 = inlined_call_operand.vmem [shape: f32[1,6], index: 2, kind: input, shape index: {}]   ;;  %s1034_s3 = inlined_call_operand.vmem [shape: f32[2,6], index: 3, kind: output, shape index: {}]  }
   0x1   :  { %s948_s14 = smov 0  }
   0x2 LB: > { %s25_s15 = sadd.s32 1, %s916_s13  ;;  %p753_p0 = scmp.ge.s32.totalorder %s920_s14, 1  ;;  %s920_s14 = sphi %s948_s14, %s13_s14   ;;  %s916_s13 = sphi %s946_s13, %s1036_s13   ;;  %s912_s12 = sphi %s944_s12, %s1035_s12  }
   0x3   : > { %p26_p1 = scmp.ge.s32.totalorder %s25_s15, 16  ;;  %p188_p2 = scmp.lt.s32.totalorder %s920_s14, 17 }
   0x5   : > { %s1038_s15 = smov (%p26_p1, %s25_s15), 0  ;;  %p189_p3 = pnand %p753_p0, %p188_p2 }
   0x6   : > { %s754_s16 = sshll.u32 (!%p189_p3), %s912_s12, 2  ;;  %s755_s17 = sshll.u32 (!%p189_p3), %s912_s12, 6 }
   0x7   : > { %192 = sbr.rel (%p189_p3) target bundleno = 288 (0x120), region = 32  ;;  %p231_p4 = scmp.lt.s32.totalorder (!%p189_p3), %s754_s16, 63 }
   0x8   : > { %p238_p5 = scmp.lt.s32.totalorder (!%p189_p3), %s755_s17, 1023  ;;  %p757_p6 = scmp.ne.s32.totalorder (!%p189_p3), %s912_s12, 0 }
   0xe   : > { %s1040_s16 = smov (!%p231_p4, %s754_s16), 63  ;;  %s1042_s17 = smov (!%p238_p5, %s755_s17), 1023 }
   0xf   : > { %s235_s20 = scalar_lea.vmem %s1031_s0, %s1040_s16  ;;  %s756_s21 = sshll.u32 %s1042_s17, 2  ;;  %vm261_vm0 = vcmask (!%p757_p6), 41984   ;;  %v922_v0 = vmov (!%p757_p6), 0.0  }
  0x10   : > { %s975_s24 = scalar_lea.vmem %s1032_s1, %s756_s21  ;;  %260 = sbr.rel (%p757_p6) target bundleno = 23 (0x17), region = 36  ;;  %262 = vst.msk [vmem:[#allocation2] sm:$0x3] (!%p757_p6), %vm261_vm0, %v922_v0 }
  0x17 PF: > { %v866_v1 = vld [vmem:[%s975_s24 + $0x40] sm:$0xff]   ;;  %v870_v5 = vld [vmem:[%s975_s24 + $0x48] sm:$0xff]   ;;  %v874_v9 = vld [vmem:[%s975_s24 + $0x50] sm:$0xff]   ;;  %v341_v31 = vlaneseq  ;;  %v923_v35 = vmov 1966171168   ;;  %vm631_vm1 = vcmask 41984  }
  0x18   : > { %v867_v2 = vld [vmem:[%s975_s24 + $0xc0] sm:$0xff]   ;;  %796 = vmatprep.subr.bf16.mxu0 %v866_v1  ;;  %v871_v6 = vld [vmem:[%s975_s24 + $0xc8] sm:$0xff]   ;;  %v875_v10 = vld [vmem:[%s975_s24 + $0xd0] sm:$0xff]   ;;  %v339_v36 = vunpack.c.l.s4 %v923_v35  ;;  %p791_p7 = scmp.ne.s32.totalorder %s912_s12, 15 }
  0x19   : > { %v868_v3 = vld [vmem:[%s975_s24] sm:$0xff]   ;;  %818 = vmatprep.subr.bf16.mxu1 %v867_v2  ;;  %v872_v7 = vld [vmem:[%s975_s24 + $0x8] sm:$0xff]   ;;  %v876_v11 = vld [vmem:[%s975_s24 + $0x10] sm:$0xff]   ;;  %v342_v37 = vshrl.u32 %v341_v31, 7 }
  0x1a   : > { %v869_v4 = vld [vmem:[%s975_s24 + $0x80] sm:$0xff]   ;;  %797 = vmatpush3.bf16.msra.mxu0 %v868_v3  ;;  %v873_v8 = vld [vmem:[%s975_s24 + $0x88] sm:$0xff]   ;;  %v877_v12 = vld [vmem:[%s975_s24 + $0x90] sm:$0xff]   ;;  %v340_v39 = vunpack.c.0.s8 %v339_v36 }
  0x1b   : > { %819 = vmatpush3.bf16.msra.mxu1 %v869_v4  ;;  %798 = vmatprep.subr.bf16.mxu0 %v870_v5  ;;  %v878_v13 = vld [vmem:[%s975_s24 + $0x58] sm:$0xff]   ;;  %v882_v17 = vld [vmem:[%s975_s24 + $0x60] sm:$0xff]   ;;  %v886_v21 = vld [vmem:[%s975_s24 + $0x68] sm:$0xff]  }
  0x1c   : > { %820 = vmatprep.subr.bf16.mxu1 %v871_v6  ;;  %v879_v14 = vld [vmem:[%s975_s24 + $0xd8] sm:$0xff]   ;;  %v883_v18 = vld [vmem:[%s975_s24 + $0xe0] sm:$0xff]   ;;  %v887_v22 = vld [vmem:[%s975_s24 + $0xe8] sm:$0xff]   ;;  %v343_v40 = vsub.s32 %v340_v39, %v342_v37 }
  0x1d   : > { %v880_v15 = vld [vmem:[%s975_s24 + $0x18] sm:$0xff]   ;;  %v884_v19 = vld [vmem:[%s975_s24 + $0x20] sm:$0xff]   ;;  %v888_v23 = vld [vmem:[%s975_s24 + $0x28] sm:$0xff]  }
  0x1e   : > { %799 = vmatpush3.bf16.msra.mxu0 %v872_v7  ;;  %v881_v16 = vld [vmem:[%s975_s24 + $0x98] sm:$0xff]   ;;  %v885_v20 = vld [vmem:[%s975_s24 + $0xa0] sm:$0xff]   ;;  %v889_v24 = vld [vmem:[%s975_s24 + $0xa8] sm:$0xff]  }
  0x1f   : > { %821 = vmatpush3.bf16.msra.mxu1 %v873_v8  ;;  %800 = vmatprep.subr.bf16.mxu0 %v874_v9  ;;  %v890_v25 = vld [vmem:[%s975_s24 + $0x70] sm:$0xff]   ;;  %v894_v29 = vld [vmem:[%s975_s24 + $0x78] sm:$0xff]   ;;  %v758_v34 = vld.sshfl [vmem:[%s235_s20] sm:$0x33 pattern:$0x75316420] }
  0x20   : > { %822 = vmatprep.subr.bf16.mxu1 %v875_v10  ;;  %v891_v26 = vld [vmem:[%s975_s24 + $0xf0] sm:$0xff]   ;;  %v895_v30 = vld [vmem:[%s975_s24 + $0xf8] sm:$0xff]   ;;  %v337_v38 = vcombine.high %v758_v34, %v758_v34  ;;  %v344_v42 = vrot.slane %v758_v34, %v343_v40  ;;  %v263_v54 = vld [vmem:[#allocation2] sm:$0x3] }
  0x21   : > { %v892_v27 = vld [vmem:[%s975_s24 + $0x30] sm:$0xff]   ;;  %v896_v32 = vld [vmem:[%s975_s24 + $0x38] sm:$0xff]   ;;  %v792_v59 = vld [vmem:[%s1033_s2] ss:$0 sm:$0xff] (!%p791_p7) }
  0x22   : > { %801 = vmatpush3.bf16.msra.mxu0 %v876_v11  ;;  %v893_v28 = vld [vmem:[%s975_s24 + $0xb0] sm:$0xff]   ;;  %v897_v33 = vld [vmem:[%s975_s24 + $0xb8] sm:$0xff]   ;;  %v351_v41 = vrot.slane %v337_v38, %v343_v40  ;;  %v352_v44 = vcombine.high %v344_v42, %v344_v42 }
  0x23   : > { %823 = vmatpush3.bf16.msra.mxu1 %v877_v12  ;;  %802 = vmatprep.subr.bf16.mxu0 %v878_v13 }
  0x24   : > { %824 = vmatprep.subr.bf16.mxu1 %v879_v14  ;;  %582 = vmatprep.mubr.bf16.mxu0 %v351_v41  ;;  %v353_v43 = vcombine.high %v351_v41, %v351_v41 }
  0x26   : > { %803 = vmatpush3.bf16.msra.mxu0 %v880_v15  ;;  %622 = vmatprep.mubr.bf16.mxu1 %v353_v43 }
  0x27   : > { %825 = vmatpush3.bf16.msra.mxu1 %v881_v16  ;;  %804 = vmatprep.subr.bf16.mxu0 %v882_v17 }
  0x28   : > { %826 = vmatprep.subr.bf16.mxu1 %v883_v18 }
  0x2a   : > { %805 = vmatpush3.bf16.msra.mxu0 %v884_v19 }
  0x2b   : > { %827 = vmatpush3.bf16.msra.mxu1 %v885_v20  ;;  %806 = vmatprep.subr.bf16.mxu0 %v886_v21 }
  0x2c   : > { %828 = vmatprep.subr.bf16.mxu1 %v887_v22 }
  0x2e   : > { %807 = vmatpush3.bf16.msra.mxu0 %v888_v23 }
  0x2f   : > { %829 = vmatpush3.bf16.msra.mxu1 %v889_v24  ;;  %808 = vmatprep.subr.bf16.mxu0 %v890_v25 }
  0x30   : > { %830 = vmatprep.subr.bf16.mxu1 %v891_v26 }
  0x32   : > { %809 = vmatpush3.bf16.msra.mxu0 %v892_v27 }
  0x33   : > { %831 = vmatpush3.bf16.msra.mxu1 %v893_v28  ;;  %810 = vmatprep.subr.bf16.mxu0 %v894_v29 }
  0x34   : > { %832 = vmatprep.subr.bf16.mxu1 %v895_v30 }
  0x36   : > { %811 = vmatpush3.bf16.msra.mxu0 %v896_v32 }
  0x37   : > { %833 = vmatpush3.bf16.msra.mxu1 %v897_v33 }
  0x39   : > { %583 = vmatmul.mubr.bf16.vlgmr.msra.gmra.mrb[0].mxu0 %v344_v42 }
  0x3a   : > { %623 = vmatmul.mubr.bf16.vlgmr.msra.gmra.mrb[0].mxu1 %v352_v44 }
 0x10c   : > { %v812_v45 = vpop.f32.mrb[0].mxu0 }
 0x10d   : > { %v813_v46 = vpop.f32.mrb[1].mxu0  ;;  %v834_v47 = vpop.f32.mrb[0].mxu1 }
 0x10e   : > { %v814_v48 = vadd.f32 %v813_v46, %v812_v45  ;;  %v815_v49 = vpop.f32.mrb[2].mxu0  ;;  %v835_v50 = vpop.f32.mrb[1].mxu1 }
 0x10f   : > { %v816_v51 = vpop.f32.mrb[3].mxu0  ;;  %v836_v52 = vadd.f32 %v835_v50, %v834_v47  ;;  %v837_v53 = vpop.f32.mrb[2].mxu1  ;;  %636 = sbr.rel (%p791_p7) target bundleno = 288 (0x120), region = 40 }
 0x110   : > { %v838_v55 = vpop.f32.mrb[3].mxu1 }
 0x111   : > { %v625_v56 = vadd.f32 %v836_v52, %v814_v48 }
 0x113   : > { %v630_v57 = vadd.f32 %v625_v56, %v263_v54 }
 0x115   : > { %632 = vst.msk [vmem:[#allocation2] sm:$0x3] %vm631_vm1, %v630_v57 }
 0x11c   : > { %v637_v58 = vld [vmem:[#allocation2] sm:$0x3] }
 0x11d   : > { %v645_v60 = vadd.f32 %v792_v59, %v637_v58 }
 0x11f   : > { %646 = vst.msk [vmem:[%s1034_s3] sm:$0x3] %vm631_vm1, %v645_v60 }
 0x120 PF: > { %s13_s14 = sadd.s32 1, %s920_s14   ;;  %s1035_s12 = smov %s916_s13 }
 0x121   : > { %p10_p8 = scmp.ge.s32.totalorder %s13_s14, 18   ;;  %s1036_s13 = smov %s1038_s15 }
 0x123   :  { %12 = sbr.rel (!%p10_p8) target bundleno = 2 (0x2), region = 76 }

</bundles_post_ra>
